<compile_context>
chip_gen: v7x
topology: tpu7x:2x2x1
jax: 0.10.0
libtpu: 0.0.40
codegen_flags: <defaults>
</compile_context>

<pallas_src>
from functools import partial

import numpy as np

import jax
import jax.numpy as jnp
from jax.experimental import pallas as pl
from jax.experimental.pallas import tpu as pltpu

_TILE_M = 512  # rows per grid step for the M axis


def _ceil_to(x, m):
    return (x + m - 1) // m * m


def _round_m(M):
    """Pad M to a friendly extent; return (padded_M, tile_m, num_tiles)."""
    Mp = _ceil_to(M, 16)
    if Mp <= _TILE_M:
        return Mp, Mp, 1
    Mp = _ceil_to(M, _TILE_M)
    return Mp, _TILE_M, Mp // _TILE_M


# ---------------------------------------------------------------------------
# Fused ConvT-matmul + BatchNorm (batch stats) + ReLU  (single pallas_call)
# ---------------------------------------------------------------------------
def _make_block_kernel(nm, tm, cp, groups, inv_count, eps):
    """Kernel: y = ReLU(BN(A @ B)).

    Lanes of the matmul output are ordered (group, channel) where `group`
    runs over the sub-pixel positions; BN stats reduce over rows AND groups.
    Grid axis m tiles the rows; the f32 pre-activation stays resident in a
    VMEM scratch so the affine can be applied after stats are complete,
    without any HBM round trip.
    """

    def kernel(a_ref, b_ref, g_ref, bt_ref, o_ref, acc_ref, sum_ref, sq_ref):
        m = pl.program_id(0)

        @pl.when(m == 0)
        def _init():
            sum_ref[...] = jnp.zeros_like(sum_ref)
            sq_ref[...] = jnp.zeros_like(sq_ref)

        # MXU matmul, f32 accumulation; stash the f32 tile in resident scratch.
        acc = jnp.dot(a_ref[...], b_ref[...], preferred_element_type=jnp.float32)
        acc_ref[m] = acc
        # Per-lane partial BN statistics (separate rows; no concat / no masked
        # HBM store -- these live in VMEM scratch).
        sum_ref[...] += jnp.sum(acc, axis=0, keepdims=True)
        sq_ref[...] += jnp.sum(acc * acc, axis=0, keepdims=True)

        @pl.when(m == nm - 1)
        def _finalize():
            # Group-reduce per-lane stats (lane order = (group, channel)).
            s1 = sum_ref[:, 0:cp]
            s2 = sq_ref[:, 0:cp]
            for g in range(1, groups):
                s1 = s1 + sum_ref[:, g * cp:(g + 1) * cp]
                s2 = s2 + sq_ref[:, g * cp:(g + 1) * cp]
            mean = s1 * inv_count
            var = jnp.maximum(s2 * inv_count - mean * mean, 0.0)
            scale = g_ref[...] * jax.lax.rsqrt(var + eps)
            shift = bt_ref[...] - mean * scale
            # Broadcast per-channel scale/shift back to all (group, channel) lanes.
            scale_full = jnp.concatenate([scale] * groups, axis=1)
            shift_full = jnp.concatenate([shift] * groups, axis=1)
            # Affine + ReLU applied to the f32 accumulator, stored once (lane-dense).
            for t in range(nm):
                y = acc_ref[t]
                o_ref[t * tm:(t + 1) * tm, :] = jnp.maximum(
                    y * scale_full + shift_full, 0.0).astype(o_ref.dtype)

    return kernel


def pallas_convblock(a, B, gamma_row, beta_row, *, groups, count, eps=1e-5):
    """Fused (a @ B) -> BatchNorm2d(batch stats) -> ReLU.

    a: [M, K] activations (rows = N*H*W output "macro" pixels, zero-padded).
    B: [K, Nout] bf16 weights with Nout = groups * cp (cp = padded channels).
    gamma_row / beta_row: [1, cp] f32.
    Returns [Mp, Nout] bf16 (padded rows / channels included)."""
    M, K = a.shape
    Kb, Nout = B.shape
    assert K == Kb
    cp = gamma_row.shape[-1]
    assert Nout == groups * cp and Nout % 128 == 0

    Mp, tm, nm = _round_m(M)
    a = a.astype(jnp.bfloat16)
    if Mp != M:
        a = jnp.pad(a, ((0, Mp - M), (0, 0)))  # zero rows: contribute 0 to stats

    kernel = _make_block_kernel(nm=nm, tm=tm, cp=cp, groups=groups,
                                inv_count=1.0 / float(count), eps=eps)
    return pl.pallas_call(
        kernel,
        out_shape=jax.ShapeDtypeStruct((Mp, Nout), jnp.bfloat16),
        grid=(nm,),
        in_specs=[
            pl.BlockSpec((tm, K), lambda m: (m, 0)),      # A tile, streamed
            pl.BlockSpec((K, Nout), lambda m: (0, 0)),    # B, resident
            pl.BlockSpec((1, cp), lambda m: (0, 0)),      # gamma
            pl.BlockSpec((1, cp), lambda m: (0, 0)),      # beta
        ],
        # Output stays VMEM-resident across the (reduction-carrying) M axis and
        # is written to HBM exactly once at the end.
        out_specs=pl.BlockSpec((Mp, Nout), lambda m: (0, 0)),
        scratch_shapes=[
            pltpu.VMEM((nm, tm, Nout), jnp.float32),      # f32 pre-activation
            pltpu.VMEM((1, Nout), jnp.float32),           # sum
            pltpu.VMEM((1, Nout), jnp.float32),           # sum of squares
        ],
        compiler_params=pltpu.CompilerParams(dimension_semantics=("arbitrary",)),
    )(a, B, gamma_row, beta_row)


# ---------------------------------------------------------------------------
# Final layer: matmul + bias + tanh (bf16 output, lane-dense)
# ---------------------------------------------------------------------------
def _mm_bias_tanh_kernel(a_ref, b_ref, bias_ref, o_ref):
    acc = jnp.dot(a_ref[...], b_ref[...], preferred_element_type=jnp.float32)
    o_ref[...] = jnp.tanh(acc + bias_ref[...]).astype(o_ref.dtype)


def pallas_matmul_bias_tanh(a, B, bias_row):
    M, K = a.shape
    _, Nout = B.shape
    Mp, tm, nm = _round_m(M)
    a = a.astype(jnp.bfloat16)
    if Mp != M:
        a = jnp.pad(a, ((0, Mp - M), (0, 0)))
    return pl.pallas_call(
        _mm_bias_tanh_kernel,
        out_shape=jax.ShapeDtypeStruct((Mp, Nout), jnp.bfloat16),
        grid=(nm,),
        in_specs=[pl.BlockSpec((tm, K), lambda m: (m, 0)),
                  pl.BlockSpec((K, Nout), lambda m: (0, 0)),
                  pl.BlockSpec((1, Nout), lambda m: (0, 0))],
        out_specs=pl.BlockSpec((tm, Nout), lambda m: (m, 0)),
        compiler_params=pltpu.CompilerParams(dimension_semantics=("parallel",)),
    )(a, B, bias_row)


# ---------------------------------------------------------------------------
# XLA-side data movement (no compute): im2col gather and pixel-shuffle
# ---------------------------------------------------------------------------
def _im2col_3x3(x):
    """[N,H,W,C] -> [N*H*W, 9*C] 3x3 patches (zero padded), order (dh,dw,c)."""
    N, H, W, C = x.shape
    xp = jnp.pad(x, ((0, 0), (1, 1), (1, 1), (0, 0)))
    cols = [xp[:, dh:dh + H, dw:dw + W, :] for dh in range(3) for dw in range(3)]
    return jnp.concatenate(cols, axis=-1).reshape(N * H * W, 9 * C)


def _pixel_shuffle_2x(y, N, H, W):
    """[N*H*W, 4*C] (lanes ordered (ph,pw,c)) -> [N, 2H, 2W, C]."""
    C = y.shape[1] // 4
    y = y.reshape(N, H, W, 2, 2, C)
    y = jnp.transpose(y, (0, 1, 3, 2, 4, 5))
    return y.reshape(N, 2 * H, 2 * W, C)


# ---------------------------------------------------------------------------
# Weight preparation (done ONCE at init, outside the per-call path)
# ---------------------------------------------------------------------------
def _prep_convT_k4s2p1(w, cin_pad=None, cout_pad=None):
    """PyTorch ConvTranspose2d weight [Cin,Cout,4,4] (stride 2, pad 1) ->
    matmul weight [9*Cin_pad, 4*Cout_pad]: rows ordered (dh,dw,ci) matching
    _im2col_3x3, cols ordered (ph,pw,co) matching _pixel_shuffle_2x.
    Padded input/output channels map to zero rows/columns."""
    w = np.asarray(w)
    Cin, Cout, KH, KW = w.shape
    CIP = Cin if cin_pad is None else cin_pad
    CP = Cout if cout_pad is None else cout_pad
    B = np.zeros((3, 3, CIP, 2, 2, CP), np.float32)
    for dh in range(3):
        for dw in range(3):
            for ph in range(2):
                for pw in range(2):
                    kh = 3 + ph - 2 * dh
                    kw = 3 + pw - 2 * dw
                    if 0 <= kh < KH and 0 <= kw < KW:
                        B[dh, dw, :Cin, ph, pw, :Cout] = w[:, :, kh, kw]
    return jnp.asarray(B.reshape(9 * CIP, 4 * CP))


def _pad_gamma_beta(cout, cp):
    gamma = jnp.pad(jnp.ones((cout,), jnp.float32), (0, cp - cout),
                    constant_values=1.0)[None, :]
    beta = jnp.zeros((1, cp), jnp.float32)
    return gamma, beta


def init_params(key, channels_noise, channels_img, features_g):
    fg = features_g
    couts = [fg * 16, fg * 8, fg * 4, fg * 2]
    keys = jax.random.split(key, 6)
    params = {}

    # Block 0: ConvT(k4,s1,p0) on 1x1 input -> plain [Cin, 16*Cout_pad] matmul.
    cout0 = couts[0]
    cp0 = _ceil_to(cout0, 8)                         # 16*cp0 % 128 == 0
    w0 = 0.05 * jax.random.normal(keys[0], (channels_noise, cout0, 4, 4), jnp.float32)
    w0t = jnp.transpose(w0, (0, 2, 3, 1))            # [Cin, 4, 4, Cout]
    w0t = jnp.pad(w0t, ((0, 0), (0, 0), (0, 0), (0, cp0 - cout0)))
    params["B0"] = w0t.reshape(channels_noise, 16 * cp0).astype(jnp.bfloat16)
    params["gamma0"], params["beta0"] = _pad_gamma_beta(cout0, cp0)

    # Blocks 1-3: ConvT(k4,s2,p1) -> sub-pixel conv weights, 128-lane padded.
    cp_prev = cp0
    for i in (1, 2, 3):
        cin, cout = couts[i - 1], couts[i]
        cp = _ceil_to(cout, 32)                      # 4*cp % 128 == 0
        w = 0.05 * jax.random.normal(keys[i], (cin, cout, 4, 4), jnp.float32)
        params[f"B{i}"] = _prep_convT_k4s2p1(w, cin_pad=cp_prev,
                                             cout_pad=cp).astype(jnp.bfloat16)
        params[f"gamma{i}"], params[f"beta{i}"] = _pad_gamma_beta(cout, cp)
        cp_prev = cp

    # Final ConvT(k4,s2,p1) with bias; pad Cout so 4*cp4 = 128 lanes.
    cp4 = _ceil_to(channels_img, 32)
    w4 = 0.05 * jax.random.normal(keys[4], (couts[3], channels_img, 4, 4), jnp.float32)
    params["B4"] = _prep_convT_k4s2p1(w4, cin_pad=cp_prev,
                                      cout_pad=cp4).astype(jnp.bfloat16)
    b4 = 0.02 * jax.random.normal(keys[5], (channels_img,), jnp.float32)
    params["bias_row4"] = jnp.tile(jnp.pad(b4, (0, cp4 - channels_img)),
                                   4)[None, :].astype(jnp.float32)
    return params


# ---------------------------------------------------------------------------
# Generator forward
# ---------------------------------------------------------------------------
@partial(jax.jit, static_argnames=("channels_img",))
def generator_forward(x_nchw, params, channels_img):
    N = x_nchw.shape[0]
    x2d = x_nchw.reshape(N, -1).astype(jnp.bfloat16)       # [N, channels_noise]

    # Block 0: ConvT(k4,s1,p0) 1x1 -> 4x4, fused BN + ReLU.
    cp0 = params["gamma0"].shape[-1]
    y = pallas_convblock(x2d, params["B0"], params["gamma0"], params["beta0"],
                         groups=16, count=N * 16)           # [Mp, 16*cp0]
    x = y[:N].reshape(N, 4, 4, cp0)
    H = W = 4

    # Blocks 1-3: ConvT(k4,s2,p1) + BN + ReLU (im2col + single fused kernel +
    # pixel shuffle).  Padded channels stay exactly zero through BN+ReLU.
    for i in (1, 2, 3):
        M = N * H * W
        a = _im2col_3x3(x)                                   # [M, 9*C] bf16
        y = pallas_convblock(a, params[f"B{i}"],
                             params[f"gamma{i}"], params[f"beta{i}"],
                             groups=4, count=M * 4)          # [Mp, 4*cp]
        x = _pixel_shuffle_2x(y[:M], N, H, W)
        H, W = 2 * H, 2 * W

    # Final: ConvT(k4,s2,p1) + bias + tanh fused, bf16 output, dense 128 lanes.
    M = N * H * W
    a = _im2col_3x3(x)
    y = pallas_matmul_bias_tanh(a, params["B4"], params["bias_row4"])
    out = _pixel_shuffle_2x(y[:M], N, H, W)[..., :channels_img]

    # NHWC -> NCHW, cast back to f32 only at the API boundary.
    return jnp.transpose(out, (0, 3, 1, 2)).astype(jnp.float32)


if __name__ == "__main__":
    # Small, module-consistent shapes: noise is (N, channels_noise, 1, 1).
    N = 2
    channels_noise = 32
    channels_img = 3
    features_g = 8

    key = jax.random.PRNGKey(0)
    k_x, k_p = jax.random.split(key)
    x = jax.random.normal(k_x, (N, channels_noise, 1, 1), jnp.float32)
    params = init_params(k_p, channels_noise, channels_img, features_g)

    out = generator_forward(x, params, channels_img=channels_img)
    out = jax.block_until_ready(out)

    assert out.shape == (N, channels_img, 64, 64), out.shape
    assert bool(jnp.all(jnp.isfinite(out)))
    assert bool(jnp.all(jnp.abs(out) <= 1.0))  # tanh range
    print("KERNEL_OK")
</pallas_src>

<mosaic_0001>
module attributes {stable_mosaic.version = 11 : i64} {
  func.func @kernel(%arg0: i32, %arg1: memref<16x32xbf16, #tpu.memory_space<vmem>>, %arg2: memref<32x2048xbf16, #tpu.memory_space<vmem>>, %arg3: memref<1x128xf32, #tpu.memory_space<vmem>>, %arg4: memref<1x128xf32, #tpu.memory_space<vmem>>, %arg5: memref<16x2048xbf16, #tpu.memory_space<vmem>>, %arg6: memref<1x16x2048xf32, #tpu.memory_space<vmem>>, %arg7: memref<1x2048xf32, #tpu.memory_space<vmem>>, %arg8: memref<1x2048xf32, #tpu.memory_space<vmem>>) attributes {dimension_semantics = [#tpu.dimension_semantics<arbitrary>], iteration_bounds = array<i64: 1>, scalar_prefetch = 0 : i64, scratch_operands = 3 : i64, tpu.core_type = #tpu.core_type<tc>, window_params = [{transform_indices = @transform_0, window_bounds = array<i64: 16, 32>}, {pipeline_mode = #tpu.pipeline_mode<synchronous>, transform_indices = @transform_1, window_bounds = array<i64: 32, 2048>}, {pipeline_mode = #tpu.pipeline_mode<synchronous>, transform_indices = @transform_2, window_bounds = array<i64: 1, 128>}, {pipeline_mode = #tpu.pipeline_mode<synchronous>, transform_indices = @transform_3, window_bounds = array<i64: 1, 128>}, {pipeline_mode = #tpu.pipeline_mode<synchronous>, transform_indices = @transform_4, window_bounds = array<i64: 16, 2048>}]} {
    %c0_i32 = arith.constant 0 : i32
    %0 = arith.cmpi eq, %arg0, %c0_i32 : i32
    %1 = arith.extui %0 : i1 to i32
    %c0_i32_0 = arith.constant 0 : i32
    %2 = arith.cmpi ne, %1, %c0_i32_0 : i32
    scf.if %2 {
      %cst_18 = arith.constant 0.000000e+00 : f32
      %24 = vector.broadcast %cst_18 : f32 to vector<1x2048xf32>
      %c0_19 = arith.constant 0 : index
      %c0_20 = arith.constant 0 : index
      %25 = vector.load %arg7[%c0_19, %c0_20] : memref<1x2048xf32, #tpu.memory_space<vmem>>, vector<1x2048xf32>
      tpu.vector_store %arg7[%c0_19, %c0_20], %24 {strides = array<i32>} : memref<1x2048xf32, #tpu.memory_space<vmem>>, vector<1x2048xf32>,
      %cst_21 = arith.constant 0.000000e+00 : f32
      %26 = vector.broadcast %cst_21 : f32 to vector<1x2048xf32>
      %c0_22 = arith.constant 0 : index
      %c0_23 = arith.constant 0 : index
      %27 = vector.load %arg8[%c0_22, %c0_23] : memref<1x2048xf32, #tpu.memory_space<vmem>>, vector<1x2048xf32>
      tpu.vector_store %arg8[%c0_22, %c0_23], %26 {strides = array<i32>} : memref<1x2048xf32, #tpu.memory_space<vmem>>, vector<1x2048xf32>,
    } else {
    }
    %c0 = arith.constant 0 : index
    %c0_1 = arith.constant 0 : index
    %3 = vector.load %arg1[%c0, %c0_1] : memref<16x32xbf16, #tpu.memory_space<vmem>>, vector<16x32xbf16>
    %c0_2 = arith.constant 0 : index
    %c0_3 = arith.constant 0 : index
    %4 = vector.load %arg2[%c0_2, %c0_3] : memref<32x2048xbf16, #tpu.memory_space<vmem>>, vector<32x2048xbf16>
    %cst = arith.constant dense<0.000000e+00> : vector<16x2048xf32>
    %5 = tpu.matmul %3, %4, %cst {dimension_numbers = #tpu.dot_dimension_numbers<[1], [0], [0], [1], [0, 0, 1, 1], [], []>} : vector<16x32xbf16>, vector<32x2048xbf16>, vector<16x2048xf32> -> vector<16x2048xf32>
    %6 = arith.index_cast %arg0 : i32 to index
    %c0_4 = arith.constant 0 : index
    %c0_5 = arith.constant 0 : index
    %7 = vector.load %arg6[%6, %c0_4, %c0_5] : memref<1x16x2048xf32, #tpu.memory_space<vmem>>, vector<1x16x2048xf32>
    %8 = vector.shape_cast %7 : vector<1x16x2048xf32> to vector<16x2048xf32>
    %9 = vector.shape_cast %5 : vector<16x2048xf32> to vector<1x16x2048xf32>
    tpu.vector_store %arg6[%6, %c0_4, %c0_5], %9 {strides = array<i32>} : memref<1x16x2048xf32, #tpu.memory_space<vmem>>, vector<1x16x2048xf32>,
    %c0_6 = arith.constant 0 : index
    %c0_7 = arith.constant 0 : index
    %10 = vector.load %arg7[%c0_6, %c0_7] : memref<1x2048xf32, #tpu.memory_space<vmem>>, vector<1x2048xf32>
    %cst_8 = arith.constant dense<0.000000e+00> : vector<2048xf32>
    %11 = vector.multi_reduction <add>, %5, %cst_8 [0] : vector<16x2048xf32> to vector<2048xf32>
    %12 = vector.shape_cast %11 : vector<2048xf32> to vector<1x2048xf32>
    %13 = arith.addf %10, %12 : vector<1x2048xf32>
    %c0_9 = arith.constant 0 : index
    %c0_10 = arith.constant 0 : index
    %14 = vector.load %arg7[%c0_9, %c0_10] : memref<1x2048xf32, #tpu.memory_space<vmem>>, vector<1x2048xf32>
    tpu.vector_store %arg7[%c0_9, %c0_10], %13 {strides = array<i32>} : memref<1x2048xf32, #tpu.memory_space<vmem>>, vector<1x2048xf32>,
    %c0_11 = arith.constant 0 : index
    %c0_12 = arith.constant 0 : index
    %15 = vector.load %arg8[%c0_11, %c0_12] : memref<1x2048xf32, #tpu.memory_space<vmem>>, vector<1x2048xf32>
    %16 = arith.mulf %5, %5 : vector<16x2048xf32>
    %cst_13 = arith.constant dense<0.000000e+00> : vector<2048xf32>
    %17 = vector.multi_reduction <add>, %16, %cst_13 [0] : vector<16x2048xf32> to vector<2048xf32>
    %18 = vector.shape_cast %17 : vector<2048xf32> to vector<1x2048xf32>
    %19 = arith.addf %15, %18 : vector<1x2048xf32>
    %c0_14 = arith.constant 0 : index
    %c0_15 = arith.constant 0 : index
    %20 = vector.load %arg8[%c0_14, %c0_15] : memref<1x2048xf32, #tpu.memory_space<vmem>>, vector<1x2048xf32>
    tpu.vector_store %arg8[%c0_14, %c0_15], %19 {strides = array<i32>} : memref<1x2048xf32, #tpu.memory_space<vmem>>, vector<1x2048xf32>,
    %c0_i32_16 = arith.constant 0 : i32
    %21 = arith.cmpi eq, %arg0, %c0_i32_16 : i32
    %22 = arith.extui %21 : i1 to i32
    %c0_i32_17 = arith.constant 0 : i32
    %23 = arith.cmpi ne, %22, %c0_i32_17 : i32
    scf.if %23 {
      %c0_18 = arith.constant 0 : index
      %c0_19 = arith.constant 0 : index
      %24 = vector.load %arg7[%c0_18, %c0_19] : memref<1x2048xf32, #tpu.memory_space<vmem>>, vector<1x128xf32>
      %c0_20 = arith.constant 0 : index
      %c0_21 = arith.constant 0 : index
      %25 = vector.load %arg8[%c0_20, %c0_21] : memref<1x2048xf32, #tpu.memory_space<vmem>>, vector<1x128xf32>
      %c0_22 = arith.constant 0 : index
      %c128 = arith.constant 128 : index
      %26 = vector.load %arg7[%c0_22, %c128] : memref<1x2048xf32, #tpu.memory_space<vmem>>, vector<1x128xf32>
      %27 = arith.addf %24, %26 : vector<1x128xf32>
      %c0_23 = arith.constant 0 : index
      %c128_24 = arith.constant 128 : index
      %28 = vector.load %arg8[%c0_23, %c128_24] : memref<1x2048xf32, #tpu.memory_space<vmem>>, vector<1x128xf32>
      %29 = arith.addf %25, %28 : vector<1x128xf32>
      %c0_25 = arith.constant 0 : index
      %c256 = arith.constant 256 : index
      %30 = vector.load %arg7[%c0_25, %c256] : memref<1x2048xf32, #tpu.memory_space<vmem>>, vector<1x128xf32>
      %31 = arith.addf %27, %30 : vector<1x128xf32>
      %c0_26 = arith.constant 0 : index
      %c256_27 = arith.constant 256 : index
      %32 = vector.load %arg8[%c0_26, %c256_27] : memref<1x2048xf32, #tpu.memory_space<vmem>>, vector<1x128xf32>
      %33 = arith.addf %29, %32 : vector<1x128xf32>
      %c0_28 = arith.constant 0 : index
      %c384 = arith.constant 384 : index
      %34 = vector.load %arg7[%c0_28, %c384] : memref<1x2048xf32, #tpu.memory_space<vmem>>, vector<1x128xf32>
      %35 = arith.addf %31, %34 : vector<1x128xf32>
      %c0_29 = arith.constant 0 : index
      %c384_30 = arith.constant 384 : index
      %36 = vector.load %arg8[%c0_29, %c384_30] : memref<1x2048xf32, #tpu.memory_space<vmem>>, vector<1x128xf32>
      %37 = arith.addf %33, %36 : vector<1x128xf32>
      %c0_31 = arith.constant 0 : index
      %c512 = arith.constant 512 : index
      %38 = vector.load %arg7[%c0_31, %c512] : memref<1x2048xf32, #tpu.memory_space<vmem>>, vector<1x128xf32>
      %39 = arith.addf %35, %38 : vector<1x128xf32>
      %c0_32 = arith.constant 0 : index
      %c512_33 = arith.constant 512 : index
      %40 = vector.load %arg8[%c0_32, %c512_33] : memref<1x2048xf32, #tpu.memory_space<vmem>>, vector<1x128xf32>
      %41 = arith.addf %37, %40 : vector<1x128xf32>
      %c0_34 = arith.constant 0 : index
      %c640 = arith.constant 640 : index
      %42 = vector.load %arg7[%c0_34, %c640] : memref<1x2048xf32, #tpu.memory_space<vmem>>, vector<1x128xf32>
      %43 = arith.addf %39, %42 : vector<1x128xf32>
      %c0_35 = arith.constant 0 : index
      %c640_36 = arith.constant 640 : index
      %44 = vector.load %arg8[%c0_35, %c640_36] : memref<1x2048xf32, #tpu.memory_space<vmem>>, vector<1x128xf32>
      %45 = arith.addf %41, %44 : vector<1x128xf32>
      %c0_37 = arith.constant 0 : index
      %c768 = arith.constant 768 : index
      %46 = vector.load %arg7[%c0_37, %c768] : memref<1x2048xf32, #tpu.memory_space<vmem>>, vector<1x128xf32>
      %47 = arith.addf %43, %46 : vector<1x128xf32>
      %c0_38 = arith.constant 0 : index
      %c768_39 = arith.constant 768 : index
      %48 = vector.load %arg8[%c0_38, %c768_39] : memref<1x2048xf32, #tpu.memory_space<vmem>>, vector<1x128xf32>
      %49 = arith.addf %45, %48 : vector<1x128xf32>
      %c0_40 = arith.constant 0 : index
      %c896 = arith.constant 896 : index
      %50 = vector.load %arg7[%c0_40, %c896] : memref<1x2048xf32, #tpu.memory_space<vmem>>, vector<1x128xf32>
      %51 = arith.addf %47, %50 : vector<1x128xf32>
      %c0_41 = arith.constant 0 : index
      %c896_42 = arith.constant 896 : index
      %52 = vector.load %arg8[%c0_41, %c896_42] : memref<1x2048xf32, #tpu.memory_space<vmem>>, vector<1x128xf32>
      %53 = arith.addf %49, %52 : vector<1x128xf32>
      %c0_43 = arith.constant 0 : index
      %c1024 = arith.constant 1024 : index
      %54 = vector.load %arg7[%c0_43, %c1024] : memref<1x2048xf32, #tpu.memory_space<vmem>>, vector<1x128xf32>
      %55 = arith.addf %51, %54 : vector<1x128xf32>
      %c0_44 = arith.constant 0 : index
      %c1024_45 = arith.constant 1024 : index
      %56 = vector.load %arg8[%c0_44, %c1024_45] : memref<1x2048xf32, #tpu.memory_space<vmem>>, vector<1x128xf32>
      %57 = arith.addf %53, %56 : vector<1x128xf32>
      %c0_46 = arith.constant 0 : index
      %c1152 = arith.constant 1152 : index
      %58 = vector.load %arg7[%c0_46, %c1152] : memref<1x2048xf32, #tpu.memory_space<vmem>>, vector<1x128xf32>
      %59 = arith.addf %55, %58 : vector<1x128xf32>
      %c0_47 = arith.constant 0 : index
      %c1152_48 = arith.constant 1152 : index
      %60 = vector.load %arg8[%c0_47, %c1152_48] : memref<1x2048xf32, #tpu.memory_space<vmem>>, vector<1x128xf32>
      %61 = arith.addf %57, %60 : vector<1x128xf32>
      %c0_49 = arith.constant 0 : index
      %c1280 = arith.constant 1280 : index
      %62 = vector.load %arg7[%c0_49, %c1280] : memref<1x2048xf32, #tpu.memory_space<vmem>>, vector<1x128xf32>
      %63 = arith.addf %59, %62 : vector<1x128xf32>
      %c0_50 = arith.constant 0 : index
      %c1280_51 = arith.constant 1280 : index
      %64 = vector.load %arg8[%c0_50, %c1280_51] : memref<1x2048xf32, #tpu.memory_space<vmem>>, vector<1x128xf32>
      %65 = arith.addf %61, %64 : vector<1x128xf32>
      %c0_52 = arith.constant 0 : index
      %c1408 = arith.constant 1408 : index
      %66 = vector.load %arg7[%c0_52, %c1408] : memref<1x2048xf32, #tpu.memory_space<vmem>>, vector<1x128xf32>
      %67 = arith.addf %63, %66 : vector<1x128xf32>
      %c0_53 = arith.constant 0 : index
      %c1408_54 = arith.constant 1408 : index
      %68 = vector.load %arg8[%c0_53, %c1408_54] : memref<1x2048xf32, #tpu.memory_space<vmem>>, vector<1x128xf32>
      %69 = arith.addf %65, %68 : vector<1x128xf32>
      %c0_55 = arith.constant 0 : index
      %c1536 = arith.constant 1536 : index
      %70 = vector.load %arg7[%c0_55, %c1536] : memref<1x2048xf32, #tpu.memory_space<vmem>>, vector<1x128xf32>
      %71 = arith.addf %67, %70 : vector<1x128xf32>
      %c0_56 = arith.constant 0 : index
      %c1536_57 = arith.constant 1536 : index
      %72 = vector.load %arg8[%c0_56, %c1536_57] : memref<1x2048xf32, #tpu.memory_space<vmem>>, vector<1x128xf32>
      %73 = arith.addf %69, %72 : vector<1x128xf32>
      %c0_58 = arith.constant 0 : index
      %c1664 = arith.constant 1664 : index
      %74 = vector.load %arg7[%c0_58, %c1664] : memref<1x2048xf32, #tpu.memory_space<vmem>>, vector<1x128xf32>
      %75 = arith.addf %71, %74 : vector<1x128xf32>
      %c0_59 = arith.constant 0 : index
      %c1664_60 = arith.constant 1664 : index
      %76 = vector.load %arg8[%c0_59, %c1664_60] : memref<1x2048xf32, #tpu.memory_space<vmem>>, vector<1x128xf32>
      %77 = arith.addf %73, %76 : vector<1x128xf32>
      %c0_61 = arith.constant 0 : index
      %c1792 = arith.constant 1792 : index
      %78 = vector.load %arg7[%c0_61, %c1792] : memref<1x2048xf32, #tpu.memory_space<vmem>>, vector<1x128xf32>
      %79 = arith.addf %75, %78 : vector<1x128xf32>
      %c0_62 = arith.constant 0 : index
      %c1792_63 = arith.constant 1792 : index
      %80 = vector.load %arg8[%c0_62, %c1792_63] : memref<1x2048xf32, #tpu.memory_space<vmem>>, vector<1x128xf32>
      %81 = arith.addf %77, %80 : vector<1x128xf32>
      %c0_64 = arith.constant 0 : index
      %c1920 = arith.constant 1920 : index
      %82 = vector.load %arg7[%c0_64, %c1920] : memref<1x2048xf32, #tpu.memory_space<vmem>>, vector<1x128xf32>
      %83 = arith.addf %79, %82 : vector<1x128xf32>
      %c0_65 = arith.constant 0 : index
      %c1920_66 = arith.constant 1920 : index
      %84 = vector.load %arg8[%c0_65, %c1920_66] : memref<1x2048xf32, #tpu.memory_space<vmem>>, vector<1x128xf32>
      %85 = arith.addf %81, %84 : vector<1x128xf32>
      %cst_67 = arith.constant 3.125000e-02 : f32
      %86 = vector.broadcast %cst_67 : f32 to vector<1x128xf32>
      %87 = arith.mulf %83, %86 : vector<1x128xf32>
      %cst_68 = arith.constant 3.125000e-02 : f32
      %88 = vector.broadcast %cst_68 : f32 to vector<1x128xf32>
      %89 = arith.mulf %85, %88 : vector<1x128xf32>
      %90 = arith.mulf %87, %87 : vector<1x128xf32>
      %91 = arith.subf %89, %90 : vector<1x128xf32>
      %cst_69 = arith.constant 0.000000e+00 : f32
      %92 = vector.broadcast %cst_69 : f32 to vector<1x128xf32>
      %93 = arith.maximumf %91, %92 : vector<1x128xf32>
      %c0_70 = arith.constant 0 : index
      %c0_71 = arith.constant 0 : index
      %94 = vector.load %arg3[%c0_70, %c0_71] : memref<1x128xf32, #tpu.memory_space<vmem>>, vector<1x128xf32>
      %cst_72 = arith.constant 9.99999974E-6 : f32
      %95 = vector.broadcast %cst_72 : f32 to vector<1x128xf32>
      %96 = arith.addf %93, %95 : vector<1x128xf32>
      %97 = math.rsqrt %96 : vector<1x128xf32>
      %98 = arith.mulf %94, %97 : vector<1x128xf32>
      %c0_73 = arith.constant 0 : index
      %c0_74 = arith.constant 0 : index
      %99 = vector.load %arg4[%c0_73, %c0_74] : memref<1x128xf32, #tpu.memory_space<vmem>>, vector<1x128xf32>
      %100 = arith.mulf %87, %98 : vector<1x128xf32>
      %101 = arith.subf %99, %100 : vector<1x128xf32>
      %102 = tpu.concatenate %98, %98, %98, %98, %98, %98, %98, %98, %98, %98, %98, %98, %98, %98, %98, %98 in 1 : vector<1x128xf32>, vector<1x128xf32>, vector<1x128xf32>, vector<1x128xf32>, vector<1x128xf32>, vector<1x128xf32>, vector<1x128xf32>, vector<1x128xf32>, vector<1x128xf32>, vector<1x128xf32>, vector<1x128xf32>, vector<1x128xf32>, vector<1x128xf32>, vector<1x128xf32>, vector<1x128xf32>, vector<1x128xf32> -> vector<1x2048xf32>
      %103 = tpu.concatenate %101, %101, %101, %101, %101, %101, %101, %101, %101, %101, %101, %101, %101, %101, %101, %101 in 1 : vector<1x128xf32>, vector<1x128xf32>, vector<1x128xf32>, vector<1x128xf32>, vector<1x128xf32>, vector<1x128xf32>, vector<1x128xf32>, vector<1x128xf32>, vector<1x128xf32>, vector<1x128xf32>, vector<1x128xf32>, vector<1x128xf32>, vector<1x128xf32>, vector<1x128xf32>, vector<1x128xf32>, vector<1x128xf32> -> vector<1x2048xf32>
      %c0_75 = arith.constant 0 : index
      %c0_76 = arith.constant 0 : index
      %c0_77 = arith.constant 0 : index
      %104 = vector.load %arg6[%c0_75, %c0_76, %c0_77] : memref<1x16x2048xf32, #tpu.memory_space<vmem>>, vector<1x16x2048xf32>
      %105 = vector.shape_cast %104 : vector<1x16x2048xf32> to vector<16x2048xf32>
      %106 = vector.broadcast %102 : vector<1x2048xf32> to vector<16x2048xf32>
      %107 = arith.mulf %105, %106 : vector<16x2048xf32>
      %108 = vector.broadcast %103 : vector<1x2048xf32> to vector<16x2048xf32>
      %109 = arith.addf %107, %108 : vector<16x2048xf32>
      %cst_78 = arith.constant 0.000000e+00 : f32
      %110 = vector.broadcast %cst_78 : f32 to vector<16x2048xf32>
      %111 = arith.maximumf %109, %110 : vector<16x2048xf32>
      %112 = arith.truncf %111 : vector<16x2048xf32> to vector<16x2048xbf16>
      %c0_79 = arith.constant 0 : index
      %c0_80 = arith.constant 0 : index
      %113 = vector.load %arg5[%c0_79, %c0_80] : memref<16x2048xbf16, #tpu.memory_space<vmem>>, vector<16x2048xbf16>
      tpu.vector_store %arg5[%c0_79, %c0_80], %112 {strides = array<i32>} : memref<16x2048xbf16, #tpu.memory_space<vmem>>, vector<16x2048xbf16>,
    } else {
    }
    return
  }
  func.func @transform_0(%arg0: i32) -> (i32, i32) {
    %c0_i32 = arith.constant 0 : i32
    %c0_i32_0 = arith.constant 0 : i32
    return %arg0, %c0_i32 : i32, i32
  }
  func.func @transform_1(%arg0: i32) -> (i32, i32) {
    %c0_i32 = arith.constant 0 : i32
    %c0_i32_0 = arith.constant 0 : i32
    %c0_i32_1 = arith.constant 0 : i32
    return %c0_i32, %c0_i32_0 : i32, i32
  }
  func.func @transform_2(%arg0: i32) -> (i32, i32) {
    %c0_i32 = arith.constant 0 : i32
    %c0_i32_0 = arith.constant 0 : i32
    %c0_i32_1 = arith.constant 0 : i32
    return %c0_i32, %c0_i32_0 : i32, i32
  }
  func.func @transform_3(%arg0: i32) -> (i32, i32) {
    %c0_i32 = arith.constant 0 : i32
    %c0_i32_0 = arith.constant 0 : i32
    %c0_i32_1 = arith.constant 0 : i32
    return %c0_i32, %c0_i32_0 : i32, i32
  }
  func.func @transform_4(%arg0: i32) -> (i32, i32) {
    %c0_i32 = arith.constant 0 : i32
    %c0_i32_0 = arith.constant 0 : i32
    %c0_i32_1 = arith.constant 0 : i32
    return %c0_i32, %c0_i32_0 : i32, i32
  }
}

module attributes {stable_mosaic.version = 11 : i64} {
  func.func @kernel(%arg0: i32, %arg1: memref<32x1152xbf16, #tpu.memory_space<vmem>>, %arg2: memref<1152x256xbf16, #tpu.memory_space<vmem>>, %arg3: memref<1x64xf32, #tpu.memory_space<vmem>>, %arg4: memref<1x64xf32, #tpu.memory_space<vmem>>, %arg5: memref<32x256xbf16, #tpu.memory_space<vmem>>, %arg6: memref<1x32x256xf32, #tpu.memory_space<vmem>>, %arg7: memref<1x256xf32, #tpu.memory_space<vmem>>, %arg8: memref<1x256xf32, #tpu.memory_space<vmem>>) attributes {dimension_semantics = [#tpu.dimension_semantics<arbitrary>], iteration_bounds = array<i64: 1>, scalar_prefetch = 0 : i64, scratch_operands = 3 : i64, tpu.core_type = #tpu.core_type<tc>, window_params = [{transform_indices = @transform_0, window_bounds = array<i64: 32, 1152>}, {pipeline_mode = #tpu.pipeline_mode<synchronous>, transform_indices = @transform_1, window_bounds = array<i64: 1152, 256>}, {pipeline_mode = #tpu.pipeline_mode<synchronous>, transform_indices = @transform_2, window_bounds = array<i64: 1, 64>}, {pipeline_mode = #tpu.pipeline_mode<synchronous>, transform_indices = @transform_3, window_bounds = array<i64: 1, 64>}, {pipeline_mode = #tpu.pipeline_mode<synchronous>, transform_indices = @transform_4, window_bounds = array<i64: 32, 256>}]} {
    %c0_i32 = arith.constant 0 : i32
    %0 = arith.cmpi eq, %arg0, %c0_i32 : i32
    %1 = arith.extui %0 : i1 to i32
    %c0_i32_0 = arith.constant 0 : i32
    %2 = arith.cmpi ne, %1, %c0_i32_0 : i32
    scf.if %2 {
      %cst_18 = arith.constant 0.000000e+00 : f32
      %24 = vector.broadcast %cst_18 : f32 to vector<1x256xf32>
      %c0_19 = arith.constant 0 : index
      %c0_20 = arith.constant 0 : index
      %25 = vector.load %arg7[%c0_19, %c0_20] : memref<1x256xf32, #tpu.memory_space<vmem>>, vector<1x256xf32>
      tpu.vector_store %arg7[%c0_19, %c0_20], %24 {strides = array<i32>} : memref<1x256xf32, #tpu.memory_space<vmem>>, vector<1x256xf32>,
      %cst_21 = arith.constant 0.000000e+00 : f32
      %26 = vector.broadcast %cst_21 : f32 to vector<1x256xf32>
      %c0_22 = arith.constant 0 : index
      %c0_23 = arith.constant 0 : index
      %27 = vector.load %arg8[%c0_22, %c0_23] : memref<1x256xf32, #tpu.memory_space<vmem>>, vector<1x256xf32>
      tpu.vector_store %arg8[%c0_22, %c0_23], %26 {strides = array<i32>} : memref<1x256xf32, #tpu.memory_space<vmem>>, vector<1x256xf32>,
    } else {
    }
    %c0 = arith.constant 0 : index
    %c0_1 = arith.constant 0 : index
    %3 = vector.load %arg1[%c0, %c0_1] : memref<32x1152xbf16, #tpu.memory_space<vmem>>, vector<32x1152xbf16>
    %c0_2 = arith.constant 0 : index
    %c0_3 = arith.constant 0 : index
    %4 = vector.load %arg2[%c0_2, %c0_3] : memref<1152x256xbf16, #tpu.memory_space<vmem>>, vector<1152x256xbf16>
    %cst = arith.constant dense<0.000000e+00> : vector<32x256xf32>
    %5 = tpu.matmul %3, %4, %cst {dimension_numbers = #tpu.dot_dimension_numbers<[1], [0], [0], [1], [0, 0, 1, 1], [], []>} : vector<32x1152xbf16>, vector<1152x256xbf16>, vector<32x256xf32> -> vector<32x256xf32>
    %6 = arith.index_cast %arg0 : i32 to index
    %c0_4 = arith.constant 0 : index
    %c0_5 = arith.constant 0 : index
    %7 = vector.load %arg6[%6, %c0_4, %c0_5] : memref<1x32x256xf32, #tpu.memory_space<vmem>>, vector<1x32x256xf32>
    %8 = vector.shape_cast %7 : vector<1x32x256xf32> to vector<32x256xf32>
    %9 = vector.shape_cast %5 : vector<32x256xf32> to vector<1x32x256xf32>
    tpu.vector_store %arg6[%6, %c0_4, %c0_5], %9 {strides = array<i32>} : memref<1x32x256xf32, #tpu.memory_space<vmem>>, vector<1x32x256xf32>,
    %c0_6 = arith.constant 0 : index
    %c0_7 = arith.constant 0 : index
    %10 = vector.load %arg7[%c0_6, %c0_7] : memref<1x256xf32, #tpu.memory_space<vmem>>, vector<1x256xf32>
    %cst_8 = arith.constant dense<0.000000e+00> : vector<256xf32>
    %11 = vector.multi_reduction <add>, %5, %cst_8 [0] : vector<32x256xf32> to vector<256xf32>
    %12 = vector.shape_cast %11 : vector<256xf32> to vector<1x256xf32>
    %13 = arith.addf %10, %12 : vector<1x256xf32>
    %c0_9 = arith.constant 0 : index
    %c0_10 = arith.constant 0 : index
    %14 = vector.load %arg7[%c0_9, %c0_10] : memref<1x256xf32, #tpu.memory_space<vmem>>, vector<1x256xf32>
    tpu.vector_store %arg7[%c0_9, %c0_10], %13 {strides = array<i32>} : memref<1x256xf32, #tpu.memory_space<vmem>>, vector<1x256xf32>,
    %c0_11 = arith.constant 0 : index
    %c0_12 = arith.constant 0 : index
    %15 = vector.load %arg8[%c0_11, %c0_12] : memref<1x256xf32, #tpu.memory_space<vmem>>, vector<1x256xf32>
    %16 = arith.mulf %5, %5 : vector<32x256xf32>
    %cst_13 = arith.constant dense<0.000000e+00> : vector<256xf32>
    %17 = vector.multi_reduction <add>, %16, %cst_13 [0] : vector<32x256xf32> to vector<256xf32>
    %18 = vector.shape_cast %17 : vector<256xf32> to vector<1x256xf32>
    %19 = arith.addf %15, %18 : vector<1x256xf32>
    %c0_14 = arith.constant 0 : index
    %c0_15 = arith.constant 0 : index
    %20 = vector.load %arg8[%c0_14, %c0_15] : memref<1x256xf32, #tpu.memory_space<vmem>>, vector<1x256xf32>
    tpu.vector_store %arg8[%c0_14, %c0_15], %19 {strides = array<i32>} : memref<1x256xf32, #tpu.memory_space<vmem>>, vector<1x256xf32>,
    %c0_i32_16 = arith.constant 0 : i32
    %21 = arith.cmpi eq, %arg0, %c0_i32_16 : i32
    %22 = arith.extui %21 : i1 to i32
    %c0_i32_17 = arith.constant 0 : i32
    %23 = arith.cmpi ne, %22, %c0_i32_17 : i32
    scf.if %23 {
      %c0_18 = arith.constant 0 : index
      %c0_19 = arith.constant 0 : index
      %24 = vector.load %arg7[%c0_18, %c0_19] : memref<1x256xf32, #tpu.memory_space<vmem>>, vector<1x64xf32>
      %c0_20 = arith.constant 0 : index
      %c0_21 = arith.constant 0 : index
      %25 = vector.load %arg8[%c0_20, %c0_21] : memref<1x256xf32, #tpu.memory_space<vmem>>, vector<1x64xf32>
      %c0_22 = arith.constant 0 : index
      %c64 = arith.constant 64 : index
      %26 = vector.load %arg7[%c0_22, %c64] : memref<1x256xf32, #tpu.memory_space<vmem>>, vector<1x64xf32>
      %27 = arith.addf %24, %26 : vector<1x64xf32>
      %c0_23 = arith.constant 0 : index
      %c64_24 = arith.constant 64 : index
      %28 = vector.load %arg8[%c0_23, %c64_24] : memref<1x256xf32, #tpu.memory_space<vmem>>, vector<1x64xf32>
      %29 = arith.addf %25, %28 : vector<1x64xf32>
      %c0_25 = arith.constant 0 : index
      %c128 = arith.constant 128 : index
      %30 = vector.load %arg7[%c0_25, %c128] : memref<1x256xf32, #tpu.memory_space<vmem>>, vector<1x64xf32>
      %31 = arith.addf %27, %30 : vector<1x64xf32>
      %c0_26 = arith.constant 0 : index
      %c128_27 = arith.constant 128 : index
      %32 = vector.load %arg8[%c0_26, %c128_27] : memref<1x256xf32, #tpu.memory_space<vmem>>, vector<1x64xf32>
      %33 = arith.addf %29, %32 : vector<1x64xf32>
      %c0_28 = arith.constant 0 : index
      %c192 = arith.constant 192 : index
      %34 = vector.load %arg7[%c0_28, %c192] : memref<1x256xf32, #tpu.memory_space<vmem>>, vector<1x64xf32>
      %35 = arith.addf %31, %34 : vector<1x64xf32>
      %c0_29 = arith.constant 0 : index
      %c192_30 = arith.constant 192 : index
      %36 = vector.load %arg8[%c0_29, %c192_30] : memref<1x256xf32, #tpu.memory_space<vmem>>, vector<1x64xf32>
      %37 = arith.addf %33, %36 : vector<1x64xf32>
      %cst_31 = arith.constant 7.812500e-03 : f32
      %38 = vector.broadcast %cst_31 : f32 to vector<1x64xf32>
      %39 = arith.mulf %35, %38 : vector<1x64xf32>
      %cst_32 = arith.constant 7.812500e-03 : f32
      %40 = vector.broadcast %cst_32 : f32 to vector<1x64xf32>
      %41 = arith.mulf %37, %40 : vector<1x64xf32>
      %42 = arith.mulf %39, %39 : vector<1x64xf32>
      %43 = arith.subf %41, %42 : vector<1x64xf32>
      %cst_33 = arith.constant 0.000000e+00 : f32
      %44 = vector.broadcast %cst_33 : f32 to vector<1x64xf32>
      %45 = arith.maximumf %43, %44 : vector<1x64xf32>
      %c0_34 = arith.constant 0 : index
      %c0_35 = arith.constant 0 : index
      %46 = vector.load %arg3[%c0_34, %c0_35] : memref<1x64xf32, #tpu.memory_space<vmem>>, vector<1x64xf32>
      %cst_36 = arith.constant 9.99999974E-6 : f32
      %47 = vector.broadcast %cst_36 : f32 to vector<1x64xf32>
      %48 = arith.addf %45, %47 : vector<1x64xf32>
      %49 = math.rsqrt %48 : vector<1x64xf32>
      %50 = arith.mulf %46, %49 : vector<1x64xf32>
      %c0_37 = arith.constant 0 : index
      %c0_38 = arith.constant 0 : index
      %51 = vector.load %arg4[%c0_37, %c0_38] : memref<1x64xf32, #tpu.memory_space<vmem>>, vector<1x64xf32>
      %52 = arith.mulf %39, %50 : vector<1x64xf32>
      %53 = arith.subf %51, %52 : vector<1x64xf32>
      %54 = tpu.concatenate %50, %50, %50, %50 in 1 : vector<1x64xf32>, vector<1x64xf32>, vector<1x64xf32>, vector<1x64xf32> -> vector<1x256xf32>
      %55 = tpu.concatenate %53, %53, %53, %53 in 1 : vector<1x64xf32>, vector<1x64xf32>, vector<1x64xf32>, vector<1x64xf32> -> vector<1x256xf32>
      %c0_39 = arith.constant 0 : index
      %c0_40 = arith.constant 0 : index
      %c0_41 = arith.constant 0 : index
      %56 = vector.load %arg6[%c0_39, %c0_40, %c0_41] : memref<1x32x256xf32, #tpu.memory_space<vmem>>, vector<1x32x256xf32>
      %57 = vector.shape_cast %56 : vector<1x32x256xf32> to vector<32x256xf32>
      %58 = vector.broadcast %54 : vector<1x256xf32> to vector<32x256xf32>
      %59 = arith.mulf %57, %58 : vector<32x256xf32>
      %60 = vector.broadcast %55 : vector<1x256xf32> to vector<32x256xf32>
      %61 = arith.addf %59, %60 : vector<32x256xf32>
      %cst_42 = arith.constant 0.000000e+00 : f32
      %62 = vector.broadcast %cst_42 : f32 to vector<32x256xf32>
      %63 = arith.maximumf %61, %62 : vector<32x256xf32>
      %64 = arith.truncf %63 : vector<32x256xf32> to vector<32x256xbf16>
      %c0_43 = arith.constant 0 : index
      %c0_44 = arith.constant 0 : index
      %65 = vector.load %arg5[%c0_43, %c0_44] : memref<32x256xbf16, #tpu.memory_space<vmem>>, vector<32x256xbf16>
      tpu.vector_store %arg5[%c0_43, %c0_44], %64 {strides = array<i32>} : memref<32x256xbf16, #tpu.memory_space<vmem>>, vector<32x256xbf16>,
    } else {
    }
    return
  }
  func.func @transform_0(%arg0: i32) -> (i32, i32) {
    %c0_i32 = arith.constant 0 : i32
    %c0_i32_0 = arith.constant 0 : i32
    return %arg0, %c0_i32 : i32, i32
  }
  func.func @transform_1(%arg0: i32) -> (i32, i32) {
    %c0_i32 = arith.constant 0 : i32
    %c0_i32_0 = arith.constant 0 : i32
    %c0_i32_1 = arith.constant 0 : i32
    return %c0_i32, %c0_i32_0 : i32, i32
  }
  func.func @transform_2(%arg0: i32) -> (i32, i32) {
    %c0_i32 = arith.constant 0 : i32
    %c0_i32_0 = arith.constant 0 : i32
    %c0_i32_1 = arith.constant 0 : i32
    return %c0_i32, %c0_i32_0 : i32, i32
  }
  func.func @transform_3(%arg0: i32) -> (i32, i32) {
    %c0_i32 = arith.constant 0 : i32
    %c0_i32_0 = arith.constant 0 : i32
    %c0_i32_1 = arith.constant 0 : i32
    return %c0_i32, %c0_i32_0 : i32, i32
  }
  func.func @transform_4(%arg0: i32) -> (i32, i32) {
    %c0_i32 = arith.constant 0 : i32
    %c0_i32_0 = arith.constant 0 : i32
    %c0_i32_1 = arith.constant 0 : i32
    return %c0_i32, %c0_i32_0 : i32, i32
  }
}

module attributes {stable_mosaic.version = 11 : i64} {
  func.func @kernel(%arg0: i32, %arg1: memref<128x576xbf16, #tpu.memory_space<vmem>>, %arg2: memref<576x128xbf16, #tpu.memory_space<vmem>>, %arg3: memref<1x32xf32, #tpu.memory_space<vmem>>, %arg4: memref<1x32xf32, #tpu.memory_space<vmem>>, %arg5: memref<128x128xbf16, #tpu.memory_space<vmem>>, %arg6: memref<1x128x128xf32, #tpu.memory_space<vmem>>, %arg7: memref<1x128xf32, #tpu.memory_space<vmem>>, %arg8: memref<1x128xf32, #tpu.memory_space<vmem>>) attributes {dimension_semantics = [#tpu.dimension_semantics<arbitrary>], iteration_bounds = array<i64: 1>, scalar_prefetch = 0 : i64, scratch_operands = 3 : i64, tpu.core_type = #tpu.core_type<tc>, window_params = [{transform_indices = @transform_0, window_bounds = array<i64: 128, 576>}, {pipeline_mode = #tpu.pipeline_mode<synchronous>, transform_indices = @transform_1, window_bounds = array<i64: 576, 128>}, {pipeline_mode = #tpu.pipeline_mode<synchronous>, transform_indices = @transform_2, window_bounds = array<i64: 1, 32>}, {pipeline_mode = #tpu.pipeline_mode<synchronous>, transform_indices = @transform_3, window_bounds = array<i64: 1, 32>}, {pipeline_mode = #tpu.pipeline_mode<synchronous>, transform_indices = @transform_4, window_bounds = array<i64: 128, 128>}]} {
    %c0_i32 = arith.constant 0 : i32
    %0 = arith.cmpi eq, %arg0, %c0_i32 : i32
    %1 = arith.extui %0 : i1 to i32
    %c0_i32_0 = arith.constant 0 : i32
    %2 = arith.cmpi ne, %1, %c0_i32_0 : i32
    scf.if %2 {
      %cst_18 = arith.constant 0.000000e+00 : f32
      %24 = vector.broadcast %cst_18 : f32 to vector<1x128xf32>
      %c0_19 = arith.constant 0 : index
      %c0_20 = arith.constant 0 : index
      %25 = vector.load %arg7[%c0_19, %c0_20] : memref<1x128xf32, #tpu.memory_space<vmem>>, vector<1x128xf32>
      tpu.vector_store %arg7[%c0_19, %c0_20], %24 {strides = array<i32>} : memref<1x128xf32, #tpu.memory_space<vmem>>, vector<1x128xf32>,
      %cst_21 = arith.constant 0.000000e+00 : f32
      %26 = vector.broadcast %cst_21 : f32 to vector<1x128xf32>
      %c0_22 = arith.constant 0 : index
      %c0_23 = arith.constant 0 : index
      %27 = vector.load %arg8[%c0_22, %c0_23] : memref<1x128xf32, #tpu.memory_space<vmem>>, vector<1x128xf32>
      tpu.vector_store %arg8[%c0_22, %c0_23], %26 {strides = array<i32>} : memref<1x128xf32, #tpu.memory_space<vmem>>, vector<1x128xf32>,
    } else {
    }
    %c0 = arith.constant 0 : index
    %c0_1 = arith.constant 0 : index
    %3 = vector.load %arg1[%c0, %c0_1] : memref<128x576xbf16, #tpu.memory_space<vmem>>, vector<128x576xbf16>
    %c0_2 = arith.constant 0 : index
    %c0_3 = arith.constant 0 : index
    %4 = vector.load %arg2[%c0_2, %c0_3] : memref<576x128xbf16, #tpu.memory_space<vmem>>, vector<576x128xbf16>
    %cst = arith.constant dense<0.000000e+00> : vector<128x128xf32>
    %5 = tpu.matmul %3, %4, %cst {dimension_numbers = #tpu.dot_dimension_numbers<[1], [0], [0], [1], [0, 0, 1, 1], [], []>} : vector<128x576xbf16>, vector<576x128xbf16>, vector<128x128xf32> -> vector<128x128xf32>
    %6 = arith.index_cast %arg0 : i32 to index
    %c0_4 = arith.constant 0 : index
    %c0_5 = arith.constant 0 : index
    %7 = vector.load %arg6[%6, %c0_4, %c0_5] : memref<1x128x128xf32, #tpu.memory_space<vmem>>, vector<1x128x128xf32>
    %8 = vector.shape_cast %7 : vector<1x128x128xf32> to vector<128x128xf32>
    %9 = vector.shape_cast %5 : vector<128x128xf32> to vector<1x128x128xf32>
    tpu.vector_store %arg6[%6, %c0_4, %c0_5], %9 {strides = array<i32>} : memref<1x128x128xf32, #tpu.memory_space<vmem>>, vector<1x128x128xf32>,
    %c0_6 = arith.constant 0 : index
    %c0_7 = arith.constant 0 : index
    %10 = vector.load %arg7[%c0_6, %c0_7] : memref<1x128xf32, #tpu.memory_space<vmem>>, vector<1x128xf32>
    %cst_8 = arith.constant dense<0.000000e+00> : vector<128xf32>
    %11 = vector.multi_reduction <add>, %5, %cst_8 [0] : vector<128x128xf32> to vector<128xf32>
    %12 = vector.shape_cast %11 : vector<128xf32> to vector<1x128xf32>
    %13 = arith.addf %10, %12 : vector<1x128xf32>
    %c0_9 = arith.constant 0 : index
    %c0_10 = arith.constant 0 : index
    %14 = vector.load %arg7[%c0_9, %c0_10] : memref<1x128xf32, #tpu.memory_space<vmem>>, vector<1x128xf32>
    tpu.vector_store %arg7[%c0_9, %c0_10], %13 {strides = array<i32>} : memref<1x128xf32, #tpu.memory_space<vmem>>, vector<1x128xf32>,
    %c0_11 = arith.constant 0 : index
    %c0_12 = arith.constant 0 : index
    %15 = vector.load %arg8[%c0_11, %c0_12] : memref<1x128xf32, #tpu.memory_space<vmem>>, vector<1x128xf32>
    %16 = arith.mulf %5, %5 : vector<128x128xf32>
    %cst_13 = arith.constant dense<0.000000e+00> : vector<128xf32>
    %17 = vector.multi_reduction <add>, %16, %cst_13 [0] : vector<128x128xf32> to vector<128xf32>
    %18 = vector.shape_cast %17 : vector<128xf32> to vector<1x128xf32>
    %19 = arith.addf %15, %18 : vector<1x128xf32>
    %c0_14 = arith.constant 0 : index
    %c0_15 = arith.constant 0 : index
    %20 = vector.load %arg8[%c0_14, %c0_15] : memref<1x128xf32, #tpu.memory_space<vmem>>, vector<1x128xf32>
    tpu.vector_store %arg8[%c0_14, %c0_15], %19 {strides = array<i32>} : memref<1x128xf32, #tpu.memory_space<vmem>>, vector<1x128xf32>,
    %c0_i32_16 = arith.constant 0 : i32
    %21 = arith.cmpi eq, %arg0, %c0_i32_16 : i32
    %22 = arith.extui %21 : i1 to i32
    %c0_i32_17 = arith.constant 0 : i32
    %23 = arith.cmpi ne, %22, %c0_i32_17 : i32
    scf.if %23 {
      %c0_18 = arith.constant 0 : index
      %c0_19 = arith.constant 0 : index
      %24 = vector.load %arg7[%c0_18, %c0_19] : memref<1x128xf32, #tpu.memory_space<vmem>>, vector<1x32xf32>
      %c0_20 = arith.constant 0 : index
      %c0_21 = arith.constant 0 : index
      %25 = vector.load %arg8[%c0_20, %c0_21] : memref<1x128xf32, #tpu.memory_space<vmem>>, vector<1x32xf32>
      %c0_22 = arith.constant 0 : index
      %c32 = arith.constant 32 : index
      %26 = vector.load %arg7[%c0_22, %c32] : memref<1x128xf32, #tpu.memory_space<vmem>>, vector<1x32xf32>
      %27 = arith.addf %24, %26 : vector<1x32xf32>
      %c0_23 = arith.constant 0 : index
      %c32_24 = arith.constant 32 : index
      %28 = vector.load %arg8[%c0_23, %c32_24] : memref<1x128xf32, #tpu.memory_space<vmem>>, vector<1x32xf32>
      %29 = arith.addf %25, %28 : vector<1x32xf32>
      %c0_25 = arith.constant 0 : index
      %c64 = arith.constant 64 : index
      %30 = vector.load %arg7[%c0_25, %c64] : memref<1x128xf32, #tpu.memory_space<vmem>>, vector<1x32xf32>
      %31 = arith.addf %27, %30 : vector<1x32xf32>
      %c0_26 = arith.constant 0 : index
      %c64_27 = arith.constant 64 : index
      %32 = vector.load %arg8[%c0_26, %c64_27] : memref<1x128xf32, #tpu.memory_space<vmem>>, vector<1x32xf32>
      %33 = arith.addf %29, %32 : vector<1x32xf32>
      %c0_28 = arith.constant 0 : index
      %c96 = arith.constant 96 : index
      %34 = vector.load %arg7[%c0_28, %c96] : memref<1x128xf32, #tpu.memory_space<vmem>>, vector<1x32xf32>
      %35 = arith.addf %31, %34 : vector<1x32xf32>
      %c0_29 = arith.constant 0 : index
      %c96_30 = arith.constant 96 : index
      %36 = vector.load %arg8[%c0_29, %c96_30] : memref<1x128xf32, #tpu.memory_space<vmem>>, vector<1x32xf32>
      %37 = arith.addf %33, %36 : vector<1x32xf32>
      %cst_31 = arith.constant 0.001953125 : f32
      %38 = vector.broadcast %cst_31 : f32 to vector<1x32xf32>
      %39 = arith.mulf %35, %38 : vector<1x32xf32>
      %cst_32 = arith.constant 0.001953125 : f32
      %40 = vector.broadcast %cst_32 : f32 to vector<1x32xf32>
      %41 = arith.mulf %37, %40 : vector<1x32xf32>
      %42 = arith.mulf %39, %39 : vector<1x32xf32>
      %43 = arith.subf %41, %42 : vector<1x32xf32>
      %cst_33 = arith.constant 0.000000e+00 : f32
      %44 = vector.broadcast %cst_33 : f32 to vector<1x32xf32>
      %45 = arith.maximumf %43, %44 : vector<1x32xf32>
      %c0_34 = arith.constant 0 : index
      %c0_35 = arith.constant 0 : index
      %46 = vector.load %arg3[%c0_34, %c0_35] : memref<1x32xf32, #tpu.memory_space<vmem>>, vector<1x32xf32>
      %cst_36 = arith.constant 9.99999974E-6 : f32
      %47 = vector.broadcast %cst_36 : f32 to vector<1x32xf32>
      %48 = arith.addf %45, %47 : vector<1x32xf32>
      %49 = math.rsqrt %48 : vector<1x32xf32>
      %50 = arith.mulf %46, %49 : vector<1x32xf32>
      %c0_37 = arith.constant 0 : index
      %c0_38 = arith.constant 0 : index
      %51 = vector.load %arg4[%c0_37, %c0_38] : memref<1x32xf32, #tpu.memory_space<vmem>>, vector<1x32xf32>
      %52 = arith.mulf %39, %50 : vector<1x32xf32>
      %53 = arith.subf %51, %52 : vector<1x32xf32>
      %54 = tpu.concatenate %50, %50, %50, %50 in 1 : vector<1x32xf32>, vector<1x32xf32>, vector<1x32xf32>, vector<1x32xf32> -> vector<1x128xf32>
      %55 = tpu.concatenate %53, %53, %53, %53 in 1 : vector<1x32xf32>, vector<1x32xf32>, vector<1x32xf32>, vector<1x32xf32> -> vector<1x128xf32>
      %c0_39 = arith.constant 0 : index
      %c0_40 = arith.constant 0 : index
      %c0_41 = arith.constant 0 : index
      %56 = vector.load %arg6[%c0_39, %c0_40, %c0_41] : memref<1x128x128xf32, #tpu.memory_space<vmem>>, vector<1x128x128xf32>
      %57 = vector.shape_cast %56 : vector<1x128x128xf32> to vector<128x128xf32>
      %58 = vector.broadcast %54 : vector<1x128xf32> to vector<128x128xf32>
      %59 = arith.mulf %57, %58 : vector<128x128xf32>
      %60 = vector.broadcast %55 : vector<1x128xf32> to vector<128x128xf32>
      %61 = arith.addf %59, %60 : vector<128x128xf32>
      %cst_42 = arith.constant 0.000000e+00 : f32
      %62 = vector.broadcast %cst_42 : f32 to vector<128x128xf32>
      %63 = arith.maximumf %61, %62 : vector<128x128xf32>
      %64 = arith.truncf %63 : vector<128x128xf32> to vector<128x128xbf16>
      %c0_43 = arith.constant 0 : index
      %c0_44 = arith.constant 0 : index
      %65 = vector.load %arg5[%c0_43, %c0_44] : memref<128x128xbf16, #tpu.memory_space<vmem>>, vector<128x128xbf16>
      tpu.vector_store %arg5[%c0_43, %c0_44], %64 {strides = array<i32>} : memref<128x128xbf16, #tpu.memory_space<vmem>>, vector<128x128xbf16>,
    } else {
    }
    return
  }
  func.func @transform_0(%arg0: i32) -> (i32, i32) {
    %c0_i32 = arith.constant 0 : i32
    %c0_i32_0 = arith.constant 0 : i32
    return %arg0, %c0_i32 : i32, i32
  }
  func.func @transform_1(%arg0: i32) -> (i32, i32) {
    %c0_i32 = arith.constant 0 : i32
    %c0_i32_0 = arith.constant 0 : i32
    %c0_i32_1 = arith.constant 0 : i32
    return %c0_i32, %c0_i32_0 : i32, i32
  }
  func.func @transform_2(%arg0: i32) -> (i32, i32) {
    %c0_i32 = arith.constant 0 : i32
    %c0_i32_0 = arith.constant 0 : i32
    %c0_i32_1 = arith.constant 0 : i32
    return %c0_i32, %c0_i32_0 : i32, i32
  }
  func.func @transform_3(%arg0: i32) -> (i32, i32) {
    %c0_i32 = arith.constant 0 : i32
    %c0_i32_0 = arith.constant 0 : i32
    %c0_i32_1 = arith.constant 0 : i32
    return %c0_i32, %c0_i32_0 : i32, i32
  }
  func.func @transform_4(%arg0: i32) -> (i32, i32) {
    %c0_i32 = arith.constant 0 : i32
    %c0_i32_0 = arith.constant 0 : i32
    %c0_i32_1 = arith.constant 0 : i32
    return %c0_i32, %c0_i32_0 : i32, i32
  }
}

module attributes {stable_mosaic.version = 11 : i64} {
  func.func @kernel(%arg0: i32, %arg1: memref<512x288xbf16, #tpu.memory_space<vmem>>, %arg2: memref<288x128xbf16, #tpu.memory_space<vmem>>, %arg3: memref<1x32xf32, #tpu.memory_space<vmem>>, %arg4: memref<1x32xf32, #tpu.memory_space<vmem>>, %arg5: memref<512x128xbf16, #tpu.memory_space<vmem>>, %arg6: memref<1x512x128xf32, #tpu.memory_space<vmem>>, %arg7: memref<1x128xf32, #tpu.memory_space<vmem>>, %arg8: memref<1x128xf32, #tpu.memory_space<vmem>>) attributes {dimension_semantics = [#tpu.dimension_semantics<arbitrary>], iteration_bounds = array<i64: 1>, scalar_prefetch = 0 : i64, scratch_operands = 3 : i64, tpu.core_type = #tpu.core_type<tc>, window_params = [{transform_indices = @transform_0, window_bounds = array<i64: 512, 288>}, {pipeline_mode = #tpu.pipeline_mode<synchronous>, transform_indices = @transform_1, window_bounds = array<i64: 288, 128>}, {pipeline_mode = #tpu.pipeline_mode<synchronous>, transform_indices = @transform_2, window_bounds = array<i64: 1, 32>}, {pipeline_mode = #tpu.pipeline_mode<synchronous>, transform_indices = @transform_3, window_bounds = array<i64: 1, 32>}, {pipeline_mode = #tpu.pipeline_mode<synchronous>, transform_indices = @transform_4, window_bounds = array<i64: 512, 128>}]} {
    %c0_i32 = arith.constant 0 : i32
    %0 = arith.cmpi eq, %arg0, %c0_i32 : i32
    %1 = arith.extui %0 : i1 to i32
    %c0_i32_0 = arith.constant 0 : i32
    %2 = arith.cmpi ne, %1, %c0_i32_0 : i32
    scf.if %2 {
      %cst_18 = arith.constant 0.000000e+00 : f32
      %24 = vector.broadcast %cst_18 : f32 to vector<1x128xf32>
      %c0_19 = arith.constant 0 : index
      %c0_20 = arith.constant 0 : index
      %25 = vector.load %arg7[%c0_19, %c0_20] : memref<1x128xf32, #tpu.memory_space<vmem>>, vector<1x128xf32>
      tpu.vector_store %arg7[%c0_19, %c0_20], %24 {strides = array<i32>} : memref<1x128xf32, #tpu.memory_space<vmem>>, vector<1x128xf32>,
      %cst_21 = arith.constant 0.000000e+00 : f32
      %26 = vector.broadcast %cst_21 : f32 to vector<1x128xf32>
      %c0_22 = arith.constant 0 : index
      %c0_23 = arith.constant 0 : index
      %27 = vector.load %arg8[%c0_22, %c0_23] : memref<1x128xf32, #tpu.memory_space<vmem>>, vector<1x128xf32>
      tpu.vector_store %arg8[%c0_22, %c0_23], %26 {strides = array<i32>} : memref<1x128xf32, #tpu.memory_space<vmem>>, vector<1x128xf32>,
    } else {
    }
    %c0 = arith.constant 0 : index
    %c0_1 = arith.constant 0 : index
    %3 = vector.load %arg1[%c0, %c0_1] : memref<512x288xbf16, #tpu.memory_space<vmem>>, vector<512x288xbf16>
    %c0_2 = arith.constant 0 : index
    %c0_3 = arith.constant 0 : index
    %4 = vector.load %arg2[%c0_2, %c0_3] : memref<288x128xbf16, #tpu.memory_space<vmem>>, vector<288x128xbf16>
    %cst = arith.constant dense<0.000000e+00> : vector<512x128xf32>
    %5 = tpu.matmul %3, %4, %cst {dimension_numbers = #tpu.dot_dimension_numbers<[1], [0], [0], [1], [0, 0, 1, 1], [], []>} : vector<512x288xbf16>, vector<288x128xbf16>, vector<512x128xf32> -> vector<512x128xf32>
    %6 = arith.index_cast %arg0 : i32 to index
    %c0_4 = arith.constant 0 : index
    %c0_5 = arith.constant 0 : index
    %7 = vector.load %arg6[%6, %c0_4, %c0_5] : memref<1x512x128xf32, #tpu.memory_space<vmem>>, vector<1x512x128xf32>
    %8 = vector.shape_cast %7 : vector<1x512x128xf32> to vector<512x128xf32>
    %9 = vector.shape_cast %5 : vector<512x128xf32> to vector<1x512x128xf32>
    tpu.vector_store %arg6[%6, %c0_4, %c0_5], %9 {strides = array<i32>} : memref<1x512x128xf32, #tpu.memory_space<vmem>>, vector<1x512x128xf32>,
    %c0_6 = arith.constant 0 : index
    %c0_7 = arith.constant 0 : index
    %10 = vector.load %arg7[%c0_6, %c0_7] : memref<1x128xf32, #tpu.memory_space<vmem>>, vector<1x128xf32>
    %cst_8 = arith.constant dense<0.000000e+00> : vector<128xf32>
    %11 = vector.multi_reduction <add>, %5, %cst_8 [0] : vector<512x128xf32> to vector<128xf32>
    %12 = vector.shape_cast %11 : vector<128xf32> to vector<1x128xf32>
    %13 = arith.addf %10, %12 : vector<1x128xf32>
    %c0_9 = arith.constant 0 : index
    %c0_10 = arith.constant 0 : index
    %14 = vector.load %arg7[%c0_9, %c0_10] : memref<1x128xf32, #tpu.memory_space<vmem>>, vector<1x128xf32>
    tpu.vector_store %arg7[%c0_9, %c0_10], %13 {strides = array<i32>} : memref<1x128xf32, #tpu.memory_space<vmem>>, vector<1x128xf32>,
    %c0_11 = arith.constant 0 : index
    %c0_12 = arith.constant 0 : index
    %15 = vector.load %arg8[%c0_11, %c0_12] : memref<1x128xf32, #tpu.memory_space<vmem>>, vector<1x128xf32>
    %16 = arith.mulf %5, %5 : vector<512x128xf32>
    %cst_13 = arith.constant dense<0.000000e+00> : vector<128xf32>
    %17 = vector.multi_reduction <add>, %16, %cst_13 [0] : vector<512x128xf32> to vector<128xf32>
    %18 = vector.shape_cast %17 : vector<128xf32> to vector<1x128xf32>
    %19 = arith.addf %15, %18 : vector<1x128xf32>
    %c0_14 = arith.constant 0 : index
    %c0_15 = arith.constant 0 : index
    %20 = vector.load %arg8[%c0_14, %c0_15] : memref<1x128xf32, #tpu.memory_space<vmem>>, vector<1x128xf32>
    tpu.vector_store %arg8[%c0_14, %c0_15], %19 {strides = array<i32>} : memref<1x128xf32, #tpu.memory_space<vmem>>, vector<1x128xf32>,
    %c0_i32_16 = arith.constant 0 : i32
    %21 = arith.cmpi eq, %arg0, %c0_i32_16 : i32
    %22 = arith.extui %21 : i1 to i32
    %c0_i32_17 = arith.constant 0 : i32
    %23 = arith.cmpi ne, %22, %c0_i32_17 : i32
    scf.if %23 {
      %c0_18 = arith.constant 0 : index
      %c0_19 = arith.constant 0 : index
      %24 = vector.load %arg7[%c0_18, %c0_19] : memref<1x128xf32, #tpu.memory_space<vmem>>, vector<1x32xf32>
      %c0_20 = arith.constant 0 : index
      %c0_21 = arith.constant 0 : index
      %25 = vector.load %arg8[%c0_20, %c0_21] : memref<1x128xf32, #tpu.memory_space<vmem>>, vector<1x32xf32>
      %c0_22 = arith.constant 0 : index
      %c32 = arith.constant 32 : index
      %26 = vector.load %arg7[%c0_22, %c32] : memref<1x128xf32, #tpu.memory_space<vmem>>, vector<1x32xf32>
      %27 = arith.addf %24, %26 : vector<1x32xf32>
      %c0_23 = arith.constant 0 : index
      %c32_24 = arith.constant 32 : index
      %28 = vector.load %arg8[%c0_23, %c32_24] : memref<1x128xf32, #tpu.memory_space<vmem>>, vector<1x32xf32>
      %29 = arith.addf %25, %28 : vector<1x32xf32>
      %c0_25 = arith.constant 0 : index
      %c64 = arith.constant 64 : index
      %30 = vector.load %arg7[%c0_25, %c64] : memref<1x128xf32, #tpu.memory_space<vmem>>, vector<1x32xf32>
      %31 = arith.addf %27, %30 : vector<1x32xf32>
      %c0_26 = arith.constant 0 : index
      %c64_27 = arith.constant 64 : index
      %32 = vector.load %arg8[%c0_26, %c64_27] : memref<1x128xf32, #tpu.memory_space<vmem>>, vector<1x32xf32>
      %33 = arith.addf %29, %32 : vector<1x32xf32>
      %c0_28 = arith.constant 0 : index
      %c96 = arith.constant 96 : index
      %34 = vector.load %arg7[%c0_28, %c96] : memref<1x128xf32, #tpu.memory_space<vmem>>, vector<1x32xf32>
      %35 = arith.addf %31, %34 : vector<1x32xf32>
      %c0_29 = arith.constant 0 : index
      %c96_30 = arith.constant 96 : index
      %36 = vector.load %arg8[%c0_29, %c96_30] : memref<1x128xf32, #tpu.memory_space<vmem>>, vector<1x32xf32>
      %37 = arith.addf %33, %36 : vector<1x32xf32>
      %cst_31 = arith.constant 4.8828125E-4 : f32
      %38 = vector.broadcast %cst_31 : f32 to vector<1x32xf32>
      %39 = arith.mulf %35, %38 : vector<1x32xf32>
      %cst_32 = arith.constant 4.8828125E-4 : f32
      %40 = vector.broadcast %cst_32 : f32 to vector<1x32xf32>
      %41 = arith.mulf %37, %40 : vector<1x32xf32>
      %42 = arith.mulf %39, %39 : vector<1x32xf32>
      %43 = arith.subf %41, %42 : vector<1x32xf32>
      %cst_33 = arith.constant 0.000000e+00 : f32
      %44 = vector.broadcast %cst_33 : f32 to vector<1x32xf32>
      %45 = arith.maximumf %43, %44 : vector<1x32xf32>
      %c0_34 = arith.constant 0 : index
      %c0_35 = arith.constant 0 : index
      %46 = vector.load %arg3[%c0_34, %c0_35] : memref<1x32xf32, #tpu.memory_space<vmem>>, vector<1x32xf32>
      %cst_36 = arith.constant 9.99999974E-6 : f32
      %47 = vector.broadcast %cst_36 : f32 to vector<1x32xf32>
      %48 = arith.addf %45, %47 : vector<1x32xf32>
      %49 = math.rsqrt %48 : vector<1x32xf32>
      %50 = arith.mulf %46, %49 : vector<1x32xf32>
      %c0_37 = arith.constant 0 : index
      %c0_38 = arith.constant 0 : index
      %51 = vector.load %arg4[%c0_37, %c0_38] : memref<1x32xf32, #tpu.memory_space<vmem>>, vector<1x32xf32>
      %52 = arith.mulf %39, %50 : vector<1x32xf32>
      %53 = arith.subf %51, %52 : vector<1x32xf32>
      %54 = tpu.concatenate %50, %50, %50, %50 in 1 : vector<1x32xf32>, vector<1x32xf32>, vector<1x32xf32>, vector<1x32xf32> -> vector<1x128xf32>
      %55 = tpu.concatenate %53, %53, %53, %53 in 1 : vector<1x32xf32>, vector<1x32xf32>, vector<1x32xf32>, vector<1x32xf32> -> vector<1x128xf32>
      %c0_39 = arith.constant 0 : index
      %c0_40 = arith.constant 0 : index
      %c0_41 = arith.constant 0 : index
      %56 = vector.load %arg6[%c0_39, %c0_40, %c0_41] : memref<1x512x128xf32, #tpu.memory_space<vmem>>, vector<1x512x128xf32>
      %57 = vector.shape_cast %56 : vector<1x512x128xf32> to vector<512x128xf32>
      %58 = vector.broadcast %54 : vector<1x128xf32> to vector<512x128xf32>
      %59 = arith.mulf %57, %58 : vector<512x128xf32>
      %60 = vector.broadcast %55 : vector<1x128xf32> to vector<512x128xf32>
      %61 = arith.addf %59, %60 : vector<512x128xf32>
      %cst_42 = arith.constant 0.000000e+00 : f32
      %62 = vector.broadcast %cst_42 : f32 to vector<512x128xf32>
      %63 = arith.maximumf %61, %62 : vector<512x128xf32>
      %64 = arith.truncf %63 : vector<512x128xf32> to vector<512x128xbf16>
      %c0_43 = arith.constant 0 : index
      %c0_44 = arith.constant 0 : index
      %65 = vector.load %arg5[%c0_43, %c0_44] : memref<512x128xbf16, #tpu.memory_space<vmem>>, vector<512x128xbf16>
      tpu.vector_store %arg5[%c0_43, %c0_44], %64 {strides = array<i32>} : memref<512x128xbf16, #tpu.memory_space<vmem>>, vector<512x128xbf16>,
    } else {
    }
    return
  }
  func.func @transform_0(%arg0: i32) -> (i32, i32) {
    %c0_i32 = arith.constant 0 : i32
    %c0_i32_0 = arith.constant 0 : i32
    return %arg0, %c0_i32 : i32, i32
  }
  func.func @transform_1(%arg0: i32) -> (i32, i32) {
    %c0_i32 = arith.constant 0 : i32
    %c0_i32_0 = arith.constant 0 : i32
    %c0_i32_1 = arith.constant 0 : i32
    return %c0_i32, %c0_i32_0 : i32, i32
  }
  func.func @transform_2(%arg0: i32) -> (i32, i32) {
    %c0_i32 = arith.constant 0 : i32
    %c0_i32_0 = arith.constant 0 : i32
    %c0_i32_1 = arith.constant 0 : i32
    return %c0_i32, %c0_i32_0 : i32, i32
  }
  func.func @transform_3(%arg0: i32) -> (i32, i32) {
    %c0_i32 = arith.constant 0 : i32
    %c0_i32_0 = arith.constant 0 : i32
    %c0_i32_1 = arith.constant 0 : i32
    return %c0_i32, %c0_i32_0 : i32, i32
  }
  func.func @transform_4(%arg0: i32) -> (i32, i32) {
    %c0_i32 = arith.constant 0 : i32
    %c0_i32_0 = arith.constant 0 : i32
    %c0_i32_1 = arith.constant 0 : i32
    return %c0_i32, %c0_i32_0 : i32, i32
  }
}

module attributes {stable_mosaic.version = 11 : i64} {
  func.func @_mm_bias_tanh_kernel(%arg0: i32, %arg1: memref<512x288xbf16, #tpu.memory_space<vmem>>, %arg2: memref<288x128xbf16, #tpu.memory_space<vmem>>, %arg3: memref<1x128xf32, #tpu.memory_space<vmem>>, %arg4: memref<512x128xbf16, #tpu.memory_space<vmem>>) attributes {dimension_semantics = [#tpu.dimension_semantics<parallel>], iteration_bounds = array<i64: 4>, scalar_prefetch = 0 : i64, scratch_operands = 0 : i64, tpu.core_type = #tpu.core_type<tc>, window_params = [{transform_indices = @transform_0, window_bounds = array<i64: 512, 288>}, {pipeline_mode = #tpu.pipeline_mode<synchronous>, transform_indices = @transform_1, window_bounds = array<i64: 288, 128>}, {pipeline_mode = #tpu.pipeline_mode<synchronous>, transform_indices = @transform_2, window_bounds = array<i64: 1, 128>}, {transform_indices = @transform_3, window_bounds = array<i64: 512, 128>}]} {
    %c0 = arith.constant 0 : index
    %c0_0 = arith.constant 0 : index
    %0 = vector.load %arg1[%c0, %c0_0] : memref<512x288xbf16, #tpu.memory_space<vmem>>, vector<512x288xbf16>
    %c0_1 = arith.constant 0 : index
    %c0_2 = arith.constant 0 : index
    %1 = vector.load %arg2[%c0_1, %c0_2] : memref<288x128xbf16, #tpu.memory_space<vmem>>, vector<288x128xbf16>
    %cst = arith.constant dense<0.000000e+00> : vector<512x128xf32>
    %2 = tpu.matmul %0, %1, %cst {dimension_numbers = #tpu.dot_dimension_numbers<[1], [0], [0], [1], [0, 0, 1, 1], [], []>} : vector<512x288xbf16>, vector<288x128xbf16>, vector<512x128xf32> -> vector<512x128xf32>
    %c0_3 = arith.constant 0 : index
    %c0_4 = arith.constant 0 : index
    %3 = vector.load %arg3[%c0_3, %c0_4] : memref<1x128xf32, #tpu.memory_space<vmem>>, vector<1x128xf32>
    %4 = vector.broadcast %3 : vector<1x128xf32> to vector<512x128xf32>
    %5 = arith.addf %2, %4 : vector<512x128xf32>
    %6 = math.tanh %5 : vector<512x128xf32>
    %7 = arith.truncf %6 : vector<512x128xf32> to vector<512x128xbf16>
    %c0_5 = arith.constant 0 : index
    %c0_6 = arith.constant 0 : index
    %8 = vector.load %arg4[%c0_5, %c0_6] : memref<512x128xbf16, #tpu.memory_space<vmem>>, vector<512x128xbf16>
    tpu.vector_store %arg4[%c0_5, %c0_6], %7 {strides = array<i32>} : memref<512x128xbf16, #tpu.memory_space<vmem>>, vector<512x128xbf16>,
    return
  }
  func.func @transform_0(%arg0: i32) -> (i32, i32) {
    %c0_i32 = arith.constant 0 : i32
    %c0_i32_0 = arith.constant 0 : i32
    return %arg0, %c0_i32 : i32, i32
  }
  func.func @transform_1(%arg0: i32) -> (i32, i32) {
    %c0_i32 = arith.constant 0 : i32
    %c0_i32_0 = arith.constant 0 : i32
    %c0_i32_1 = arith.constant 0 : i32
    return %c0_i32, %c0_i32_0 : i32, i32
  }
  func.func @transform_2(%arg0: i32) -> (i32, i32) {
    %c0_i32 = arith.constant 0 : i32
    %c0_i32_0 = arith.constant 0 : i32
    %c0_i32_1 = arith.constant 0 : i32
    return %c0_i32, %c0_i32_0 : i32, i32
  }
  func.func @transform_3(%arg0: i32) -> (i32, i32) {
    %c0_i32 = arith.constant 0 : i32
    %c0_i32_0 = arith.constant 0 : i32
    return %arg0, %c0_i32 : i32, i32
  }
}

</mosaic_0001>

<bundles_post_ra>
// kernel: generator_forward.5
= control target key start
LH: loop header
LB: loop body
LE: loop exit
PB: predicated region body
PF: predicated region fallthrough
CT: control target
= control target key end

     0   :  { %9 = vsyncpa [#allocation6], 0  ;;  %s2052_s0 = inlined_call_operand.vmem [shape: bf16[16,32], index: 0, kind: input, shape index: {}]   ;;  %s2053_s1 = inlined_call_operand.hbm [shape: bf16[32,2048], index: 1, kind: input, shape index: {}]   ;;  %s2054_s2 = inlined_call_operand.hbm [shape: f32[1,128], index: 2, kind: input, shape index: {}]   ;;  %s2055_s3 = inlined_call_operand.hbm [shape: f32[1,128], index: 3, kind: input, shape index: {}]   ;;  %s2056_s4 = inlined_call_operand.vmem [shape: bf16[16,2048], index: 4, kind: output, shape index: {}]  }
   0x1   :  { %10 = vsyncpa [#allocation8], 0  ;;  %s1630_s15 = smov [#allocation7]   ;;  %s1631_s17 = smov [#allocation5]  }
   0x2   :  { %s31_s16 = sshll.u32 %s1630_s15, 4  ;;  %s18_s18 = sshll.u32 %s1631_s17, 4  ;;  %s32_s16 = int_to_ptr.vmem [resolvable:$true] %s31_s16  ;;  %s1662_s18 = int_to_ptr.vmem [resolvable:$true] %s18_s18 }
   0x3   :  { %s1560_s21 = scalar_lea.hbm %s2054_s2, 16 }
   0x4   :  { %p1561_p0 = scmp.ne.s32.totalorder %s2054_s2, %s1560_s21  ;;  %p1564_p1 = scmp.lt.u32.totalorder %s1560_s21, %s2054_s2 }
   0x6   :  { %p1566_p2 = pnand %p1564_p1, %p1561_p0 }
   0x8   :  { %1569 = shalt.err (!%p1566_p2)
}
   0x9   :  { %s1570_s26 = scalar_lea.vmem %s32_s16, 16  ;;  %s1574_s27 = scalar_lea.vmem %s32_s16, 32 }
   0xa   :  { %p1571_p3 = scmp.ne.s32.totalorder %s32_s16, %s1570_s26  ;;  %p1575_p4 = scmp.lt.s32.totalorder %s32_s16, %s32_s16 }
   0xb   :  { %p1576_p5 = scmp.lt.s32.totalorder %s1574_s27, %s1570_s26 }
   0xd   :  { %p1577_p6 = por %p1576_p5, %p1575_p4 }
   0xf   :  { %p1578_p7 = pnand %p1577_p6, %p1571_p3 }
  0x11   :  { %1581 = shalt.err (!%p1578_p7)
}
  0x12   :  { %34 = dma.hbm_to_vmem [thread:$0]  %s2054_s2, 16, %s32_s16, [#allocation8]  }
  0x13   :  { %s1582_s6 = scalar_lea.hbm %s2053_s1, 4096 }
  0x14   :  { %p1583_p8 = scmp.ne.s32.totalorder %s2053_s1, %s1582_s6  ;;  %p1586_p9 = scmp.lt.u32.totalorder %s1582_s6, %s2053_s1 }
  0x16   :  { %p1588_p10 = pnand %p1586_p9, %p1583_p8 }
  0x18   :  { %1591 = shalt.err (!%p1588_p10)
}
  0x19   :  { %s1592_s11 = scalar_lea.vmem %s1662_s18, 4096  ;;  %p1597_p12 = scmp.lt.s32.totalorder %s1662_s18, %s1662_s18 }
  0x1a   :  { %p1593_p11 = scmp.ne.s32.totalorder %s1662_s18, %s1592_s11  ;;  %p1598_p13 = scmp.lt.s32.totalorder %s1592_s11, %s1592_s11 }
  0x1c   :  { %p1599_p0 = por %p1598_p13, %p1597_p12 }
  0x1e   :  { %p1600_p1 = pnand %p1599_p0, %p1593_p11 }
  0x20   :  { %1603 = shalt.err (!%p1600_p1)
}
  0x21   :  { %s1632_s2 = smov 1024   ;;  %s1633_s12 = smov 64  }
  0x22   :  { %24 = dma.hbm_to_vmem [thread:$0]  %s2053_s1, 4096, %s1662_s18, [#allocation6], %s1632_s2, %s1632_s2, %s1633_s12  }
  0x23   :  { %s1634_s15 = smov [#allocation9]   ;;  %s1604_s20 = scalar_lea.hbm %s2055_s3, 16 }
  0x24   :  { %s41_s16 = sshll.u32 %s1634_s15, 4  ;;  %p1605_p2 = scmp.ne.s32.totalorder %s2055_s3, %s1604_s20  ;;  %s42_s16 = int_to_ptr.vmem [resolvable:$true] %s41_s16 }
  0x25   :  { %p1608_p3 = scmp.lt.u32.totalorder %s1604_s20, %s2055_s3 }
  0x27   :  { %p1610_p4 = pnand %p1608_p3, %p1605_p2 }
  0x29   :  { %1613 = shalt.err (!%p1610_p4)
}
  0x2a   :  { %s1614_s25 = scalar_lea.vmem %s42_s16, 16  ;;  %s1618_s1 = scalar_lea.vmem %s42_s16, 32 }
  0x2b   :  { %p1615_p5 = scmp.ne.s32.totalorder %s42_s16, %s1614_s25  ;;  %p1619_p6 = scmp.lt.s32.totalorder %s42_s16, %s42_s16 }
  0x2c   :  { %p1620_p7 = scmp.lt.s32.totalorder %s1618_s1, %s1614_s25 }
  0x2e   :  { %p1621_p8 = por %p1620_p7, %p1619_p6 }
  0x30   :  { %p1622_p9 = pnand %p1621_p8, %p1615_p5 }
  0x32   :  { %1625 = shalt.err (!%p1622_p9)
}
  0x33   :  { %44 = dma.hbm_to_vmem [thread:$0]  %s2055_s3, 16, %s42_s16, [#allocation8]  }
  0x34   :  { %1626 = dma.done.wait [#allocation6], 4096  }
  0x35   :  { %1627 = vsyncadd [#allocation6], 4294963200 }
  0x36   :  { %1628 = dma.done.wait [#allocation8], 32  }
  0x37   :  { %1629 = vsyncadd [#allocation8], 4294967264  ;;  %v1635_v0 = vmov 0   ;;  %v65_v1 = vld [vmem:[#allocation5] sm:$0xff]  ;;  %v66_v3 = vld [vmem:[#allocation5 + $0x8] sm:$0xff]  ;;  %vm262_vm0 = vcmask 261120  }
  0x38   :  { %298 = vmatprep.mubr.bf16.mxu0 %v1635_v0  ;;  %341 = vmatprep.mubr.bf16.mxu1 %v1635_v0  ;;  %v73_v2 = vld [vmem:[#allocation5 + $0x40] sm:$0xff]  ;;  %v74_v5 = vld [vmem:[#allocation5 + $0x48] sm:$0xff]  ;;  %v67_v15 = vld [vmem:[#allocation5 + $0x10] sm:$0xff] }
  0x39   :  { %v1478_v4 = vcombine.high %v65_v1, %v73_v2  ;;  %v1477_v6 = vcombine.low %v65_v1, %v73_v2  ;;  %v81_v7 = vld [vmem:[#allocation5 + $0x80] sm:$0xff]  ;;  %v1480_v9 = vcombine.high %v66_v3, %v74_v5  ;;  %v1479_v10 = vcombine.low %v66_v3, %v74_v5  ;;  %v82_v12 = vld [vmem:[#allocation5 + $0x88] sm:$0xff]  ;;  %v75_v17 = vld [vmem:[#allocation5 + $0x50] sm:$0xff] }
  0x3a   :  { %v89_v8 = vld [vmem:[#allocation5 + $0xc0] sm:$0xff]  ;;  %v90_v13 = vld [vmem:[#allocation5 + $0xc8] sm:$0xff]  ;;  %v68_v18 = vld [vmem:[#allocation5 + $0x18] sm:$0xff]  ;;  %v1482_v21 = vcombine.high %v67_v15, %v75_v17  ;;  %v1481_v28 = vcombine.low %v67_v15, %v75_v17  ;;  %v1636_v3 = vmov 1966171168   ;;  %v782_v5 = vlaneseq }
  0x3b   :  { %v1494_v11 = vcombine.high %v81_v7, %v89_v8  ;;  %266 = vmatprep.subr.bf16.mxu0 %v1478_v4  ;;  %v1496_v14 = vcombine.high %v82_v12, %v90_v13  ;;  %309 = vmatprep.subr.bf16.mxu1 %v1480_v9  ;;  %v1493_v16 = vcombine.low %v81_v7, %v89_v8  ;;  %v76_v19 = vld [vmem:[#allocation5 + $0x58] sm:$0xff]  ;;  %v83_v23 = vld [vmem:[#allocation5 + $0x90] sm:$0xff]  ;;  %v1710_v25 = vld [vmem:[%s2052_s0] sm:$0xff]   ;;  %v780_v4 = vunpack.c.l.s4 %v1636_v3 }
  0x3c   :  { %267 = vmatpush1.bf16.msra.mxu0 %v1477_v6  ;;  %310 = vmatpush1.bf16.msra.mxu1 %v1479_v10  ;;  %v1495_v20 = vcombine.low %v82_v12, %v90_v13  ;;  %v1484_v22 = vcombine.high %v68_v18, %v76_v19  ;;  %v91_v24 = vld [vmem:[#allocation5 + $0xd0] sm:$0xff]  ;;  %v84_v26 = vld [vmem:[#allocation5 + $0x98] sm:$0xff]  ;;  %v1483_v29 = vcombine.low %v68_v18, %v76_v19  ;;  %v69_v32 = vld [vmem:[#allocation5 + $0x20] sm:$0xff]  ;;  %v1734_v7 = vshrl.u32 %v782_v5, 7 }
  0x3d   :  { %268 = vmatprep.subr.bf16.mxu0 %v1494_v11  ;;  %311 = vmatprep.subr.bf16.mxu1 %v1496_v14  ;;  %v92_v27 = vld [vmem:[#allocation5 + $0xd8] sm:$0xff]  ;;  %v1498_v30 = vcombine.high %v83_v23, %v91_v24  ;;  %v77_v33 = vld [vmem:[#allocation5 + $0x60] sm:$0xff]  ;;  %v70_v34 = vld [vmem:[#allocation5 + $0x28] sm:$0xff]  ;;  %v1497_v36 = vcombine.low %v83_v23, %v91_v24  ;;  %v781_v6 = vunpack.c.0.s8 %v780_v4 }
  0x3e   :  { %v1500_v31 = vcombine.high %v84_v26, %v92_v27  ;;  %v78_v35 = vld [vmem:[#allocation5 + $0x68] sm:$0xff]  ;;  %v1499_v37 = vcombine.low %v84_v26, %v92_v27  ;;  %v1486_v38 = vcombine.high %v69_v32, %v77_v33  ;;  %v85_v40 = vld [vmem:[#allocation5 + $0xa0] sm:$0xff]  ;;  %v1485_v44 = vcombine.low %v69_v32, %v77_v33  ;;  %v71_v48 = vld [vmem:[#allocation5 + $0x30] sm:$0xff] }
  0x3f   :  { %v1488_v39 = vcombine.high %v70_v34, %v78_v35  ;;  %v93_v41 = vld [vmem:[#allocation5 + $0xe0] sm:$0xff]  ;;  %v86_v42 = vld [vmem:[#allocation5 + $0xa8] sm:$0xff]  ;;  %v1487_v45 = vcombine.low %v70_v34, %v78_v35  ;;  %v79_v49 = vld [vmem:[#allocation5 + $0x70] sm:$0xff]  ;;  %v1751_v14 = vsub.s32 %v781_v6, %v1734_v7 }
  0x40   :  { %269 = vmatpush1.bf16.msra.mxu0 %v1493_v16  ;;  %312 = vmatpush1.bf16.msra.mxu1 %v1495_v20  ;;  %v94_v43 = vld [vmem:[#allocation5 + $0xe8] sm:$0xff]  ;;  %v1502_v46 = vcombine.high %v85_v40, %v93_v41  ;;  %v72_v50 = vld [vmem:[#allocation5 + $0x38] sm:$0xff]  ;;  %v1501_v52 = vcombine.low %v85_v40, %v93_v41  ;;  %v1490_v54 = vcombine.high %v71_v48, %v79_v49  ;;  %v87_v56 = vld [vmem:[#allocation5 + $0xb0] sm:$0xff] }
  0x41   :  { %352 = vmatprep.subr.bf16.mxu0 %v1482_v21  ;;  %395 = vmatprep.subr.bf16.mxu1 %v1484_v22  ;;  %v1504_v47 = vcombine.high %v86_v42, %v94_v43  ;;  %v80_v51 = vld [vmem:[#allocation5 + $0x78] sm:$0xff]  ;;  %v1503_v53 = vcombine.low %v86_v42, %v94_v43  ;;  %v95_v57 = vld [vmem:[#allocation5 + $0xf0] sm:$0xff]  ;;  %v1489_v60 = vcombine.low %v71_v48, %v79_v49 }
  0x42   :  { %v1492_v55 = vcombine.high %v72_v50, %v80_v51  ;;  %v88_v58 = vld [vmem:[#allocation5 + $0xb8] sm:$0xff]  ;;  %v1491_v61 = vcombine.low %v72_v50, %v80_v51  ;;  %v1506_v62 = vcombine.high %v87_v56, %v95_v57  ;;  %v1505_v1 = vcombine.low %v87_v56, %v95_v57 }
  0x43   :  { %1509 = vmatmul.mubr.msk.bf16.vlgmr.msra.gmra.mrb[0].mxu0 %vm262_vm0, %v1710_v25  ;;  %1510 = vmatmul.mubr.msk.bf16.vlgmr.msra.gmra.mrb[0].mxu1 %vm262_vm0, %v1710_v25  ;;  %v96_v59 = vld [vmem:[#allocation5 + $0xf8] sm:$0xff] }
  0x44   :  { %353 = vmatpush1.bf16.msra.mxu0 %v1481_v28  ;;  %396 = vmatpush1.bf16.msra.mxu1 %v1483_v29  ;;  %v1508_v63 = vcombine.high %v88_v58, %v96_v59  ;;  %v1507_v2 = vcombine.low %v88_v58, %v96_v59 }
  0x45   :  { %354 = vmatprep.subr.bf16.mxu0 %v1498_v30  ;;  %397 = vmatprep.subr.bf16.mxu1 %v1500_v31 }
  0x46   :  { %384 = vmatprep.mubr.bf16.mxu0 %v1635_v0  ;;  %427 = vmatprep.mubr.bf16.mxu1 %v1635_v0 }
  0x48   :  { %355 = vmatpush1.bf16.msra.mxu0 %v1497_v36  ;;  %398 = vmatpush1.bf16.msra.mxu1 %v1499_v37 }
  0x49   :  { %438 = vmatprep.subr.bf16.mxu0 %v1486_v38  ;;  %481 = vmatprep.subr.bf16.mxu1 %v1488_v39 }
  0x4b   :  { %1511 = vmatmul.mubr.msk.bf16.vlgmr.msra.gmra.mrb[4].mxu0 %vm262_vm0, %v1710_v25  ;;  %1512 = vmatmul.mubr.msk.bf16.vlgmr.msra.gmra.mrb[4].mxu1 %vm262_vm0, %v1710_v25 }
  0x4c   :  { %439 = vmatpush1.bf16.msra.mxu0 %v1485_v44  ;;  %482 = vmatpush1.bf16.msra.mxu1 %v1487_v45 }
  0x4d   :  { %440 = vmatprep.subr.bf16.mxu0 %v1502_v46  ;;  %483 = vmatprep.subr.bf16.mxu1 %v1504_v47 }
  0x4e   :  { %470 = vmatprep.mubr.bf16.mxu0 %v1635_v0  ;;  %513 = vmatprep.mubr.bf16.mxu1 %v1635_v0 }
  0x50   :  { %441 = vmatpush1.bf16.msra.mxu0 %v1501_v52  ;;  %484 = vmatpush1.bf16.msra.mxu1 %v1503_v53 }
  0x51   :  { %524 = vmatprep.subr.bf16.mxu0 %v1490_v54  ;;  %567 = vmatprep.subr.bf16.mxu1 %v1492_v55 }
  0x53   :  { %1513 = vmatmul.mubr.msk.bf16.vlgmr.msra.gmra.mrb[8].mxu0 %vm262_vm0, %v1710_v25  ;;  %1514 = vmatmul.mubr.msk.bf16.vlgmr.msra.gmra.mrb[8].mxu1 %vm262_vm0, %v1710_v25 }
  0x54   :  { %525 = vmatpush1.bf16.msra.mxu0 %v1489_v60  ;;  %568 = vmatpush1.bf16.msra.mxu1 %v1491_v61 }
  0x55   :  { %526 = vmatprep.subr.bf16.mxu0 %v1506_v62  ;;  %569 = vmatprep.subr.bf16.mxu1 %v1508_v63 }
  0x56   :  { %556 = vmatprep.mubr.bf16.mxu0 %v1635_v0  ;;  %599 = vmatprep.mubr.bf16.mxu1 %v1635_v0 }
  0x58   :  { %527 = vmatpush1.bf16.msra.mxu0 %v1505_v1  ;;  %570 = vmatpush1.bf16.msra.mxu1 %v1507_v2 }
  0x5b   :  { %1515 = vmatmul.mubr.msk.bf16.vlgmr.msra.gmra.mrb[12].mxu0 %vm262_vm0, %v1710_v25  ;;  %1516 = vmatmul.mubr.msk.bf16.vlgmr.msra.gmra.mrb[12].mxu1 %vm262_vm0, %v1710_v25 }
 0x116   :  { %v1736_v8 = vpop.f32.mrb[0].mxu0  ;;  %v1738_v9 = vpop.f32.mrb[0].mxu1 }
 0x117   :  { %v1740_v10 = vpop.f32.mrb[1].mxu0  ;;  %v881_v0 = vmul.f32 %v1736_v8, %v1736_v8  ;;  %v883_v11 = vmul.f32 %v1738_v9, %v1738_v9  ;;  %v1746_v12 = vpop.f32.mrb[1].mxu1 }
 0x118   :  { %v1748_v13 = vpop.f32.mrb[2].mxu0  ;;  %v882_v15 = vmul.f32 %v1740_v10, %v1740_v10  ;;  %v884_v16 = vmul.f32 %v1746_v12, %v1746_v12  ;;  %v1761_v19 = vpop.f32.mrb[2].mxu1 }
 0x119   :  { %2068 = vst [vmem:[#allocation12_spill] sm:$0xff] %v1748_v13  ;;  %v647_v17 = vadd.f32 %v1748_v13, %v1736_v8  ;;  %v897_v18 = vmul.f32 %v1748_v13, %v1748_v13  ;;  %2069 = vst [vmem:[#allocation13_spill] sm:$0xff] %v1761_v19  ;;  %v1763_v20 = vpop.f32.mrb[3].mxu0  ;;  %v661_v21 = vadd.f32 %v1761_v19, %v1738_v9  ;;  %v1773_v25 = vpop.f32.mrb[3].mxu1 }
 0x11a   :  { %2070 = vst [vmem:[#allocation14_spill] sm:$0xff] %v1763_v20  ;;  %v899_v22 = vmul.f32 %v1761_v19, %v1761_v19  ;;  %v654_v23 = vadd.f32 %v1763_v20, %v1740_v10  ;;  %v898_v24 = vmul.f32 %v1763_v20, %v1763_v20  ;;  %2071 = vst [vmem:[#allocation15_spill] sm:$0xff] %v1773_v25 }
 0x11b   :  { %v648_v26 = vrot.slane %v647_v17, 4  ;;  %v913_v27 = vadd.f32 %v897_v18, %v881_v0  ;;  %v668_v28 = vadd.f32 %v1773_v25, %v1746_v12  ;;  %v900_v29 = vmul.f32 %v1773_v25, %v1773_v25 }
 0x11c   :  { %v662_v30 = vrot.slane %v661_v21, 4  ;;  %v927_v31 = vadd.f32 %v899_v22, %v883_v11  ;;  %v655_v32 = vrot.slane %v654_v23, 4  ;;  %v920_v33 = vadd.f32 %v898_v24, %v882_v15 }
 0x11d   :  { %v649_v34 = vadd.f32 %v648_v26, %v647_v17  ;;  %v914_v35 = vrot.slane %v913_v27, 4  ;;  %v669_v36 = vrot.slane %v668_v28, 4  ;;  %v934_v37 = vadd.f32 %v900_v29, %v884_v16 }
 0x11e   :  { %v663_v38 = vadd.f32 %v662_v30, %v661_v21  ;;  %v928_v39 = vrot.slane %v927_v31, 4  ;;  %v656_v40 = vadd.f32 %v655_v32, %v654_v23  ;;  %v921_v41 = vrot.slane %v920_v33, 4  ;;  %v1779_v42 = vpop.f32.mrb[4].mxu0  ;;  %v1781_v47 = vpop.f32.mrb[4].mxu1 }
 0x11f   :  { %v650_v43 = vrot.slane %v649_v34, 2  ;;  %v915_v44 = vadd.f32 %v914_v35, %v913_v27  ;;  %v670_v45 = vadd.f32 %v669_v36, %v668_v28  ;;  %v935_v46 = vrot.slane %v934_v37, 4  ;;  %v1783_v48 = vpop.f32.mrb[5].mxu0  ;;  %v1785_v53 = vpop.f32.mrb[5].mxu1 }
 0x120   :  { %v664_v49 = vrot.slane %v663_v38, 2  ;;  %v929_v50 = vadd.f32 %v928_v39, %v927_v31  ;;  %v657_v51 = vrot.slane %v656_v40, 2  ;;  %v922_v52 = vadd.f32 %v921_v41, %v920_v33  ;;  %2072 = vst [vmem:[#allocation16_spill] sm:$0xff] %v1785_v53  ;;  %v1787_v54 = vpop.f32.mrb[6].mxu0  ;;  %v1789_v59 = vpop.f32.mrb[6].mxu1 }
 0x121   :  { %2073 = vst [vmem:[#allocation17_spill] sm:$0xff] %v1787_v54  ;;  %v651_v55 = vadd.f32 %v650_v43, %v649_v34  ;;  %v916_v56 = vrot.slane %v915_v44, 2  ;;  %v671_v57 = vrot.slane %v670_v45, 2  ;;  %v936_v58 = vadd.f32 %v935_v46, %v934_v37  ;;  %2074 = vst [vmem:[#allocation18_spill] sm:$0xff] %v1789_v59  ;;  %v1791_v60 = vpop.f32.mrb[7].mxu0  ;;  %v1793_v2 = vpop.f32.mrb[7].mxu1 }
 0x122   :  { %2075 = vst [vmem:[#allocation19_spill] sm:$0xff] %v1791_v60  ;;  %v665_v61 = vadd.f32 %v664_v49, %v663_v38  ;;  %v930_v62 = vrot.slane %v929_v50, 2  ;;  %v658_v63 = vadd.f32 %v657_v51, %v656_v40  ;;  %v923_v1 = vrot.slane %v922_v52, 2  ;;  %2076 = vst [vmem:[#allocation20_spill] sm:$0xff] %v1793_v2 }
 0x123   :  { %v652_v3 = vrot.slane %v651_v55, 1  ;;  %v917_v4 = vadd.f32 %v916_v56, %v915_v44  ;;  %v672_v5 = vadd.f32 %v671_v57, %v670_v45  ;;  %v937_v6 = vrot.slane %v936_v58, 2 }
 0x124   :  { %v666_v0 = vrot.slane %v665_v61, 1  ;;  %v931_v11 = vadd.f32 %v930_v62, %v929_v50  ;;  %v659_v15 = vrot.slane %v658_v63, 1  ;;  %v924_v16 = vadd.f32 %v923_v1, %v922_v52 }
 0x125   :  { %v653_v17 = vadd.f32 %v652_v3, %v651_v55  ;;  %v918_v18 = vrot.slane %v917_v4, 1  ;;  %v673_v21 = vrot.slane %v672_v5, 1  ;;  %v938_v22 = vadd.f32 %v937_v6, %v936_v58 }
 0x126   :  { %v667_v23 = vadd.f32 %v666_v0, %v665_v61  ;;  %v932_v24 = vrot.slane %v931_v11, 1  ;;  %v660_v26 = vadd.f32 %v659_v15, %v658_v63  ;;  %v925_v27 = vrot.slane %v924_v16, 1  ;;  %v1795_v28 = vpop.f32.mrb[8].mxu0  ;;  %v1797_v32 = vpop.f32.mrb[8].mxu1 }
 0x127   :  { %v919_v29 = vadd.f32 %v918_v18, %v917_v4  ;;  %v674_v30 = vadd.f32 %v673_v21, %v672_v5  ;;  %v939_v31 = vrot.slane %v938_v22, 1  ;;  %v1799_v33 = vpop.f32.mrb[9].mxu0  ;;  %v885_v37 = vmul.f32 %v1779_v42, %v1779_v42  ;;  %v1803_v38 = vpop.f32.mrb[9].mxu1 }
 0x128   :  { %v933_v34 = vadd.f32 %v932_v24, %v931_v11  ;;  %v775_v35 = vcombine.low %v653_v17, %v660_v26  ;;  %v926_v36 = vadd.f32 %v925_v27, %v924_v16  ;;  %v1805_v39 = vpop.f32.mrb[10].mxu0  ;;  %v887_v43 = vmul.f32 %v1781_v47, %v1781_v47  ;;  %v1811_v45 = vpop.f32.mrb[10].mxu1 }
 0x129   :  { %v776_v40 = vcombine.low %v667_v23, %v674_v30  ;;  %v940_v41 = vadd.f32 %v939_v31, %v938_v22  ;;  %v886_v44 = vmul.f32 %v1783_v48, %v1783_v48  ;;  %v1813_v46 = vpop.f32.mrb[11].mxu0  ;;  %v675_v51 = vadd.f32 %v1787_v54, %v1779_v42  ;;  %v1822_v55 = vpop.f32.mrb[11].mxu1 }
 0x12a   :  { %v1816_v49 = vrot.slane %v775_v35, %v1751_v14  ;;  %v1041_v50 = vcombine.low %v919_v29, %v926_v36  ;;  %v901_v52 = vmul.f32 %v1787_v54, %v1787_v54  ;;  %v689_v58 = vadd.f32 %v1789_v59, %v1781_v47 }
 0x12b   :  { %v1825_v56 = vrot.slane %v776_v40, %v1751_v14  ;;  %v1042_v57 = vcombine.low %v933_v34, %v940_v41  ;;  %v903_v61 = vmul.f32 %v1789_v59, %v1789_v59  ;;  %v676_v63 = vrot.slane %v675_v51, 4 }
 0x12c   :  { %v1832_v62 = vrot.slane %v1041_v50, %v1751_v14  ;;  %v941_v1 = vadd.f32 %v901_v52, %v885_v37  ;;  %v682_v3 = vadd.f32 %v1791_v60, %v1783_v48  ;;  %v690_v6 = vrot.slane %v689_v58, 4 }
 0x12d   :  { %v1839_v5 = vrot.slane %v1042_v57, %v1751_v14  ;;  %v955_v0 = vadd.f32 %v903_v61, %v887_v43  ;;  %v677_v11 = vadd.f32 %v676_v63, %v675_v51  ;;  %v902_v17 = vmul.f32 %v1791_v60, %v1791_v60 }
 0x12e   :  { %v942_v15 = vrot.slane %v941_v1, 4  ;;  %v683_v16 = vrot.slane %v682_v3, 4  ;;  %v1843_v18 = vpop.f32.mrb[12].mxu0  ;;  %v691_v22 = vadd.f32 %v690_v6, %v689_v58  ;;  %v1847_v24 = vpop.f32.mrb[12].mxu1  ;;  %v888_v36 = vmul.f32 %v1785_v53, %v1785_v53 }
 0x12f   :  { %v956_v23 = vrot.slane %v955_v0, 4  ;;  %v1849_v26 = vpop.f32.mrb[13].mxu0  ;;  %v678_v27 = vrot.slane %v677_v11, 2  ;;  %v948_v31 = vadd.f32 %v902_v17, %v886_v44  ;;  %v1851_v34 = vpop.f32.mrb[13].mxu1  ;;  %v696_v41 = vadd.f32 %v1793_v2, %v1785_v53 }
 0x130   :  { %v943_v29 = vadd.f32 %v942_v15, %v941_v1  ;;  %v684_v30 = vadd.f32 %v683_v16, %v682_v3  ;;  %v1853_v35 = vpop.f32.mrb[14].mxu0  ;;  %v692_v37 = vrot.slane %v691_v22, 2  ;;  %v1859_v43 = vpop.f32.mrb[14].mxu1  ;;  %v904_v3 = vmul.f32 %v1793_v2, %v1793_v2 }
 0x131   :  { %v957_v40 = vadd.f32 %v956_v23, %v955_v0  ;;  %2077 = vst [vmem:[#allocation21_spill] sm:$0xff] %v1859_v43  ;;  %v1861_v50 = vpop.f32.mrb[15].mxu0  ;;  %v679_v51 = vadd.f32 %v678_v27, %v677_v11  ;;  %v949_v44 = vrot.slane %v948_v31, 4  ;;  %v1863_v58 = vpop.f32.mrb[15].mxu1  ;;  %v697_v1 = vrot.slane %v696_v41, 4 }
 0x132   :  { %v944_v52 = vrot.slane %v943_v29, 2  ;;  %v685_v57 = vrot.slane %v684_v30, 2  ;;  %2078 = vst [vmem:[#allocation22_spill] sm:$0xff] %v1863_v58  ;;  %v693_v61 = vadd.f32 %v692_v37, %v691_v22  ;;  %v962_v4 = vadd.f32 %v904_v3, %v888_v36 }
 0x133   :  { %v958_v63 = vrot.slane %v957_v40, 2  ;;  %v680_v6 = vrot.slane %v679_v51, 1  ;;  %v950_v16 = vadd.f32 %v949_v44, %v948_v31  ;;  %v698_v21 = vadd.f32 %v697_v1, %v696_v41 }
 0x134   :  { %v945_v0 = vadd.f32 %v944_v52, %v943_v29  ;;  %v686_v15 = vadd.f32 %v685_v57, %v684_v30  ;;  %v694_v17 = vrot.slane %v693_v61, 1  ;;  %v963_v22 = vrot.slane %v962_v4, 4 }
 0x135   :  { %v959_v23 = vadd.f32 %v958_v63, %v957_v40  ;;  %v681_v11 = vadd.f32 %v680_v6, %v679_v51  ;;  %v951_v60 = vrot.slane %v950_v16, 2  ;;  %v699_v25 = vrot.slane %v698_v21, 2 }
 0x136   :  { %v946_v27 = vrot.slane %v945_v0, 1  ;;  %v687_v59 = vrot.slane %v686_v15, 1  ;;  %v695_v37 = vadd.f32 %v694_v17, %v693_v61  ;;  %v964_v53 = vadd.f32 %v963_v22, %v962_v4 }
 0x137   :  { %v960_v54 = vrot.slane %v959_v23, 1  ;;  %v952_v20 = vadd.f32 %v951_v60, %v950_v16  ;;  %v700_v2 = vadd.f32 %v699_v25, %v698_v21  ;;  %v889_v29 = vmul.f32 %v1795_v28, %v1795_v28 }
 0x138   :  { %v688_v19 = vadd.f32 %v687_v59, %v686_v15  ;;  %v947_v13 = vadd.f32 %v946_v27, %v945_v0  ;;  %v891_v36 = vmul.f32 %v1797_v32, %v1797_v32  ;;  %v965_v51 = vrot.slane %v964_v53, 2 }
 0x139   :  { %v961_v30 = vadd.f32 %v960_v54, %v959_v23  ;;  %v953_v40 = vrot.slane %v952_v20, 1  ;;  %v701_v41 = vrot.slane %v700_v2, 1  ;;  %v703_v52 = vadd.f32 %v1805_v39, %v1795_v28 }
 0x13a   :  { %v777_v31 = vcombine.low %v681_v11, %v688_v19  ;;  %v905_v59 = vmul.f32 %v1805_v39, %v1805_v39  ;;  %v717_v4 = vadd.f32 %v1811_v45, %v1797_v32  ;;  %v907_v19 = vmul.f32 %v1811_v45, %v1811_v45 }
 0x13b   :  { %v954_v60 = vadd.f32 %v953_v40, %v952_v20  ;;  %v702_v54 = vadd.f32 %v701_v41, %v700_v2  ;;  %v966_v21 = vadd.f32 %v965_v51, %v964_v53  ;;  %v704_v57 = vrot.slane %v703_v52, 4 }
 0x13c   :  { %v799_v25 = vrot.slane %v777_v31, %v1751_v14  ;;  %v969_v44 = vadd.f32 %v905_v59, %v889_v29  ;;  %v718_v63 = vrot.slane %v717_v4, 4  ;;  %v983_v1 = vadd.f32 %v907_v19, %v891_v36 }
 0x13d   :  { %v1043_v61 = vcombine.low %v947_v13, %v954_v60  ;;  %v710_v3 = vadd.f32 %v1813_v46, %v1799_v33  ;;  %v778_v6 = vcombine.low %v695_v37, %v702_v54  ;;  %v967_v0 = vrot.slane %v966_v21, 1 }
 0x13e   :  { %v705_v15 = vadd.f32 %v704_v57, %v703_v52  ;;  %v970_v20 = vrot.slane %v969_v44, 4  ;;  %v890_v16 = vmul.f32 %v1799_v33, %v1799_v33  ;;  %v719_v17 = vadd.f32 %v718_v63, %v717_v4 }
 0x13f   :  { %v984_v23 = vrot.slane %v983_v1, 4  ;;  %v711_v11 = vrot.slane %v710_v3, 4  ;;  %v806_v53 = vrot.slane %v778_v6, %v1751_v14  ;;  %v968_v2 = vadd.f32 %v967_v0, %v966_v21 }
 0x140   :  { %v706_v27 = vrot.slane %v705_v15, 2  ;;  %v971_v13 = vadd.f32 %v970_v20, %v969_v44  ;;  %v1065_v22 = vrot.slane %v1043_v61, %v1751_v14  ;;  %v720_v29 = vrot.slane %v719_v17, 2 }
 0x141   :  { %v712_v31 = vadd.f32 %v711_v11, %v710_v3  ;;  %v906_v37 = vmul.f32 %v1813_v46, %v1813_v46  ;;  %v808_v40 = vcombine.low %v799_v25, %v806_v53  ;;  %v1044_v36 = vcombine.low %v961_v30, %v968_v2 }
 0x142   :  { %v707_v41 = vadd.f32 %v706_v27, %v705_v15  ;;  %v972_v51 = vrot.slane %v971_v13, 2  ;;  %v2079_v52 = vcombine.low %v1816_v49, %v1825_v56  ;;  %v985_v60 = vadd.f32 %v984_v23, %v983_v1 }
 0x143   :  { %v713_v4 = vrot.slane %v712_v31, 2  ;;  %v976_v19 = vadd.f32 %v906_v37, %v890_v16  ;;  %v822_v54 = vrot.slane %v808_v40, %v1751_v14  ;;  %v1072_v21 = vrot.slane %v1044_v36, %v1751_v14 }
 0x144   :  { %v815_v59 = vrot.slane %v2079_v52, %v1751_v14  ;;  %v708_v57 = vrot.slane %v707_v41, 1  ;;  %v973_v44 = vadd.f32 %v972_v51, %v971_v13  ;;  %v2080_v30 = vcombine.low %v1832_v62, %v1839_v5 }
 0x145   :  { %v714_v61 = vadd.f32 %v713_v4, %v712_v31  ;;  %v977_v63 = vrot.slane %v976_v19, 4  ;;  %v1074_v6 = vcombine.low %v1065_v22, %v1072_v21  ;;  %v721_v49 = vadd.f32 %v720_v29, %v719_v17 }
 0x146   :  { %v1081_v25 = vrot.slane %v2080_v30, %v1751_v14  ;;  %v823_v3 = vcombine.low %v815_v59, %v822_v54  ;;  %v709_v56 = vadd.f32 %v708_v57, %v707_v41  ;;  %v986_v1 = vrot.slane %v985_v60, 2 }
 0x147   :  { %v715_v0 = vrot.slane %v714_v61, 1  ;;  %v978_v15 = vadd.f32 %v977_v63, %v976_v19  ;;  %v1088_v20 = vrot.slane %v1074_v6, %v1751_v14  ;;  %v974_v16 = vrot.slane %v973_v44, 1 }
 0x148   :  { %v724_v23 = vadd.f32 %v1822_v55, %v1803_v38  ;;  %v892_v11 = vmul.f32 %v1803_v38, %v1803_v38  ;;  %v908_v62 = vmul.f32 %v1822_v55, %v1822_v55  ;;  %877 = vst [vmem:[#allocation3] sm:$0xff] %v823_v3  ;;  %v722_v17 = vrot.slane %v721_v49, 1 }
 0x149   :  { %v716_v53 = vadd.f32 %v715_v0, %v714_v61  ;;  %v979_v2 = vrot.slane %v978_v15, 2  ;;  %v1089_v5 = vcombine.low %v1081_v25, %v1088_v20  ;;  %v987_v13 = vadd.f32 %v986_v1, %v985_v60 }
 0x14a   :  { %v725_v27 = vrot.slane %v724_v23, 4  ;;  %v990_v31 = vadd.f32 %v908_v62, %v892_v11  ;;  %v975_v37 = vadd.f32 %v974_v16, %v973_v44  ;;  %v731_v36 = vadd.f32 %v1853_v35, %v1843_v18 }
 0x14b   :  { %v824_v22 = vcombine.low %v709_v56, %v716_v53  ;;  %v980_v29 = vadd.f32 %v979_v2, %v978_v15  ;;  %v893_v52 = vmul.f32 %v1843_v18, %v1843_v18  ;;  %v909_v59 = vmul.f32 %v1853_v35, %v1853_v35  ;;  %1143 = vst [vmem:[#allocation4] sm:$0xff] %v1089_v5 }
 0x14c   :  { %v726_v40 = vadd.f32 %v725_v27, %v724_v23  ;;  %v991_v51 = vrot.slane %v990_v31, 4  ;;  %v895_v60 = vmul.f32 %v1847_v24, %v1847_v24  ;;  %v745_v19 = vadd.f32 %v1859_v43, %v1847_v24 }
 0x14d   :  { %v981_v41 = vrot.slane %v980_v29, 1  ;;  %v911_v54 = vmul.f32 %v1859_v43, %v1859_v43  ;;  %v997_v44 = vadd.f32 %v909_v59, %v893_v52  ;;  %v738_v61 = vadd.f32 %v1861_v50, %v1849_v26 }
 0x14e   :  { %v727_v4 = vrot.slane %v726_v40, 2  ;;  %v992_v57 = vadd.f32 %v991_v51, %v990_v31  ;;  %v894_v30 = vmul.f32 %v1849_v26, %v1849_v26  ;;  %v732_v25 = vrot.slane %v731_v36, 4 }
 0x14f   :  { %v982_v21 = vadd.f32 %v981_v41, %v980_v29  ;;  %v1011_v3 = vadd.f32 %v911_v54, %v895_v60  ;;  %v910_v56 = vmul.f32 %v1861_v50, %v1861_v50  ;;  %v752_v1 = vadd.f32 %v1863_v58, %v1851_v34 }
 0x150   :  { %v728_v63 = vadd.f32 %v727_v4, %v726_v40  ;;  %v912_v0 = vmul.f32 %v1863_v58, %v1863_v58  ;;  %v723_v15 = vadd.f32 %v722_v17, %v721_v49  ;;  %v988_v20 = vrot.slane %v987_v13, 1 }
 0x151   :  { %v1090_v6 = vcombine.low %v975_v37, %v982_v21  ;;  %v896_v16 = vmul.f32 %v1851_v34, %v1851_v34  ;;  %v993_v11 = vrot.slane %v992_v57, 2  ;;  %v746_v53 = vrot.slane %v745_v19, 4 }
 0x152   :  { %v729_v23 = vrot.slane %v728_v63, 1  ;;  %v1004_v2 = vadd.f32 %v910_v56, %v894_v30  ;;  %v733_v62 = vadd.f32 %v732_v25, %v731_v36  ;;  %v998_v5 = vrot.slane %v997_v44, 4 }
 0x153   :  { %v994_v29 = vadd.f32 %v993_v11, %v992_v57  ;;  %v1018_v31 = vadd.f32 %v912_v0, %v896_v16  ;;  %v989_v37 = vadd.f32 %v988_v20, %v987_v13  ;;  %v1930_v40 = vrot.slane %v824_v22, %v1751_v14 }
 0x154   :  { %v730_v27 = vadd.f32 %v729_v23, %v728_v63  ;;  %v999_v41 = vadd.f32 %v998_v5, %v997_v44  ;;  %v747_v17 = vadd.f32 %v746_v53, %v745_v19  ;;  %v1012_v52 = vrot.slane %v1011_v3, 4 }
 0x155   :  { %v995_v49 = vrot.slane %v994_v29, 1  ;;  %v734_v59 = vrot.slane %v733_v62, 2  ;;  %v1936_v21 = vrot.slane %v1090_v6, %v1751_v14  ;;  %v739_v30 = vrot.slane %v738_v61, 4 }
 0x156   :  { %v825_v51 = vcombine.low %v723_v15, %v730_v27  ;;  %v1000_v54 = vrot.slane %v999_v41, 2  ;;  %v1013_v36 = vadd.f32 %v1012_v52, %v1011_v3  ;;  %v748_v57 = vrot.slane %v747_v17, 2  ;;  %v1152_v52 = vld [vmem:[#allocation4 + $0x1] sm:$0x1] }
 0x157   :  { %v996_v60 = vadd.f32 %v995_v49, %v994_v29  ;;  %v735_v44 = vadd.f32 %v734_v59, %v733_v62  ;;  %v1005_v56 = vrot.slane %v1004_v2, 4  ;;  %v740_v0 = vadd.f32 %v739_v30, %v738_v61  ;;  %v1148_v29 = vld [vmem:[#allocation3] sm:$0x1] }
 0x158   :  { %v1933_v4 = vrot.slane %v825_v51, %v1751_v14  ;;  %v1014_v63 = vrot.slane %v1013_v36, 2  ;;  %v1001_v25 = vadd.f32 %v1000_v54, %v999_v41  ;;  %v749_v15 = vadd.f32 %v748_v57, %v747_v17  ;;  %v1149_v41 = vld [vmem:[#allocation4] sm:$0x1] }
 0x159   :  { %v1091_v22 = vcombine.low %v989_v37, %v996_v60  ;;  %v1006_v6 = vadd.f32 %v1005_v56, %v1004_v2  ;;  %v753_v20 = vrot.slane %v752_v1, 4  ;;  %v736_v16 = vrot.slane %v735_v44, 1  ;;  %v1150_v37 = vld [vmem:[#allocation3 + $0x1] sm:$0x1] }
 0x15a   :  { %v1015_v23 = vadd.f32 %v1014_v63, %v1013_v36  ;;  %v741_v11 = vrot.slane %v740_v0, 2  ;;  %v1019_v53 = vrot.slane %v1018_v31, 4  ;;  %v1002_v5 = vrot.slane %v1001_v25, 1 }
 0x15b   :  { %v1941_v19 = vrot.slane %v1091_v22, %v1751_v14  ;;  %v1007_v62 = vrot.slane %v1006_v6, 2  ;;  %v754_v27 = vadd.f32 %v753_v20, %v752_v1  ;;  %v750_v61 = vrot.slane %v749_v15, 1 }
 0x15c   :  { %v742_v51 = vadd.f32 %v741_v11, %v740_v0  ;;  %v1020_v49 = vadd.f32 %v1019_v53, %v1018_v31  ;;  %v737_v54 = vadd.f32 %v736_v16, %v735_v44  ;;  %v1016_v17 = vrot.slane %v1015_v23, 1  ;;  %v1154_v31 = vld [vmem:[#allocation3 + $0x2] sm:$0x1] }
 0x15d   :  { %v1122_v3 = vcombine.low %v1936_v21, %v1941_v19  ;;  %v1008_v59 = vadd.f32 %v1007_v62, %v1006_v6  ;;  %v755_v60 = vrot.slane %v754_v27, 2  ;;  %v1151_v22 = vadd.f32 %v1150_v37, %v1148_v29  ;;  %v1156_v62 = vld [vmem:[#allocation4 + $0x2] sm:$0x1] }
 0x15e   :  { %v743_v2 = vrot.slane %v742_v51, 1  ;;  %v1021_v21 = vrot.slane %v1020_v49, 2  ;;  %v1003_v36 = vadd.f32 %v1002_v5, %v1001_v25  ;;  %v1153_v30 = vadd.f32 %v1152_v52, %v1149_v41 }
 0x15f   :  { %v1009_v57 = vrot.slane %v1008_v59, 1  ;;  %v756_v63 = vadd.f32 %v755_v60, %v754_v27  ;;  %v751_v56 = vadd.f32 %v750_v61, %v749_v15  ;;  %v1017_v11 = vadd.f32 %v1016_v17, %v1015_v23  ;;  %v1158_v27 = vld [vmem:[#allocation3 + $0x3] sm:$0x1]  ;;  %v1162_v61 = vld [vmem:[#allocation3 + $0x4] sm:$0x1] }
 0x160   :  { %v744_v19 = vadd.f32 %v743_v2, %v742_v51  ;;  %v1022_v1 = vadd.f32 %v1021_v21, %v1020_v49  ;;  %v1155_v6 = vadd.f32 %v1154_v31, %v1151_v22  ;;  %v1157_v58 = vadd.f32 %v1156_v62, %v1153_v30  ;;  %v1160_v51 = vld [vmem:[#allocation4 + $0x3] sm:$0x1]  ;;  %v1168_v30 = vld [vmem:[#allocation4 + $0x5] sm:$0x1]  ;;  %v1176_v31 = vld [vmem:[#allocation4 + $0x7] sm:$0x1] }
 0x161   :  { %v1010_v20 = vadd.f32 %v1009_v57, %v1008_v59  ;;  %v757_v0 = vrot.slane %v756_v63, 1  ;;  %v1130_v21 = vrot.slane %v1122_v3, %v1751_v14 }
 0x162   :  { %v826_v53 = vcombine.low %v737_v54, %v744_v19  ;;  %v1023_v13 = vrot.slane %v1022_v1, 1  ;;  %v1159_v15 = vadd.f32 %v1158_v27, %v1155_v6  ;;  %v1161_v23 = vadd.f32 %v1160_v51, %v1157_v58  ;;  %v1164_v54 = vld [vmem:[#allocation4 + $0x4] sm:$0x1] }
 0x163   :  { %v1092_v44 = vcombine.low %v1003_v36, %v1010_v20  ;;  %v758_v16 = vadd.f32 %v757_v0, %v756_v63  ;;  %v1166_v36 = vld [vmem:[#allocation3 + $0x5] sm:$0x1]  ;;  %v1172_v20 = vld [vmem:[#allocation4 + $0x6] sm:$0x1] }
 0x164   :  { %v1024_v43 = vadd.f32 %v1023_v13, %v1022_v1  ;;  %v848_v25 = vrot.slane %v826_v53, %v1751_v14  ;;  %v1163_v60 = vadd.f32 %v1162_v61, %v1159_v15  ;;  %v2081_v13 = vcombine.low %v1930_v40, %v1933_v4  ;;  %v1170_v1 = vld [vmem:[#allocation3 + $0x6] sm:$0x1]  ;;  %v1174_v4 = vld [vmem:[#allocation3 + $0x7] sm:$0x1] }
 0x165   :  { %v827_v5 = vcombine.low %v751_v56, %v758_v16  ;;  %v1114_v29 = vrot.slane %v1092_v44, %v1751_v14 }
 0x166   :  { %v1093_v37 = vcombine.low %v1017_v11, %v1024_v43  ;;  %v864_v17 = vrot.slane %v2081_v13, %v1751_v14  ;;  %v1165_v43 = vadd.f32 %v1164_v54, %v1161_v23  ;;  %v1167_v63 = vadd.f32 %v1166_v36, %v1163_v60 }
 0x167   :  { %v855_v49 = vrot.slane %v827_v5, %v1751_v14 }
 0x168   :  { %v1121_v41 = vrot.slane %v1093_v37, %v1751_v14  ;;  %v1169_v19 = vadd.f32 %v1168_v30, %v1165_v43  ;;  %v1171_v56 = vadd.f32 %v1170_v1, %v1167_v63 }
 0x169   :  { %v857_v52 = vcombine.low %v848_v25, %v855_v49 }
 0x16a   :  { %v1123_v59 = vcombine.low %v1114_v29, %v1121_v41  ;;  %v1173_v40 = vadd.f32 %v1172_v20, %v1169_v19  ;;  %v1175_v0 = vadd.f32 %v1174_v4, %v1171_v56  ;;  %v1215_v4 = vld [vmem:[#allocation7] sm:$0x1] }
 0x16b   :  { %v871_v2 = vrot.slane %v857_v52, %v1751_v14 }
 0x16c   :  { %v1137_v22 = vrot.slane %v1123_v59, %v1751_v14  ;;  %v1177_v11 = vadd.f32 %v1176_v31, %v1173_v40 }
 0x16d   :  { %v872_v58 = vcombine.low %v864_v17, %v871_v2 }
 0x16e   :  { %v1138_v57 = vcombine.low %v1130_v21, %v1137_v22 }
 0x16f   :  { %878 = vst [vmem:[#allocation3 + $0x8] sm:$0xff] %v872_v58 }
 0x170   :  { %1144 = vst [vmem:[#allocation4 + $0x8] sm:$0xff] %v1138_v57 }
 0x176   :  { %v1178_v53 = vld [vmem:[#allocation3 + $0x8] sm:$0x1]  ;;  %v1182_v62 = vld [vmem:[#allocation3 + $0x9] sm:$0x1]  ;;  %v1186_v5 = vld [vmem:[#allocation3 + $0xa] sm:$0x1] }
 0x177   :  { %v1179_v3 = vadd.f32 %v1178_v53, %v1175_v0  ;;  %v1180_v6 = vld [vmem:[#allocation4 + $0x8] sm:$0x1]  ;;  %v1184_v16 = vld [vmem:[#allocation4 + $0x9] sm:$0x1]  ;;  %v1188_v29 = vld [vmem:[#allocation4 + $0xa] sm:$0x1] }
 0x178   :  { %v1181_v14 = vadd.f32 %v1180_v6, %v1177_v11  ;;  %v1190_v15 = vld [vmem:[#allocation3 + $0xb] sm:$0x1]  ;;  %v1192_v49 = vld [vmem:[#allocation4 + $0xb] sm:$0x1]  ;;  %v1194_v41 = vld [vmem:[#allocation3 + $0xc] sm:$0x1] }
 0x179   :  { %v1183_v44 = vadd.f32 %v1182_v62, %v1179_v3  ;;  %v1196_v61 = vld [vmem:[#allocation4 + $0xc] sm:$0x1]  ;;  %v1198_v60 = vld [vmem:[#allocation3 + $0xd] sm:$0x1]  ;;  %v1200_v13 = vld [vmem:[#allocation4 + $0xd] sm:$0x1] }
 0x17a   :  { %v1185_v25 = vadd.f32 %v1184_v16, %v1181_v14  ;;  %v1202_v2 = vld [vmem:[#allocation3 + $0xe] sm:$0x1]  ;;  %v1204_v21 = vld [vmem:[#allocation4 + $0xe] sm:$0x1]  ;;  %v1206_v58 = vld [vmem:[#allocation3 + $0xf] sm:$0x1] }
 0x17b   :  { %v1187_v27 = vadd.f32 %v1186_v5, %v1183_v44  ;;  %v1208_v57 = vld [vmem:[#allocation4 + $0xf] sm:$0x1]  ;;  %v1256_v0 = vsub.s32 0, %v1734_v7  ;;  %v1219_v53 = vld [vmem:[#allocation9] sm:$0x1] }
 0x17c   :  { %v1189_v37 = vadd.f32 %v1188_v29, %v1185_v25  ;;  %v2082_v29 = vld [vmem:[#allocation16_spill] sm:$0xff] }
 0x17d   :  { %v1191_v51 = vadd.f32 %v1190_v15, %v1187_v27 }
 0x17e   :  { %v1193_v23 = vadd.f32 %v1192_v49, %v1189_v37  ;;  %v2083_v49 = vld [vmem:[#allocation12_spill] sm:$0xff] }
 0x17f   :  { %v1195_v52 = vadd.f32 %v1194_v41, %v1191_v51 }
 0x180   :  { %v1197_v59 = vadd.f32 %v1196_v61, %v1193_v23  ;;  %v2084_v23 = vld [vmem:[#allocation14_spill] sm:$0xff]  ;;  %v2086_v61 = vld [vmem:[#allocation15_spill] sm:$0xff] }
 0x181   :  { %v1199_v54 = vadd.f32 %v1198_v60, %v1195_v52  ;;  %v2085_v52 = vld [vmem:[#allocation13_spill] sm:$0xff]  ;;  %v2088_v60 = vld [vmem:[#allocation19_spill] sm:$0xff] }
 0x182   :  { %v1201_v17 = vadd.f32 %v1200_v13, %v1197_v59  ;;  %v2087_v59 = vld [vmem:[#allocation17_spill] sm:$0xff]  ;;  %v2090_v13 = vld [vmem:[#allocation20_spill] sm:$0xff] }
 0x183   :  { %v1203_v43 = vadd.f32 %v1202_v2, %v1199_v54  ;;  %v2089_v54 = vld [vmem:[#allocation18_spill] sm:$0xff] }
 0x184   :  { %v1205_v22 = vadd.f32 %v1204_v21, %v1201_v17 }
 0x185   :  { %v1207_v36 = vadd.f32 %v1206_v58, %v1203_v43  ;;  %v2091_v58 = vld [vmem:[#allocation21_spill] sm:$0xff] }
 0x186   :  { %v1209_v63 = vadd.f32 %v1208_v57, %v1205_v22  ;;  %v2092_v57 = vld [vmem:[#allocation22_spill] sm:$0xff] }
 0x187   :  { %v1210_v30 = vmul.f32 0.03125, %v1207_v36 }
 0x188   :  { %v1211_v19 = vmul.f32 0.03125, %v1209_v63 }
 0x189   :  { %v1212_v1 = vmul.f32 %v1210_v30, %v1210_v30 }
 0x18b   :  { %v1213_v56 = vsub.f32 %v1211_v19, %v1212_v1 }
 0x18d   :  { %v1214_v20 = vmax.f32 %v1213_v56, 0.0 }
 0x18f   :  { %v1216_v40 = vadd.f32 1e-05, %v1214_v20 }
 0x191   :  { %1558 = vrsqrt.f32 %v1216_v40 }
 0x19b   :  { %v1559_v31 = vpop.eup %1558 }
 0x19c   :  { %v1218_v11 = vmul.f32 %v1559_v31, %v1215_v4 }
 0x19e   :  { %v1220_v3 = vmul.f32 %v1218_v11, %v1210_v30  ;;  %v1257_v6 = vrot.slane %v1218_v11, %v1256_v0 }
 0x1a0   :  { %v1221_v14 = vsub.f32 %v1219_v53, %v1220_v3  ;;  %v1258_v62 = vmul.f32 %v1257_v6, %v1736_v8  ;;  %v1259_v44 = vmul.f32 %v1257_v6, %v1740_v10  ;;  %v1260_v16 = vmul.f32 %v1257_v6, %v1738_v9 }
 0x1a1   :  { %v1261_v25 = vmul.f32 %v1257_v6, %v1746_v12  ;;  %v1262_v5 = vmul.f32 %v1257_v6, %v1779_v42  ;;  %v1263_v27 = vmul.f32 %v1257_v6, %v1783_v48  ;;  %v1264_v7 = vmul.f32 %v1257_v6, %v1781_v47 }
 0x1a2   :  { %v1265_v37 = vmul.f32 %v1257_v6, %v2082_v29  ;;  %v1266_v15 = vmul.f32 %v1257_v6, %v1795_v28  ;;  %v1267_v51 = vmul.f32 %v1257_v6, %v1799_v33  ;;  %v1268_v8 = vmul.f32 %v1257_v6, %v1797_v32 }
 0x1a3   :  { %v1269_v10 = vmul.f32 %v1257_v6, %v1803_v38  ;;  %v1270_v9 = vmul.f32 %v1257_v6, %v1843_v18  ;;  %v1271_v12 = vmul.f32 %v1257_v6, %v1849_v26  ;;  %v1272_v42 = vmul.f32 %v1257_v6, %v1847_v24 }
 0x1a4   :  { %v1273_v48 = vmul.f32 %v1257_v6, %v1851_v34  ;;  %v1274_v47 = vmul.f32 %v1257_v6, %v2083_v49  ;;  %v1275_v41 = vmul.f32 %v1257_v6, %v2084_v23  ;;  %v1276_v28 = vmul.f32 %v1257_v6, %v2085_v52 }
 0x1a5   :  { %v1277_v33 = vmul.f32 %v1257_v6, %v2086_v61  ;;  %v1278_v32 = vmul.f32 %v1257_v6, %v2087_v59  ;;  %v1279_v38 = vmul.f32 %v1257_v6, %v2088_v60  ;;  %v1280_v18 = vmul.f32 %v1257_v6, %v2089_v54 }
 0x1a6   :  { %v1281_v26 = vmul.f32 %v1257_v6, %v2090_v13  ;;  %v1282_v24 = vmul.f32 %v1257_v6, %v1805_v39  ;;  %v1283_v34 = vmul.f32 %v1257_v6, %v1813_v46  ;;  %v1284_v17 = vmul.f32 %v1257_v6, %v1811_v45 }
 0x1a7   :  { %v1285_v2 = vmul.f32 %v1257_v6, %v1822_v55  ;;  %v1293_v43 = vrot.slane %v1221_v14, %v1256_v0  ;;  %v1286_v21 = vmul.f32 %v1257_v6, %v1853_v35  ;;  %v1287_v22 = vmul.f32 %v1257_v6, %v1861_v50 }
 0x1a8   :  { %v1288_v36 = vmul.f32 %v1257_v6, %v2091_v58  ;;  %v1289_v63 = vmul.f32 %v1257_v6, %v2092_v57 }
 0x1a9   :  { %v1989_v30 = vadd.f32 %v1293_v43, %v1258_v62  ;;  %v1991_v19 = vadd.f32 %v1293_v43, %v1259_v44  ;;  %v1993_v39 = vadd.f32 %v1293_v43, %v1260_v16  ;;  %v1995_v46 = vadd.f32 %v1293_v43, %v1261_v25 }
 0x1aa   :  { %v1997_v45 = vadd.f32 %v1293_v43, %v1262_v5  ;;  %v1299_v55 = vadd.f32 %v1293_v43, %v1263_v27  ;;  %v1300_v1 = vadd.f32 %v1293_v43, %v1264_v7  ;;  %v1301_v56 = vadd.f32 %v1293_v43, %v1265_v37 }
 0x1ab   :  { %v1302_v35 = vadd.f32 %v1293_v43, %v1266_v15  ;;  %v1303_v20 = vadd.f32 %v1293_v43, %v1267_v51  ;;  %v1304_v50 = vadd.f32 %v1293_v43, %v1268_v8  ;;  %v1305_v40 = vadd.f32 %v1293_v43, %v1269_v10 }
 0x1ac   :  { %v1306_v4 = vadd.f32 %v1293_v43, %v1270_v9  ;;  %v1307_v0 = vadd.f32 %v1293_v43, %v1271_v12  ;;  %v1308_v31 = vadd.f32 %v1293_v43, %v1272_v42  ;;  %v1309_v11 = vadd.f32 %v1293_v43, %v1273_v48 }
 0x1ad   :  { %v1310_v53 = vadd.f32 %v1293_v43, %v1274_v47  ;;  %v1311_v3 = vadd.f32 %v1293_v43, %v1275_v41  ;;  %v1312_v6 = vadd.f32 %v1293_v43, %v1276_v28  ;;  %v1313_v14 = vadd.f32 %v1293_v43, %v1277_v33 }
 0x1ae   :  { %v1314_v62 = vadd.f32 %v1293_v43, %v1278_v32  ;;  %v1315_v44 = vadd.f32 %v1293_v43, %v1279_v38  ;;  %v1316_v16 = vadd.f32 %v1293_v43, %v1280_v18  ;;  %v1317_v25 = vadd.f32 %v1293_v43, %v1281_v26 }
 0x1af   :  { %v1318_v5 = vadd.f32 %v1293_v43, %v1282_v24  ;;  %v1319_v27 = vadd.f32 %v1293_v43, %v1283_v34  ;;  %v1320_v7 = vadd.f32 %v1293_v43, %v1284_v17  ;;  %v1321_v29 = vadd.f32 %v1293_v43, %v1285_v2 }
 0x1b0   :  { %v1322_v37 = vadd.f32 %v1293_v43, %v1286_v21  ;;  %v1323_v15 = vadd.f32 %v1293_v43, %v1287_v22  ;;  %v1324_v51 = vadd.f32 %v1293_v43, %v1288_v36  ;;  %v1325_v8 = vadd.f32 %v1293_v43, %v1289_v63 }
 0x1b1   :  { %v1326_v10 = vmax.f32 %v1989_v30, 0.0  ;;  %v1327_v9 = vmax.f32 %v1991_v19, 0.0  ;;  %v1328_v12 = vmax.f32 %v1993_v39, 0.0  ;;  %v1329_v42 = vmax.f32 %v1995_v46, 0.0 }
 0x1b2   :  { %v1330_v48 = vmax.f32 %v1997_v45, 0.0  ;;  %v1331_v49 = vmax.f32 %v1299_v55, 0.0  ;;  %v1332_v47 = vmax.f32 %v1300_v1, 0.0  ;;  %v1333_v23 = vmax.f32 %v1301_v56, 0.0 }
 0x1b3   :  { %v1334_v41 = vmax.f32 %v1302_v35, 0.0  ;;  %v1335_v52 = vmax.f32 %v1303_v20, 0.0  ;;  %v1336_v28 = vmax.f32 %v1304_v50, 0.0  ;;  %v1337_v61 = vmax.f32 %v1305_v40, 0.0 }
 0x1b4   :  { %v1338_v33 = vmax.f32 %v1306_v4, 0.0  ;;  %v1339_v59 = vmax.f32 %v1307_v0, 0.0  ;;  %v1340_v32 = vmax.f32 %v1308_v31, 0.0  ;;  %v1341_v60 = vmax.f32 %v1309_v11, 0.0 }
 0x1b5   :  { %v1342_v38 = vmax.f32 %v1310_v53, 0.0  ;;  %v1343_v54 = vmax.f32 %v1311_v3, 0.0  ;;  %v1344_v18 = vmax.f32 %v1312_v6, 0.0  ;;  %v1345_v13 = vmax.f32 %v1313_v14, 0.0 }
 0x1b6   :  { %v1346_v26 = vmax.f32 %v1314_v62, 0.0  ;;  %v1347_v24 = vmax.f32 %v1315_v44, 0.0  ;;  %v1348_v34 = vmax.f32 %v1316_v16, 0.0  ;;  %v1349_v17 = vmax.f32 %v1317_v25, 0.0 }
 0x1b7   :  { %v1350_v2 = vmax.f32 %v1318_v5, 0.0  ;;  %v1351_v43 = vmax.f32 %v1319_v27, 0.0  ;;  %v1352_v21 = vmax.f32 %v1320_v7, 0.0  ;;  %v1353_v22 = vmax.f32 %v1321_v29, 0.0 }
 0x1b8   :  { %v1354_v58 = vmax.f32 %v1322_v37, 0.0  ;;  %v1355_v36 = vmax.f32 %v1323_v15, 0.0  ;;  %v1356_v57 = vmax.f32 %v1324_v51, 0.0  ;;  %v1357_v63 = vmax.f32 %v1325_v8, 0.0 }
 0x1b9   :  { %v1533_v30 = vpack.c.bf16 %v1327_v9, %v1326_v10  ;;  %v1534_v19 = vpack.c.bf16 %v1329_v42, %v1328_v12  ;;  %v1535_v39 = vpack.c.bf16 %v1331_v49, %v1330_v48  ;;  %v1536_v46 = vpack.c.bf16 %v1333_v23, %v1332_v47 }
 0x1ba   :  { %v1537_v45 = vpack.c.bf16 %v1335_v52, %v1334_v41  ;;  %v1538_v55 = vpack.c.bf16 %v1337_v61, %v1336_v28  ;;  %v1539_v1 = vpack.c.bf16 %v1339_v59, %v1338_v33  ;;  %v1540_v56 = vpack.c.bf16 %v1341_v60, %v1340_v32 }
 0x1bb   :  { %v1541_v35 = vpack.c.bf16 %v1343_v54, %v1342_v38  ;;  %v1542_v20 = vpack.c.bf16 %v1345_v13, %v1344_v18  ;;  %v1543_v50 = vpack.c.bf16 %v1347_v24, %v1346_v26  ;;  %v1544_v40 = vpack.c.bf16 %v1349_v17, %v1348_v34  ;;  %1454 = vst [vmem:[%s2056_s4] sm:$0xff] %v1533_v30 }
 0x1bc   :  { %1455 = vst [vmem:[%s2056_s4 + $0x8] sm:$0xff] %v1534_v19  ;;  %1456 = vst [vmem:[%s2056_s4 + $0x10] sm:$0xff] %v1535_v39  ;;  %v1545_v4 = vpack.c.bf16 %v1351_v43, %v1350_v2  ;;  %v1546_v0 = vpack.c.bf16 %v1353_v22, %v1352_v21  ;;  %v1547_v31 = vpack.c.bf16 %v1355_v36, %v1354_v58 }
 0x1bd   :  { %1457 = vst [vmem:[%s2056_s4 + $0x18] sm:$0xff] %v1536_v46  ;;  %v1548_v11 = vpack.c.bf16 %v1357_v63, %v1356_v57  ;;  %1458 = vst [vmem:[%s2056_s4 + $0x20] sm:$0xff] %v1537_v45 }
 0x1be   :  { %1459 = vst [vmem:[%s2056_s4 + $0x28] sm:$0xff] %v1538_v55  ;;  %1460 = vst [vmem:[%s2056_s4 + $0x30] sm:$0xff] %v1539_v1 }
 0x1bf   :  { %1461 = vst [vmem:[%s2056_s4 + $0x38] sm:$0xff] %v1540_v56  ;;  %1462 = vst [vmem:[%s2056_s4 + $0x40] sm:$0xff] %v1541_v35 }
 0x1c0   :  { %1463 = vst [vmem:[%s2056_s4 + $0x48] sm:$0xff] %v1542_v20  ;;  %1464 = vst [vmem:[%s2056_s4 + $0x50] sm:$0xff] %v1543_v50 }
 0x1c1   :  { %1465 = vst [vmem:[%s2056_s4 + $0x58] sm:$0xff] %v1544_v40  ;;  %1466 = vst [vmem:[%s2056_s4 + $0x60] sm:$0xff] %v1545_v4 }
 0x1c2   :  { %1467 = vst [vmem:[%s2056_s4 + $0x68] sm:$0xff] %v1546_v0  ;;  %1468 = vst [vmem:[%s2056_s4 + $0x70] sm:$0xff] %v1547_v31 }
 0x1c3   :  { %1469 = vst [vmem:[%s2056_s4 + $0x78] sm:$0xff] %v1548_v11 }
 0x1c4   :  { %1474 = vsyncpa [#allocation6], 1 }
 0x1c5   :  { %1475 = vsyncpa [#allocation8], 1 }

// kernel: generator_forward.6
= control target key start
LH: loop header
LB: loop body
LE: loop exit
PB: predicated region body
PF: predicated region fallthrough
CT: control target
= control target key end

     0   :  { %9 = vsyncpa [#allocation6], 0  ;;  %s2293_s0 = inlined_call_operand.vmem [shape: bf16[32,1152], index: 0, kind: input, shape index: {}]   ;;  %s2294_s1 = inlined_call_operand.hbm [shape: bf16[1152,256], index: 1, kind: input, shape index: {}]   ;;  %s2295_s2 = inlined_call_operand.hbm [shape: f32[1,64], index: 2, kind: input, shape index: {}]   ;;  %s2296_s3 = inlined_call_operand.hbm [shape: f32[1,64], index: 3, kind: input, shape index: {}]   ;;  %s2297_s4 = inlined_call_operand.vmem [shape: bf16[32,256], index: 4, kind: output, shape index: {}]  }
   0x1   :  { %10 = vsyncpa [#allocation8], 0  ;;  %s2082_s15 = smov [#allocation7]   ;;  %s2083_s17 = smov [#allocation5]  }
   0x2   :  { %s31_s16 = sshll.u32 %s2082_s15, 4  ;;  %s18_s18 = sshll.u32 %s2083_s17, 4  ;;  %s32_s16 = int_to_ptr.vmem [resolvable:$true] %s31_s16  ;;  %s2116_s18 = int_to_ptr.vmem [resolvable:$true] %s18_s18 }
   0x3   :  { %s2012_s21 = scalar_lea.hbm %s2295_s2, 16 }
   0x4   :  { %p2013_p0 = scmp.ne.s32.totalorder %s2295_s2, %s2012_s21  ;;  %p2016_p1 = scmp.lt.u32.totalorder %s2012_s21, %s2295_s2 }
   0x6   :  { %p2018_p2 = pnand %p2016_p1, %p2013_p0 }
   0x8   :  { %2021 = shalt.err (!%p2018_p2)
}
   0x9   :  { %s2022_s26 = scalar_lea.vmem %s32_s16, 16  ;;  %s2026_s27 = scalar_lea.vmem %s32_s16, 32 }
   0xa   :  { %p2023_p3 = scmp.ne.s32.totalorder %s32_s16, %s2022_s26  ;;  %p2027_p4 = scmp.lt.s32.totalorder %s32_s16, %s32_s16 }
   0xb   :  { %p2028_p5 = scmp.lt.s32.totalorder %s2026_s27, %s2022_s26 }
   0xd   :  { %p2029_p6 = por %p2028_p5, %p2027_p4 }
   0xf   :  { %p2030_p7 = pnand %p2029_p6, %p2023_p3 }
  0x11   :  { %2033 = shalt.err (!%p2030_p7)
}
  0x12   :  { %34 = dma.hbm_to_vmem [thread:$0]  %s2295_s2, 16, %s32_s16, [#allocation8]  }
  0x13   :  { %s2034_s6 = scalar_lea.hbm %s2294_s1, 18432 }
  0x14   :  { %p2035_p8 = scmp.ne.s32.totalorder %s2294_s1, %s2034_s6  ;;  %p2038_p9 = scmp.lt.u32.totalorder %s2034_s6, %s2294_s1 }
  0x16   :  { %p2040_p10 = pnand %p2038_p9, %p2035_p8 }
  0x18   :  { %2043 = shalt.err (!%p2040_p10)
}
  0x19   :  { %s2044_s11 = scalar_lea.vmem %s2116_s18, 18432  ;;  %p2049_p12 = scmp.lt.s32.totalorder %s2116_s18, %s2116_s18 }
  0x1a   :  { %p2045_p11 = scmp.ne.s32.totalorder %s2116_s18, %s2044_s11  ;;  %p2050_p13 = scmp.lt.s32.totalorder %s2044_s11, %s2044_s11 }
  0x1c   :  { %p2051_p0 = por %p2050_p13, %p2049_p12 }
  0x1e   :  { %p2052_p1 = pnand %p2051_p0, %p2045_p11 }
  0x20   :  { %2055 = shalt.err (!%p2052_p1)
}
  0x21   :  { %s2084_s2 = smov 128   ;;  %s2085_s12 = smov 8  }
  0x22   :  { %24 = dma.hbm_to_vmem [thread:$0]  %s2294_s1, 18432, %s2116_s18, [#allocation6], %s2084_s2, %s2084_s2, %s2085_s12  }
  0x23   :  { %s2086_s15 = smov [#allocation9]   ;;  %s2056_s20 = scalar_lea.hbm %s2296_s3, 16 }
  0x24   :  { %s41_s16 = sshll.u32 %s2086_s15, 4  ;;  %p2057_p2 = scmp.ne.s32.totalorder %s2296_s3, %s2056_s20  ;;  %s42_s16 = int_to_ptr.vmem [resolvable:$true] %s41_s16 }
  0x25   :  { %p2060_p3 = scmp.lt.u32.totalorder %s2056_s20, %s2296_s3 }
  0x27   :  { %p2062_p4 = pnand %p2060_p3, %p2057_p2 }
  0x29   :  { %2065 = shalt.err (!%p2062_p4)
}
  0x2a   :  { %s2066_s25 = scalar_lea.vmem %s42_s16, 16  ;;  %s2070_s1 = scalar_lea.vmem %s42_s16, 32 }
  0x2b   :  { %p2067_p5 = scmp.ne.s32.totalorder %s42_s16, %s2066_s25  ;;  %p2071_p6 = scmp.lt.s32.totalorder %s42_s16, %s42_s16 }
  0x2c   :  { %p2072_p7 = scmp.lt.s32.totalorder %s2070_s1, %s2066_s25 }
  0x2e   :  { %p2073_p8 = por %p2072_p7, %p2071_p6 }
  0x30   :  { %p2074_p9 = pnand %p2073_p8, %p2067_p5 }
  0x32   :  { %2077 = shalt.err (!%p2074_p9)
}
  0x33   :  { %44 = dma.hbm_to_vmem [thread:$0]  %s2296_s3, 16, %s42_s16, [#allocation8]  }
  0x34   :  { %2078 = dma.done.wait [#allocation6], 18432  }
  0x35   :  { %2079 = vsyncadd [#allocation6], 4294948864 }
  0x36   :  { %2080 = dma.done.wait [#allocation8], 32  }
  0x37   :  { %2081 = vsyncadd [#allocation8], 4294967264  ;;  %v1768_v0 = vld [vmem:[#allocation5 + $0x4] ss:$8 sps:$4 sm:$0xff]   ;;  %v1772_v2 = vld [vmem:[#allocation5] ss:$8 sps:$4 sm:$0xff]  }
  0x38   :  { %v1770_v1 = vld [vmem:[#allocation5 + $0x204] ss:$8 sps:$4 sm:$0xff]   ;;  %1041 = vmatprep.subr.bf16.mxu1 %v1768_v0  ;;  %v1773_v3 = vld [vmem:[#allocation5 + $0x200] ss:$8 sps:$4 sm:$0xff]   ;;  %v1774_v4 = vld [vmem:[#allocation5 + $0x14] ss:$8 sps:$4 sm:$0xff]  }
  0x39   :  { %1147 = vmatprep.subr.bf16.mxu0 %v1770_v1  ;;  %1042 = vmatpush1.bf16.msra.mxu1 %v1772_v2  ;;  %v1776_v5 = vld [vmem:[#allocation5 + $0x214] ss:$8 sps:$4 sm:$0xff]   ;;  %v1778_v6 = vld [vmem:[#allocation5 + $0x10] ss:$8 sps:$4 sm:$0xff]   ;;  %v1780_v8 = vld [vmem:[#allocation5 + $0x24] ss:$8 sps:$4 sm:$0xff]  }
  0x3a   :  { %1148 = vmatpush1.bf16.msra.mxu0 %v1773_v3  ;;  %1043 = vmatprep.subr.bf16.mxu1 %v1774_v4  ;;  %v1779_v7 = vld [vmem:[#allocation5 + $0x210] ss:$8 sps:$4 sm:$0xff]   ;;  %v1782_v9 = vld [vmem:[#allocation5 + $0x224] ss:$8 sps:$4 sm:$0xff]   ;;  %v1784_v10 = vld [vmem:[#allocation5 + $0x20] ss:$8 sps:$4 sm:$0xff]  }
  0x3b   :  { %1149 = vmatprep.subr.bf16.mxu0 %v1776_v5  ;;  %v1785_v11 = vld [vmem:[#allocation5 + $0x220] ss:$8 sps:$4 sm:$0xff]   ;;  %v1786_v12 = vld [vmem:[#allocation5 + $0x34] ss:$8 sps:$4 sm:$0xff]   ;;  %v1790_v14 = vld [vmem:[#allocation5 + $0x30] ss:$8 sps:$4 sm:$0xff]  }
  0x3c   :  { %v1788_v13 = vld [vmem:[#allocation5 + $0x234] ss:$8 sps:$4 sm:$0xff]   ;;  %v1791_v15 = vld [vmem:[#allocation5 + $0x230] ss:$8 sps:$4 sm:$0xff]   ;;  %v1792_v16 = vld [vmem:[#allocation5 + $0x44] ss:$8 sps:$4 sm:$0xff]  }
  0x3d   :  { %1044 = vmatpush1.bf16.msra.mxu1 %v1778_v6  ;;  %v1794_v17 = vld [vmem:[#allocation5 + $0x244] ss:$8 sps:$4 sm:$0xff]   ;;  %v1796_v18 = vld [vmem:[#allocation5 + $0x40] ss:$8 sps:$4 sm:$0xff]   ;;  %v1798_v20 = vld [vmem:[#allocation5 + $0x54] ss:$8 sps:$4 sm:$0xff]  }
  0x3e   :  { %1150 = vmatpush1.bf16.msra.mxu0 %v1779_v7  ;;  %1045 = vmatprep.subr.bf16.mxu1 %v1780_v8  ;;  %v1797_v19 = vld [vmem:[#allocation5 + $0x240] ss:$8 sps:$4 sm:$0xff]   ;;  %v1800_v21 = vld [vmem:[#allocation5 + $0x254] ss:$8 sps:$4 sm:$0xff]   ;;  %v1802_v22 = vld [vmem:[#allocation5 + $0x50] ss:$8 sps:$4 sm:$0xff]  }
  0x3f   :  { %1151 = vmatprep.subr.bf16.mxu0 %v1782_v9  ;;  %v1803_v23 = vld [vmem:[#allocation5 + $0x250] ss:$8 sps:$4 sm:$0xff]   ;;  %v1804_v24 = vld [vmem:[#allocation5 + $0x64] ss:$8 sps:$4 sm:$0xff]   ;;  %v1808_v26 = vld [vmem:[#allocation5 + $0x60] ss:$8 sps:$4 sm:$0xff]  }
  0x40   :  { %v1806_v25 = vld [vmem:[#allocation5 + $0x264] ss:$8 sps:$4 sm:$0xff]   ;;  %v1809_v27 = vld [vmem:[#allocation5 + $0x260] ss:$8 sps:$4 sm:$0xff]   ;;  %v1810_v28 = vld [vmem:[#allocation5 + $0x74] ss:$8 sps:$4 sm:$0xff]  }
  0x41   :  { %1046 = vmatpush1.bf16.msra.mxu1 %v1784_v10  ;;  %v1812_v29 = vld [vmem:[#allocation5 + $0x274] ss:$8 sps:$4 sm:$0xff]   ;;  %v1814_v30 = vld [vmem:[#allocation5 + $0x70] ss:$8 sps:$4 sm:$0xff]   ;;  %v1816_v32 = vld [vmem:[#allocation5 + $0x84] ss:$8 sps:$4 sm:$0xff]  }
  0x42   :  { %1152 = vmatpush1.bf16.msra.mxu0 %v1785_v11  ;;  %1047 = vmatprep.subr.bf16.mxu1 %v1786_v12  ;;  %v1815_v31 = vld [vmem:[#allocation5 + $0x270] ss:$8 sps:$4 sm:$0xff]   ;;  %v1818_v33 = vld [vmem:[#allocation5 + $0x284] ss:$8 sps:$4 sm:$0xff]   ;;  %v1820_v34 = vld [vmem:[#allocation5 + $0x80] ss:$8 sps:$4 sm:$0xff]  }
  0x43   :  { %1153 = vmatprep.subr.bf16.mxu0 %v1788_v13  ;;  %v1821_v35 = vld [vmem:[#allocation5 + $0x280] ss:$8 sps:$4 sm:$0xff]   ;;  %v1822_v36 = vld [vmem:[#allocation5 + $0x94] ss:$8 sps:$4 sm:$0xff]   ;;  %v1826_v38 = vld [vmem:[#allocation5 + $0x90] ss:$8 sps:$4 sm:$0xff]  }
  0x44   :  { %v1824_v37 = vld [vmem:[#allocation5 + $0x294] ss:$8 sps:$4 sm:$0xff]   ;;  %v1827_v39 = vld [vmem:[#allocation5 + $0x290] ss:$8 sps:$4 sm:$0xff]   ;;  %v1828_v40 = vld [vmem:[#allocation5 + $0xa4] ss:$8 sps:$4 sm:$0xff]  }
  0x45   :  { %1048 = vmatpush1.bf16.msra.mxu1 %v1790_v14  ;;  %v1830_v41 = vld [vmem:[#allocation5 + $0x2a4] ss:$8 sps:$4 sm:$0xff]   ;;  %v1832_v42 = vld [vmem:[#allocation5 + $0xa0] ss:$8 sps:$4 sm:$0xff]   ;;  %v1834_v44 = vld [vmem:[#allocation5 + $0xb4] ss:$8 sps:$4 sm:$0xff]  }
  0x46   :  { %1154 = vmatpush1.bf16.msra.mxu0 %v1791_v15  ;;  %1049 = vmatprep.subr.bf16.mxu1 %v1792_v16  ;;  %v1833_v43 = vld [vmem:[#allocation5 + $0x2a0] ss:$8 sps:$4 sm:$0xff]   ;;  %v1836_v45 = vld [vmem:[#allocation5 + $0x2b4] ss:$8 sps:$4 sm:$0xff]   ;;  %v1838_v46 = vld [vmem:[#allocation5 + $0xb0] ss:$8 sps:$4 sm:$0xff]  }
  0x47   :  { %1155 = vmatprep.subr.bf16.mxu0 %v1794_v17  ;;  %v1839_v47 = vld [vmem:[#allocation5 + $0x2b0] ss:$8 sps:$4 sm:$0xff]   ;;  %v1866_v48 = vld [vmem:[%s2293_s0 + $0x4] ss:$36 sps:$4 sm:$0xff]   ;;  %v1846_v54 = vld [vmem:[#allocation5 + $0xd4] ss:$8 sps:$4 sm:$0xff]  }
  0x48   :  { %v1840_v49 = vld [vmem:[#allocation5 + $0xc4] ss:$8 sps:$4 sm:$0xff]   ;;  %1073 = vmatprep.mubr.bf16.mxu1 %v1866_v48  ;;  %v1872_v51 = vld [vmem:[%s2293_s0 + $0x14] ss:$36 sps:$4 sm:$0xff]   ;;  %v1844_v52 = vld [vmem:[#allocation5 + $0xc0] ss:$8 sps:$4 sm:$0xff]  }
  0x49   :  { %1050 = vmatpush1.bf16.msra.mxu1 %v1796_v18  ;;  %v1842_v50 = vld [vmem:[#allocation5 + $0x2c4] ss:$8 sps:$4 sm:$0xff]   ;;  %v1845_v53 = vld [vmem:[#allocation5 + $0x2c0] ss:$8 sps:$4 sm:$0xff]   ;;  %v1848_v55 = vld [vmem:[#allocation5 + $0x2d4] ss:$8 sps:$4 sm:$0xff]   ;;  %1179 = vmatprep.mubr.bf16.mxu0 %v1872_v51 }
  0x4a   :  { %1156 = vmatpush1.bf16.msra.mxu0 %v1797_v19  ;;  %1051 = vmatprep.subr.bf16.mxu1 %v1798_v20  ;;  %v1850_v56 = vld [vmem:[#allocation5 + $0xd0] ss:$8 sps:$4 sm:$0xff]   ;;  %v1852_v58 = vld [vmem:[#allocation5 + $0xe4] ss:$8 sps:$4 sm:$0xff]   ;;  %v1856_v60 = vld [vmem:[#allocation5 + $0xe0] ss:$8 sps:$4 sm:$0xff]  }
  0x4b   :  { %1157 = vmatprep.subr.bf16.mxu0 %v1800_v21  ;;  %v1851_v57 = vld [vmem:[#allocation5 + $0x2d0] ss:$8 sps:$4 sm:$0xff]   ;;  %v1854_v59 = vld [vmem:[#allocation5 + $0x2e4] ss:$8 sps:$4 sm:$0xff]   ;;  %v1857_v61 = vld [vmem:[#allocation5 + $0x2e0] ss:$8 sps:$4 sm:$0xff]  }
  0x4c   :  { %v1858_v62 = vld [vmem:[#allocation5 + $0xf4] ss:$8 sps:$4 sm:$0xff]   ;;  %v1862_v0 = vld [vmem:[#allocation5 + $0xf0] ss:$8 sps:$4 sm:$0xff]   ;;  %v1869_v2 = vld [vmem:[#allocation5 + $0x104] ss:$8 sps:$4 sm:$0xff]  }
  0x4d   :  { %1052 = vmatpush1.bf16.msra.mxu1 %v1802_v22  ;;  %v1860_v63 = vld [vmem:[#allocation5 + $0x2f4] ss:$8 sps:$4 sm:$0xff]   ;;  %v1863_v1 = vld [vmem:[#allocation5 + $0x2f0] ss:$8 sps:$4 sm:$0xff]   ;;  %v1875_v3 = vld [vmem:[#allocation5 + $0x304] ss:$8 sps:$4 sm:$0xff]  }
  0x4e   :  { %1158 = vmatpush1.bf16.msra.mxu0 %v1803_v23  ;;  %1053 = vmatprep.subr.bf16.mxu1 %v1804_v24  ;;  %v1864_v4 = vld [vmem:[%s2293_s0] ss:$36 sps:$4 sm:$0xff]   ;;  %v1870_v6 = vld [vmem:[%s2293_s0 + $0x10] ss:$36 sps:$4 sm:$0xff]   ;;  %vm1456_vm1 = vcmask 523264  }
  0x4f   :  { %1159 = vmatprep.subr.bf16.mxu0 %v1806_v25  ;;  %v1867_v5 = vld [vmem:[#allocation5 + $0x100] ss:$8 sps:$4 sm:$0xff]   ;;  %v1878_v8 = vld [vmem:[#allocation5 + $0x114] ss:$8 sps:$4 sm:$0xff]   ;;  %v1876_v10 = vld [vmem:[#allocation5 + $0x110] ss:$8 sps:$4 sm:$0xff]  }
  0x50   :  { %v1873_v7 = vld [vmem:[#allocation5 + $0x300] ss:$8 sps:$4 sm:$0xff]   ;;  %v1881_v9 = vld [vmem:[#allocation5 + $0x314] ss:$8 sps:$4 sm:$0xff]   ;;  %v1879_v11 = vld [vmem:[#allocation5 + $0x310] ss:$8 sps:$4 sm:$0xff]  }
  0x51   :  { %1054 = vmatpush1.bf16.msra.mxu1 %v1808_v26  ;;  %v1884_v12 = vld [vmem:[#allocation5 + $0x124] ss:$8 sps:$4 sm:$0xff]   ;;  %v1882_v14 = vld [vmem:[#allocation5 + $0x120] ss:$8 sps:$4 sm:$0xff]   ;;  %v1890_v16 = vld [vmem:[#allocation5 + $0x134] ss:$8 sps:$4 sm:$0xff]  }
  0x52   :  { %1160 = vmatpush1.bf16.msra.mxu0 %v1809_v27  ;;  %1055 = vmatprep.subr.bf16.mxu1 %v1810_v28  ;;  %v1887_v13 = vld [vmem:[#allocation5 + $0x324] ss:$8 sps:$4 sm:$0xff]   ;;  %v1885_v15 = vld [vmem:[#allocation5 + $0x320] ss:$8 sps:$4 sm:$0xff]   ;;  %v1893_v17 = vld [vmem:[#allocation5 + $0x334] ss:$8 sps:$4 sm:$0xff]  }
  0x53   :  { %1161 = vmatprep.subr.bf16.mxu0 %v1812_v29  ;;  %v1888_v18 = vld [vmem:[#allocation5 + $0x130] ss:$8 sps:$4 sm:$0xff]   ;;  %v1896_v20 = vld [vmem:[#allocation5 + $0x144] ss:$8 sps:$4 sm:$0xff]   ;;  %v1894_v22 = vld [vmem:[#allocation5 + $0x140] ss:$8 sps:$4 sm:$0xff]  }
  0x54   :  { %v1891_v19 = vld [vmem:[#allocation5 + $0x330] ss:$8 sps:$4 sm:$0xff]   ;;  %v1899_v21 = vld [vmem:[#allocation5 + $0x344] ss:$8 sps:$4 sm:$0xff]   ;;  %v1897_v23 = vld [vmem:[#allocation5 + $0x340] ss:$8 sps:$4 sm:$0xff]  }
  0x55   :  { %1056 = vmatpush1.bf16.msra.mxu1 %v1814_v30  ;;  %v1902_v24 = vld [vmem:[#allocation5 + $0x154] ss:$8 sps:$4 sm:$0xff]   ;;  %v1900_v26 = vld [vmem:[#allocation5 + $0x150] ss:$8 sps:$4 sm:$0xff]   ;;  %v1908_v28 = vld [vmem:[#allocation5 + $0x164] ss:$8 sps:$4 sm:$0xff]  }
  0x56   :  { %1162 = vmatpush1.bf16.msra.mxu0 %v1815_v31  ;;  %1057 = vmatprep.subr.bf16.mxu1 %v1816_v32  ;;  %v1905_v25 = vld [vmem:[#allocation5 + $0x354] ss:$8 sps:$4 sm:$0xff]   ;;  %v1903_v27 = vld [vmem:[#allocation5 + $0x350] ss:$8 sps:$4 sm:$0xff]   ;;  %v1954_v29 = vld [vmem:[%s2293_s0 + $0x4c] ss:$36 sps:$4 sm:$0xff]  }
  0x57   :  { %1163 = vmatprep.subr.bf16.mxu0 %v1818_v33  ;;  %v1956_v30 = vld [vmem:[%s2293_s0 + $0x5c] ss:$36 sps:$4 sm:$0xff]   ;;  %v1958_v31 = vld [vmem:[%s2293_s0 + $0x48] ss:$36 sps:$4 sm:$0xff]  }
  0x58   :  { %v1911_v32 = vld [vmem:[#allocation5 + $0x364] ss:$8 sps:$4 sm:$0xff]   ;;  %v1962_v33 = vld [vmem:[%s2293_s0 + $0x58] ss:$36 sps:$4 sm:$0xff]  }
  0x59   :  { %1058 = vmatpush1.bf16.msra.mxu1 %v1820_v34  ;;  %v1906_v34 = vld [vmem:[#allocation5 + $0x160] ss:$8 sps:$4 sm:$0xff]   ;;  %v1924_v48 = vld [vmem:[#allocation5 + $0x190] ss:$8 sps:$4 sm:$0xff]   ;;  %v1935_v51 = vld [vmem:[#allocation5 + $0x3a4] ss:$8 sps:$4 sm:$0xff]  }
  0x5a   :  { %1164 = vmatpush1.bf16.msra.mxu0 %v1821_v35  ;;  %1059 = vmatprep.subr.bf16.mxu1 %v1822_v36  ;;  %v1909_v35 = vld [vmem:[#allocation5 + $0x360] ss:$8 sps:$4 sm:$0xff]   ;;  %v1914_v36 = vld [vmem:[#allocation5 + $0x174] ss:$8 sps:$4 sm:$0xff]  }
  0x5b   :  { %1165 = vmatprep.subr.bf16.mxu0 %v1824_v37  ;;  %v1917_v37 = vld [vmem:[#allocation5 + $0x374] ss:$8 sps:$4 sm:$0xff]  }
  0x5d   :  { %1060 = vmatpush1.bf16.msra.mxu1 %v1826_v38  ;;  %v1912_v38 = vld [vmem:[#allocation5 + $0x170] ss:$8 sps:$4 sm:$0xff]  }
  0x5e   :  { %1166 = vmatpush1.bf16.msra.mxu0 %v1827_v39  ;;  %1061 = vmatprep.subr.bf16.mxu1 %v1828_v40  ;;  %v1915_v39 = vld [vmem:[#allocation5 + $0x370] ss:$8 sps:$4 sm:$0xff]   ;;  %v1920_v40 = vld [vmem:[#allocation5 + $0x184] ss:$8 sps:$4 sm:$0xff]  }
  0x5f   :  { %1167 = vmatprep.subr.bf16.mxu0 %v1830_v41  ;;  %v1974_v41 = vld [vmem:[%s2293_s0 + $0xc] ss:$36 sps:$4 sm:$0xff]  }
  0x61   :  { %1062 = vmatpush1.bf16.msra.mxu1 %v1832_v42  ;;  %v1923_v42 = vld [vmem:[#allocation5 + $0x384] ss:$8 sps:$4 sm:$0xff]  }
  0x62   :  { %1168 = vmatpush1.bf16.msra.mxu0 %v1833_v43  ;;  %1063 = vmatprep.subr.bf16.mxu1 %v1834_v44  ;;  %v1977_v43 = vld [vmem:[%s2293_s0 + $0x1c] ss:$36 sps:$4 sm:$0xff]   ;;  %v1918_v44 = vld [vmem:[#allocation5 + $0x180] ss:$8 sps:$4 sm:$0xff]  }
  0x63   :  { %1169 = vmatprep.subr.bf16.mxu0 %v1836_v45  ;;  %v1921_v45 = vld [vmem:[#allocation5 + $0x380] ss:$8 sps:$4 sm:$0xff]  }
  0x65   :  { %1064 = vmatpush1.bf16.msra.mxu1 %v1838_v46  ;;  %v1926_v46 = vld [vmem:[#allocation5 + $0x194] ss:$8 sps:$4 sm:$0xff]  }
  0x66   :  { %1170 = vmatpush1.bf16.msra.mxu0 %v1839_v47  ;;  %1065 = vmatprep.subr.bf16.mxu1 %v1840_v49  ;;  %v1929_v47 = vld [vmem:[#allocation5 + $0x394] ss:$8 sps:$4 sm:$0xff]   ;;  %v1927_v49 = vld [vmem:[#allocation5 + $0x390] ss:$8 sps:$4 sm:$0xff]  }
  0x67   :  { %1171 = vmatprep.subr.bf16.mxu0 %v1842_v50  ;;  %v1932_v50 = vld [vmem:[#allocation5 + $0x1a4] ss:$8 sps:$4 sm:$0xff]  }
  0x69   :  { %1066 = vmatpush1.bf16.msra.mxu1 %v1844_v52  ;;  %v1930_v52 = vld [vmem:[#allocation5 + $0x1a0] ss:$8 sps:$4 sm:$0xff]  }
  0x6a   :  { %1172 = vmatpush1.bf16.msra.mxu0 %v1845_v53  ;;  %1067 = vmatprep.subr.bf16.mxu1 %v1846_v54  ;;  %v1933_v53 = vld [vmem:[#allocation5 + $0x3a0] ss:$8 sps:$4 sm:$0xff]   ;;  %v1938_v54 = vld [vmem:[#allocation5 + $0x1b4] ss:$8 sps:$4 sm:$0xff]  }
  0x6b   :  { %1173 = vmatprep.subr.bf16.mxu0 %v1848_v55  ;;  %v1941_v55 = vld [vmem:[#allocation5 + $0x3b4] ss:$8 sps:$4 sm:$0xff]  }
  0x6d   :  { %1068 = vmatpush1.bf16.msra.mxu1 %v1850_v56  ;;  %v1936_v56 = vld [vmem:[#allocation5 + $0x1b0] ss:$8 sps:$4 sm:$0xff]  }
  0x6e   :  { %1174 = vmatpush1.bf16.msra.mxu0 %v1851_v57  ;;  %1069 = vmatprep.subr.bf16.mxu1 %v1852_v58  ;;  %v1939_v57 = vld [vmem:[#allocation5 + $0x3b0] ss:$8 sps:$4 sm:$0xff]   ;;  %v1944_v58 = vld [vmem:[#allocation5 + $0x1c4] ss:$8 sps:$4 sm:$0xff]  }
  0x6f   :  { %1175 = vmatprep.subr.bf16.mxu0 %v1854_v59  ;;  %v1947_v59 = vld [vmem:[#allocation5 + $0x3c4] ss:$8 sps:$4 sm:$0xff]  }
  0x71   :  { %1070 = vmatpush1.bf16.msra.mxu1 %v1856_v60  ;;  %v1942_v60 = vld [vmem:[#allocation5 + $0x1c0] ss:$8 sps:$4 sm:$0xff]  }
  0x72   :  { %1176 = vmatpush1.bf16.msra.mxu0 %v1857_v61  ;;  %1071 = vmatprep.subr.bf16.mxu1 %v1858_v62  ;;  %v1945_v61 = vld [vmem:[#allocation5 + $0x3c0] ss:$8 sps:$4 sm:$0xff]   ;;  %v1950_v62 = vld [vmem:[#allocation5 + $0x1d4] ss:$8 sps:$4 sm:$0xff]  }
  0x73   :  { %1177 = vmatprep.subr.bf16.mxu0 %v1860_v63  ;;  %v1953_v63 = vld [vmem:[#allocation5 + $0x3d4] ss:$8 sps:$4 sm:$0xff]  }
  0x75   :  { %1072 = vmatpush1.bf16.msra.mxu1 %v1862_v0  ;;  %v1948_v0 = vld [vmem:[#allocation5 + $0x1d0] ss:$8 sps:$4 sm:$0xff]  }
  0x76   :  { %1178 = vmatpush1.bf16.msra.mxu0 %v1863_v1  ;;  %1094 = vmatprep.subr.bf16.mxu1 %v1869_v2  ;;  %v1951_v1 = vld [vmem:[#allocation5 + $0x3d0] ss:$8 sps:$4 sm:$0xff]   ;;  %v1961_v2 = vld [vmem:[#allocation5 + $0x1e4] ss:$8 sps:$4 sm:$0xff]  }
  0x77   :  { %1200 = vmatprep.subr.bf16.mxu0 %v1875_v3  ;;  %v1965_v3 = vld [vmem:[#allocation5 + $0x3e4] ss:$8 sps:$4 sm:$0xff]  }
  0x78   :  { %1074 = vmatmul.mubr.bf16.vlgmr.msra.gmra.mrb[0].mxu1 %v1864_v4  ;;  %v1959_v4 = vld [vmem:[#allocation5 + $0x1e0] ss:$8 sps:$4 sm:$0xff]  }
  0x79   :  { %1180 = vmatmul.mubr.bf16.vlgmr.msra.gmra.mrb[0].mxu0 %v1870_v6  ;;  %1095 = vmatpush1.bf16.msra.mxu1 %v1867_v5  ;;  %v1963_v5 = vld [vmem:[#allocation5 + $0x3e0] ss:$8 sps:$4 sm:$0xff]   ;;  %v1968_v6 = vld [vmem:[#allocation5 + $0x1f4] ss:$8 sps:$4 sm:$0xff]  }
  0x7a   :  { %1201 = vmatpush1.bf16.msra.mxu0 %v1873_v7  ;;  %1096 = vmatprep.subr.bf16.mxu1 %v1878_v8  ;;  %v1971_v7 = vld [vmem:[#allocation5 + $0x3f4] ss:$8 sps:$4 sm:$0xff]   ;;  %v1966_v8 = vld [vmem:[#allocation5 + $0x1f0] ss:$8 sps:$4 sm:$0xff]  }
  0x7b   :  { %1202 = vmatprep.subr.bf16.mxu0 %v1881_v9  ;;  %1083 = vmatprep.mubr.bf16.mxu1 %v1954_v29  ;;  %v1969_v9 = vld [vmem:[#allocation5 + $0x3f0] ss:$8 sps:$4 sm:$0xff]   ;;  %v2004_v29 = vld [vmem:[#allocation5 + $0x464] ss:$8 sps:$4 sm:$0xff]  }
  0x7c   :  { %1189 = vmatprep.mubr.bf16.mxu0 %v1956_v30  ;;  %v2002_v30 = vld [vmem:[#allocation5 + $0x460] ss:$8 sps:$4 sm:$0xff]  }
  0x7d   :  { %1097 = vmatpush1.bf16.msra.mxu1 %v1876_v10  ;;  %v1980_v10 = vld [vmem:[#allocation5 + $0x404] ss:$8 sps:$4 sm:$0xff]  }
  0x7e   :  { %1203 = vmatpush1.bf16.msra.mxu0 %v1879_v11  ;;  %1098 = vmatprep.subr.bf16.mxu1 %v1884_v12  ;;  %v1972_v11 = vld [vmem:[%s2293_s0 + $0x8] ss:$36 sps:$4 sm:$0xff]   ;;  %v1975_v12 = vld [vmem:[%s2293_s0 + $0x18] ss:$36 sps:$4 sm:$0xff]  }
  0x7f   :  { %1204 = vmatprep.subr.bf16.mxu0 %v1887_v13  ;;  %v1978_v13 = vld [vmem:[#allocation5 + $0x400] ss:$8 sps:$4 sm:$0xff]  }
  0x80   :  { %1084 = vmatmul.mubr.bf16.gmra.mrb[4].mxu1 %v1958_v31  ;;  %v2007_v31 = vld [vmem:[#allocation5 + $0x474] ss:$8 sps:$4 sm:$0xff]  }
  0x81   :  { %1099 = vmatpush1.bf16.msra.mxu1 %v1882_v14  ;;  %1190 = vmatmul.mubr.bf16.gmra.mrb[4].mxu0 %v1962_v33  ;;  %v1983_v14 = vld [vmem:[#allocation5 + $0x414] ss:$8 sps:$4 sm:$0xff]  }
  0x82   :  { %1205 = vmatpush1.bf16.msra.mxu0 %v1885_v15  ;;  %1100 = vmatprep.subr.bf16.mxu1 %v1890_v16  ;;  %v1984_v15 = vld [vmem:[%s2293_s0 + $0x54] ss:$36 sps:$4 sm:$0xff]   ;;  %v1986_v16 = vld [vmem:[%s2293_s0 + $0x64] ss:$36 sps:$4 sm:$0xff]  }
  0x83   :  { %1206 = vmatprep.subr.bf16.mxu0 %v1893_v17  ;;  %1126 = vmatprep.mubr.bf16.mxu1 %v1974_v41  ;;  %v1981_v17 = vld [vmem:[#allocation5 + $0x410] ss:$8 sps:$4 sm:$0xff]   ;;  %v2008_v33 = vld [vmem:[%s2293_s0 + $0x20] ss:$36 sps:$4 sm:$0xff]  }
  0x84   :  { %1232 = vmatprep.mubr.bf16.mxu0 %v1977_v43 }
  0x85   :  { %1101 = vmatpush1.bf16.msra.mxu1 %v1888_v18  ;;  %v1992_v18 = vld [vmem:[#allocation5 + $0x424] ss:$8 sps:$4 sm:$0xff]  }
  0x86   :  { %1207 = vmatpush1.bf16.msra.mxu0 %v1891_v19  ;;  %1102 = vmatprep.subr.bf16.mxu1 %v1896_v20  ;;  %v1988_v19 = vld [vmem:[%s2293_s0 + $0x50] ss:$36 sps:$4 sm:$0xff]   ;;  %v1989_v20 = vld [vmem:[%s2293_s0 + $0x60] ss:$36 sps:$4 sm:$0xff]  }
  0x87   :  { %1208 = vmatprep.subr.bf16.mxu0 %v1899_v21  ;;  %v1990_v21 = vld [vmem:[#allocation5 + $0x420] ss:$8 sps:$4 sm:$0xff]  }
  0x89   :  { %1103 = vmatpush1.bf16.msra.mxu1 %v1894_v22  ;;  %v1995_v22 = vld [vmem:[#allocation5 + $0x434] ss:$8 sps:$4 sm:$0xff]  }
  0x8a   :  { %1209 = vmatpush1.bf16.msra.mxu0 %v1897_v23  ;;  %1104 = vmatprep.subr.bf16.mxu1 %v1902_v24  ;;  %v1993_v23 = vld [vmem:[#allocation5 + $0x430] ss:$8 sps:$4 sm:$0xff]   ;;  %v1998_v24 = vld [vmem:[#allocation5 + $0x444] ss:$8 sps:$4 sm:$0xff]  }
  0x8b   :  { %1210 = vmatprep.subr.bf16.mxu0 %v1905_v25  ;;  %v2087_v25 = vmov 0  }
  0x8d   :  { %1105 = vmatpush1.bf16.msra.mxu1 %v1900_v26  ;;  %v1996_v26 = vld [vmem:[#allocation5 + $0x440] ss:$8 sps:$4 sm:$0xff]  }
  0x8e   :  { %1211 = vmatpush1.bf16.msra.mxu0 %v1903_v27  ;;  %1106 = vmatprep.subr.bf16.mxu1 %v1908_v28  ;;  %v2001_v27 = vld [vmem:[#allocation5 + $0x454] ss:$8 sps:$4 sm:$0xff]   ;;  %v1999_v28 = vld [vmem:[#allocation5 + $0x450] ss:$8 sps:$4 sm:$0xff]  }
  0x8f   :  { %1212 = vmatprep.subr.bf16.mxu0 %v1911_v32  ;;  %v2005_v32 = vld [vmem:[#allocation5 + $0x470] ss:$8 sps:$4 sm:$0xff]  }
  0x91   :  { %1107 = vmatpush1.bf16.msra.mxu1 %v1906_v34  ;;  %v2009_v34 = vld [vmem:[%s2293_s0 + $0x68] ss:$36 sps:$4 sm:$0xff]   ;;  %s2090_s0 = smov 64  }
  0x92   :  { %1213 = vmatpush1.bf16.msra.mxu0 %v1909_v35  ;;  %1108 = vmatprep.subr.bf16.mxu1 %v1914_v36  ;;  %v59_v35 = vlaneseq }
  0x93   :  { %1214 = vmatprep.subr.bf16.mxu0 %v1917_v37  ;;  %v2088_v37 = vmov 0.0  }
  0x94   :  { %vm2214_vm0 = vcmp.lt.s32.totalorder %v59_v35, 256 }
  0x95   :  { %1109 = vmatpush1.bf16.msra.mxu1 %v1912_v38  ;;  %63 = vst.msk [vmem:[#allocation3] sm:$0x3] %vm2214_vm0, %v2088_v37  ;;  %64 = vst.msk [vmem:[#allocation4] sm:$0x3] %vm2214_vm0, %v2088_v37 }
  0x96   :  { %1215 = vmatpush1.bf16.msra.mxu0 %v1915_v39  ;;  %1110 = vmatprep.subr.bf16.mxu1 %v1920_v40 }
  0x97   :  { %1216 = vmatprep.subr.bf16.mxu0 %v1923_v42 }
  0x99   :  { %1111 = vmatpush1.bf16.msra.mxu1 %v1918_v44 }
  0x9a   :  { %1217 = vmatpush1.bf16.msra.mxu0 %v1921_v45  ;;  %1112 = vmatprep.subr.bf16.mxu1 %v1926_v46 }
  0x9b   :  { %1218 = vmatprep.subr.bf16.mxu0 %v1929_v47 }
  0x9d   :  { %1113 = vmatpush1.bf16.msra.mxu1 %v1924_v48 }
  0x9e   :  { %1219 = vmatpush1.bf16.msra.mxu0 %v1927_v49  ;;  %1114 = vmatprep.subr.bf16.mxu1 %v1932_v50 }
  0x9f   :  { %1220 = vmatprep.subr.bf16.mxu0 %v1935_v51 }
  0xa1   :  { %1115 = vmatpush1.bf16.msra.mxu1 %v1930_v52 }
  0xa2   :  { %1221 = vmatpush1.bf16.msra.mxu0 %v1933_v53  ;;  %1116 = vmatprep.subr.bf16.mxu1 %v1938_v54 }
  0xa3   :  { %1222 = vmatprep.subr.bf16.mxu0 %v1941_v55 }
  0xa5   :  { %1117 = vmatpush1.bf16.msra.mxu1 %v1936_v56 }
  0xa6   :  { %1223 = vmatpush1.bf16.msra.mxu0 %v1939_v57  ;;  %1118 = vmatprep.subr.bf16.mxu1 %v1944_v58 }
  0xa7   :  { %1224 = vmatprep.subr.bf16.mxu0 %v1947_v59 }
  0xa9   :  { %1119 = vmatpush1.bf16.msra.mxu1 %v1942_v60 }
  0xaa   :  { %1225 = vmatpush1.bf16.msra.mxu0 %v1945_v61  ;;  %1120 = vmatprep.subr.bf16.mxu1 %v1950_v62 }
  0xab   :  { %1226 = vmatprep.subr.bf16.mxu0 %v1953_v63 }
  0xad   :  { %1121 = vmatpush1.bf16.msra.mxu1 %v1948_v0 }
  0xae   :  { %1227 = vmatpush1.bf16.msra.mxu0 %v1951_v1  ;;  %1122 = vmatprep.subr.bf16.mxu1 %v1961_v2 }
  0xaf   :  { %1228 = vmatprep.subr.bf16.mxu0 %v1965_v3 }
  0xb1   :  { %1123 = vmatpush1.bf16.msra.mxu1 %v1959_v4 }
  0xb2   :  { %1229 = vmatpush1.bf16.msra.mxu0 %v1963_v5  ;;  %1124 = vmatprep.subr.bf16.mxu1 %v1968_v6 }
  0xb3   :  { %1230 = vmatprep.subr.bf16.mxu0 %v1971_v7 }
  0xb5   :  { %1125 = vmatpush1.bf16.msra.mxu1 %v1966_v8 }
  0xb6   :  { %1231 = vmatpush1.bf16.msra.mxu0 %v1969_v9  ;;  %1711 = vmatprep.subr.bf16.mxu1 %v1980_v10 }
  0xb7   :  { %1253 = vmatprep.subr.bf16.mxu0 %v1980_v10 }
  0xb8   :  { %1127 = vmatmul.mubr.bf16.vlgmr.msra.gmra.mrb[0].mxu1 %v1972_v11 }
  0xb9   :  { %1233 = vmatmul.mubr.bf16.vlgmr.msra.gmra.mrb[0].mxu0 %v1975_v12  ;;  %1719 = vmatpush1.bf16.msra.mxu1 %v1978_v13 }
  0xba   :  { %1254 = vmatpush1.bf16.msra.mxu0 %v1978_v13  ;;  %1712 = vmatprep.subr.bf16.mxu1 %v1983_v14 }
  0xbb   :  { %1255 = vmatprep.subr.bf16.mxu0 %v1983_v14  ;;  %1136 = vmatprep.mubr.bf16.mxu1 %v1984_v15 }
  0xbc   :  { %1242 = vmatprep.mubr.bf16.mxu0 %v1986_v16 }
  0xbd   :  { %1720 = vmatpush1.bf16.msra.mxu1 %v1981_v17 }
  0xbe   :  { %1256 = vmatpush1.bf16.msra.mxu0 %v1981_v17  ;;  %1713 = vmatprep.subr.bf16.mxu1 %v1992_v18 }
  0xbf   :  { %1257 = vmatprep.subr.bf16.mxu0 %v1992_v18 }
  0xc0   :  { %1137 = vmatmul.mubr.bf16.gmra.mrb[4].mxu1 %v1988_v19 }
  0xc1   :  { %1243 = vmatmul.mubr.bf16.gmra.mrb[4].mxu0 %v1989_v20  ;;  %1721 = vmatpush1.bf16.msra.mxu1 %v1990_v21 }
  0xc2   :  { %1258 = vmatpush1.bf16.msra.mxu0 %v1990_v21  ;;  %1714 = vmatprep.subr.bf16.mxu1 %v1995_v22 }
  0xc3   :  { %1259 = vmatprep.subr.bf16.mxu0 %v1995_v22  ;;  %1285 = vmatprep.mubr.bf16.mxu0 %v2087_v25 }
  0xc4   :  { %1295 = vmatprep.mubr.bf16.mxu1 %v2087_v25 }
  0xc5   :  { %1722 = vmatpush1.bf16.msra.mxu1 %v1993_v23 }
  0xc6   :  { %1260 = vmatpush1.bf16.msra.mxu0 %v1993_v23  ;;  %1715 = vmatprep.subr.bf16.mxu1 %v1998_v24 }
  0xc7   :  { %1261 = vmatprep.subr.bf16.mxu0 %v1998_v24 }
  0xc9   :  { %1723 = vmatpush1.bf16.msra.mxu1 %v1996_v26 }
  0xca   :  { %1262 = vmatpush1.bf16.msra.mxu0 %v1996_v26  ;;  %1716 = vmatprep.subr.bf16.mxu1 %v2001_v27 }
  0xcb   :  { %1263 = vmatprep.subr.bf16.mxu0 %v2001_v27 }
  0xcd   :  { %1724 = vmatpush1.bf16.msra.mxu1 %v1999_v28 }
  0xce   :  { %1264 = vmatpush1.bf16.msra.mxu0 %v1999_v28  ;;  %1717 = vmatprep.subr.bf16.mxu1 %v2004_v29 }
  0xcf   :  { %1265 = vmatprep.subr.bf16.mxu0 %v2004_v29 }
  0xd1   :  { %1725 = vmatpush1.bf16.msra.mxu1 %v2002_v30 }
  0xd2   :  { %1266 = vmatpush1.bf16.msra.mxu0 %v2002_v30  ;;  %1718 = vmatprep.subr.bf16.mxu1 %v2007_v31 }
  0xd3   :  { %1267 = vmatprep.subr.bf16.mxu0 %v2007_v31  ;;  %v2089_v31 = vmov 1966171168  }
  0xd5   :  { %1726 = vmatpush1.bf16.msra.mxu1 %v2005_v32 }
  0xd6   :  { %1268 = vmatpush1.bf16.msra.mxu0 %v2005_v32  ;;  %v1340_v32 = vunpack.c.l.s4 %v2089_v31 }
  0xd8   :  { %1296 = vmatmul.mubr.bf16.vlgmr.msra.gmra.mrb[8].mxu1 %v2009_v34 }
  0xd9   :  { %1286 = vmatmul.mubr.bf16.vlgmr.msra.gmra.mrb[0].mxu0 %v2008_v33 }
 0x18b   :  { %v1128_v38 = vpop.f32.mrb[0].mxu1 }
 0x18c   :  { %v1130_v39 = vpop.f32.mrb[1].mxu1 }
 0x18d   :  { %v1132_v40 = vpop.f32.mrb[2].mxu1 }
 0x18e   :  { %v1134_v41 = vpop.f32.mrb[3].mxu1 }
 0x193   :  { %v1138_v42 = vpop.f32.mrb[4].mxu1 }
 0x194   :  { %v1244_v43 = vpop.f32.mrb[4].mxu0  ;;  %v1140_v45 = vpop.f32.mrb[5].mxu1 }
 0x195   :  { %v1731_v44 = vadd.f32 %v1244_v43, %v1138_v42  ;;  %v1246_v46 = vpop.f32.mrb[5].mxu0  ;;  %v1142_v48 = vpop.f32.mrb[6].mxu1  ;;  %v1341_v43 = vunpack.c.0.s8 %v1340_v32 }
 0x196   :  { %v1733_v47 = vadd.f32 %v1246_v46, %v1140_v45  ;;  %v1248_v49 = vpop.f32.mrb[6].mxu0  ;;  %v1144_v51 = vpop.f32.mrb[7].mxu1 }
 0x197   :  { %v1735_v50 = vadd.f32 %v1248_v49, %v1142_v48  ;;  %v1250_v52 = vpop.f32.mrb[7].mxu0 }
 0x198   :  { %v1737_v53 = vadd.f32 %v1250_v52, %v1144_v51 }
 0x1ab   :  { %v1297_v55 = vpop.f32.mrb[8].mxu1 }
 0x1ac   :  { %v1287_v54 = vpop.f32.mrb[0].mxu0  ;;  %v2224_v57 = vadd.f32 %v1731_v44, %v1297_v55  ;;  %v1299_v59 = vpop.f32.mrb[9].mxu1  ;;  %v1343_v44 = vshrl.u32 %v59_v35, 7 }
 0x1ad   :  { %v2222_v56 = vadd.f32 %v1287_v54, %v1128_v38  ;;  %v1289_v58 = vpop.f32.mrb[1].mxu0  ;;  %v2228_v61 = vadd.f32 %v1733_v47, %v1299_v59  ;;  %v1301_v63 = vpop.f32.mrb[10].mxu1 }
 0x1ae   :  { %v2226_v60 = vadd.f32 %v1289_v58, %v1130_v39  ;;  %v1291_v62 = vpop.f32.mrb[2].mxu0  ;;  %v2232_v1 = vadd.f32 %v1735_v50, %v1301_v63  ;;  %v1303_v3 = vpop.f32.mrb[11].mxu1  ;;  %v1365_v12 = vmul.f32 %v2224_v57, %v2224_v57 }
 0x1af   :  { %v2230_v0 = vadd.f32 %v1291_v62, %v1132_v40  ;;  %v1293_v2 = vpop.f32.mrb[3].mxu0  ;;  %v2236_v5 = vadd.f32 %v1737_v53, %v1303_v3  ;;  %v1361_v6 = vmul.f32 %v2222_v56, %v2222_v56  ;;  %v1366_v15 = vmul.f32 %v2228_v61, %v2228_v61 }
 0x1b0   :  { %v2234_v4 = vadd.f32 %v1293_v2, %v1134_v41  ;;  %v1362_v9 = vmul.f32 %v2226_v60, %v2226_v60  ;;  %v1367_v19 = vmul.f32 %v2232_v1, %v2232_v1  ;;  %v1344_v53 = vsub.s32 %v1341_v43, %v1343_v44  ;;  %v1317_v2 = vld [vmem:[#allocation3] sm:$0x3] }
 0x1b1   :  { %v1318_v7 = vadd.f32 %v2230_v0, %v2222_v56  ;;  %v1363_v8 = vmul.f32 %v2230_v0, %v2230_v0  ;;  %v1368_v22 = vmul.f32 %v2236_v5, %v2236_v5 }
 0x1b2   :  { %v1327_v10 = vadd.f32 %v2234_v4, %v2226_v60  ;;  %v1364_v11 = vmul.f32 %v2234_v4, %v2234_v4 }
 0x1b3   :  { %v1369_v13 = vadd.f32 %v1363_v8, %v1361_v6  ;;  %v1319_v14 = vadd.f32 %v2224_v57, %v1318_v7  ;;  %v1360_v7 = vld [vmem:[#allocation4] sm:$0x3] }
 0x1b4   :  { %v1378_v16 = vadd.f32 %v1364_v11, %v1362_v9  ;;  %v1328_v17 = vadd.f32 %v2228_v61, %v1327_v10 }
 0x1b5   :  { %v1320_v18 = vadd.f32 %v2232_v1, %v1319_v14  ;;  %v1370_v20 = vadd.f32 %v1369_v13, %v1365_v12 }
 0x1b6   :  { %v1329_v21 = vadd.f32 %v2236_v5, %v1328_v17  ;;  %v1379_v23 = vadd.f32 %v1378_v16, %v1366_v15 }
 0x1b7   :  { %v1321_v24 = vrot.slane %v1320_v18, 4  ;;  %v1371_v25 = vadd.f32 %v1370_v20, %v1367_v19 }
 0x1b8   :  { %v1330_v26 = vrot.slane %v1329_v21, 4  ;;  %v1380_v27 = vadd.f32 %v1379_v23, %v1368_v22 }
 0x1b9   :  { %v1322_v28 = vadd.f32 %v1321_v24, %v1320_v18  ;;  %v1372_v29 = vrot.slane %v1371_v25, 4 }
 0x1ba   :  { %v1331_v30 = vadd.f32 %v1330_v26, %v1329_v21  ;;  %v1381_v33 = vrot.slane %v1380_v27, 4 }
 0x1bb   :  { %v1323_v34 = vrot.slane %v1322_v28, 2  ;;  %v1373_v37 = vadd.f32 %v1372_v29, %v1371_v25  ;;  %v1441_v29 = vld [vmem:[#allocation7] sm:$0x1] }
 0x1bc   :  { %v1332_v38 = vrot.slane %v1331_v30, 2  ;;  %v1382_v39 = vadd.f32 %v1381_v33, %v1380_v27  ;;  %v1445_v33 = vld [vmem:[#allocation9] sm:$0x1] }
 0x1bd   :  { %v1324_v40 = vadd.f32 %v1323_v34, %v1322_v28  ;;  %v1374_v41 = vrot.slane %v1373_v37, 2 }
 0x1be   :  { %v1333_v42 = vadd.f32 %v1332_v38, %v1331_v30  ;;  %v1383_v45 = vrot.slane %v1382_v39, 2  ;;  %v1451_v30 = vsub.s32 0, %v1343_v44 }
 0x1bf   :  { %v1325_v46 = vrot.slane %v1324_v40, 1  ;;  %v1375_v47 = vadd.f32 %v1374_v41, %v1373_v37 }
 0x1c0   :  { %v1334_v48 = vrot.slane %v1333_v42, 1  ;;  %v1384_v49 = vadd.f32 %v1383_v45, %v1382_v39 }
 0x1c1   :  { %v1326_v50 = vadd.f32 %v1325_v46, %v1324_v40  ;;  %v1376_v51 = vrot.slane %v1375_v47, 1 }
 0x1c2   :  { %v1335_v52 = vadd.f32 %v1334_v48, %v1333_v42  ;;  %v1385_v54 = vrot.slane %v1384_v49, 1 }
 0x1c3   :  { %v1377_v55 = vadd.f32 %v1376_v51, %v1375_v47 }
 0x1c4   :  { %v1338_v58 = vcombine.low %v1326_v50, %v1335_v52  ;;  %v1386_v59 = vadd.f32 %v1385_v54, %v1384_v49 }
 0x1c6   :  { %v1345_v62 = vrot.slane %v1338_v58, %v1344_v53  ;;  %v1389_v63 = vcombine.low %v1377_v55, %v1386_v59 }
 0x1c8   :  { %v1352_v3 = vrot.slane %v1345_v62, %v1344_v53  ;;  %v1396_v6 = vrot.slane %v1389_v63, %v1344_v53 }
 0x1ca   :  { %v1354_v35 = vadd.f32 %v1352_v3, %v1317_v2  ;;  %v1403_v8 = vrot.slane %v1396_v6, %v1344_v53 }
 0x1cc   :  { %1359 = vst.msk [vmem:[#allocation3] sm:$0x3] %vm2214_vm0, %v1354_v35  ;;  %v1405_v9 = vadd.f32 %v1403_v8, %v1360_v7 }
 0x1ce   :  { %1406 = vst.msk [vmem:[#allocation4] sm:$0x3] %vm2214_vm0, %v1405_v9 }
 0x1d3   :  { %v1422_v10 = vld [vmem:[#allocation3 + $0x1] sm:$0x1]  ;;  %v1410_v11 = vld [vmem:[#allocation3] sm:$0x1] }
 0x1d4   :  { %1427 = vrot.lane.b32.xlu1 %v1422_v10, %s2090_s0  ;;  %1413 = vrot.lane.b32.xlu0 %v1410_v11, %s2090_s0 }
 0x1d5   :  { %v1424_v12 = vld [vmem:[#allocation4 + $0x1] sm:$0x1]  ;;  %v1411_v13 = vld [vmem:[#allocation4] sm:$0x1] }
 0x1d8   :  { %1432 = vrot.lane.b32.xlu1 %v1424_v12, %s2090_s0  ;;  %1418 = vrot.lane.b32.xlu0 %v1411_v13, %s2090_s0 }
 0x246   :  { %v1414_v14 = vpop.permute.xlu0 %1413  ;;  %v1428_v16 = vpop.permute.xlu1 %1427 }
 0x247   :  { %v1416_v15 = vadd.f32 %v1414_v14, %v1410_v11 }
 0x249   :  { %v1423_v17 = vadd.f32 %v1422_v10, %v1416_v15 }
 0x24a   :  { %v1419_v18 = vpop.permute.xlu0 %1418  ;;  %v1433_v22 = vpop.permute.xlu1 %1432 }
 0x24b   :  { %v1430_v36 = vadd.f32 %v1428_v16, %v1423_v17  ;;  %v1421_v19 = vadd.f32 %v1419_v18, %v1411_v13 }
 0x24d   :  { %v1436_v20 = vmul.f32 0.0078125, %v1430_v36  ;;  %v1425_v21 = vadd.f32 %v1424_v12, %v1421_v19 }
 0x24f   :  { %v1435_v23 = vadd.f32 %v1433_v22, %v1425_v21  ;;  %v1438_v24 = vmul.f32 %v1436_v20, %v1436_v20 }
 0x251   :  { %v1437_v25 = vmul.f32 0.0078125, %v1435_v23 }
 0x253   :  { %v1439_v26 = vsub.f32 %v1437_v25, %v1438_v24 }
 0x255   :  { %v1440_v27 = vmax.f32 %v1439_v26, 0.0 }
 0x257   :  { %v1442_v28 = vadd.f32 1e-05, %v1440_v27 }
 0x259   :  { %2010 = vrsqrt.f32 %v1442_v28 }
 0x263   :  { %v2011_v31 = vpop.eup %2010 }
 0x264   :  { %v1444_v32 = vmul.f32 %v2011_v31, %v1441_v29 }
 0x266   :  { %v1452_v34 = vrot.slane %v1444_v32, %v1451_v30  ;;  %v1446_v37 = vmul.f32 %v1444_v32, %v1436_v20 }
 0x268   :  { %1453 = vrot.lane.b32.xlu0 %v1452_v34, %s2090_s0  ;;  %v1447_v38 = vsub.f32 %v1445_v33, %v1446_v37 }
 0x26a   :  { %v1462_v39 = vrot.slane %v1447_v38, %v1451_v30 }
 0x26c   :  { %1463 = vrot.lane.b32.xlu1 %v1462_v39, %s2090_s0 }
 0x2da   :  { %v1454_v40 = vpop.permute.xlu0 %1453 }
 0x2db   :  { %v1457_v41 = vsel %vm1456_vm1, %v1444_v32, %v1454_v40 }
 0x2dc   :  { %v1478_v42 = vrot.slane %v1457_v41, %v1451_v30 }
 0x2de   :  { %v1464_v43 = vpop.permute.xlu1 %1463  ;;  %v1479_v45 = vmul.f32 %v2222_v56, %v1478_v42  ;;  %v1480_v44 = vmul.f32 %v2226_v60, %v1478_v42  ;;  %v1481_v47 = vmul.f32 %v2230_v0, %v1478_v42  ;;  %v1482_v48 = vmul.f32 %v2234_v4, %v1478_v42 }
 0x2df   :  { %v1466_v46 = vsel %vm1456_vm1, %v1447_v38, %v1464_v43  ;;  %v1483_v50 = vmul.f32 %v2224_v57, %v1478_v42  ;;  %v1484_v51 = vmul.f32 %v2228_v61, %v1478_v42  ;;  %v1485_v52 = vmul.f32 %v2232_v1, %v1478_v42 }
 0x2e0   :  { %v1490_v49 = vrot.slane %v1466_v46, %v1451_v30  ;;  %v1486_v53 = vmul.f32 %v2236_v5, %v1478_v42 }
 0x2e2   :  { %v1491_v54 = vadd.f32 %v1490_v49, %v1479_v45  ;;  %v1492_v55 = vadd.f32 %v1490_v49, %v1480_v44  ;;  %v1493_v58 = vadd.f32 %v1490_v49, %v1481_v47  ;;  %v1494_v56 = vadd.f32 %v1490_v49, %v1482_v48 }
 0x2e3   :  { %v1495_v59 = vadd.f32 %v1490_v49, %v1483_v50  ;;  %v1496_v62 = vadd.f32 %v1490_v49, %v1484_v51  ;;  %v1497_v60 = vadd.f32 %v1490_v49, %v1485_v52  ;;  %v1498_v63 = vadd.f32 %v1490_v49, %v1486_v53 }
 0x2e4   :  { %v1499_v0 = vmax.f32 %v1491_v54, 0.0  ;;  %v1500_v2 = vmax.f32 %v1492_v55, 0.0  ;;  %v1501_v4 = vmax.f32 %v1493_v58, 0.0  ;;  %v1502_v3 = vmax.f32 %v1494_v56, 0.0 }
 0x2e5   :  { %v1503_v6 = vmax.f32 %v1495_v59, 0.0  ;;  %v1504_v57 = vmax.f32 %v1496_v62, 0.0  ;;  %v1505_v7 = vmax.f32 %v1497_v60, 0.0  ;;  %v1506_v61 = vmax.f32 %v1498_v63, 0.0 }
 0x2e6   :  { %v1707_v35 = vpack.c.bf16 %v1500_v2, %v1499_v0  ;;  %v1708_v1 = vpack.c.bf16 %v1502_v3, %v1501_v4 }
 0x2e7   :  { %v1709_v8 = vpack.c.bf16 %v1504_v57, %v1503_v6  ;;  %v1710_v5 = vpack.c.bf16 %v1506_v61, %v1505_v7 }
 0x2e8   :  { %1531 = vst [vmem:[%s2297_s4] sm:$0xff] %v1707_v35  ;;  %1532 = vst [vmem:[%s2297_s4 + $0x8] sm:$0xff] %v1708_v1 }
 0x2e9   :  { %1533 = vst [vmem:[%s2297_s4 + $0x10] sm:$0xff] %v1709_v8  ;;  %1534 = vst [vmem:[%s2297_s4 + $0x18] sm:$0xff] %v1710_v5 }
 0x2ea   :  { %1539 = vsyncpa [#allocation6], 1 }
 0x2eb   :  { %1540 = vsyncpa [#allocation8], 1 }

// kernel: generator_forward.7
= control target key start
LH: loop header
LB: loop body
LE: loop exit
PB: predicated region body
PF: predicated region fallthrough
CT: control target
= control target key end

     0   :  { %vm560_vm0 = vcmask 523264   ;;  %s1628_s9 = smov 96   ;;  %s1629_s10 = smov 32   ;;  %vm1015_vm1 = vcmask 261120   ;;  %vm1018_vm2 = vcmask 785408   ;;  %s2057_s1 = inlined_call_operand.vmem [shape: bf16[576,128], index: 1, kind: input, shape index: {}]   ;;  %s2058_s0 = inlined_call_operand.vmem [shape: bf16[128,576], index: 0, kind: input, shape index: {}]   ;;  %s2059_s2 = inlined_call_operand.vmem [shape: f32[1,32], index: 2, kind: input, shape index: {}]   ;;  %s2060_s3 = inlined_call_operand.vmem [shape: f32[1,32], index: 3, kind: input, shape index: {}]   ;;  %s2061_s4 = inlined_call_operand.vmem [shape: bf16[128,128], index: 4, kind: output, shape index: {}]  }
   0x1   :  { %v1532_v0 = vld [vmem:[%s2057_s1 + $0x40] sm:$0xff]   ;;  %v1536_v4 = vld [vmem:[%s2057_s1 + $0x48] sm:$0xff]   ;;  %v1540_v8 = vld [vmem:[%s2057_s1 + $0x50] sm:$0xff]  }
   0x2   :  { %v1533_v1 = vld [vmem:[%s2057_s1 + $0xc0] sm:$0xff]   ;;  %1356 = vmatprep.subr.bf16.mxu0 %v1532_v0  ;;  %v1537_v5 = vld [vmem:[%s2057_s1 + $0xc8] sm:$0xff]   ;;  %v1541_v9 = vld [vmem:[%s2057_s1 + $0xd0] sm:$0xff]  }
   0x3   :  { %v1534_v2 = vld [vmem:[%s2057_s1] sm:$0xff]   ;;  %1420 = vmatprep.subr.bf16.mxu1 %v1533_v1  ;;  %v1538_v6 = vld [vmem:[%s2057_s1 + $0x8] sm:$0xff]   ;;  %v1542_v10 = vld [vmem:[%s2057_s1 + $0x10] sm:$0xff]  }
   0x4   :  { %v1535_v3 = vld [vmem:[%s2057_s1 + $0x80] sm:$0xff]   ;;  %1357 = vmatpush3.bf16.msra.mxu0 %v1534_v2  ;;  %v1539_v7 = vld [vmem:[%s2057_s1 + $0x88] sm:$0xff]   ;;  %v1543_v11 = vld [vmem:[%s2057_s1 + $0x90] sm:$0xff]  }
   0x5   :  { %1421 = vmatpush3.bf16.msra.mxu1 %v1535_v3  ;;  %1358 = vmatprep.subr.bf16.mxu0 %v1536_v4  ;;  %v1544_v12 = vld [vmem:[%s2057_s1 + $0x58] sm:$0xff]   ;;  %v1548_v16 = vld [vmem:[%s2057_s1 + $0x60] sm:$0xff]   ;;  %v1552_v20 = vld [vmem:[%s2057_s1 + $0x68] sm:$0xff]  }
   0x6   :  { %1422 = vmatprep.subr.bf16.mxu1 %v1537_v5  ;;  %v1545_v13 = vld [vmem:[%s2057_s1 + $0xd8] sm:$0xff]   ;;  %v1549_v17 = vld [vmem:[%s2057_s1 + $0xe0] sm:$0xff]   ;;  %v1553_v21 = vld [vmem:[%s2057_s1 + $0xe8] sm:$0xff]  }
   0x7   :  { %v1546_v14 = vld [vmem:[%s2057_s1 + $0x18] sm:$0xff]   ;;  %v1550_v18 = vld [vmem:[%s2057_s1 + $0x20] sm:$0xff]   ;;  %v1554_v22 = vld [vmem:[%s2057_s1 + $0x28] sm:$0xff]  }
   0x8   :  { %1359 = vmatpush3.bf16.msra.mxu0 %v1538_v6  ;;  %v1547_v15 = vld [vmem:[%s2057_s1 + $0x98] sm:$0xff]   ;;  %v1551_v19 = vld [vmem:[%s2057_s1 + $0xa0] sm:$0xff]   ;;  %v1555_v23 = vld [vmem:[%s2057_s1 + $0xa8] sm:$0xff]  }
   0x9   :  { %1423 = vmatpush3.bf16.msra.mxu1 %v1539_v7  ;;  %1360 = vmatprep.subr.bf16.mxu0 %v1540_v8  ;;  %v1556_v24 = vld [vmem:[%s2057_s1 + $0x70] sm:$0xff]   ;;  %v1560_v28 = vld [vmem:[%s2057_s1 + $0x78] sm:$0xff]   ;;  %v1569_v35 = vld [vmem:[%s2058_s0 + $0xc] ss:$20 sps:$4 sm:$0xff]  }
   0xa   :  { %1424 = vmatprep.subr.bf16.mxu1 %v1541_v9  ;;  %v1557_v25 = vld [vmem:[%s2057_s1 + $0xf0] sm:$0xff]   ;;  %v1561_v29 = vld [vmem:[%s2057_s1 + $0xf8] sm:$0xff]   ;;  %v1570_v36 = vld [vmem:[%s2057_s1 + $0x100] sm:$0xff]   ;;  %714 = vmatprep.mubr.bf16.mxu1 %v1569_v35 }
   0xb   :  { %v1558_v26 = vld [vmem:[%s2057_s1 + $0x30] sm:$0xff]   ;;  %v1562_v30 = vld [vmem:[%s2057_s1 + $0x38] sm:$0xff]   ;;  %v1571_v37 = vld [vmem:[%s2058_s0 + $0x2c] ss:$20 sps:$4 sm:$0xff]  }
   0xc   :  { %1361 = vmatpush3.bf16.msra.mxu0 %v1542_v10  ;;  %v1559_v27 = vld [vmem:[%s2057_s1 + $0xb0] sm:$0xff]   ;;  %v1563_v31 = vld [vmem:[%s2057_s1 + $0xb8] sm:$0xff]   ;;  %v1583_v42 = vld [vmem:[%s2057_s1 + $0x108] sm:$0xff]  }
   0xd   :  { %1425 = vmatpush3.bf16.msra.mxu1 %v1543_v11  ;;  %1362 = vmatprep.subr.bf16.mxu0 %v1544_v12  ;;  %v1564_v32 = vld [vmem:[%s2058_s0] ss:$20 sps:$4 sm:$0xff]   ;;  %v1566_v33 = vld [vmem:[%s2058_s0 + $0x4] ss:$20 sps:$4 sm:$0xff]   ;;  %v1567_v34 = vld [vmem:[%s2058_s0 + $0x8] ss:$20 sps:$4 sm:$0xff]  }
   0xe   :  { %1426 = vmatprep.subr.bf16.mxu1 %v1545_v13  ;;  %617 = vmatprep.mubr.bf16.mxu0 %v1566_v33  ;;  %v1573_v38 = vld [vmem:[%s2058_s0 + $0x34] ss:$20 sps:$4 sm:$0xff]   ;;  %v1576_v40 = vld [vmem:[%s2058_s0 + $0x30] ss:$20 sps:$4 sm:$0xff]   ;;  %v1582_v45 = vld [vmem:[%s2058_s0 + $0x58] ss:$20 sps:$4 sm:$0xff]  }
   0xf   :  { %v1575_v39 = vld [vmem:[%s2058_s0 + $0x28] ss:$20 sps:$4 sm:$0xff]   ;;  %v1581_v44 = vld [vmem:[%s2058_s0 + $0x50] ss:$20 sps:$4 sm:$0xff]   ;;  %v1588_v50 = vld [vmem:[%s2058_s0 + $0x78] ss:$20 sps:$4 sm:$0xff]  }
  0x10   :  { %1363 = vmatpush3.bf16.msra.mxu0 %v1546_v14  ;;  %v1577_v41 = vld [vmem:[%s2058_s0 + $0x54] ss:$20 sps:$4 sm:$0xff]   ;;  %v1579_v43 = vld [vmem:[%s2058_s0 + $0x5c] ss:$20 sps:$4 sm:$0xff]   ;;  %v1586_v48 = vld [vmem:[%s2058_s0 + $0x84] ss:$20 sps:$4 sm:$0xff]  }
  0x11   :  { %1427 = vmatpush3.bf16.msra.mxu1 %v1547_v15  ;;  %1364 = vmatprep.subr.bf16.mxu0 %v1548_v16  ;;  %v1596_v46 = vld [vmem:[%s2057_s1 + $0x110] sm:$0xff]   ;;  %v1609_v49 = vld [vmem:[%s2057_s1 + $0x118] sm:$0xff]   ;;  %v1592_v53 = vld [vmem:[%s2058_s0 + $0xac] ss:$20 sps:$4 sm:$0xff]   ;;  %v1626_v12 = vmov 0.0  }
  0x12   :  { %1428 = vmatprep.subr.bf16.mxu1 %v1549_v17  ;;  %v1584_v47 = vld [vmem:[%s2058_s0 + $0x7c] ss:$20 sps:$4 sm:$0xff]   ;;  %v1589_v51 = vld [vmem:[%s2058_s0 + $0x80] ss:$20 sps:$4 sm:$0xff]   ;;  %v1590_v52 = vld [vmem:[%s2058_s0 + $0xa4] ss:$20 sps:$4 sm:$0xff]  }
  0x13   :  { %v1594_v54 = vld [vmem:[%s2058_s0 + $0xa0] ss:$20 sps:$4 sm:$0xff]   ;;  %v1595_v55 = vld [vmem:[%s2058_s0 + $0xa8] ss:$20 sps:$4 sm:$0xff]   ;;  %v1602_v59 = vld [vmem:[%s2058_s0 + $0xd0] ss:$20 sps:$4 sm:$0xff]  }
  0x14   :  { %1365 = vmatpush3.bf16.msra.mxu0 %v1550_v18  ;;  %v1597_v56 = vld [vmem:[%s2058_s0 + $0xcc] ss:$20 sps:$4 sm:$0xff]   ;;  %v1599_v57 = vld [vmem:[%s2058_s0 + $0xd4] ss:$20 sps:$4 sm:$0xff]   ;;  %v1605_v61 = vld [vmem:[%s2058_s0 + $0xfc] ss:$20 sps:$4 sm:$0xff]  }
  0x15   :  { %1429 = vmatpush3.bf16.msra.mxu1 %v1551_v19  ;;  %1366 = vmatprep.subr.bf16.mxu0 %v1552_v20  ;;  %v1601_v58 = vld [vmem:[%s2058_s0 + $0xc8] ss:$20 sps:$4 sm:$0xff]   ;;  %v1607_v62 = vld [vmem:[%s2058_s0 + $0xf0] ss:$20 sps:$4 sm:$0xff]   ;;  %v1608_v63 = vld [vmem:[%s2058_s0 + $0xf8] ss:$20 sps:$4 sm:$0xff]  }
  0x16   :  { %1430 = vmatprep.subr.bf16.mxu1 %v1553_v21  ;;  %v1603_v60 = vld [vmem:[%s2058_s0 + $0xf4] ss:$20 sps:$4 sm:$0xff]   ;;  %v1610_v0 = vld [vmem:[%s2058_s0 + $0x11c] ss:$20 sps:$4 sm:$0xff]   ;;  %v1612_v1 = vld [vmem:[%s2058_s0 + $0x124] ss:$20 sps:$4 sm:$0xff]  }
  0x17   :  { %v1614_v2 = vld [vmem:[%s2058_s0 + $0x118] ss:$20 sps:$4 sm:$0xff]   ;;  %v1615_v3 = vld [vmem:[%s2058_s0 + $0x120] ss:$20 sps:$4 sm:$0xff]   ;;  %v1616_v4 = vld [vmem:[%s2058_s0 + $0x10] ss:$20 sps:$4 sm:$0xff]  }
  0x18   :  { %1367 = vmatpush3.bf16.msra.mxu0 %v1554_v22  ;;  %v1617_v5 = vld [vmem:[%s2058_s0 + $0xb0] ss:$20 sps:$4 sm:$0xff]   ;;  %v1618_v6 = vld [vmem:[%s2058_s0 + $0x38] ss:$20 sps:$4 sm:$0xff]   ;;  %v1620_v8 = vld [vmem:[%s2058_s0 + $0x60] ss:$20 sps:$4 sm:$0xff]  }
  0x19   :  { %1431 = vmatpush3.bf16.msra.mxu1 %v1555_v23  ;;  %1368 = vmatprep.subr.bf16.mxu0 %v1556_v24  ;;  %v1619_v7 = vld [vmem:[%s2058_s0 + $0xd8] ss:$20 sps:$4 sm:$0xff]   ;;  %v1621_v9 = vld [vmem:[%s2058_s0 + $0x100] ss:$20 sps:$4 sm:$0xff]   ;;  %v1622_v10 = vld [vmem:[%s2058_s0 + $0x88] ss:$20 sps:$4 sm:$0xff]  }
  0x1a   :  { %1432 = vmatprep.subr.bf16.mxu1 %v1557_v25  ;;  %v1623_v11 = vld [vmem:[%s2058_s0 + $0x128] ss:$20 sps:$4 sm:$0xff]   ;;  %22 = vst [vmem:[#allocation3] sm:$0x1] %v1626_v12  ;;  %23 = vst [vmem:[#allocation4] sm:$0x1] %v1626_v12 }
  0x1b   :  { %s1627_s0 = smov 64  }
  0x1c   :  { %1369 = vmatpush3.bf16.msra.mxu0 %v1558_v26 }
  0x1d   :  { %1433 = vmatpush3.bf16.msra.mxu1 %v1559_v27  ;;  %1370 = vmatprep.subr.bf16.mxu0 %v1560_v28 }
  0x1e   :  { %1434 = vmatprep.subr.bf16.mxu1 %v1561_v29 }
  0x20   :  { %1371 = vmatpush3.bf16.msra.mxu0 %v1562_v30 }
  0x21   :  { %1435 = vmatpush3.bf16.msra.mxu1 %v1563_v31  ;;  %1496 = vmatprep.subr.bf16.mxu0 %v1570_v36 }
  0x22   :  { %1520 = vmatprep.subr.bf16.mxu1 %v1570_v36 }
  0x23   :  { %618 = vmatmul.mubr.bf16.vlgmr.msra.gmra.mrb[0].mxu0 %v1564_v32 }
  0x24   :  { %715 = vmatmul.mubr.bf16.vlgmr.msra.gmra.mrb[0].mxu1 %v1567_v34  ;;  %1497 = vmatpush3.bf16.msra.mxu0 %v1570_v36 }
  0x25   :  { %625 = vmatprep.mubr.bf16.mxu0 %v1571_v37  ;;  %722 = vmatprep.mubr.bf16.mxu1 %v1573_v38 }
  0x26   :  { %1524 = vmatpush3.bf16.msra.mxu1 %v1570_v36  ;;  %1498 = vmatprep.subr.bf16.mxu0 %v1583_v42 }
  0x27   :  { %1521 = vmatprep.subr.bf16.mxu1 %v1583_v42 }
  0x28   :  { %1499 = vmatpush3.bf16.msra.mxu0 %v1583_v42 }
  0x29   :  { %1500 = vmatprep.subr.bf16.mxu0 %v1596_v46 }
  0x2a   :  { %1525 = vmatpush3.bf16.msra.mxu1 %v1583_v42 }
  0x2b   :  { %626 = vmatmul.mubr.bf16.gmra.mrb[4].mxu0 %v1575_v39  ;;  %1522 = vmatprep.subr.bf16.mxu1 %v1596_v46 }
  0x2c   :  { %723 = vmatmul.mubr.bf16.gmra.mrb[4].mxu1 %v1576_v40  ;;  %633 = vmatprep.mubr.bf16.mxu0 %v1577_v41 }
  0x2d   :  { %730 = vmatprep.mubr.bf16.mxu1 %v1579_v43  ;;  %1501 = vmatpush3.bf16.msra.mxu0 %v1596_v46 }
  0x2e   :  { %1526 = vmatpush3.bf16.msra.mxu1 %v1596_v46  ;;  %1502 = vmatprep.subr.bf16.mxu0 %v1609_v49 }
  0x2f   :  { %1523 = vmatprep.subr.bf16.mxu1 %v1609_v49 }
  0x31   :  { %1503 = vmatpush3.bf16.msra.mxu0 %v1609_v49 }
  0x32   :  { %1527 = vmatpush3.bf16.msra.mxu1 %v1609_v49 }
  0x33   :  { %634 = vmatmul.mubr.bf16.gmra.mrb[8].mxu0 %v1581_v44 }
  0x34   :  { %731 = vmatmul.mubr.bf16.gmra.mrb[8].mxu1 %v1582_v45  ;;  %641 = vmatprep.mubr.bf16.mxu0 %v1584_v47 }
  0x35   :  { %738 = vmatprep.mubr.bf16.mxu1 %v1586_v48 }
  0x3b   :  { %642 = vmatmul.mubr.bf16.gmra.mrb[12].mxu0 %v1588_v50 }
  0x3c   :  { %739 = vmatmul.mubr.bf16.gmra.mrb[12].mxu1 %v1589_v51  ;;  %649 = vmatprep.mubr.bf16.mxu0 %v1590_v52 }
  0x3d   :  { %746 = vmatprep.mubr.bf16.mxu1 %v1592_v53 }
  0x43   :  { %650 = vmatmul.mubr.bf16.gmra.mrb[16].mxu0 %v1594_v54 }
  0x44   :  { %747 = vmatmul.mubr.bf16.gmra.mrb[16].mxu1 %v1595_v55  ;;  %657 = vmatprep.mubr.bf16.mxu0 %v1597_v56 }
  0x45   :  { %754 = vmatprep.mubr.bf16.mxu1 %v1599_v57 }
  0x4b   :  { %658 = vmatmul.mubr.bf16.gmra.mrb[20].mxu0 %v1601_v58 }
  0x4c   :  { %755 = vmatmul.mubr.bf16.gmra.mrb[20].mxu1 %v1602_v59  ;;  %665 = vmatprep.mubr.bf16.mxu0 %v1603_v60 }
  0x4d   :  { %762 = vmatprep.mubr.bf16.mxu1 %v1605_v61 }
  0x53   :  { %666 = vmatmul.mubr.bf16.gmra.mrb[24].mxu0 %v1607_v62 }
  0x54   :  { %763 = vmatmul.mubr.bf16.gmra.mrb[24].mxu1 %v1608_v63  ;;  %673 = vmatprep.mubr.bf16.mxu0 %v1610_v0 }
  0x55   :  { %770 = vmatprep.mubr.bf16.mxu1 %v1612_v1 }
  0x5b   :  { %674 = vmatmul.mubr.bf16.gmra.mrb[28].mxu0 %v1614_v2 }
  0x5c   :  { %771 = vmatmul.mubr.bf16.gmra.mrb[28].mxu1 %v1615_v3  ;;  %1504 = vmatprep.mubr.msk.bf16.mxu0 %vm560_vm0, %v1616_v4 }
  0x5d   :  { %1512 = vmatprep.mubr.msk.bf16.mxu1 %vm560_vm0, %v1617_v5 }
  0x63   :  { %1505 = vmatmul.mubr.msk.bf16.vlgmr.msra.gmra.mrb[32].mxu0 %vm560_vm0, %v1618_v6 }
  0x64   :  { %1513 = vmatmul.mubr.msk.bf16.vlgmr.msra.gmra.mrb[32].mxu1 %vm560_vm0, %v1619_v7  ;;  %1508 = vmatprep.mubr.msk.bf16.mxu0 %vm560_vm0, %v1620_v8 }
  0x65   :  { %1516 = vmatprep.mubr.msk.bf16.mxu1 %vm560_vm0, %v1621_v9 }
  0x6b   :  { %1509 = vmatmul.mubr.msk.bf16.gmra.mrb[36].mxu0 %vm560_vm0, %v1622_v10 }
  0x6c   :  { %1517 = vmatmul.mubr.msk.bf16.gmra.mrb[36].mxu1 %vm560_vm0, %v1623_v11 }
  0xf6   :  { %v1372_v13 = vpop.f32.mrb[0].mxu0 }
  0xf7   :  { %v1436_v14 = vpop.f32.mrb[0].mxu1  ;;  %v1373_v15 = vpop.f32.mrb[1].mxu0 }
  0xf8   :  { %v1374_v16 = vadd.f32 %v1373_v15, %v1372_v13  ;;  %v1437_v17 = vpop.f32.mrb[1].mxu1  ;;  %v1375_v18 = vpop.f32.mrb[2].mxu0 }
  0xf9   :  { %v1438_v19 = vadd.f32 %v1437_v17, %v1436_v14  ;;  %v1439_v20 = vpop.f32.mrb[2].mxu1  ;;  %v1376_v21 = vpop.f32.mrb[3].mxu0 }
  0xfa   :  { %v1377_v22 = vadd.f32 %v1376_v21, %v1375_v18  ;;  %v1440_v23 = vpop.f32.mrb[3].mxu1 }
  0xfb   :  { %v1441_v24 = vadd.f32 %v1440_v23, %v1439_v20  ;;  %v1891_v25 = vadd.f32 %v1438_v19, %v1374_v16 }
  0xfd   :  { %v1893_v26 = vadd.f32 %v1441_v24, %v1377_v22 }
  0xfe   :  { %v1378_v27 = vpop.f32.mrb[4].mxu0 }
  0xff   :  { %v1442_v28 = vpop.f32.mrb[4].mxu1  ;;  %v1379_v29 = vpop.f32.mrb[5].mxu0 }
 0x100   :  { %v1380_v30 = vadd.f32 %v1379_v29, %v1378_v27  ;;  %v1443_v31 = vpop.f32.mrb[5].mxu1  ;;  %v1381_v32 = vpop.f32.mrb[6].mxu0 }
 0x101   :  { %v1444_v33 = vadd.f32 %v1443_v31, %v1442_v28  ;;  %v1445_v34 = vpop.f32.mrb[6].mxu1  ;;  %v1382_v35 = vpop.f32.mrb[7].mxu0 }
 0x102   :  { %v1383_v36 = vadd.f32 %v1382_v35, %v1381_v32  ;;  %v1446_v37 = vpop.f32.mrb[7].mxu1 }
 0x103   :  { %v1447_v38 = vadd.f32 %v1446_v37, %v1445_v34  ;;  %v1895_v39 = vadd.f32 %v1444_v33, %v1380_v30 }
 0x105   :  { %v1897_v40 = vadd.f32 %v1447_v38, %v1383_v36 }
 0x106   :  { %v1384_v41 = vpop.f32.mrb[8].mxu0 }
 0x107   :  { %v1448_v42 = vpop.f32.mrb[8].mxu1  ;;  %v1385_v43 = vpop.f32.mrb[9].mxu0 }
 0x108   :  { %v1386_v44 = vadd.f32 %v1385_v43, %v1384_v41  ;;  %v1449_v45 = vpop.f32.mrb[9].mxu1  ;;  %v1387_v46 = vpop.f32.mrb[10].mxu0 }
 0x109   :  { %v1450_v47 = vadd.f32 %v1449_v45, %v1448_v42  ;;  %v1451_v48 = vpop.f32.mrb[10].mxu1  ;;  %v1388_v49 = vpop.f32.mrb[11].mxu0 }
 0x10a   :  { %v1389_v50 = vadd.f32 %v1388_v49, %v1387_v46  ;;  %v1452_v51 = vpop.f32.mrb[11].mxu1 }
 0x10b   :  { %v1453_v52 = vadd.f32 %v1452_v51, %v1451_v48  ;;  %v1899_v53 = vadd.f32 %v1450_v47, %v1386_v44 }
 0x10d   :  { %v1901_v54 = vadd.f32 %v1453_v52, %v1389_v50 }
 0x10e   :  { %v1390_v55 = vpop.f32.mrb[12].mxu0 }
 0x10f   :  { %v1454_v56 = vpop.f32.mrb[12].mxu1  ;;  %v1391_v57 = vpop.f32.mrb[13].mxu0 }
 0x110   :  { %v1392_v58 = vadd.f32 %v1391_v57, %v1390_v55  ;;  %v1455_v59 = vpop.f32.mrb[13].mxu1  ;;  %v1393_v60 = vpop.f32.mrb[14].mxu0 }
 0x111   :  { %v1456_v61 = vadd.f32 %v1455_v59, %v1454_v56  ;;  %v1457_v62 = vpop.f32.mrb[14].mxu1  ;;  %v1394_v63 = vpop.f32.mrb[15].mxu0 }
 0x112   :  { %v1395_v0 = vadd.f32 %v1394_v63, %v1393_v60  ;;  %v1458_v1 = vpop.f32.mrb[15].mxu1 }
 0x113   :  { %v1459_v2 = vadd.f32 %v1458_v1, %v1457_v62  ;;  %v1903_v3 = vadd.f32 %v1456_v61, %v1392_v58 }
 0x115   :  { %v1905_v4 = vadd.f32 %v1459_v2, %v1395_v0 }
 0x116   :  { %v1396_v5 = vpop.f32.mrb[16].mxu0 }
 0x117   :  { %v1460_v6 = vpop.f32.mrb[16].mxu1  ;;  %v1397_v7 = vpop.f32.mrb[17].mxu0 }
 0x118   :  { %v1398_v8 = vadd.f32 %v1397_v7, %v1396_v5  ;;  %v1461_v9 = vpop.f32.mrb[17].mxu1  ;;  %v1399_v10 = vpop.f32.mrb[18].mxu0 }
 0x119   :  { %v1462_v11 = vadd.f32 %v1461_v9, %v1460_v6  ;;  %v1463_v12 = vpop.f32.mrb[18].mxu1  ;;  %v1400_v13 = vpop.f32.mrb[19].mxu0 }
 0x11a   :  { %v1401_v14 = vadd.f32 %v1400_v13, %v1399_v10  ;;  %v1464_v15 = vpop.f32.mrb[19].mxu1 }
 0x11b   :  { %v1465_v16 = vadd.f32 %v1464_v15, %v1463_v12  ;;  %v749_v17 = vadd.f32 %v1462_v11, %v1398_v8 }
 0x11d   :  { %v752_v18 = vadd.f32 %v1465_v16, %v1401_v14 }
 0x11e   :  { %v1402_v19 = vpop.f32.mrb[20].mxu0 }
 0x11f   :  { %v1466_v20 = vpop.f32.mrb[20].mxu1  ;;  %v1403_v21 = vpop.f32.mrb[21].mxu0 }
 0x120   :  { %v1404_v22 = vadd.f32 %v1403_v21, %v1402_v19  ;;  %v1467_v23 = vpop.f32.mrb[21].mxu1  ;;  %v1405_v24 = vpop.f32.mrb[22].mxu0 }
 0x121   :  { %v1468_v27 = vadd.f32 %v1467_v23, %v1466_v20  ;;  %v1469_v28 = vpop.f32.mrb[22].mxu1  ;;  %v1406_v29 = vpop.f32.mrb[23].mxu0 }
 0x122   :  { %v1407_v30 = vadd.f32 %v1406_v29, %v1405_v24  ;;  %v1470_v31 = vpop.f32.mrb[23].mxu1 }
 0x123   :  { %v1471_v32 = vadd.f32 %v1470_v31, %v1469_v28  ;;  %v757_v33 = vadd.f32 %v1468_v27, %v1404_v22 }
 0x125   :  { %v760_v34 = vadd.f32 %v1471_v32, %v1407_v30 }
 0x126   :  { %v1408_v35 = vpop.f32.mrb[24].mxu0 }
 0x127   :  { %v1472_v36 = vpop.f32.mrb[24].mxu1  ;;  %v1409_v37 = vpop.f32.mrb[25].mxu0 }
 0x128   :  { %v1410_v38 = vadd.f32 %v1409_v37, %v1408_v35  ;;  %v1473_v41 = vpop.f32.mrb[25].mxu1  ;;  %v1411_v42 = vpop.f32.mrb[26].mxu0 }
 0x129   :  { %v1474_v43 = vadd.f32 %v1473_v41, %v1472_v36  ;;  %v1475_v44 = vpop.f32.mrb[26].mxu1  ;;  %v1412_v45 = vpop.f32.mrb[27].mxu0 }
 0x12a   :  { %v1413_v46 = vadd.f32 %v1412_v45, %v1411_v42  ;;  %v1476_v47 = vpop.f32.mrb[27].mxu1 }
 0x12b   :  { %v1477_v48 = vadd.f32 %v1476_v47, %v1475_v44  ;;  %v765_v49 = vadd.f32 %v1474_v43, %v1410_v38 }
 0x12d   :  { %v768_v50 = vadd.f32 %v1477_v48, %v1413_v46 }
 0x12e   :  { %v1414_v51 = vpop.f32.mrb[28].mxu0 }
 0x12f   :  { %v1478_v52 = vpop.f32.mrb[28].mxu1  ;;  %v1415_v55 = vpop.f32.mrb[29].mxu0 }
 0x130   :  { %v1416_v56 = vadd.f32 %v1415_v55, %v1414_v51  ;;  %v1479_v57 = vpop.f32.mrb[29].mxu1  ;;  %v1417_v58 = vpop.f32.mrb[30].mxu0 }
 0x131   :  { %v1480_v59 = vadd.f32 %v1479_v57, %v1478_v52  ;;  %v1481_v60 = vpop.f32.mrb[30].mxu1  ;;  %v1418_v61 = vpop.f32.mrb[31].mxu0 }
 0x132   :  { %v1419_v62 = vadd.f32 %v1418_v61, %v1417_v58  ;;  %v1482_v63 = vpop.f32.mrb[31].mxu1 }
 0x133   :  { %v1483_v0 = vadd.f32 %v1482_v63, %v1481_v60  ;;  %v773_v1 = vadd.f32 %v1480_v59, %v1416_v56 }
 0x135   :  { %v776_v2 = vadd.f32 %v1483_v0, %v1419_v62 }
 0x136   :  { %v1506_v5 = vpop.f32.mrb[32].mxu0 }
 0x137   :  { %v1908_v6 = vadd.f32 %v1506_v5, %v1895_v39  ;;  %v1514_v7 = vpop.f32.mrb[32].mxu1  ;;  %v813_v8 = vpop.f32.mrb[33].mxu0 }
 0x138   :  { %v1910_v9 = vadd.f32 %v1514_v7, %v757_v33  ;;  %v1913_v10 = vadd.f32 %v813_v8, %v1891_v25  ;;  %v845_v11 = vpop.f32.mrb[33].mxu1  ;;  %v1507_v12 = vpop.f32.mrb[34].mxu0 }
 0x139   :  { %v1915_v13 = vadd.f32 %v845_v11, %v749_v17  ;;  %v1918_v14 = vadd.f32 %v1507_v12, %v1897_v40  ;;  %v1515_v15 = vpop.f32.mrb[34].mxu1  ;;  %v816_v16 = vpop.f32.mrb[35].mxu0  ;;  %v921_v22 = vmul.f32 %v1908_v6, %v1908_v6 }
 0x13a   :  { %v1920_v19 = vadd.f32 %v1515_v15, %v760_v34  ;;  %v1923_v39 = vadd.f32 %v816_v16, %v1893_v26  ;;  %v848_v20 = vpop.f32.mrb[35].mxu1  ;;  %v919_v25 = vmul.f32 %v1913_v10, %v1913_v10  ;;  %v929_v62 = vmul.f32 %v1910_v9, %v1910_v9 }
 0x13b   :  { %v1925_v21 = vadd.f32 %v848_v20, %v752_v18  ;;  %v922_v18 = vmul.f32 %v1918_v14, %v1918_v14 }
 0x13c   :  { %v895_v17 = vadd.f32 %v1923_v39, %v1913_v10  ;;  %v920_v40 = vmul.f32 %v1923_v39, %v1923_v39 }
 0x13d   :  { %v928_v59 = vmul.f32 %v1925_v21, %v1925_v21 }
 0x13e   :  { %v896_v23 = vadd.f32 %v895_v17, %v1908_v6  ;;  %v935_v24 = vadd.f32 %v920_v40, %v919_v25  ;;  %v1510_v26 = vpop.f32.mrb[36].mxu0 }
 0x13f   :  { %v1939_v27 = vadd.f32 %v1510_v26, %v1903_v3  ;;  %v1518_v28 = vpop.f32.mrb[36].mxu1  ;;  %v829_v29 = vpop.f32.mrb[37].mxu0 }
 0x140   :  { %v936_v30 = vadd.f32 %v935_v24, %v921_v22  ;;  %v1941_v31 = vadd.f32 %v1518_v28, %v773_v1  ;;  %v1944_v32 = vadd.f32 %v829_v29, %v1899_v53  ;;  %v897_v33 = vadd.f32 %v896_v23, %v1918_v14  ;;  %v861_v34 = vpop.f32.mrb[37].mxu1  ;;  %v1511_v35 = vpop.f32.mrb[38].mxu0 }
 0x141   :  { %v1947_v36 = vadd.f32 %v861_v34, %v765_v49  ;;  %v1950_v37 = vadd.f32 %v1511_v35, %v1905_v4  ;;  %v1519_v38 = vpop.f32.mrb[38].mxu1  ;;  %v832_v3 = vpop.f32.mrb[39].mxu0  ;;  %v925_v49 = vmul.f32 %v1939_v27, %v1939_v27  ;;  %v930_v1 = vmul.f32 %v1920_v19, %v1920_v19 }
 0x142   :  { %v898_v41 = vadd.f32 %v897_v33, %v1944_v32  ;;  %v923_v42 = vmul.f32 %v1944_v32, %v1944_v32  ;;  %v937_v43 = vadd.f32 %v936_v30, %v922_v18  ;;  %v864_v44 = vpop.f32.mrb[39].mxu1  ;;  %v1955_v53 = vadd.f32 %v1519_v38, %v776_v2 }
 0x143   :  { %v1958_v45 = vadd.f32 %v832_v3, %v1901_v54  ;;  %v1960_v47 = vadd.f32 %v864_v44, %v768_v50  ;;  %v926_v55 = vmul.f32 %v1950_v37, %v1950_v37  ;;  %v927_v50 = vmul.f32 %v1915_v13, %v1915_v13  ;;  %v894_v3 = vld [vmem:[#allocation3] sm:$0x1] }
 0x144   :  { %v938_v46 = vadd.f32 %v937_v43, %v923_v42  ;;  %v931_v7 = vmul.f32 %v1947_v36, %v1947_v36  ;;  %v933_v20 = vmul.f32 %v1941_v31, %v1941_v31  ;;  %v934_v40 = vmul.f32 %v1955_v53, %v1955_v53  ;;  %v918_v43 = vld [vmem:[#allocation4] sm:$0x1] }
 0x145   :  { %v899_v4 = vadd.f32 %v898_v41, %v1958_v45  ;;  %v924_v48 = vmul.f32 %v1958_v45, %v1958_v45  ;;  %v932_v15 = vmul.f32 %v1960_v47, %v1960_v47 }
 0x147   :  { %v900_v51 = vadd.f32 %v899_v4, %v1939_v27  ;;  %v939_v52 = vadd.f32 %v938_v46, %v924_v48 }
 0x149   :  { %v901_v54 = vadd.f32 %v900_v51, %v1950_v37  ;;  %v940_v56 = vadd.f32 %v939_v52, %v925_v49 }
 0x14b   :  { %v902_v57 = vadd.f32 %v901_v54, %v1915_v13  ;;  %v941_v58 = vadd.f32 %v940_v56, %v926_v55 }
 0x14d   :  { %v942_v60 = vadd.f32 %v941_v58, %v927_v50  ;;  %v903_v61 = vadd.f32 %v902_v57, %v1925_v21 }
 0x14f   :  { %v904_v63 = vadd.f32 %v903_v61, %v1910_v9  ;;  %v943_v0 = vadd.f32 %v942_v60, %v928_v59 }
 0x151   :  { %v905_v2 = vadd.f32 %v904_v63, %v1920_v19  ;;  %v944_v5 = vadd.f32 %v943_v0, %v929_v62 }
 0x153   :  { %v906_v8 = vadd.f32 %v905_v2, %v1947_v36  ;;  %v945_v11 = vadd.f32 %v944_v5, %v930_v1 }
 0x155   :  { %v907_v12 = vadd.f32 %v906_v8, %v1960_v47  ;;  %v946_v16 = vadd.f32 %v945_v11, %v931_v7  ;;  %v1002_v8 = vlaneseq }
 0x157   :  { %v908_v25 = vadd.f32 %v907_v12, %v1941_v31  ;;  %v947_v17 = vadd.f32 %v946_v16, %v932_v15  ;;  %v1003_v11 = vshrl.u32 %v1002_v8, 7  ;;  %v994_v12 = vld [vmem:[%s2059_s2] sm:$0x1] }
 0x159   :  { %v909_v22 = vadd.f32 %v908_v25, %v1955_v53  ;;  %v948_v23 = vadd.f32 %v947_v17, %v933_v20  ;;  %v1004_v15 = vsub.s32 0, %v1003_v11  ;;  %v998_v25 = vld [vmem:[%s2060_s3] sm:$0x1] }
 0x15b   :  { %v910_v24 = vrot.slane %v909_v22, 4  ;;  %v949_v26 = vadd.f32 %v948_v23, %v934_v40 }
 0x15d   :  { %v911_v18 = vadd.f32 %v910_v24, %v909_v22  ;;  %v950_v28 = vrot.slane %v949_v26, 4 }
 0x15f   :  { %v912_v29 = vrot.slane %v911_v18, 2  ;;  %v951_v30 = vadd.f32 %v950_v28, %v949_v26 }
 0x161   :  { %v913_v33 = vadd.f32 %v912_v29, %v911_v18  ;;  %v952_v34 = vrot.slane %v951_v30, 2 }
 0x163   :  { %v914_v35 = vrot.slane %v913_v33, 1  ;;  %v953_v38 = vadd.f32 %v952_v34, %v951_v30 }
 0x165   :  { %v915_v41 = vadd.f32 %v914_v35, %v913_v33  ;;  %v954_v42 = vrot.slane %v953_v38, 1 }
 0x167   :  { %v916_v44 = vadd.f32 %v915_v41, %v894_v3  ;;  %v955_v46 = vadd.f32 %v954_v42, %v953_v38 }
 0x169   :  { %917 = vst [vmem:[#allocation3] sm:$0x1] %v916_v44  ;;  %v956_v4 = vadd.f32 %v955_v46, %v918_v43 }
 0x16b   :  { %957 = vst [vmem:[#allocation4] sm:$0x1] %v956_v4 }
 0x170   :  { %v961_v48 = vld [vmem:[#allocation3] sm:$0x1] }
 0x171   :  { %973 = vrot.lane.b32.xlu1 %v961_v48, %s1627_s0  ;;  %964 = vrot.lane.b32.xlu0 %v961_v48, %s1628_s9 }
 0x172   :  { %v962_v49 = vld [vmem:[#allocation4] sm:$0x1] }
 0x175   :  { %977 = vrot.lane.b32.xlu1 %v962_v49, %s1627_s0  ;;  %969 = vrot.lane.b32.xlu0 %v962_v49, %s1628_s9 }
 0x179   :  { %985 = vrot.lane.b32.xlu1 %v962_v49, %s1629_s10  ;;  %981 = vrot.lane.b32.xlu0 %v961_v48, %s1629_s10 }
 0x1e3   :  { %v974_v51 = vpop.permute.xlu1 %973  ;;  %v965_v52 = vpop.permute.xlu0 %964 }
 0x1e4   :  { %v967_v55 = vadd.f32 %v965_v52, %v961_v48 }
 0x1e6   :  { %v976_v58 = vadd.f32 %v974_v51, %v967_v55 }
 0x1e7   :  { %v978_v54 = vpop.permute.xlu1 %977  ;;  %v970_v56 = vpop.permute.xlu0 %969 }
 0x1e8   :  { %v972_v50 = vadd.f32 %v970_v56, %v962_v49 }
 0x1ea   :  { %v980_v57 = vadd.f32 %v978_v54, %v972_v50 }
 0x1eb   :  { %v986_v59 = vpop.permute.xlu1 %985  ;;  %v982_v60 = vpop.permute.xlu0 %981 }
 0x1ec   :  { %v988_v61 = vadd.f32 %v986_v59, %v980_v57  ;;  %v984_v62 = vadd.f32 %v982_v60, %v976_v58 }
 0x1ee   :  { %v989_v63 = vmul.f32 0.001953125, %v984_v62  ;;  %v990_v0 = vmul.f32 0.001953125, %v988_v61 }
 0x1f0   :  { %v991_v1 = vmul.f32 %v989_v63, %v989_v63 }
 0x1f2   :  { %v992_v2 = vsub.f32 %v990_v0, %v991_v1 }
 0x1f4   :  { %v993_v5 = vmax.f32 %v992_v2, 0.0 }
 0x1f6   :  { %v995_v7 = vadd.f32 1e-05, %v993_v5 }
 0x1f8   :  { %1624 = vrsqrt.f32 %v995_v7 }
 0x202   :  { %v1625_v16 = vpop.eup %1624 }
 0x203   :  { %v997_v20 = vmul.f32 %v1625_v16, %v994_v12 }
 0x205   :  { %v999_v17 = vmul.f32 %v997_v20, %v989_v63  ;;  %v1005_v40 = vrot.slane %v997_v20, %v1004_v15 }
 0x207   :  { %v1000_v22 = vsub.f32 %v998_v25, %v999_v17  ;;  %1009 = vrot.lane.b32.xlu1 %v1005_v40, %s1627_s0  ;;  %1006 = vrot.lane.b32.xlu0 %v1005_v40, %s1629_s10 }
 0x209   :  { %v1024_v23 = vrot.slane %v1000_v22, %v1004_v15 }
 0x20b   :  { %1012 = vrot.lane.b32.xlu0 %v1005_v40, %s1628_s9  ;;  %1025 = vrot.lane.b32.xlu1 %v1024_v23, %s1629_s10 }
 0x20f   :  { %1028 = vrot.lane.b32.xlu0 %v1024_v23, %s1627_s0  ;;  %1031 = vrot.lane.b32.xlu1 %v1024_v23, %s1628_s9 }
 0x279   :  { %v1010_v24 = vpop.permute.xlu1 %1009  ;;  %v1007_v26 = vpop.permute.xlu0 %1006 }
 0x27a   :  { %v1016_v18 = vsel %vm1015_vm1, %v997_v20, %v1007_v26 }
 0x27b   :  { %v1017_v28 = vsel %vm560_vm0, %v1016_v18, %v1010_v24 }
 0x27d   :  { %v1013_v29 = vpop.permute.xlu0 %1012  ;;  %v1026_v30 = vpop.permute.xlu1 %1025 }
 0x27e   :  { %v1019_v33 = vsel %vm1018_vm2, %v1017_v28, %v1013_v29  ;;  %v1034_v43 = vsel %vm1015_vm1, %v1000_v22, %v1026_v30 }
 0x27f   :  { %v1056_v34 = vrot.slane %v1019_v33, %v1004_v15 }
 0x281   :  { %v1029_v35 = vpop.permute.xlu0 %1028  ;;  %v1032_v38 = vpop.permute.xlu1 %1031  ;;  %v1057_v3 = vmul.f32 %v1056_v34, %v1913_v10  ;;  %v1058_v41 = vmul.f32 %v1056_v34, %v1923_v39  ;;  %v1059_v42 = vmul.f32 %v1056_v34, %v1908_v6  ;;  %v1060_v44 = vmul.f32 %v1056_v34, %v1918_v14 }
 0x282   :  { %v1061_v46 = vmul.f32 %v1056_v34, %v1944_v32  ;;  %v1062_v4 = vmul.f32 %v1056_v34, %v1958_v45  ;;  %v1035_v48 = vsel %vm560_vm0, %v1034_v43, %v1029_v35  ;;  %v1063_v49 = vmul.f32 %v1056_v34, %v1939_v27 }
 0x283   :  { %v1064_v51 = vmul.f32 %v1056_v34, %v1950_v37  ;;  %v1065_v52 = vmul.f32 %v1056_v34, %v1915_v13  ;;  %v1036_v10 = vsel %vm1018_vm2, %v1035_v48, %v1032_v38  ;;  %v1066_v39 = vmul.f32 %v1056_v34, %v1925_v21 }
 0x284   :  { %v1067_v6 = vmul.f32 %v1056_v34, %v1910_v9  ;;  %v1068_v14 = vmul.f32 %v1056_v34, %v1920_v19  ;;  %v1076_v55 = vrot.slane %v1036_v10, %v1004_v15  ;;  %v1069_v32 = vmul.f32 %v1056_v34, %v1947_v36 }
 0x285   :  { %v1070_v45 = vmul.f32 %v1056_v34, %v1960_v47  ;;  %v1071_v54 = vmul.f32 %v1056_v34, %v1941_v31  ;;  %v1072_v27 = vmul.f32 %v1056_v34, %v1955_v53 }
 0x286   :  { %v1077_v37 = vadd.f32 %v1076_v55, %v1057_v3  ;;  %v1078_v56 = vadd.f32 %v1076_v55, %v1058_v41  ;;  %v1079_v13 = vadd.f32 %v1076_v55, %v1059_v42  ;;  %v1080_v50 = vadd.f32 %v1076_v55, %v1060_v44 }
 0x287   :  { %v1081_v57 = vadd.f32 %v1076_v55, %v1061_v46  ;;  %v1082_v58 = vadd.f32 %v1076_v55, %v1062_v4  ;;  %v1083_v21 = vadd.f32 %v1076_v55, %v1063_v49  ;;  %v1084_v59 = vadd.f32 %v1076_v55, %v1064_v51 }
 0x288   :  { %v1085_v9 = vadd.f32 %v1076_v55, %v1065_v52  ;;  %v1086_v60 = vadd.f32 %v1076_v55, %v1066_v39  ;;  %v1087_v19 = vadd.f32 %v1076_v55, %v1067_v6  ;;  %v1088_v61 = vadd.f32 %v1076_v55, %v1068_v14 }
 0x289   :  { %v1089_v62 = vadd.f32 %v1076_v55, %v1069_v32  ;;  %v1090_v36 = vadd.f32 %v1076_v55, %v1070_v45  ;;  %v1091_v63 = vadd.f32 %v1076_v55, %v1071_v54  ;;  %v1092_v47 = vadd.f32 %v1076_v55, %v1072_v27 }
 0x28a   :  { %v1093_v0 = vmax.f32 %v1077_v37, 0.0  ;;  %v1094_v31 = vmax.f32 %v1078_v56, 0.0  ;;  %v1095_v1 = vmax.f32 %v1079_v13, 0.0  ;;  %v1096_v53 = vmax.f32 %v1080_v50, 0.0 }
 0x28b   :  { %v1097_v2 = vmax.f32 %v1081_v57, 0.0  ;;  %v1098_v5 = vmax.f32 %v1082_v58, 0.0  ;;  %v1099_v7 = vmax.f32 %v1083_v21, 0.0  ;;  %v1100_v8 = vmax.f32 %v1084_v59, 0.0 }
 0x28c   :  { %v1101_v11 = vmax.f32 %v1085_v9, 0.0  ;;  %v1102_v12 = vmax.f32 %v1086_v60, 0.0  ;;  %v1103_v15 = vmax.f32 %v1087_v19, 0.0  ;;  %v1104_v16 = vmax.f32 %v1088_v61, 0.0 }
 0x28d   :  { %v1105_v20 = vmax.f32 %v1089_v62, 0.0  ;;  %v1106_v25 = vmax.f32 %v1090_v36, 0.0  ;;  %v1107_v17 = vmax.f32 %v1091_v63, 0.0  ;;  %v1108_v40 = vmax.f32 %v1092_v47, 0.0 }
 0x28e   :  { %v1312_v22 = vpack.c.bf16 %v1094_v31, %v1093_v0  ;;  %v1317_v23 = vpack.c.bf16 %v1096_v53, %v1095_v1  ;;  %v1322_v24 = vpack.c.bf16 %v1098_v5, %v1097_v2  ;;  %v1327_v26 = vpack.c.bf16 %v1100_v8, %v1099_v7 }
 0x28f   :  { %v1332_v18 = vpack.c.bf16 %v1102_v12, %v1101_v11  ;;  %v1337_v28 = vpack.c.bf16 %v1104_v16, %v1103_v15  ;;  %v1342_v29 = vpack.c.bf16 %v1106_v25, %v1105_v20  ;;  %v1347_v30 = vpack.c.bf16 %v1108_v40, %v1107_v17 }
 0x290   :  { %1313 = vst [vmem:[%s2061_s4] sm:$0xff] %v1312_v22   ;;  %1349 = vst [vmem:[%s2061_s4 + $0x8] sm:$0xff] %v1317_v23  }
 0x291   :  { %1350 = vst [vmem:[%s2061_s4 + $0x10] sm:$0xff] %v1322_v24   ;;  %1351 = vst [vmem:[%s2061_s4 + $0x18] sm:$0xff] %v1327_v26  }
 0x292   :  { %1352 = vst [vmem:[%s2061_s4 + $0x20] sm:$0xff] %v1332_v18   ;;  %1353 = vst [vmem:[%s2061_s4 + $0x28] sm:$0xff] %v1337_v28  }
 0x293   :  { %1354 = vst [vmem:[%s2061_s4 + $0x30] sm:$0xff] %v1342_v29   ;;  %1355 = vst [vmem:[%s2061_s4 + $0x38] sm:$0xff] %v1347_v30  }

// kernel: generator_forward.8
= control target key start
LH: loop header
LB: loop body
LE: loop exit
PB: predicated region body
PF: predicated region fallthrough
CT: control target
= control target key end

     0   :  { %v3144_v0 = vmov 0   ;;  %vm776_vm0 = vcmask 261120   ;;  %s3147_s28 = smov 96   ;;  %s3148_s29 = smov 32   ;;  %vm1783_vm1 = vcmask 523264   ;;  %vm1785_vm2 = vcmask 785408   ;;  %s4730_s1 = inlined_call_operand.vmem [shape: bf16[288,128], index: 1, kind: input, shape index: {}]   ;;  %s4731_s0 = inlined_call_operand.vmem [shape: bf16[512,288], index: 0, kind: input, shape index: {}]   ;;  %s4732_s2 = inlined_call_operand.vmem [shape: f32[1,32], index: 2, kind: input, shape index: {}]   ;;  %s4733_s3 = inlined_call_operand.vmem [shape: f32[1,32], index: 3, kind: input, shape index: {}]   ;;  %s4734_s4 = inlined_call_operand.vmem [shape: bf16[512,128], index: 4, kind: output, shape index: {}]  }
   0x1   :  { %873 = vmatprep.subr.bf16.mxu0 %v3144_v0  ;;  %2959 = vmatprep.subr.bf16.mxu1 %v3144_v0  ;;  %v2996_v1 = vld [vmem:[%s4730_s1] sm:$0xff]   ;;  %v2997_v2 = vld [vmem:[%s4730_s1 + $0x8] sm:$0xff]   ;;  %v2998_v3 = vld [vmem:[%s4730_s1 + $0x10] sm:$0xff]  }
   0x2   :  { %874 = vmatpush1.bf16.msra.mxu0 %v2996_v1  ;;  %2975 = vmatpush1.bf16.msra.mxu1 %v2996_v1  ;;  %v2999_v4 = vld [vmem:[%s4730_s1 + $0x18] sm:$0xff]   ;;  %v3000_v5 = vld [vmem:[%s4730_s1 + $0x20] sm:$0xff]   ;;  %v3001_v7 = vld [vmem:[%s4730_s1 + $0x28] sm:$0xff]  }
   0x3   :  { %875 = vmatprep.subr.bf16.mxu0 %v3144_v0  ;;  %2960 = vmatprep.subr.bf16.mxu1 %v3144_v0  ;;  %v3014_v6 = vld [vmem:[%s4731_s0 + $0x4] ss:$12 sps:$4 sm:$0xff]   ;;  %v3003_v10 = vld [vmem:[%s4730_s1 + $0x38] sm:$0xff]   ;;  %v3005_v12 = vld [vmem:[%s4730_s1 + $0x48] sm:$0xff]  }
   0x4   :  { %v3017_v8 = vld [vmem:[%s4731_s0 + $0x244] ss:$12 sps:$4 sm:$0xff]   ;;  %905 = vmatprep.mubr.bf16.mxu0 %v3014_v6  ;;  %v3007_v14 = vld [vmem:[%s4730_s1 + $0x58] sm:$0xff]   ;;  %v3009_v16 = vld [vmem:[%s4730_s1 + $0x68] sm:$0xff]  }
   0x5   :  { %1097 = vmatprep.mubr.bf16.mxu1 %v3017_v8  ;;  %v3002_v9 = vld [vmem:[%s4730_s1 + $0x30] sm:$0xff]   ;;  %v3004_v11 = vld [vmem:[%s4730_s1 + $0x40] sm:$0xff]   ;;  %v3011_v18 = vld [vmem:[%s4730_s1 + $0x78] sm:$0xff]  }
   0x6   :  { %876 = vmatpush1.bf16.msra.mxu0 %v2997_v2  ;;  %2976 = vmatpush1.bf16.msra.mxu1 %v2997_v2  ;;  %v3006_v13 = vld [vmem:[%s4730_s1 + $0x50] sm:$0xff]   ;;  %v3008_v15 = vld [vmem:[%s4730_s1 + $0x60] sm:$0xff]   ;;  %v3018_v22 = vld [vmem:[%s4731_s0 + $0x1c] ss:$12 sps:$4 sm:$0xff]  }
   0x7   :  { %877 = vmatprep.subr.bf16.mxu0 %v3144_v0  ;;  %2961 = vmatprep.subr.bf16.mxu1 %v3144_v0  ;;  %v3010_v17 = vld [vmem:[%s4730_s1 + $0x70] sm:$0xff]   ;;  %v3036_v19 = vld [vmem:[%s4730_s1 + $0x80] sm:$0xff]   ;;  %v3020_v23 = vld [vmem:[%s4731_s0 + $0x25c] ss:$12 sps:$4 sm:$0xff]  }
   0x8   :  { %v3012_v20 = vld [vmem:[%s4731_s0] ss:$12 sps:$4 sm:$0xff]   ;;  %v3022_v25 = vld [vmem:[%s4731_s0 + $0x18] ss:$12 sps:$4 sm:$0xff]   ;;  %v3028_v29 = vld [vmem:[%s4731_s0 + $0x30] ss:$12 sps:$4 sm:$0xff]  }
   0x9   :  { %v3015_v21 = vld [vmem:[%s4731_s0 + $0x240] ss:$12 sps:$4 sm:$0xff]   ;;  %v3023_v26 = vld [vmem:[%s4731_s0 + $0x258] ss:$12 sps:$4 sm:$0xff]   ;;  %v3029_v30 = vld [vmem:[%s4731_s0 + $0x270] ss:$12 sps:$4 sm:$0xff]  }
   0xa   :  { %878 = vmatpush1.bf16.msra.mxu0 %v2998_v3  ;;  %2977 = vmatpush1.bf16.msra.mxu1 %v2998_v3  ;;  %v3061_v24 = vld [vmem:[%s4730_s1 + $0x88] sm:$0xff]   ;;  %v3024_v27 = vld [vmem:[%s4731_s0 + $0x34] ss:$12 sps:$4 sm:$0xff]   ;;  %v3037_v35 = vld [vmem:[%s4731_s0 + $0x64] ss:$12 sps:$4 sm:$0xff]  }
   0xb   :  { %879 = vmatprep.subr.bf16.mxu0 %v3144_v0  ;;  %2962 = vmatprep.subr.bf16.mxu1 %v3144_v0  ;;  %v3026_v28 = vld [vmem:[%s4731_s0 + $0x274] ss:$12 sps:$4 sm:$0xff]   ;;  %v3030_v31 = vld [vmem:[%s4731_s0 + $0x4c] ss:$12 sps:$4 sm:$0xff]   ;;  %v3039_v36 = vld [vmem:[%s4731_s0 + $0x2a4] ss:$12 sps:$4 sm:$0xff]  }
   0xc   :  { %v3032_v32 = vld [vmem:[%s4731_s0 + $0x28c] ss:$12 sps:$4 sm:$0xff]   ;;  %v3034_v33 = vld [vmem:[%s4731_s0 + $0x48] ss:$12 sps:$4 sm:$0xff]   ;;  %v3053_v45 = vld [vmem:[%s4731_s0 + $0x90] ss:$12 sps:$4 sm:$0xff]  }
   0xd   :  { %v3035_v34 = vld [vmem:[%s4731_s0 + $0x288] ss:$12 sps:$4 sm:$0xff]   ;;  %v3041_v37 = vld [vmem:[%s4731_s0 + $0x60] ss:$12 sps:$4 sm:$0xff]   ;;  %v3047_v41 = vld [vmem:[%s4731_s0 + $0x78] ss:$12 sps:$4 sm:$0xff]  }
   0xe   :  { %880 = vmatpush1.bf16.msra.mxu0 %v2999_v4  ;;  %2978 = vmatpush1.bf16.msra.mxu1 %v2999_v4  ;;  %v3042_v38 = vld [vmem:[%s4731_s0 + $0x2a0] ss:$12 sps:$4 sm:$0xff]   ;;  %v3043_v39 = vld [vmem:[%s4731_s0 + $0x7c] ss:$12 sps:$4 sm:$0xff]   ;;  %v3048_v42 = vld [vmem:[%s4731_s0 + $0x2b8] ss:$12 sps:$4 sm:$0xff]  }
   0xf   :  { %881 = vmatprep.subr.bf16.mxu0 %v3144_v0  ;;  %2963 = vmatprep.subr.bf16.mxu1 %v3144_v0  ;;  %v3045_v40 = vld [vmem:[%s4731_s0 + $0x2bc] ss:$12 sps:$4 sm:$0xff]   ;;  %v3049_v43 = vld [vmem:[%s4731_s0 + $0x94] ss:$12 sps:$4 sm:$0xff]   ;;  %v3055_v47 = vld [vmem:[%s4731_s0 + $0xac] ss:$12 sps:$4 sm:$0xff]  }
  0x10   :  { %v3051_v44 = vld [vmem:[%s4731_s0 + $0x2d4] ss:$12 sps:$4 sm:$0xff]   ;;  %v3054_v46 = vld [vmem:[%s4731_s0 + $0x2d0] ss:$12 sps:$4 sm:$0xff]   ;;  %v3057_v48 = vld [vmem:[%s4731_s0 + $0x2ec] ss:$12 sps:$4 sm:$0xff]  }
  0x11   :  { %v3059_v49 = vld [vmem:[%s4731_s0 + $0xa8] ss:$12 sps:$4 sm:$0xff]   ;;  %v3062_v51 = vld [vmem:[%s4731_s0 + $0xc4] ss:$12 sps:$4 sm:$0xff]   ;;  %v3065_v53 = vld [vmem:[%s4731_s0 + $0xc0] ss:$12 sps:$4 sm:$0xff]  }
  0x12   :  { %882 = vmatpush1.bf16.msra.mxu0 %v3000_v5  ;;  %2979 = vmatpush1.bf16.msra.mxu1 %v3000_v5  ;;  %v3060_v50 = vld [vmem:[%s4731_s0 + $0x2e8] ss:$12 sps:$4 sm:$0xff]   ;;  %v3066_v54 = vld [vmem:[%s4731_s0 + $0x20] ss:$12 sps:$4 sm:$0xff]   ;;  %v3069_v56 = vld [vmem:[%s4731_s0 + $0x38] ss:$12 sps:$4 sm:$0xff]  }
  0x13   :  { %883 = vmatprep.subr.bf16.mxu0 %v3144_v0  ;;  %2964 = vmatprep.subr.bf16.mxu1 %v3144_v0  ;;  %v3064_v52 = vld [vmem:[%s4731_s0 + $0x8] ss:$12 sps:$4 sm:$0xff]   ;;  %v3070_v57 = vld [vmem:[%s4731_s0 + $0xd8] ss:$12 sps:$4 sm:$0xff]   ;;  %v3071_v58 = vld [vmem:[%s4731_s0 + $0x50] ss:$12 sps:$4 sm:$0xff]  }
  0x14   :  { %v3067_v55 = vld [vmem:[%s4731_s0 + $0xdc] ss:$12 sps:$4 sm:$0xff]   ;;  %v3072_v59 = vld [vmem:[%s4731_s0 + $0xf4] ss:$12 sps:$4 sm:$0xff]   ;;  %v3077_v63 = vld [vmem:[%s4731_s0 + $0x10c] ss:$12 sps:$4 sm:$0xff]  }
  0x15   :  { %v3074_v60 = vld [vmem:[%s4731_s0 + $0x68] ss:$12 sps:$4 sm:$0xff]   ;;  %v3075_v61 = vld [vmem:[%s4731_s0 + $0xf0] ss:$12 sps:$4 sm:$0xff]   ;;  %v3076_v62 = vld [vmem:[%s4731_s0 + $0x80] ss:$12 sps:$4 sm:$0xff]  }
  0x16   :  { %884 = vmatpush1.bf16.msra.mxu0 %v3001_v7  ;;  %2980 = vmatpush1.bf16.msra.mxu1 %v3001_v7  ;;  %v3080_v1 = vld [vmem:[%s4731_s0 + $0x108] ss:$12 sps:$4 sm:$0xff]   ;;  %v3081_v2 = vld [vmem:[%s4731_s0 + $0xb0] ss:$12 sps:$4 sm:$0xff]   ;;  %v3085_v5 = vld [vmem:[%s4731_s0 + $0x120] ss:$12 sps:$4 sm:$0xff]  }
  0x17   :  { %885 = vmatprep.subr.bf16.mxu0 %v3144_v0  ;;  %2965 = vmatprep.subr.bf16.mxu1 %v3144_v0  ;;  %v3082_v3 = vld [vmem:[%s4731_s0 + $0x124] ss:$12 sps:$4 sm:$0xff]   ;;  %v3084_v4 = vld [vmem:[%s4731_s0 + $0xc8] ss:$12 sps:$4 sm:$0xff]   ;;  %v3086_v6 = vld [vmem:[%s4731_s0 + $0xe0] ss:$12 sps:$4 sm:$0xff]  }
  0x18   :  { %v3087_v7 = vld [vmem:[%s4731_s0 + $0x13c] ss:$12 sps:$4 sm:$0xff]   ;;  %v3089_v8 = vld [vmem:[%s4731_s0 + $0xf8] ss:$12 sps:$4 sm:$0xff]  }
  0x1a   :  { %886 = vmatpush1.bf16.msra.mxu0 %v3002_v9  ;;  %2981 = vmatpush1.bf16.msra.mxu1 %v3002_v9  ;;  %v3090_v9 = vld [vmem:[%s4731_s0 + $0x138] ss:$12 sps:$4 sm:$0xff]  }
  0x1b   :  { %887 = vmatprep.subr.bf16.mxu0 %v3144_v0  ;;  %2966 = vmatprep.subr.bf16.mxu1 %v3144_v0 }
  0x1e   :  { %888 = vmatpush1.bf16.msra.mxu0 %v3003_v10  ;;  %2982 = vmatpush1.bf16.msra.mxu1 %v3003_v10  ;;  %v3091_v10 = vld [vmem:[%s4731_s0 + $0x110] ss:$12 sps:$4 sm:$0xff]  }
  0x1f   :  { %889 = vmatprep.subr.bf16.mxu0 %v3144_v0  ;;  %2967 = vmatprep.subr.bf16.mxu1 %v3144_v0 }
  0x22   :  { %890 = vmatpush1.bf16.msra.mxu0 %v3004_v11  ;;  %2983 = vmatpush1.bf16.msra.mxu1 %v3004_v11  ;;  %v3092_v11 = vld [vmem:[%s4731_s0 + $0x154] ss:$12 sps:$4 sm:$0xff]  }
  0x23   :  { %891 = vmatprep.subr.bf16.mxu0 %v3144_v0  ;;  %2968 = vmatprep.subr.bf16.mxu1 %v3144_v0 }
  0x26   :  { %892 = vmatpush1.bf16.msra.mxu0 %v3005_v12  ;;  %2984 = vmatpush1.bf16.msra.mxu1 %v3005_v12  ;;  %v3094_v12 = vld [vmem:[%s4731_s0 + $0x128] ss:$12 sps:$4 sm:$0xff]  }
  0x27   :  { %893 = vmatprep.subr.bf16.mxu0 %v3144_v0  ;;  %2969 = vmatprep.subr.bf16.mxu1 %v3144_v0 }
  0x2a   :  { %894 = vmatpush1.bf16.msra.mxu0 %v3006_v13  ;;  %2985 = vmatpush1.bf16.msra.mxu1 %v3006_v13  ;;  %v3095_v13 = vld [vmem:[%s4731_s0 + $0x150] ss:$12 sps:$4 sm:$0xff]  }
  0x2b   :  { %895 = vmatprep.subr.bf16.mxu0 %v3144_v0  ;;  %2970 = vmatprep.subr.bf16.mxu1 %v3144_v0 }
  0x2e   :  { %896 = vmatpush1.bf16.msra.mxu0 %v3007_v14  ;;  %2986 = vmatpush1.bf16.msra.mxu1 %v3007_v14  ;;  %v3096_v14 = vld [vmem:[%s4731_s0 + $0x140] ss:$12 sps:$4 sm:$0xff]  }
  0x2f   :  { %897 = vmatprep.subr.bf16.mxu0 %v3144_v0  ;;  %2971 = vmatprep.subr.bf16.mxu1 %v3144_v0 }
  0x32   :  { %898 = vmatpush1.bf16.msra.mxu0 %v3008_v15  ;;  %2987 = vmatpush1.bf16.msra.mxu1 %v3008_v15  ;;  %v3097_v15 = vld [vmem:[%s4731_s0 + $0x16c] ss:$12 sps:$4 sm:$0xff]  }
  0x33   :  { %899 = vmatprep.subr.bf16.mxu0 %v3144_v0  ;;  %2972 = vmatprep.subr.bf16.mxu1 %v3144_v0 }
  0x36   :  { %900 = vmatpush1.bf16.msra.mxu0 %v3009_v16  ;;  %2988 = vmatpush1.bf16.msra.mxu1 %v3009_v16  ;;  %v3099_v16 = vld [vmem:[%s4731_s0 + $0x158] ss:$12 sps:$4 sm:$0xff]  }
  0x37   :  { %901 = vmatprep.subr.bf16.mxu0 %v3144_v0  ;;  %2973 = vmatprep.subr.bf16.mxu1 %v3144_v0 }
  0x3a   :  { %902 = vmatpush1.bf16.msra.mxu0 %v3010_v17  ;;  %2989 = vmatpush1.bf16.msra.mxu1 %v3010_v17  ;;  %v3100_v17 = vld [vmem:[%s4731_s0 + $0x168] ss:$12 sps:$4 sm:$0xff]  }
  0x3b   :  { %903 = vmatprep.subr.bf16.mxu0 %v3144_v0  ;;  %2974 = vmatprep.subr.bf16.mxu1 %v3144_v0  ;;  %v3079_v0 = vld [vmem:[%s4731_s0 + $0x98] ss:$12 sps:$4 sm:$0xff]  }
  0x3e   :  { %904 = vmatpush1.bf16.msra.mxu0 %v3011_v18  ;;  %2990 = vmatpush1.bf16.msra.mxu1 %v3011_v18  ;;  %v3101_v18 = vld [vmem:[%s4731_s0 + $0x170] ss:$12 sps:$4 sm:$0xff]  }
  0x3f   :  { %2891 = vmatprep.subr.bf16.mxu1 %v3036_v19 }
  0x41   :  { %906 = vmatmul.mubr.bf16.vlgmr.msra.gmra.mrb[0].mxu0 %v3012_v20  ;;  %1098 = vmatmul.mubr.bf16.vlgmr.msra.gmra.mrb[0].mxu1 %v3015_v21  ;;  %v3104_v20 = vld [vmem:[%s4731_s0 + $0x188] ss:$12 sps:$4 sm:$0xff]   ;;  %v3105_v21 = vld [vmem:[%s4731_s0 + $0x180] ss:$12 sps:$4 sm:$0xff]  }
  0x42   :  { %913 = vmatprep.mubr.bf16.mxu0 %v3018_v22  ;;  %1105 = vmatprep.mubr.bf16.mxu1 %v3020_v23  ;;  %v3106_v22 = vld [vmem:[%s4731_s0 + $0x1a0] ss:$12 sps:$4 sm:$0xff]   ;;  %v3107_v23 = vld [vmem:[%s4731_s0 + $0x19c] ss:$12 sps:$4 sm:$0xff]  }
  0x43   :  { %2892 = vmatpush3.bf16.msra.mxu1 %v3036_v19  ;;  %v3102_v19 = vld [vmem:[%s4731_s0 + $0x184] ss:$12 sps:$4 sm:$0xff]  }
  0x44   :  { %2893 = vmatprep.subr.bf16.mxu1 %v3061_v24 }
  0x47   :  { %2894 = vmatpush3.bf16.msra.mxu1 %v3061_v24  ;;  %v3109_v24 = vld [vmem:[%s4731_s0 + $0x1b8] ss:$12 sps:$4 sm:$0xff]  }
  0x49   :  { %914 = vmatmul.mubr.bf16.gmra.mrb[4].mxu0 %v3022_v25  ;;  %1106 = vmatmul.mubr.bf16.gmra.mrb[4].mxu1 %v3023_v26  ;;  %v3110_v25 = vld [vmem:[%s4731_s0 + $0x198] ss:$12 sps:$4 sm:$0xff]   ;;  %v3111_v26 = vld [vmem:[%s4731_s0 + $0x1d0] ss:$12 sps:$4 sm:$0xff]  }
  0x4a   :  { %921 = vmatprep.mubr.bf16.mxu0 %v3024_v27  ;;  %1113 = vmatprep.mubr.bf16.mxu1 %v3026_v28  ;;  %v3112_v27 = vld [vmem:[%s4731_s0 + $0x1b4] ss:$12 sps:$4 sm:$0xff]  }
  0x4b   :  { %v3114_v28 = vld [vmem:[%s4731_s0 + $0x1e8] ss:$12 sps:$4 sm:$0xff]  }
  0x51   :  { %922 = vmatmul.mubr.bf16.gmra.mrb[8].mxu0 %v3028_v29  ;;  %1114 = vmatmul.mubr.bf16.gmra.mrb[8].mxu1 %v3029_v30  ;;  %v3115_v29 = vld [vmem:[%s4731_s0 + $0x1b0] ss:$12 sps:$4 sm:$0xff]   ;;  %v3116_v30 = vld [vmem:[%s4731_s0 + $0x200] ss:$12 sps:$4 sm:$0xff]  }
  0x52   :  { %929 = vmatprep.mubr.bf16.mxu0 %v3030_v31  ;;  %1121 = vmatprep.mubr.bf16.mxu1 %v3032_v32  ;;  %v3117_v31 = vld [vmem:[%s4731_s0 + $0x1cc] ss:$12 sps:$4 sm:$0xff]  }
  0x53   :  { %v3119_v32 = vld [vmem:[%s4731_s0 + $0x218] ss:$12 sps:$4 sm:$0xff]  }
  0x59   :  { %930 = vmatmul.mubr.bf16.gmra.mrb[12].mxu0 %v3034_v33  ;;  %1122 = vmatmul.mubr.bf16.gmra.mrb[12].mxu1 %v3035_v34  ;;  %v3120_v33 = vld [vmem:[%s4731_s0 + $0x1c8] ss:$12 sps:$4 sm:$0xff]   ;;  %v3121_v34 = vld [vmem:[%s4731_s0 + $0x230] ss:$12 sps:$4 sm:$0xff]  }
  0x5a   :  { %937 = vmatprep.mubr.bf16.mxu0 %v3037_v35  ;;  %1129 = vmatprep.mubr.bf16.mxu1 %v3039_v36  ;;  %v3122_v35 = vld [vmem:[%s4731_s0 + $0x1e4] ss:$12 sps:$4 sm:$0xff]   ;;  %v3124_v36 = vld [vmem:[%s4731_s0 + $0x248] ss:$12 sps:$4 sm:$0xff]  }
  0x61   :  { %938 = vmatmul.mubr.bf16.gmra.mrb[16].mxu0 %v3041_v37  ;;  %1130 = vmatmul.mubr.bf16.gmra.mrb[16].mxu1 %v3042_v38  ;;  %v3125_v37 = vld [vmem:[%s4731_s0 + $0x1e0] ss:$12 sps:$4 sm:$0xff]  }
  0x62   :  { %945 = vmatprep.mubr.bf16.mxu0 %v3043_v39  ;;  %1137 = vmatprep.mubr.bf16.mxu1 %v3045_v40  ;;  %v3126_v38 = vld [vmem:[%s4731_s0 + $0x260] ss:$12 sps:$4 sm:$0xff]   ;;  %v3127_v39 = vld [vmem:[%s4731_s0 + $0x1fc] ss:$12 sps:$4 sm:$0xff]   ;;  %v3129_v40 = vld [vmem:[%s4731_s0 + $0x278] ss:$12 sps:$4 sm:$0xff]  }
  0x69   :  { %946 = vmatmul.mubr.bf16.gmra.mrb[20].mxu0 %v3047_v41  ;;  %1138 = vmatmul.mubr.bf16.gmra.mrb[20].mxu1 %v3048_v42  ;;  %v3130_v41 = vld [vmem:[%s4731_s0 + $0x1f8] ss:$12 sps:$4 sm:$0xff]   ;;  %v3131_v42 = vld [vmem:[%s4731_s0 + $0x290] ss:$12 sps:$4 sm:$0xff]  }
  0x6a   :  { %953 = vmatprep.mubr.bf16.mxu0 %v3049_v43  ;;  %1145 = vmatprep.mubr.bf16.mxu1 %v3051_v44  ;;  %v3132_v43 = vld [vmem:[%s4731_s0 + $0x214] ss:$12 sps:$4 sm:$0xff]  }
  0x6b   :  { %v3134_v44 = vld [vmem:[%s4731_s0 + $0x2a8] ss:$12 sps:$4 sm:$0xff]  }
  0x71   :  { %954 = vmatmul.mubr.bf16.gmra.mrb[24].mxu0 %v3053_v45  ;;  %1146 = vmatmul.mubr.bf16.gmra.mrb[24].mxu1 %v3054_v46  ;;  %v3135_v45 = vld [vmem:[%s4731_s0 + $0x210] ss:$12 sps:$4 sm:$0xff]   ;;  %v3136_v46 = vld [vmem:[%s4731_s0 + $0x2c0] ss:$12 sps:$4 sm:$0xff]  }
  0x72   :  { %961 = vmatprep.mubr.bf16.mxu0 %v3055_v47  ;;  %1153 = vmatprep.mubr.bf16.mxu1 %v3057_v48  ;;  %v3137_v47 = vld [vmem:[%s4731_s0 + $0x22c] ss:$12 sps:$4 sm:$0xff]  }
  0x73   :  { %v3139_v48 = vld [vmem:[%s4731_s0 + $0x2d8] ss:$12 sps:$4 sm:$0xff]  }
  0x79   :  { %962 = vmatmul.mubr.bf16.gmra.mrb[28].mxu0 %v3059_v49  ;;  %1154 = vmatmul.mubr.bf16.gmra.mrb[28].mxu1 %v3060_v50  ;;  %v3140_v49 = vld [vmem:[%s4731_s0 + $0x228] ss:$12 sps:$4 sm:$0xff]   ;;  %v3141_v50 = vld [vmem:[%s4731_s0 + $0x2f0] ss:$12 sps:$4 sm:$0xff]   ;;  %s3146_s0 = smov 64  }
  0x7a   :  { %969 = vmatprep.mubr.bf16.mxu0 %v3062_v51  ;;  %2895 = vmatprep.mubr.msk.bf16.mxu1 %vm776_vm0, %v3064_v52 }
  0x81   :  { %970 = vmatmul.mubr.bf16.gmra.mrb[32].mxu0 %v3065_v53  ;;  %2896 = vmatmul.mubr.msk.bf16.vlgmr.msra.gmra.mrb[32].mxu1 %vm776_vm0, %v3066_v54 }
  0x82   :  { %977 = vmatprep.mubr.bf16.mxu0 %v3067_v55  ;;  %2899 = vmatprep.mubr.msk.bf16.mxu1 %vm776_vm0, %v3069_v56 }
  0x89   :  { %978 = vmatmul.mubr.bf16.gmra.mrb[36].mxu0 %v3070_v57  ;;  %2900 = vmatmul.mubr.msk.bf16.gmra.mrb[36].mxu1 %vm776_vm0, %v3071_v58 }
  0x8a   :  { %985 = vmatprep.mubr.bf16.mxu0 %v3072_v59  ;;  %2903 = vmatprep.mubr.msk.bf16.mxu1 %vm776_vm0, %v3074_v60 }
  0x91   :  { %986 = vmatmul.mubr.bf16.gmra.mrb[40].mxu0 %v3075_v61  ;;  %2904 = vmatmul.mubr.msk.bf16.gmra.mrb[40].mxu1 %vm776_vm0, %v3076_v62 }
  0x92   :  { %993 = vmatprep.mubr.bf16.mxu0 %v3077_v63  ;;  %2907 = vmatprep.mubr.msk.bf16.mxu1 %vm776_vm0, %v3079_v0 }
  0x99   :  { %994 = vmatmul.mubr.bf16.gmra.mrb[44].mxu0 %v3080_v1  ;;  %2908 = vmatmul.mubr.msk.bf16.gmra.mrb[44].mxu1 %vm776_vm0, %v3081_v2 }
  0x9a   :  { %1001 = vmatprep.mubr.bf16.mxu0 %v3082_v3  ;;  %2911 = vmatprep.mubr.msk.bf16.mxu1 %vm776_vm0, %v3084_v4 }
  0xa1   :  { %1002 = vmatmul.mubr.bf16.gmra.mrb[48].mxu0 %v3085_v5  ;;  %2912 = vmatmul.mubr.msk.bf16.gmra.mrb[48].mxu1 %vm776_vm0, %v3086_v6 }
  0xa2   :  { %1009 = vmatprep.mubr.bf16.mxu0 %v3087_v7  ;;  %2915 = vmatprep.mubr.msk.bf16.mxu1 %vm776_vm0, %v3089_v8 }
  0xa9   :  { %1010 = vmatmul.mubr.bf16.gmra.mrb[52].mxu0 %v3090_v9  ;;  %2916 = vmatmul.mubr.msk.bf16.gmra.mrb[52].mxu1 %vm776_vm0, %v3091_v10 }
  0xaa   :  { %1017 = vmatprep.mubr.bf16.mxu0 %v3092_v11  ;;  %2919 = vmatprep.mubr.msk.bf16.mxu1 %vm776_vm0, %v3094_v12 }
  0xb1   :  { %1018 = vmatmul.mubr.bf16.gmra.mrb[56].mxu0 %v3095_v13  ;;  %2920 = vmatmul.mubr.msk.bf16.gmra.mrb[56].mxu1 %vm776_vm0, %v3096_v14 }
  0xb2   :  { %1025 = vmatprep.mubr.bf16.mxu0 %v3097_v15  ;;  %2923 = vmatprep.mubr.msk.bf16.mxu1 %vm776_vm0, %v3099_v16 }
  0xb9   :  { %1026 = vmatmul.mubr.bf16.gmra.mrb[60].mxu0 %v3100_v17  ;;  %2924 = vmatmul.mubr.msk.bf16.gmra.mrb[60].mxu1 %vm776_vm0, %v3101_v18 }
  0xba   :  { %1033 = vmatprep.mubr.bf16.mxu0 %v3102_v19  ;;  %2927 = vmatprep.mubr.msk.bf16.mxu1 %vm776_vm0, %v3104_v20 }
  0xc1   :  { %1034 = vmatmul.mubr.bf16.gmra.mrb[64].mxu0 %v3105_v21  ;;  %2928 = vmatmul.mubr.msk.bf16.gmra.mrb[64].mxu1 %vm776_vm0, %v3106_v22 }
  0xc2   :  { %1041 = vmatprep.mubr.bf16.mxu0 %v3107_v23  ;;  %2931 = vmatprep.mubr.msk.bf16.mxu1 %vm776_vm0, %v3109_v24 }
  0xc9   :  { %1042 = vmatmul.mubr.bf16.gmra.mrb[68].mxu0 %v3110_v25  ;;  %2932 = vmatmul.mubr.msk.bf16.gmra.mrb[68].mxu1 %vm776_vm0, %v3111_v26 }
  0xca   :  { %1049 = vmatprep.mubr.bf16.mxu0 %v3112_v27  ;;  %2935 = vmatprep.mubr.msk.bf16.mxu1 %vm776_vm0, %v3114_v28 }
  0xd1   :  { %1050 = vmatmul.mubr.bf16.gmra.mrb[72].mxu0 %v3115_v29  ;;  %2936 = vmatmul.mubr.msk.bf16.gmra.mrb[72].mxu1 %vm776_vm0, %v3116_v30 }
  0xd2   :  { %1057 = vmatprep.mubr.bf16.mxu0 %v3117_v31  ;;  %2939 = vmatprep.mubr.msk.bf16.mxu1 %vm776_vm0, %v3119_v32 }
  0xd9   :  { %1058 = vmatmul.mubr.bf16.gmra.mrb[76].mxu0 %v3120_v33  ;;  %2940 = vmatmul.mubr.msk.bf16.gmra.mrb[76].mxu1 %vm776_vm0, %v3121_v34 }
  0xda   :  { %1065 = vmatprep.mubr.bf16.mxu0 %v3122_v35  ;;  %2943 = vmatprep.mubr.msk.bf16.mxu1 %vm776_vm0, %v3124_v36 }
  0xe1   :  { %1066 = vmatmul.mubr.bf16.gmra.mrb[80].mxu0 %v3125_v37  ;;  %2944 = vmatmul.mubr.msk.bf16.gmra.mrb[80].mxu1 %vm776_vm0, %v3126_v38 }
  0xe2   :  { %1073 = vmatprep.mubr.bf16.mxu0 %v3127_v39  ;;  %2947 = vmatprep.mubr.msk.bf16.mxu1 %vm776_vm0, %v3129_v40 }
  0xe9   :  { %1074 = vmatmul.mubr.bf16.gmra.mrb[84].mxu0 %v3130_v41  ;;  %2948 = vmatmul.mubr.msk.bf16.gmra.mrb[84].mxu1 %vm776_vm0, %v3131_v42 }
  0xea   :  { %1081 = vmatprep.mubr.bf16.mxu0 %v3132_v43  ;;  %2951 = vmatprep.mubr.msk.bf16.mxu1 %vm776_vm0, %v3134_v44 }
  0xf1   :  { %1082 = vmatmul.mubr.bf16.gmra.mrb[88].mxu0 %v3135_v45  ;;  %2952 = vmatmul.mubr.msk.bf16.gmra.mrb[88].mxu1 %vm776_vm0, %v3136_v46 }
  0xf2   :  { %1089 = vmatprep.mubr.bf16.mxu0 %v3137_v47  ;;  %2955 = vmatprep.mubr.msk.bf16.mxu1 %vm776_vm0, %v3139_v48 }
  0xf9   :  { %1090 = vmatmul.mubr.bf16.gmra.mrb[92].mxu0 %v3140_v49  ;;  %2956 = vmatmul.mubr.msk.bf16.gmra.mrb[92].mxu1 %vm776_vm0, %v3141_v50 }
 0x114   :  { %v3580_v51 = vpop.f32.mrb[0].mxu0  ;;  %v3582_v52 = vpop.f32.mrb[0].mxu1 }
 0x115   :  { %v909_v53 = vpop.f32.mrb[1].mxu0  ;;  %v1101_v54 = vpop.f32.mrb[1].mxu1 }
 0x116   :  { %v3584_v55 = vpop.f32.mrb[2].mxu0  ;;  %v3586_v56 = vpop.f32.mrb[2].mxu1 }
 0x117   :  { %v912_v57 = vpop.f32.mrb[3].mxu0  ;;  %v1104_v58 = vpop.f32.mrb[3].mxu1 }
 0x11c   :  { %v915_v59 = vpop.f32.mrb[4].mxu0  ;;  %v3588_v60 = vpop.f32.mrb[4].mxu1 }
 0x11d   :  { %v917_v61 = vpop.f32.mrb[5].mxu0  ;;  %v1109_v62 = vpop.f32.mrb[5].mxu1 }
 0x11e   :  { %v918_v63 = vpop.f32.mrb[6].mxu0  ;;  %v3590_v0 = vpop.f32.mrb[6].mxu1 }
 0x11f   :  { %v920_v1 = vpop.f32.mrb[7].mxu0  ;;  %v1112_v2 = vpop.f32.mrb[7].mxu1 }
 0x124   :  { %v3592_v3 = vpop.f32.mrb[8].mxu0  ;;  %v3594_v4 = vpop.f32.mrb[8].mxu1 }
 0x125   :  { %v925_v5 = vpop.f32.mrb[9].mxu0  ;;  %v1117_v6 = vpop.f32.mrb[9].mxu1 }
 0x126   :  { %v3596_v7 = vpop.f32.mrb[10].mxu0  ;;  %v3598_v8 = vpop.f32.mrb[10].mxu1 }
 0x127   :  { %v928_v9 = vpop.f32.mrb[11].mxu0  ;;  %v1120_v10 = vpop.f32.mrb[11].mxu1 }
 0x12c   :  { %v931_v11 = vpop.f32.mrb[12].mxu0  ;;  %v3600_v12 = vpop.f32.mrb[12].mxu1 }
 0x12d   :  { %v933_v13 = vpop.f32.mrb[13].mxu0  ;;  %v1125_v14 = vpop.f32.mrb[13].mxu1 }
 0x12e   :  { %v3602_v15 = vpop.f32.mrb[14].mxu0  ;;  %v3604_v16 = vpop.f32.mrb[14].mxu1 }
 0x12f   :  { %v936_v17 = vpop.f32.mrb[15].mxu0  ;;  %v1128_v18 = vpop.f32.mrb[15].mxu1 }
 0x134   :  { %v3606_v19 = vpop.f32.mrb[16].mxu0  ;;  %v3608_v20 = vpop.f32.mrb[16].mxu1 }
 0x135   :  { %v941_v21 = vpop.f32.mrb[17].mxu0  ;;  %v1133_v22 = vpop.f32.mrb[17].mxu1 }
 0x136   :  { %v3610_v23 = vpop.f32.mrb[18].mxu0  ;;  %v3612_v24 = vpop.f32.mrb[18].mxu1 }
 0x137   :  { %v944_v25 = vpop.f32.mrb[19].mxu0  ;;  %v1136_v26 = vpop.f32.mrb[19].mxu1 }
 0x13c   :  { %v3614_v27 = vpop.f32.mrb[20].mxu0  ;;  %v3616_v28 = vpop.f32.mrb[20].mxu1 }
 0x13d   :  { %v949_v29 = vpop.f32.mrb[21].mxu0  ;;  %v1141_v30 = vpop.f32.mrb[21].mxu1 }
 0x13e   :  { %v3618_v31 = vpop.f32.mrb[22].mxu0  ;;  %v3620_v32 = vpop.f32.mrb[22].mxu1 }
 0x13f   :  { %v952_v33 = vpop.f32.mrb[23].mxu0  ;;  %v1144_v34 = vpop.f32.mrb[23].mxu1 }
 0x144   :  { %v3622_v35 = vpop.f32.mrb[24].mxu0  ;;  %v3624_v36 = vpop.f32.mrb[24].mxu1 }
 0x145   :  { %v957_v37 = vpop.f32.mrb[25].mxu0  ;;  %v1149_v38 = vpop.f32.mrb[25].mxu1 }
 0x146   :  { %v3626_v39 = vpop.f32.mrb[26].mxu0  ;;  %v3628_v40 = vpop.f32.mrb[26].mxu1 }
 0x147   :  { %v960_v41 = vpop.f32.mrb[27].mxu0  ;;  %v1152_v42 = vpop.f32.mrb[27].mxu1 }
 0x14c   :  { %v3630_v43 = vpop.f32.mrb[28].mxu0  ;;  %v3632_v44 = vpop.f32.mrb[28].mxu1 }
 0x14d   :  { %v965_v45 = vpop.f32.mrb[29].mxu0  ;;  %v1157_v46 = vpop.f32.mrb[29].mxu1 }
 0x14e   :  { %v3634_v47 = vpop.f32.mrb[30].mxu0  ;;  %v3636_v48 = vpop.f32.mrb[30].mxu1 }
 0x14f   :  { %v968_v49 = vpop.f32.mrb[31].mxu0  ;;  %v1160_v50 = vpop.f32.mrb[31].mxu1 }
 0x150   :  { %v3145_v50 = vmov 0.0  }
 0x151   :  { %22 = vst [vmem:[#allocation3] sm:$0x1] %v3145_v50  ;;  %23 = vst [vmem:[#allocation4] sm:$0x1] %v3145_v50 }
 0x154   :  { %v3638_v53 = vpop.f32.mrb[32].mxu0  ;;  %v2897_v54 = vpop.f32.mrb[32].mxu1 }
 0x155   :  { %v3640_v57 = vadd.f32 %v2897_v54, %v915_v59  ;;  %v973_v58 = vpop.f32.mrb[33].mxu0  ;;  %v1196_v61 = vpop.f32.mrb[33].mxu1 }
 0x156   :  { %v3643_v62 = vadd.f32 %v1196_v61, %v3580_v51  ;;  %v3645_v1 = vpop.f32.mrb[34].mxu0  ;;  %v2898_v2 = vpop.f32.mrb[34].mxu1 }
 0x157   :  { %v3647_v5 = vadd.f32 %v2898_v2, %v918_v63  ;;  %v976_v6 = vpop.f32.mrb[35].mxu0  ;;  %v1199_v9 = vpop.f32.mrb[35].mxu1  ;;  %v1592_v14 = vmul.f32 %v3640_v57, %v3640_v57 }
 0x158   :  { %v3650_v10 = vadd.f32 %v1199_v9, %v3584_v55  ;;  %v1590_v13 = vmul.f32 %v3643_v62, %v3643_v62 }
 0x159   :  { %v1593_v26 = vmul.f32 %v3647_v5, %v3647_v5 }
 0x15a   :  { %v1518_v59 = vadd.f32 %v3650_v10, %v3643_v62  ;;  %v1591_v51 = vmul.f32 %v3650_v10, %v3650_v10 }
 0x15c   :  { %v1519_v63 = vadd.f32 %v1518_v59, %v3640_v57  ;;  %v1654_v17 = vadd.f32 %v1591_v51, %v1590_v13  ;;  %v3661_v18 = vpop.f32.mrb[36].mxu0  ;;  %v2901_v21 = vpop.f32.mrb[36].mxu1 }
 0x15d   :  { %v3663_v55 = vadd.f32 %v2901_v21, %v931_v11  ;;  %v981_v22 = vpop.f32.mrb[37].mxu0  ;;  %v1212_v25 = vpop.f32.mrb[37].mxu1 }
 0x15e   :  { %v1520_v29 = vadd.f32 %v1519_v63, %v3647_v5  ;;  %v1655_v30 = vadd.f32 %v1654_v17, %v1592_v14  ;;  %v3669_v33 = vadd.f32 %v1212_v25, %v3592_v3  ;;  %v3671_v34 = vpop.f32.mrb[38].mxu0  ;;  %v2902_v37 = vpop.f32.mrb[38].mxu1 }
 0x15f   :  { %v3674_v38 = vadd.f32 %v2902_v37, %v3602_v15  ;;  %v984_v41 = vpop.f32.mrb[39].mxu0  ;;  %v1215_v11 = vpop.f32.mrb[39].mxu1  ;;  %v1596_v58 = vmul.f32 %v3663_v55, %v3663_v55 }
 0x160   :  { %v1656_v42 = vadd.f32 %v1655_v30, %v1593_v26  ;;  %v1521_v45 = vadd.f32 %v1520_v29, %v3669_v33  ;;  %v1594_v46 = vmul.f32 %v3669_v33, %v3669_v33  ;;  %v3680_v49 = vadd.f32 %v1215_v11, %v3596_v7 }
 0x161   :  { %v1597_v51 = vmul.f32 %v3674_v38, %v3674_v38 }
 0x162   :  { %v1657_v3 = vadd.f32 %v1656_v42, %v1594_v46  ;;  %v1522_v54 = vadd.f32 %v1521_v45, %v3680_v49  ;;  %v1595_v15 = vmul.f32 %v3680_v49, %v3680_v49 }
 0x164   :  { %v1523_v61 = vadd.f32 %v1522_v54, %v3663_v55  ;;  %v1658_v2 = vadd.f32 %v1657_v3, %v1595_v15  ;;  %v3688_v6 = vpop.f32.mrb[40].mxu0  ;;  %v2905_v9 = vpop.f32.mrb[40].mxu1 }
 0x165   :  { %v3691_v7 = vadd.f32 %v2905_v9, %v3614_v27  ;;  %v989_v13 = vpop.f32.mrb[41].mxu0  ;;  %v1228_v59 = vpop.f32.mrb[41].mxu1 }
 0x166   :  { %v1659_v14 = vadd.f32 %v1658_v2, %v1596_v58  ;;  %v3696_v63 = vadd.f32 %v1228_v59, %v3606_v19  ;;  %v1524_v17 = vadd.f32 %v1523_v61, %v3674_v38  ;;  %v3699_v21 = vpop.f32.mrb[42].mxu0  ;;  %v2906_v22 = vpop.f32.mrb[42].mxu1 }
 0x167   :  { %v3702_v25 = vadd.f32 %v2906_v22, %v3618_v31  ;;  %v992_v26 = vpop.f32.mrb[43].mxu0  ;;  %v1231_v27 = vpop.f32.mrb[43].mxu1  ;;  %v1600_v31 = vmul.f32 %v3691_v7, %v3691_v7 }
 0x168   :  { %v1525_v29 = vadd.f32 %v1524_v17, %v3696_v63  ;;  %v1598_v30 = vmul.f32 %v3696_v63, %v3696_v63  ;;  %v1660_v37 = vadd.f32 %v1659_v14, %v1597_v51  ;;  %v3708_v41 = vadd.f32 %v1231_v27, %v3610_v23 }
 0x169   :  { %v1601_v58 = vmul.f32 %v3702_v25, %v3702_v25 }
 0x16a   :  { %v1661_v19 = vadd.f32 %v1660_v37, %v1598_v30  ;;  %v1526_v11 = vadd.f32 %v1525_v29, %v3708_v41  ;;  %v1599_v42 = vmul.f32 %v3708_v41, %v3708_v41 }
 0x16c   :  { %v1527_v45 = vadd.f32 %v1526_v11, %v3691_v7  ;;  %v1662_v46 = vadd.f32 %v1661_v19, %v1599_v42  ;;  %v995_v50 = vpop.f32.mrb[44].mxu0  ;;  %v2909_v3 = vpop.f32.mrb[44].mxu1 }
 0x16d   :  { %v3717_v54 = vadd.f32 %v2909_v3, %v3630_v43  ;;  %v997_v15 = vpop.f32.mrb[45].mxu0  ;;  %v1244_v23 = vpop.f32.mrb[45].mxu1 }
 0x16e   :  { %v1663_v61 = vadd.f32 %v1662_v46, %v1600_v31  ;;  %v3722_v2 = vadd.f32 %v1244_v23, %v3622_v35  ;;  %v1528_v9 = vadd.f32 %v1527_v45, %v3702_v25  ;;  %v998_v13 = vpop.f32.mrb[46].mxu0  ;;  %v2910_v59 = vpop.f32.mrb[46].mxu1 }
 0x16f   :  { %v3726_v51 = vadd.f32 %v2910_v59, %v3634_v47  ;;  %v1000_v14 = vpop.f32.mrb[47].mxu0  ;;  %v1247_v17 = vpop.f32.mrb[47].mxu1  ;;  %v1604_v47 = vmul.f32 %v3717_v54, %v3717_v54 }
 0x170   :  { %v1529_v43 = vadd.f32 %v1528_v9, %v3722_v2  ;;  %v1602_v22 = vmul.f32 %v3722_v2, %v3722_v2  ;;  %v1664_v26 = vadd.f32 %v1663_v61, %v1601_v58  ;;  %v3732_v27 = vadd.f32 %v1247_v17, %v3626_v39 }
 0x171   :  { %v1605_v46 = vmul.f32 %v3726_v51, %v3726_v51 }
 0x172   :  { %v1665_v35 = vadd.f32 %v1664_v26, %v1602_v22  ;;  %v1530_v29 = vadd.f32 %v1529_v43, %v3732_v27  ;;  %v1603_v30 = vmul.f32 %v3732_v27, %v3732_v27 }
 0x174   :  { %v1531_v37 = vadd.f32 %v1530_v29, %v3717_v54  ;;  %v1666_v19 = vadd.f32 %v1665_v35, %v1603_v30  ;;  %v1003_v11 = vpop.f32.mrb[48].mxu0  ;;  %v2913_v42 = vpop.f32.mrb[48].mxu1 }
 0x175   :  { %v3741_v31 = vadd.f32 %v2913_v42, %v3661_v18  ;;  %v1005_v45 = vpop.f32.mrb[49].mxu0  ;;  %v1260_v39 = vpop.f32.mrb[49].mxu1 }
 0x176   :  { %v1667_v3 = vadd.f32 %v1666_v19, %v1604_v47  ;;  %v3746_v15 = vadd.f32 %v1260_v39, %v3638_v53  ;;  %v1532_v23 = vadd.f32 %v1531_v37, %v3726_v51  ;;  %v1006_v58 = vpop.f32.mrb[50].mxu0  ;;  %v2914_v61 = vpop.f32.mrb[50].mxu1 }
 0x177   :  { %v3750_v9 = vadd.f32 %v2914_v61, %v3671_v34  ;;  %v1008_v59 = vpop.f32.mrb[51].mxu0  ;;  %v1263_v14 = vpop.f32.mrb[51].mxu1  ;;  %v1608_v34 = vmul.f32 %v3741_v31, %v3741_v31 }
 0x178   :  { %v1533_v18 = vadd.f32 %v1532_v23, %v3746_v15  ;;  %v1606_v17 = vmul.f32 %v3746_v15, %v3746_v15  ;;  %v1668_v43 = vadd.f32 %v1667_v3, %v1605_v46  ;;  %v3756_v22 = vadd.f32 %v1263_v14, %v3645_v1 }
 0x179   :  { %v1609_v1 = vmul.f32 %v3750_v9, %v3750_v9 }
 0x17a   :  { %v1669_v53 = vadd.f32 %v1668_v43, %v1606_v17  ;;  %v1534_v26 = vadd.f32 %v1533_v18, %v3756_v22  ;;  %v1607_v35 = vmul.f32 %v3756_v22, %v3756_v22 }
 0x17c   :  { %v1535_v29 = vadd.f32 %v1534_v26, %v3741_v31  ;;  %v1670_v30 = vadd.f32 %v1669_v53, %v1607_v35  ;;  %v1011_v47 = vpop.f32.mrb[52].mxu0  ;;  %v2917_v37 = vpop.f32.mrb[52].mxu1 }
 0x17d   :  { %v3764_v19 = vadd.f32 %v2917_v37, %v995_v50  ;;  %v1013_v42 = vpop.f32.mrb[53].mxu0  ;;  %v1276_v45 = vpop.f32.mrb[53].mxu1 }
 0x17e   :  { %v1671_v39 = vadd.f32 %v1670_v30, %v1608_v34  ;;  %v3769_v46 = vadd.f32 %v1276_v45, %v3688_v6  ;;  %v1536_v3 = vadd.f32 %v1535_v29, %v3750_v9  ;;  %v1014_v23 = vpop.f32.mrb[54].mxu0  ;;  %v2918_v61 = vpop.f32.mrb[54].mxu1 }
 0x17f   :  { %4763 = vst [vmem:[#allocation5_spill] sm:$0xff] %v3764_v19  ;;  %v3772_v59 = vadd.f32 %v2918_v61, %v998_v13  ;;  %v1016_v14 = vpop.f32.mrb[55].mxu0  ;;  %v1279_v18 = vpop.f32.mrb[55].mxu1  ;;  %v1612_v13 = vmul.f32 %v3764_v19, %v3764_v19 }
 0x180   :  { %4764 = vst [vmem:[#allocation6_spill] sm:$0xff] %v3769_v46  ;;  %v1537_v50 = vadd.f32 %v1536_v3, %v3769_v46  ;;  %v1610_v17 = vmul.f32 %v3769_v46, %v3769_v46  ;;  %v1672_v43 = vadd.f32 %v1671_v39, %v1609_v1  ;;  %v3778_v53 = vadd.f32 %v1279_v18, %v3699_v21 }
 0x181   :  { %4765 = vst [vmem:[#allocation7_spill] sm:$0xff] %v3772_v59  ;;  %v1613_v21 = vmul.f32 %v3772_v59, %v3772_v59 }
 0x182   :  { %4766 = vst [vmem:[#allocation8_spill] sm:$0xff] %v3778_v53  ;;  %v1673_v26 = vadd.f32 %v1672_v43, %v1610_v17  ;;  %v1538_v6 = vadd.f32 %v1537_v50, %v3778_v53  ;;  %v1611_v35 = vmul.f32 %v3778_v53, %v3778_v53 }
 0x184   :  { %v1539_v34 = vadd.f32 %v1538_v6, %v3764_v19  ;;  %v1674_v29 = vadd.f32 %v1673_v26, %v1611_v35  ;;  %v1019_v30 = vpop.f32.mrb[56].mxu0  ;;  %v2921_v37 = vpop.f32.mrb[56].mxu1 }
 0x185   :  { %v3786_v42 = vadd.f32 %v2921_v37, %v1011_v47  ;;  %v1021_v45 = vpop.f32.mrb[57].mxu0  ;;  %v1292_v1 = vpop.f32.mrb[57].mxu1 }
 0x186   :  { %v1675_v39 = vadd.f32 %v1674_v29, %v1612_v13  ;;  %v3790_v3 = vadd.f32 %v1292_v1, %v1003_v11  ;;  %v1540_v61 = vadd.f32 %v1539_v34, %v3772_v59  ;;  %v1022_v14 = vpop.f32.mrb[58].mxu0  ;;  %v2922_v18 = vpop.f32.mrb[58].mxu1 }
 0x187   :  { %4767 = vst [vmem:[#allocation9_spill] sm:$0xff] %v3786_v42  ;;  %v3793_v50 = vadd.f32 %v2922_v18, %v1014_v23  ;;  %v1024_v17 = vpop.f32.mrb[59].mxu0  ;;  %v1295_v43 = vpop.f32.mrb[59].mxu1  ;;  %v1616_v45 = vmul.f32 %v3786_v42, %v3786_v42 }
 0x188   :  { %4768 = vst [vmem:[#allocation10_spill] sm:$0xff] %v3790_v3  ;;  %v1541_v26 = vadd.f32 %v1540_v61, %v3790_v3  ;;  %v1614_v47 = vmul.f32 %v3790_v3, %v3790_v3  ;;  %v1676_v6 = vadd.f32 %v1675_v39, %v1613_v21  ;;  %v3798_v35 = vadd.f32 %v1295_v43, %v1006_v58 }
 0x189   :  { %4769 = vst [vmem:[#allocation11_spill] sm:$0xff] %v3793_v50 }
 0x18a   :  { %4770 = vst [vmem:[#allocation12_spill] sm:$0xff] %v3798_v35  ;;  %v1677_v37 = vadd.f32 %v1676_v6, %v1614_v47  ;;  %v1542_v11 = vadd.f32 %v1541_v26, %v3798_v35  ;;  %v1615_v13 = vmul.f32 %v3798_v35, %v3798_v35 }
 0x18c   :  { %v1678_v34 = vadd.f32 %v1677_v37, %v1615_v13  ;;  %v1027_v29 = vpop.f32.mrb[60].mxu0  ;;  %v2925_v23 = vpop.f32.mrb[60].mxu1  ;;  %v1543_v1 = vadd.f32 %v1542_v11, %v3786_v42  ;;  %v1617_v13 = vmul.f32 %v3793_v50, %v3793_v50 }
 0x18d   :  { %v3806_v61 = vadd.f32 %v2925_v23, %v1027_v29  ;;  %v1029_v18 = vpop.f32.mrb[61].mxu0  ;;  %v1308_v21 = vpop.f32.mrb[61].mxu1 }
 0x18e   :  { %v3808_v58 = vadd.f32 %v1308_v21, %v1019_v30  ;;  %v1030_v39 = vpop.f32.mrb[62].mxu0  ;;  %v2926_v17 = vpop.f32.mrb[62].mxu1  ;;  %v1679_v43 = vadd.f32 %v1678_v34, %v1616_v45  ;;  %v1544_v11 = vadd.f32 %v1543_v1, %v3793_v50 }
 0x18f   :  { %4771 = vst [vmem:[#allocation13_spill] sm:$0xff] %v3806_v61  ;;  %v3810_v26 = vadd.f32 %v2926_v17, %v1030_v39  ;;  %v1032_v47 = vpop.f32.mrb[63].mxu0  ;;  %v1311_v6 = vpop.f32.mrb[63].mxu1 }
 0x190   :  { %4772 = vst [vmem:[#allocation14_spill] sm:$0xff] %v3808_v58  ;;  %v3812_v37 = vadd.f32 %v1311_v6, %v1022_v14  ;;  %v1618_v29 = vmul.f32 %v3808_v58, %v3808_v58  ;;  %v1680_v23 = vadd.f32 %v1679_v43, %v1617_v13  ;;  %v1545_v21 = vadd.f32 %v1544_v11, %v3808_v58 }
 0x191   :  { %4773 = vst [vmem:[#allocation15_spill] sm:$0xff] %v3810_v26  ;;  %v1620_v11 = vmul.f32 %v3806_v61, %v3806_v61 }
 0x192   :  { %4774 = vst [vmem:[#allocation16_spill] sm:$0xff] %v3812_v37  ;;  %v1681_v47 = vadd.f32 %v1680_v23, %v1618_v29  ;;  %v1619_v6 = vmul.f32 %v3812_v37, %v3812_v37  ;;  %v1546_v43 = vadd.f32 %v1545_v21, %v3812_v37  ;;  %v1621_v21 = vmul.f32 %v3810_v26, %v3810_v26 }
 0x194   :  { %v1035_v30 = vpop.f32.mrb[64].mxu0  ;;  %v2929_v18 = vpop.f32.mrb[64].mxu1  ;;  %v1682_v13 = vadd.f32 %v1681_v47, %v1619_v6 }
 0x195   :  { %v1037_v34 = vpop.f32.mrb[65].mxu0  ;;  %v1324_v45 = vpop.f32.mrb[65].mxu1 }
 0x196   :  { %v3820_v39 = vadd.f32 %v1324_v45, %v1035_v30  ;;  %v1038_v17 = vpop.f32.mrb[66].mxu0  ;;  %v2930_v14 = vpop.f32.mrb[66].mxu1  ;;  %v1547_v30 = vadd.f32 %v1546_v43, %v3806_v61 }
 0x197   :  { %v1040_v42 = vpop.f32.mrb[67].mxu0  ;;  %v1327_v1 = vpop.f32.mrb[67].mxu1 }
 0x198   :  { %4775 = vst [vmem:[#allocation17_spill] sm:$0xff] %v3820_v39  ;;  %v3824_v50 = vadd.f32 %v1327_v1, %v1038_v17  ;;  %v1683_v42 = vadd.f32 %v1682_v13, %v1620_v11  ;;  %v1548_v47 = vadd.f32 %v1547_v30, %v3810_v26  ;;  %v1622_v6 = vmul.f32 %v3820_v39, %v3820_v39 }
 0x19a   :  { %4776 = vst [vmem:[#allocation18_spill] sm:$0xff] %v3824_v50  ;;  %v1684_v43 = vadd.f32 %v1683_v42, %v1621_v21  ;;  %v1623_v37 = vmul.f32 %v3824_v50, %v3824_v50 }
 0x19c   :  { %v1043_v35 = vpop.f32.mrb[68].mxu0  ;;  %v2933_v3 = vpop.f32.mrb[68].mxu1 }
 0x19d   :  { %v3830_v34 = vadd.f32 %v2929_v18, %v1043_v35  ;;  %v1045_v29 = vpop.f32.mrb[69].mxu0  ;;  %v1340_v23 = vpop.f32.mrb[69].mxu1 }
 0x19e   :  { %v1046_v45 = vpop.f32.mrb[70].mxu0  ;;  %v2934_v58 = vpop.f32.mrb[70].mxu1  ;;  %v1549_v29 = vadd.f32 %v1548_v47, %v3820_v39 }
 0x19f   :  { %4777 = vst [vmem:[#allocation19_spill] sm:$0xff] %v3830_v34  ;;  %v3832_v59 = vadd.f32 %v2930_v14, %v1046_v45  ;;  %v1048_v17 = vpop.f32.mrb[71].mxu0  ;;  %v1343_v1 = vpop.f32.mrb[71].mxu1  ;;  %v1624_v21 = vmul.f32 %v3830_v34, %v3830_v34 }
 0x1a0   :  { %v1685_v17 = vadd.f32 %v1684_v43, %v1622_v6  ;;  %v1550_v42 = vadd.f32 %v1549_v29, %v3824_v50 }
 0x1a1   :  { %4778 = vst [vmem:[#allocation20_spill] sm:$0xff] %v3832_v59  ;;  %v1625_v6 = vmul.f32 %v3832_v59, %v3832_v59 }
 0x1a2   :  { %v1551_v47 = vadd.f32 %v1550_v42, %v3830_v34 }
 0x1a4   :  { %v1051_v35 = vpop.f32.mrb[72].mxu0  ;;  %v2937_v18 = vpop.f32.mrb[72].mxu1  ;;  %v1552_v29 = vadd.f32 %v1551_v47, %v3832_v59 }
 0x1a5   :  { %v3840_v61 = vadd.f32 %v1340_v23, %v1051_v35  ;;  %v1053_v13 = vpop.f32.mrb[73].mxu0  ;;  %v1356_v14 = vpop.f32.mrb[73].mxu1  ;;  %v1686_v23 = vadd.f32 %v1685_v17, %v1623_v37 }
 0x1a6   :  { %v1054_v11 = vpop.f32.mrb[74].mxu0  ;;  %v3842_v45 = vpop.f32.mrb[74].mxu1 }
 0x1a7   :  { %4779 = vst [vmem:[#allocation21_spill] sm:$0xff] %v3840_v61  ;;  %v3846_v30 = vadd.f32 %v1343_v1, %v1054_v11  ;;  %v1056_v26 = vpop.f32.mrb[75].mxu0  ;;  %v1359_v19 = vpop.f32.mrb[75].mxu1  ;;  %v1687_v39 = vadd.f32 %v1686_v23, %v1624_v21  ;;  %v1626_v37 = vmul.f32 %v3840_v61, %v3840_v61  ;;  %v1553_v23 = vadd.f32 %v1552_v29, %v3840_v61 }
 0x1a9   :  { %4780 = vst [vmem:[#allocation22_spill] sm:$0xff] %v3846_v30  ;;  %v1688_v21 = vadd.f32 %v1687_v39, %v1625_v6  ;;  %v1554_v46 = vadd.f32 %v1553_v23, %v3846_v30 }
 0x1ab   :  { %v1689_v50 = vadd.f32 %v1688_v21, %v1626_v37 }
 0x1ac   :  { %v1059_v35 = vpop.f32.mrb[76].mxu0  ;;  %v3852_v13 = vpop.f32.mrb[76].mxu1 }
 0x1ad   :  { %v3856_v43 = vadd.f32 %v2933_v3, %v1059_v35  ;;  %v1061_v1 = vpop.f32.mrb[77].mxu0  ;;  %v1372_v26 = vpop.f32.mrb[77].mxu1  ;;  %v1627_v3 = vmul.f32 %v3846_v30, %v3846_v30 }
 0x1ae   :  { %v1062_v11 = vpop.f32.mrb[78].mxu0  ;;  %v3858_v53 = vpop.f32.mrb[78].mxu1 }
 0x1af   :  { %v3863_v17 = vadd.f32 %v2934_v58, %v1062_v11  ;;  %v1064_v42 = vpop.f32.mrb[79].mxu0  ;;  %v1375_v34 = vpop.f32.mrb[79].mxu1  ;;  %v1628_v47 = vmul.f32 %v3856_v43, %v3856_v43  ;;  %v1555_v21 = vadd.f32 %v1554_v46, %v3856_v43 }
 0x1b0   :  { %v1690_v42 = vadd.f32 %v1689_v50, %v1627_v3 }
 0x1b4   :  { %v1067_v35 = vpop.f32.mrb[80].mxu0  ;;  %v2945_v1 = vpop.f32.mrb[80].mxu1 }
 0x1b5   :  { %v3871_v59 = vadd.f32 %v1356_v14, %v1067_v35  ;;  %v3874_v58 = vadd.f32 %v2945_v1, %v3588_v60  ;;  %v1069_v11 = vpop.f32.mrb[81].mxu0  ;;  %v1388_v39 = vpop.f32.mrb[81].mxu1  ;;  %v1691_v35 = vadd.f32 %v1690_v42, %v1628_v47  ;;  %v1556_v1 = vadd.f32 %v1555_v21, %v3863_v17 }
 0x1b6   :  { %v3877_v6 = vadd.f32 %v1388_v39, %v3582_v52  ;;  %v1070_v29 = vpop.f32.mrb[82].mxu0  ;;  %v2946_v37 = vpop.f32.mrb[82].mxu1  ;;  %v1629_v52 = vmul.f32 %v3863_v17, %v3863_v17 }
 0x1b7   :  { %v3880_v61 = vadd.f32 %v1359_v19, %v1070_v29  ;;  %v1072_v23 = vpop.f32.mrb[83].mxu0  ;;  %v1391_v30 = vpop.f32.mrb[83].mxu1  ;;  %v3883_v14 = vadd.f32 %v2946_v37, %v3590_v0  ;;  %v1630_v50 = vmul.f32 %v3871_v59, %v3871_v59  ;;  %v1557_v11 = vadd.f32 %v1556_v1, %v3871_v59 }
 0x1b8   :  { %v3886_v60 = vadd.f32 %v1391_v30, %v3586_v56  ;;  %v1692_v3 = vadd.f32 %v1691_v35, %v1629_v52 }
 0x1b9   :  { %v1631_v21 = vmul.f32 %v3880_v61, %v3880_v61 }
 0x1ba   :  { %v1693_v42 = vadd.f32 %v1692_v3, %v1630_v50 }
 0x1bc   :  { %v1075_v46 = vpop.f32.mrb[84].mxu0  ;;  %v2949_v19 = vpop.f32.mrb[84].mxu1  ;;  %v1694_v50 = vadd.f32 %v1693_v42, %v1631_v21 }
 0x1bd   :  { %v3894_v39 = vadd.f32 %v2937_v18, %v1075_v46  ;;  %v3897_v0 = vadd.f32 %v2949_v19, %v3600_v12  ;;  %v1077_v56 = vpop.f32.mrb[85].mxu0  ;;  %v1404_v30 = vpop.f32.mrb[85].mxu1 }
 0x1be   :  { %v3900_v47 = vadd.f32 %v1404_v30, %v3594_v4  ;;  %v1078_v29 = vpop.f32.mrb[86].mxu0  ;;  %v2950_v37 = vpop.f32.mrb[86].mxu1  ;;  %v1558_v4 = vadd.f32 %v1557_v11, %v3880_v61 }
 0x1bf   :  { %v3905_v23 = vadd.f32 %v3842_v45, %v1078_v29  ;;  %v1080_v35 = vpop.f32.mrb[87].mxu0  ;;  %v1407_v18 = vpop.f32.mrb[87].mxu1  ;;  %v3908_v52 = vadd.f32 %v2950_v37, %v3604_v16  ;;  %v1632_v1 = vmul.f32 %v3894_v39, %v3894_v39 }
 0x1c0   :  { %v3911_v12 = vadd.f32 %v1407_v18, %v3598_v8  ;;  %v1559_v46 = vadd.f32 %v1558_v4, %v3894_v39 }
 0x1c1   :  { %v1695_v45 = vadd.f32 %v1694_v50, %v1632_v1  ;;  %v1633_v56 = vmul.f32 %v3905_v23, %v3905_v23 }
 0x1c2   :  { %v1560_v21 = vadd.f32 %v1559_v46, %v3905_v23 }
 0x1c3   :  { %v1696_v50 = vadd.f32 %v1695_v45, %v1633_v56 }
 0x1c4   :  { %v1083_v19 = vpop.f32.mrb[88].mxu0  ;;  %v2953_v3 = vpop.f32.mrb[88].mxu1 }
 0x1c5   :  { %v3919_v30 = vadd.f32 %v1372_v26, %v1083_v19  ;;  %v3922_v16 = vadd.f32 %v2953_v3, %v3616_v28  ;;  %v1085_v8 = vpop.f32.mrb[89].mxu0  ;;  %v1420_v29 = vpop.f32.mrb[89].mxu1 }
 0x1c6   :  { %v3925_v11 = vadd.f32 %v1420_v29, %v3608_v20  ;;  %v1086_v37 = vpop.f32.mrb[90].mxu0  ;;  %v2954_v42 = vpop.f32.mrb[90].mxu1 }
 0x1c7   :  { %4781 = vst [vmem:[#allocation23_spill] sm:$0xff] %v3922_v16  ;;  %v1634_v35 = vmul.f32 %v3919_v30, %v3919_v30  ;;  %v3930_v18 = vadd.f32 %v1375_v34, %v1086_v37  ;;  %v1088_v4 = vpop.f32.mrb[91].mxu0  ;;  %v1423_v26 = vpop.f32.mrb[91].mxu1  ;;  %v3933_v1 = vadd.f32 %v2954_v42, %v3620_v32  ;;  %v1561_v20 = vadd.f32 %v1560_v21, %v3919_v30 }
 0x1c8   :  { %v3936_v28 = vadd.f32 %v1423_v26, %v3612_v24 }
 0x1c9   :  { %4782 = vst [vmem:[#allocation24_spill] sm:$0xff] %v3933_v1  ;;  %v1697_v19 = vadd.f32 %v1696_v50, %v1634_v35  ;;  %v1635_v46 = vmul.f32 %v3930_v18, %v3930_v18  ;;  %v1562_v34 = vadd.f32 %v1561_v20, %v3930_v18 }
 0x1cb   :  { %v1698_v21 = vadd.f32 %v1697_v19, %v1635_v46  ;;  %v1638_v46 = vmul.f32 %v3877_v6, %v3877_v6 }
 0x1cc   :  { %v1091_v3 = vpop.f32.mrb[92].mxu0  ;;  %v2957_v8 = vpop.f32.mrb[92].mxu1 }
 0x1cd   :  { %v3943_v29 = vadd.f32 %v3852_v13, %v1091_v3  ;;  %v3946_v32 = vadd.f32 %v2957_v8, %v3632_v44  ;;  %v1093_v37 = vpop.f32.mrb[93].mxu0  ;;  %v1436_v24 = vpop.f32.mrb[93].mxu1 }
 0x1ce   :  { %v3949_v45 = vadd.f32 %v1436_v24, %v3624_v36  ;;  %v1094_v56 = vpop.f32.mrb[94].mxu0  ;;  %v2958_v42 = vpop.f32.mrb[94].mxu1 }
 0x1cf   :  { %4783 = vst [vmem:[#allocation25_spill] sm:$0xff] %v3946_v32  ;;  %v1563_v35 = vadd.f32 %v1562_v34, %v3943_v29  ;;  %v1636_v4 = vmul.f32 %v3943_v29, %v3943_v29  ;;  %v3955_v26 = vadd.f32 %v3858_v53, %v1094_v56  ;;  %v1096_v13 = vpop.f32.mrb[95].mxu0  ;;  %v1439_v50 = vpop.f32.mrb[95].mxu1  ;;  %v3958_v44 = vadd.f32 %v2958_v42, %v3636_v48 }
 0x1d0   :  { %4784 = vst [vmem:[#allocation26_spill] sm:$0xff] %v3949_v45  ;;  %v3961_v20 = vadd.f32 %v1439_v50, %v3628_v40  ;;  %v1639_v34 = vmul.f32 %v3886_v60, %v3886_v60  ;;  %v1640_v40 = vmul.f32 %v3874_v58, %v3874_v58  ;;  %v1641_v42 = vmul.f32 %v3883_v14, %v3883_v14 }
 0x1d1   :  { %v1699_v36 = vadd.f32 %v1698_v21, %v1636_v4  ;;  %v1564_v3 = vadd.f32 %v1563_v35, %v3955_v26  ;;  %v1637_v19 = vmul.f32 %v3955_v26, %v3955_v26  ;;  %v1642_v4 = vmul.f32 %v3900_v47, %v3900_v47 }
 0x1d2   :  { %4785 = vst [vmem:[#allocation27_spill] sm:$0xff] %v3961_v20 }
 0x1d3   :  { %v1565_v53 = vadd.f32 %v1564_v3, %v3877_v6  ;;  %v1700_v8 = vadd.f32 %v1699_v36, %v1637_v19  ;;  %v1643_v36 = vmul.f32 %v3911_v12, %v3911_v12 }
 0x1d5   :  { %v1566_v48 = vadd.f32 %v1565_v53, %v3886_v60  ;;  %v1701_v37 = vadd.f32 %v1700_v8, %v1638_v46  ;;  %v1644_v46 = vmul.f32 %v3897_v0, %v3897_v0 }
 0x1d7   :  { %v1567_v24 = vadd.f32 %v1566_v48, %v3874_v58  ;;  %v1702_v56 = vadd.f32 %v1701_v37, %v1639_v34  ;;  %v1645_v34 = vmul.f32 %v3908_v52, %v3908_v52 }
 0x1d9   :  { %v1568_v21 = vadd.f32 %v1567_v24, %v3883_v14  ;;  %v1703_v35 = vadd.f32 %v1702_v56, %v1640_v40  ;;  %v1646_v40 = vmul.f32 %v3925_v11, %v3925_v11 }
 0x1db   :  { %v1569_v13 = vadd.f32 %v1568_v21, %v3900_v47  ;;  %v1704_v50 = vadd.f32 %v1703_v35, %v1641_v42  ;;  %v1647_v42 = vmul.f32 %v3936_v28, %v3936_v28 }
 0x1dd   :  { %v1570_v3 = vadd.f32 %v1569_v13, %v3911_v12  ;;  %v1705_v19 = vadd.f32 %v1704_v50, %v1642_v4  ;;  %v1648_v4 = vmul.f32 %v3922_v16, %v3922_v16 }
 0x1df   :  { %v1706_v53 = vadd.f32 %v1705_v19, %v1643_v36  ;;  %v1571_v8 = vadd.f32 %v1570_v3, %v3897_v0  ;;  %v1649_v36 = vmul.f32 %v3933_v1, %v3933_v1 }
 0x1e1   :  { %v1572_v48 = vadd.f32 %v1571_v8, %v3908_v52  ;;  %v1707_v37 = vadd.f32 %v1706_v53, %v1644_v46  ;;  %v1650_v46 = vmul.f32 %v3949_v45, %v3949_v45 }
 0x1e3   :  { %v1573_v24 = vadd.f32 %v1572_v48, %v3925_v11  ;;  %v1708_v56 = vadd.f32 %v1707_v37, %v1645_v34  ;;  %v1651_v48 = vmul.f32 %v3961_v20, %v3961_v20 }
 0x1e5   :  { %v1574_v21 = vadd.f32 %v1573_v24, %v3936_v28  ;;  %v1709_v35 = vadd.f32 %v1708_v56, %v1646_v40  ;;  %v1652_v40 = vmul.f32 %v3946_v32, %v3946_v32 }
 0x1e7   :  { %v1575_v13 = vadd.f32 %v1574_v21, %v3922_v16  ;;  %v1710_v50 = vadd.f32 %v1709_v35, %v1647_v42  ;;  %v1653_v42 = vmul.f32 %v3958_v44, %v3958_v44 }
 0x1e9   :  { %v1576_v3 = vadd.f32 %v1575_v13, %v3933_v1  ;;  %v1711_v19 = vadd.f32 %v1710_v50, %v1648_v4 }
 0x1eb   :  { %v1577_v53 = vadd.f32 %v1576_v3, %v3949_v45  ;;  %v1712_v8 = vadd.f32 %v1711_v19, %v1649_v36  ;;  %v1517_v45 = vld [vmem:[#allocation3] sm:$0x1] }
 0x1ed   :  { %v1578_v34 = vadd.f32 %v1577_v53, %v3961_v20  ;;  %v1713_v37 = vadd.f32 %v1712_v8, %v1650_v46 }
 0x1ef   :  { %v1579_v24 = vadd.f32 %v1578_v34, %v3946_v32  ;;  %v1714_v56 = vadd.f32 %v1713_v37, %v1651_v48  ;;  %v1589_v48 = vld [vmem:[#allocation4] sm:$0x1] }
 0x1f1   :  { %v1580_v21 = vadd.f32 %v1579_v24, %v3958_v44  ;;  %v1715_v35 = vadd.f32 %v1714_v56, %v1652_v40 }
 0x1f3   :  { %v1581_v4 = vrot.slane %v1580_v21, 4  ;;  %v1716_v13 = vadd.f32 %v1715_v35, %v1653_v42 }
 0x1f5   :  { %v1582_v50 = vadd.f32 %v1581_v4, %v1580_v21  ;;  %v1717_v36 = vrot.slane %v1716_v13, 4 }
 0x1f7   :  { %v1583_v3 = vrot.slane %v1582_v50, 2  ;;  %v1718_v19 = vadd.f32 %v1717_v36, %v1716_v13 }
 0x1f9   :  { %v1584_v53 = vadd.f32 %v1583_v3, %v1582_v50  ;;  %v1719_v46 = vrot.slane %v1718_v19, 2 }
 0x1fb   :  { %v1585_v8 = vrot.slane %v1584_v53, 1  ;;  %v1720_v20 = vadd.f32 %v1719_v46, %v1718_v19 }
 0x1fd   :  { %v1586_v1 = vadd.f32 %v1585_v8, %v1584_v53  ;;  %v1721_v34 = vrot.slane %v1720_v20, 1 }
 0x1ff   :  { %v1587_v37 = vadd.f32 %v1586_v1, %v1517_v45  ;;  %v1722_v32 = vadd.f32 %v1721_v34, %v1720_v20  ;;  %v1769_v34 = vlaneseq }
 0x201   :  { %1588 = vst [vmem:[#allocation3] sm:$0x1] %v1587_v37  ;;  %v1723_v16 = vadd.f32 %v1722_v32, %v1589_v48  ;;  %v1770_v48 = vshrl.u32 %v1769_v34, 7  ;;  %v1761_v37 = vld [vmem:[%s4732_s2] sm:$0x1] }
 0x203   :  { %1724 = vst [vmem:[#allocation4] sm:$0x1] %v1723_v16 }
 0x208   :  { %v1728_v40 = vld [vmem:[#allocation3] sm:$0x1] }
 0x209   :  { %1740 = vrot.lane.b32.xlu1 %v1728_v40, %s3146_s0  ;;  %1731 = vrot.lane.b32.xlu0 %v1728_v40, %s3147_s28 }
 0x20a   :  { %v1729_v24 = vld [vmem:[#allocation4] sm:$0x1] }
 0x20d   :  { %1744 = vrot.lane.b32.xlu1 %v1729_v24, %s3146_s0  ;;  %1736 = vrot.lane.b32.xlu0 %v1729_v24, %s3147_s28 }
 0x211   :  { %1752 = vrot.lane.b32.xlu1 %v1729_v24, %s3148_s29  ;;  %1748 = vrot.lane.b32.xlu0 %v1728_v40, %s3148_s29 }
 0x27b   :  { %v1741_v1 = vpop.permute.xlu1 %1740  ;;  %v1732_v32 = vpop.permute.xlu0 %1731 }
 0x27c   :  { %v1734_v16 = vadd.f32 %v1732_v32, %v1728_v40  ;;  %v4023_v40 = vsub.s32 0, %v1770_v48  ;;  %v1765_v32 = vld [vmem:[%s4733_s3] sm:$0x1] }
 0x27e   :  { %v1743_v21 = vadd.f32 %v1741_v1, %v1734_v16 }
 0x27f   :  { %v1745_v45 = vpop.permute.xlu1 %1744  ;;  %v1737_v20 = vpop.permute.xlu0 %1736 }
 0x280   :  { %v1739_v56 = vadd.f32 %v1737_v20, %v1729_v24 }
 0x282   :  { %v1747_v42 = vadd.f32 %v1745_v45, %v1739_v56 }
 0x283   :  { %v1753_v35 = vpop.permute.xlu1 %1752  ;;  %v1749_v4 = vpop.permute.xlu0 %1748 }
 0x284   :  { %v1755_v13 = vadd.f32 %v1753_v35, %v1747_v42  ;;  %v1751_v50 = vadd.f32 %v1749_v4, %v1743_v21 }
 0x286   :  { %v1756_v36 = vmul.f32 0.00048828125, %v1751_v50  ;;  %v1757_v3 = vmul.f32 0.00048828125, %v1755_v13 }
 0x288   :  { %v1758_v19 = vmul.f32 %v1756_v36, %v1756_v36 }
 0x28a   :  { %v1759_v53 = vsub.f32 %v1757_v3, %v1758_v19 }
 0x28c   :  { %v1760_v46 = vmax.f32 %v1759_v53, 0.0 }
 0x28e   :  { %v1762_v8 = vadd.f32 1e-05, %v1760_v46 }
 0x290   :  { %3142 = vrsqrt.f32 %v1762_v8 }
 0x29a   :  { %v3143_v24 = vpop.eup %3142 }
 0x29b   :  { %v1764_v1 = vmul.f32 %v3143_v24, %v1761_v37  ;;  %v4786_v37 = vld [vmem:[#allocation6_spill] sm:$0xff]  ;;  %v4787_v24 = vld [vmem:[#allocation8_spill] sm:$0xff] }
 0x29d   :  { %v1766_v16 = vmul.f32 %v1764_v1, %v1756_v36  ;;  %v1772_v45 = vrot.slane %v1764_v1, %v4023_v40 }
 0x29f   :  { %v1767_v20 = vsub.f32 %v1765_v32, %v1766_v16  ;;  %1776 = vrot.lane.b32.xlu1 %v1772_v45, %s3146_s0  ;;  %1773 = vrot.lane.b32.xlu0 %v1772_v45, %s3148_s29  ;;  %v4789_v32 = vld [vmem:[#allocation7_spill] sm:$0xff]  ;;  %v4790_v16 = vld [vmem:[#allocation10_spill] sm:$0xff] }
 0x2a1   :  { %v1791_v56 = vrot.slane %v1767_v20, %v4023_v40 }
 0x2a3   :  { %1779 = vrot.lane.b32.xlu0 %v1772_v45, %s3147_s28  ;;  %1792 = vrot.lane.b32.xlu1 %v1791_v56, %s3148_s29  ;;  %v4791_v45 = vld [vmem:[#allocation12_spill] sm:$0xff] }
 0x2a7   :  { %1795 = vrot.lane.b32.xlu0 %v1791_v56, %s3146_s0  ;;  %1798 = vrot.lane.b32.xlu1 %v1791_v56, %s3147_s28  ;;  %v4792_v56 = vld [vmem:[#allocation9_spill] sm:$0xff] }
 0x311   :  { %v1774_v42 = vpop.permute.xlu0 %1773  ;;  %v1777_v21 = vpop.permute.xlu1 %1776 }
 0x312   :  { %v1782_v35 = vsel %vm776_vm0, %v1764_v1, %v1774_v42  ;;  %v4788_v1 = vld [vmem:[#allocation5_spill] sm:$0xff] }
 0x313   :  { %v1784_v4 = vsel %vm1783_vm1, %v1782_v35, %v1777_v21  ;;  %v4793_v21 = vld [vmem:[#allocation11_spill] sm:$0xff] }
 0x315   :  { %v1780_v13 = vpop.permute.xlu0 %1779  ;;  %v1793_v3 = vpop.permute.xlu1 %1792 }
 0x316   :  { %v1786_v50 = vsel %vm1785_vm2, %v1784_v4, %v1780_v13  ;;  %v1801_v8 = vsel %vm776_vm0, %v1767_v20, %v1793_v3  ;;  %v4794_v4 = vld [vmem:[#allocation14_spill] sm:$0xff] }
 0x317   :  { %v4040_v36 = vrot.slane %v1786_v50, %v4023_v40  ;;  %v4795_v50 = vld [vmem:[#allocation16_spill] sm:$0xff] }
 0x319   :  { %v4044_v19 = vmul.f32 %v4040_v36, %v3643_v62  ;;  %v4048_v53 = vmul.f32 %v4040_v36, %v3650_v10  ;;  %v4052_v46 = vmul.f32 %v4040_v36, %v3640_v57  ;;  %v4057_v34 = vmul.f32 %v4040_v36, %v3647_v5 }
 0x31a   :  { %v4061_v48 = vmul.f32 %v4040_v36, %v3669_v33  ;;  %v4065_v62 = vmul.f32 %v4040_v36, %v3680_v49  ;;  %v4069_v10 = vmul.f32 %v4040_v36, %v3663_v55  ;;  %v4073_v57 = vmul.f32 %v4040_v36, %v3674_v38 }
 0x31b   :  { %v4077_v5 = vmul.f32 %v4040_v36, %v3696_v63  ;;  %v4081_v33 = vmul.f32 %v4040_v36, %v3708_v41  ;;  %v4085_v49 = vmul.f32 %v4040_v36, %v3691_v7  ;;  %v4089_v55 = vmul.f32 %v4040_v36, %v3702_v25 }
 0x31c   :  { %v4093_v38 = vmul.f32 %v4040_v36, %v3722_v2  ;;  %v4097_v63 = vmul.f32 %v4040_v36, %v3732_v27  ;;  %v4101_v41 = vmul.f32 %v4040_v36, %v3717_v54  ;;  %v4105_v7 = vmul.f32 %v4040_v36, %v3726_v51 }
 0x31d   :  { %v4109_v25 = vmul.f32 %v4040_v36, %v3746_v15  ;;  %v4113_v2 = vmul.f32 %v4040_v36, %v3756_v22  ;;  %v4117_v27 = vmul.f32 %v4040_v36, %v3741_v31  ;;  %v4121_v54 = vmul.f32 %v4040_v36, %v3750_v9 }
 0x31e   :  { %v4125_v51 = vmul.f32 %v4040_v36, %v4786_v37  ;;  %v4129_v15 = vmul.f32 %v4040_v36, %v4787_v24  ;;  %v4133_v22 = vmul.f32 %v4040_v36, %v4788_v1  ;;  %v4137_v31 = vmul.f32 %v4040_v36, %v4789_v32  ;;  %v4797_v37 = vld [vmem:[#allocation13_spill] sm:$0xff]  ;;  %v4799_v1 = vld [vmem:[#allocation15_spill] sm:$0xff] }
 0x31f   :  { %v4141_v9 = vmul.f32 %v4040_v36, %v4790_v16  ;;  %v4145_v20 = vmul.f32 %v4040_v36, %v4791_v45  ;;  %v4149_v42 = vmul.f32 %v4040_v36, %v4792_v56  ;;  %v4153_v35 = vmul.f32 %v4040_v36, %v4793_v21  ;;  %v4801_v16 = vld [vmem:[#allocation17_spill] sm:$0xff]  ;;  %v4802_v56 = vld [vmem:[#allocation18_spill] sm:$0xff] }
 0x320   :  { %v4157_v13 = vmul.f32 %v4040_v36, %v4794_v4  ;;  %v4161_v3 = vmul.f32 %v4040_v36, %v4795_v50  ;;  %v4165_v24 = vmul.f32 %v4040_v36, %v4797_v37  ;;  %v4169_v32 = vmul.f32 %v4040_v36, %v4799_v1  ;;  %v4803_v4 = vld [vmem:[#allocation19_spill] sm:$0xff] }
 0x321   :  { %v4173_v45 = vmul.f32 %v4040_v36, %v4801_v16  ;;  %v4177_v21 = vmul.f32 %v4040_v36, %v4802_v56  ;;  %v4181_v50 = vmul.f32 %v4040_v36, %v4803_v4  ;;  %v4197_v56 = vmul.f32 %v4040_v36, %v3856_v43 }
 0x322   :  { %4796 = vst [vmem:[#allocation6_spill] sm:$0xff] %v4161_v3  ;;  %4798 = vst [vmem:[#allocation8_spill] sm:$0xff] %v4165_v24  ;;  %v4804_v3 = vld [vmem:[#allocation20_spill] sm:$0xff]  ;;  %v4805_v24 = vld [vmem:[#allocation21_spill] sm:$0xff]  ;;  %v4201_v4 = vmul.f32 %v4040_v36, %v3863_v17  ;;  %v4217_v43 = vmul.f32 %v4040_v36, %v3905_v23  ;;  %v4221_v17 = vmul.f32 %v4040_v36, %v3919_v30 }
 0x323   :  { %4800 = vst [vmem:[#allocation5_spill] sm:$0xff] %v4169_v32  ;;  %v4185_v37 = vmul.f32 %v4040_v36, %v4804_v3  ;;  %v4189_v1 = vmul.f32 %v4040_v36, %v4805_v24  ;;  %v4806_v32 = vld [vmem:[#allocation22_spill] sm:$0xff]  ;;  %v4205_v3 = vmul.f32 %v4040_v36, %v3871_v59  ;;  %v4209_v24 = vmul.f32 %v4040_v36, %v3880_v61 }
 0x324   :  { %v4193_v16 = vmul.f32 %v4040_v36, %v4806_v32  ;;  %v4213_v32 = vmul.f32 %v4040_v36, %v3894_v39  ;;  %v4225_v59 = vmul.f32 %v4040_v36, %v3930_v18  ;;  %v4229_v61 = vmul.f32 %v4040_v36, %v3943_v29 }
 0x325   :  { %4808 = vst [vmem:[#allocation10_spill] sm:$0xff] %v4209_v24  ;;  %v1799_v24 = vpop.permute.xlu1 %1798  ;;  %v4233_v39 = vmul.f32 %v4040_v36, %v3955_v26  ;;  %v4237_v23 = vmul.f32 %v4040_v36, %v3877_v6  ;;  %v4241_v30 = vmul.f32 %v4040_v36, %v3886_v60  ;;  %v4245_v18 = vmul.f32 %v4040_v36, %v3874_v58 }
 0x326   :  { %4807 = vst [vmem:[#allocation7_spill] sm:$0xff] %v4193_v16  ;;  %v1796_v16 = vpop.permute.xlu0 %1795  ;;  %v4249_v29 = vmul.f32 %v4040_v36, %v3883_v14  ;;  %v4253_v26 = vmul.f32 %v4040_v36, %v3900_v47  ;;  %v4257_v6 = vmul.f32 %v4040_v36, %v3911_v12  ;;  %v4262_v60 = vmul.f32 %v4040_v36, %v3897_v0  ;;  %v4814_v0 = vld [vmem:[#allocation24_spill] sm:$0xff] }
 0x327   :  { %4809 = vst [vmem:[#allocation12_spill] sm:$0xff] %v4237_v23  ;;  %v1802_v23 = vsel %vm1783_vm1, %v1801_v8, %v1796_v16  ;;  %v4266_v58 = vmul.f32 %v4040_v36, %v3908_v52  ;;  %v4270_v14 = vmul.f32 %v4040_v36, %v3925_v11  ;;  %v4275_v12 = vmul.f32 %v4040_v36, %v3936_v28  ;;  %v4817_v28 = vld [vmem:[#allocation25_spill] sm:$0xff] }
 0x328   :  { %4810 = vst [vmem:[#allocation9_spill] sm:$0xff] %v4257_v6  ;;  %v1803_v47 = vsel %vm1785_vm2, %v1802_v23, %v1799_v24  ;;  %v4813_v6 = vld [vmem:[#allocation23_spill] sm:$0xff]  ;;  %v4283_v16 = vmul.f32 %v4040_v36, %v4814_v0 }
 0x329   :  { %4811 = vst [vmem:[#allocation11_spill] sm:$0xff] %v4266_v58  ;;  %4812 = vst [vmem:[#allocation14_spill] sm:$0xff] %v4275_v12  ;;  %v4279_v8 = vmul.f32 %v4040_v36, %v4813_v6  ;;  %v4286_v52 = vrot.slane %v1803_v47, %v4023_v40  ;;  %v4815_v58 = vld [vmem:[#allocation26_spill] sm:$0xff]  ;;  %v4816_v24 = vld [vmem:[#allocation27_spill] sm:$0xff]  ;;  %v4298_v12 = vmul.f32 %v4040_v36, %v4817_v28 }
 0x32a   :  { %v4290_v11 = vmul.f32 %v4040_v36, %v4815_v58  ;;  %v4294_v23 = vmul.f32 %v4040_v36, %v4816_v24  ;;  %v4302_v6 = vmul.f32 %v4040_v36, %v3958_v44  ;;  %v4824_v24 = vld [vmem:[#allocation8_spill] sm:$0xff]  ;;  %v4825_v28 = vld [vmem:[#allocation5_spill] sm:$0xff] }
 0x32b   :  { %v4306_v40 = vadd.f32 %v4286_v52, %v4044_v19  ;;  %v4310_v58 = vadd.f32 %v4286_v52, %v4048_v53  ;;  %v4314_v47 = vadd.f32 %v4286_v52, %v4052_v46  ;;  %v4318_v0 = vadd.f32 %v4286_v52, %v4057_v34 }
 0x32c   :  { %v4322_v44 = vadd.f32 %v4286_v52, %v4061_v48  ;;  %v4326_v36 = vadd.f32 %v4286_v52, %v4065_v62  ;;  %v4330_v19 = vadd.f32 %v4286_v52, %v4069_v10  ;;  %v4334_v53 = vadd.f32 %v4286_v52, %v4073_v57 }
 0x32d   :  { %4818 = vst [vmem:[#allocation16_spill] sm:$0xff] %v4306_v40  ;;  %4819 = vst [vmem:[#allocation13_spill] sm:$0xff] %v4310_v58  ;;  %v4338_v46 = vadd.f32 %v4286_v52, %v4077_v5  ;;  %v4342_v34 = vadd.f32 %v4286_v52, %v4081_v33  ;;  %v4346_v48 = vadd.f32 %v4286_v52, %v4085_v49 }
 0x32e   :  { %4820 = vst [vmem:[#allocation15_spill] sm:$0xff] %v4314_v47  ;;  %4821 = vst [vmem:[#allocation17_spill] sm:$0xff] %v4318_v0  ;;  %v4350_v62 = vadd.f32 %v4286_v52, %v4089_v55  ;;  %v4354_v10 = vadd.f32 %v4286_v52, %v4093_v38  ;;  %v4358_v57 = vadd.f32 %v4286_v52, %v4097_v63 }
 0x32f   :  { %4822 = vst [vmem:[#allocation18_spill] sm:$0xff] %v4322_v44  ;;  %v4362_v5 = vadd.f32 %v4286_v52, %v4101_v41  ;;  %v4366_v33 = vadd.f32 %v4286_v52, %v4105_v7  ;;  %v4370_v49 = vadd.f32 %v4286_v52, %v4109_v25  ;;  %v4374_v55 = vadd.f32 %v4286_v52, %v4113_v2 }
 0x330   :  { %v4378_v38 = vadd.f32 %v4286_v52, %v4117_v27  ;;  %v4382_v63 = vadd.f32 %v4286_v52, %v4121_v54  ;;  %v4386_v41 = vadd.f32 %v4286_v52, %v4125_v51  ;;  %v4390_v7 = vadd.f32 %v4286_v52, %v4129_v15 }
 0x331   :  { %v4394_v25 = vadd.f32 %v4286_v52, %v4133_v22  ;;  %v4398_v2 = vadd.f32 %v4286_v52, %v4137_v31  ;;  %v4402_v27 = vadd.f32 %v4286_v52, %v4141_v9  ;;  %v4406_v54 = vadd.f32 %v4286_v52, %v4145_v20  ;;  %v4823_v31 = vld [vmem:[#allocation6_spill] sm:$0xff] }
 0x332   :  { %v4410_v51 = vadd.f32 %v4286_v52, %v4149_v42  ;;  %v4414_v15 = vadd.f32 %v4286_v52, %v4153_v35  ;;  %v4418_v22 = vadd.f32 %v4286_v52, %v4157_v13  ;;  %v4422_v9 = vadd.f32 %v4286_v52, %v4823_v31 }
 0x333   :  { %v4426_v20 = vadd.f32 %v4286_v52, %v4824_v24  ;;  %v4430_v42 = vadd.f32 %v4286_v52, %v4825_v28  ;;  %v4434_v35 = vadd.f32 %v4286_v52, %v4173_v45  ;;  %v4438_v13 = vadd.f32 %v4286_v52, %v4177_v21 }
 0x334   :  { %v4442_v31 = vadd.f32 %v4286_v52, %v4181_v50  ;;  %v4446_v24 = vadd.f32 %v4286_v52, %v4185_v37  ;;  %v4450_v28 = vadd.f32 %v4286_v52, %v4189_v1  ;;  %v4458_v21 = vadd.f32 %v4286_v52, %v4197_v56 }
 0x335   :  { %4826 = vst [vmem:[#allocation19_spill] sm:$0xff] %v4430_v42  ;;  %v4828_v42 = vld [vmem:[#allocation7_spill] sm:$0xff]  ;;  %v4462_v50 = vadd.f32 %v4286_v52, %v4201_v4  ;;  %v4466_v37 = vadd.f32 %v4286_v52, %v4205_v3  ;;  %v4478_v56 = vadd.f32 %v4286_v52, %v4217_v43  ;;  %v4482_v4 = vadd.f32 %v4286_v52, %v4221_v17 }
 0x336   :  { %4827 = vst [vmem:[#allocation20_spill] sm:$0xff] %v4446_v24  ;;  %v4454_v45 = vadd.f32 %v4286_v52, %v4828_v42  ;;  %v4829_v24 = vld [vmem:[#allocation10_spill] sm:$0xff]  ;;  %v4474_v42 = vadd.f32 %v4286_v52, %v4213_v32  ;;  %v4486_v3 = vadd.f32 %v4286_v52, %v4225_v59  ;;  %v4494_v32 = vadd.f32 %v4286_v52, %v4233_v39 }
 0x337   :  { %v4470_v1 = vadd.f32 %v4286_v52, %v4829_v24  ;;  %v4490_v24 = vadd.f32 %v4286_v52, %v4229_v61  ;;  %v4502_v17 = vadd.f32 %v4286_v52, %v4241_v30  ;;  %v4506_v59 = vadd.f32 %v4286_v52, %v4245_v18 }
 0x338   :  { %4830 = vst [vmem:[#allocation21_spill] sm:$0xff] %v4474_v42  ;;  %4831 = vst [vmem:[#allocation22_spill] sm:$0xff] %v4494_v32  ;;  %v4832_v42 = vld [vmem:[#allocation12_spill] sm:$0xff]  ;;  %v4510_v61 = vadd.f32 %v4286_v52, %v4249_v29  ;;  %v4514_v39 = vadd.f32 %v4286_v52, %v4253_v26  ;;  %v4835_v32 = vld [vmem:[#allocation9_spill] sm:$0xff]  ;;  %v4522_v30 = vadd.f32 %v4286_v52, %v4262_v60 }
 0x339   :  { %v4498_v43 = vadd.f32 %v4286_v52, %v4832_v42  ;;  %4833 = vst [vmem:[#allocation23_spill] sm:$0xff] %v4502_v17  ;;  %v4518_v42 = vadd.f32 %v4286_v52, %v4835_v32  ;;  %v4836_v17 = vld [vmem:[#allocation11_spill] sm:$0xff]  ;;  %v4530_v29 = vadd.f32 %v4286_v52, %v4270_v14  ;;  %v4538_v32 = vadd.f32 %v4286_v52, %v4279_v8 }
 0x33a   :  { %4834 = vst [vmem:[#allocation24_spill] sm:$0xff] %v4510_v61  ;;  %v4526_v18 = vadd.f32 %v4286_v52, %v4836_v17  ;;  %v4837_v61 = vld [vmem:[#allocation14_spill] sm:$0xff]  ;;  %v4542_v60 = vadd.f32 %v4286_v52, %v4283_v16  ;;  %v4546_v17 = vadd.f32 %v4286_v52, %v4290_v11  ;;  %v4550_v14 = vadd.f32 %v4286_v52, %v4294_v23 }
 0x33b   :  { %v4534_v26 = vadd.f32 %v4286_v52, %v4837_v61  ;;  %4838 = vst [vmem:[#allocation26_spill] sm:$0xff] %v4538_v32  ;;  %v4554_v61 = vadd.f32 %v4286_v52, %v4298_v12  ;;  %v4558_v8 = vadd.f32 %v4286_v52, %v4302_v6  ;;  %v2009_v23 = vmax.f32 %v4326_v36, 0.0 }
 0x33c   :  { %4839 = vst [vmem:[#allocation27_spill] sm:$0xff] %v4542_v60  ;;  %4840 = vst [vmem:[#allocation25_spill] sm:$0xff] %v4546_v17  ;;  %v2011_v12 = vmax.f32 %v4334_v53, 0.0  ;;  %v2013_v52 = vmax.f32 %v4342_v34, 0.0  ;;  %v2014_v6 = vmax.f32 %v4346_v48, 0.0  ;;  %v2015_v16 = vmax.f32 %v4350_v62, 0.0 }
 0x33d   :  { %4841 = vst [vmem:[#allocation6_spill] sm:$0xff] %v4550_v14  ;;  %4842 = vst [vmem:[#allocation8_spill] sm:$0xff] %v4554_v61  ;;  %v2010_v14 = vmax.f32 %v4330_v19, 0.0  ;;  %v2012_v61 = vmax.f32 %v4338_v46, 0.0  ;;  %v2016_v60 = vmax.f32 %v4354_v10, 0.0  ;;  %v2017_v11 = vmax.f32 %v4358_v57, 0.0 }
 0x33e   :  { %4843 = vst [vmem:[#allocation5_spill] sm:$0xff] %v4558_v8  ;;  %v2018_v17 = vmax.f32 %v4362_v5, 0.0  ;;  %v2019_v36 = vmax.f32 %v4366_v33, 0.0  ;;  %v2020_v19 = vmax.f32 %v4370_v49, 0.0  ;;  %v2021_v53 = vmax.f32 %v4374_v55, 0.0  ;;  %v4844_v32 = vld [vmem:[#allocation19_spill] sm:$0xff] }
 0x33f   :  { %v2022_v46 = vmax.f32 %v4378_v38, 0.0  ;;  %v2023_v34 = vmax.f32 %v4382_v63, 0.0  ;;  %v2024_v48 = vmax.f32 %v4386_v41, 0.0  ;;  %v2025_v62 = vmax.f32 %v4390_v7, 0.0  ;;  %v4845_v44 = vld [vmem:[#allocation20_spill] sm:$0xff]  ;;  %v4846_v0 = vld [vmem:[#allocation21_spill] sm:$0xff] }
 0x340   :  { %v2026_v10 = vmax.f32 %v4394_v25, 0.0  ;;  %v2027_v57 = vmax.f32 %v4398_v2, 0.0  ;;  %v2028_v5 = vmax.f32 %v4402_v27, 0.0  ;;  %v2029_v33 = vmax.f32 %v4406_v54, 0.0  ;;  %v4847_v47 = vld [vmem:[#allocation22_spill] sm:$0xff]  ;;  %v4848_v58 = vld [vmem:[#allocation23_spill] sm:$0xff] }
 0x341   :  { %v2030_v49 = vmax.f32 %v4410_v51, 0.0  ;;  %v2031_v55 = vmax.f32 %v4414_v15, 0.0  ;;  %v2032_v38 = vmax.f32 %v4418_v22, 0.0  ;;  %v2033_v63 = vmax.f32 %v4422_v9, 0.0  ;;  %v4849_v40 = vld [vmem:[#allocation24_spill] sm:$0xff] }
 0x342   :  { %v2034_v41 = vmax.f32 %v4426_v20, 0.0  ;;  %v2035_v7 = vmax.f32 %v4844_v32, 0.0  ;;  %v2036_v25 = vmax.f32 %v4434_v35, 0.0  ;;  %v2037_v2 = vmax.f32 %v4438_v13, 0.0  ;;  %v4850_v8 = vld [vmem:[#allocation26_spill] sm:$0xff] }
 0x343   :  { %v2038_v27 = vmax.f32 %v4442_v31, 0.0  ;;  %v2039_v54 = vmax.f32 %v4845_v44, 0.0  ;;  %v2040_v51 = vmax.f32 %v4450_v28, 0.0  ;;  %v2041_v15 = vmax.f32 %v4454_v45, 0.0 }
 0x344   :  { %v2042_v22 = vmax.f32 %v4458_v21, 0.0  ;;  %v2043_v9 = vmax.f32 %v4462_v50, 0.0  ;;  %v2044_v20 = vmax.f32 %v4466_v37, 0.0  ;;  %v2045_v32 = vmax.f32 %v4470_v1, 0.0 }
 0x345   :  { %v2046_v35 = vmax.f32 %v4846_v0, 0.0  ;;  %v2047_v13 = vmax.f32 %v4478_v56, 0.0  ;;  %v2048_v31 = vmax.f32 %v4482_v4, 0.0  ;;  %v2049_v44 = vmax.f32 %v4486_v3, 0.0 }
 0x346   :  { %v2050_v28 = vmax.f32 %v4490_v24, 0.0  ;;  %v2051_v45 = vmax.f32 %v4847_v47, 0.0  ;;  %v2052_v21 = vmax.f32 %v4498_v43, 0.0  ;;  %v2053_v50 = vmax.f32 %v4848_v58, 0.0  ;;  %v4851_v58 = vld [vmem:[#allocation27_spill] sm:$0xff] }
 0x347   :  { %v2054_v37 = vmax.f32 %v4506_v59, 0.0  ;;  %v2055_v1 = vmax.f32 %v4849_v40, 0.0  ;;  %v2056_v0 = vmax.f32 %v4514_v39, 0.0  ;;  %v2057_v56 = vmax.f32 %v4518_v42, 0.0  ;;  %v4852_v40 = vld [vmem:[#allocation25_spill] sm:$0xff]  ;;  %v4853_v42 = vld [vmem:[#allocation6_spill] sm:$0xff] }
 0x348   :  { %v2058_v4 = vmax.f32 %v4522_v30, 0.0  ;;  %v2059_v3 = vmax.f32 %v4526_v18, 0.0  ;;  %v2060_v24 = vmax.f32 %v4530_v29, 0.0  ;;  %v2061_v47 = vmax.f32 %v4534_v26, 0.0  ;;  %v4854_v18 = vld [vmem:[#allocation8_spill] sm:$0xff]  ;;  %v4855_v26 = vld [vmem:[#allocation5_spill] sm:$0xff] }
 0x349   :  { %v2062_v43 = vmax.f32 %v4850_v8, 0.0  ;;  %v2063_v59 = vmax.f32 %v4851_v58, 0.0  ;;  %v2064_v39 = vmax.f32 %v4852_v40, 0.0  ;;  %v2065_v30 = vmax.f32 %v4853_v42, 0.0  ;;  %v4856_v58 = vld [vmem:[#allocation16_spill] sm:$0xff]  ;;  %v4858_v42 = vld [vmem:[#allocation13_spill] sm:$0xff] }
 0x34a   :  { %v2066_v29 = vmax.f32 %v4854_v18, 0.0  ;;  %v2067_v8 = vmax.f32 %v4855_v26, 0.0  ;;  %v4857_v40 = vmax.f32 %v4856_v58, 0.0  ;;  %v4859_v18 = vmax.f32 %v4858_v42, 0.0  ;;  %v4860_v58 = vld [vmem:[#allocation15_spill] sm:$0xff] }
 0x34b   :  { %v4861_v42 = vmax.f32 %v4860_v58, 0.0 }
 0x34c   :  { %v2669_v26 = vpack.c.bf16 %v4859_v18, %v4857_v40  ;;  %v4862_v18 = vld [vmem:[#allocation17_spill] sm:$0xff] }
 0x34d   :  { %v4863_v40 = vmax.f32 %v4862_v18, 0.0  ;;  %v4864_v18 = vld [vmem:[#allocation18_spill] sm:$0xff] }
 0x34e   :  { %2670 = vst [vmem:[%s4734_s4] sm:$0xff] %v2669_v26  }
 0x34f   :  { %v2674_v58 = vpack.c.bf16 %v4863_v40, %v4861_v42  ;;  %v4865_v40 = vmax.f32 %v4864_v18, 0.0  ;;  %v2684_v18 = vpack.c.bf16 %v2011_v12, %v2010_v14  ;;  %v2699_v12 = vpack.c.bf16 %v2017_v11, %v2016_v60 }
 0x350   :  { %v2704_v14 = vpack.c.bf16 %v2019_v36, %v2018_v17  ;;  %v2719_v60 = vpack.c.bf16 %v2025_v62, %v2024_v48  ;;  %v2724_v17 = vpack.c.bf16 %v2027_v57, %v2026_v10  ;;  %v2729_v11 = vpack.c.bf16 %v2029_v33, %v2028_v5 }
 0x351   :  { %v2679_v42 = vpack.c.bf16 %v2009_v23, %v4865_v40  ;;  %v2689_v23 = vpack.c.bf16 %v2013_v52, %v2012_v61  ;;  %v2694_v40 = vpack.c.bf16 %v2015_v16, %v2014_v6  ;;  %2826 = vst [vmem:[%s4734_s4 + $0x8] sm:$0xff] %v2674_v58   ;;  %2828 = vst [vmem:[%s4734_s4 + $0x18] sm:$0xff] %v2684_v18  }
 0x352   :  { %v2709_v61 = vpack.c.bf16 %v2021_v53, %v2020_v19  ;;  %v2714_v16 = vpack.c.bf16 %v2023_v34, %v2022_v46  ;;  %2831 = vst [vmem:[%s4734_s4 + $0x30] sm:$0xff] %v2699_v12   ;;  %2832 = vst [vmem:[%s4734_s4 + $0x38] sm:$0xff] %v2704_v14   ;;  %v2734_v52 = vpack.c.bf16 %v2031_v55, %v2030_v49 }
 0x353   :  { %2827 = vst [vmem:[%s4734_s4 + $0x10] sm:$0xff] %v2679_v42   ;;  %2829 = vst [vmem:[%s4734_s4 + $0x20] sm:$0xff] %v2689_v23   ;;  %v2739_v6 = vpack.c.bf16 %v2033_v63, %v2032_v38  ;;  %v2744_v36 = vpack.c.bf16 %v2035_v7, %v2034_v41  ;;  %v2749_v19 = vpack.c.bf16 %v2037_v2, %v2036_v25 }
 0x354   :  { %2830 = vst [vmem:[%s4734_s4 + $0x28] sm:$0xff] %v2694_v40   ;;  %2833 = vst [vmem:[%s4734_s4 + $0x40] sm:$0xff] %v2709_v61   ;;  %v2754_v53 = vpack.c.bf16 %v2039_v54, %v2038_v27  ;;  %v2759_v46 = vpack.c.bf16 %v2041_v15, %v2040_v51  ;;  %v2764_v34 = vpack.c.bf16 %v2043_v9, %v2042_v22 }
 0x355   :  { %2834 = vst [vmem:[%s4734_s4 + $0x48] sm:$0xff] %v2714_v16   ;;  %2835 = vst [vmem:[%s4734_s4 + $0x50] sm:$0xff] %v2719_v60   ;;  %v2769_v48 = vpack.c.bf16 %v2045_v32, %v2044_v20  ;;  %v2774_v62 = vpack.c.bf16 %v2047_v13, %v2046_v35  ;;  %v2779_v10 = vpack.c.bf16 %v2049_v44, %v2048_v31 }
 0x356   :  { %2836 = vst [vmem:[%s4734_s4 + $0x58] sm:$0xff] %v2724_v17   ;;  %2837 = vst [vmem:[%s4734_s4 + $0x60] sm:$0xff] %v2729_v11   ;;  %v2784_v57 = vpack.c.bf16 %v2051_v45, %v2050_v28  ;;  %v2789_v5 = vpack.c.bf16 %v2053_v50, %v2052_v21  ;;  %v2794_v33 = vpack.c.bf16 %v2055_v1, %v2054_v37 }
 0x357   :  { %2838 = vst [vmem:[%s4734_s4 + $0x68] sm:$0xff] %v2734_v52   ;;  %2839 = vst [vmem:[%s4734_s4 + $0x70] sm:$0xff] %v2739_v6   ;;  %v2799_v49 = vpack.c.bf16 %v2057_v56, %v2056_v0  ;;  %v2804_v55 = vpack.c.bf16 %v2059_v3, %v2058_v4  ;;  %v2809_v38 = vpack.c.bf16 %v2061_v47, %v2060_v24 }
 0x358   :  { %2840 = vst [vmem:[%s4734_s4 + $0x78] sm:$0xff] %v2744_v36   ;;  %2841 = vst [vmem:[%s4734_s4 + $0x80] sm:$0xff] %v2749_v19   ;;  %v2814_v63 = vpack.c.bf16 %v2063_v59, %v2062_v43  ;;  %v2819_v41 = vpack.c.bf16 %v2065_v30, %v2064_v39  ;;  %v2824_v7 = vpack.c.bf16 %v2067_v8, %v2066_v29 }
 0x359   :  { %2842 = vst [vmem:[%s4734_s4 + $0x88] sm:$0xff] %v2754_v53   ;;  %2843 = vst [vmem:[%s4734_s4 + $0x90] sm:$0xff] %v2759_v46  }
 0x35a   :  { %2844 = vst [vmem:[%s4734_s4 + $0x98] sm:$0xff] %v2764_v34   ;;  %2845 = vst [vmem:[%s4734_s4 + $0xa0] sm:$0xff] %v2769_v48  }
 0x35b   :  { %2846 = vst [vmem:[%s4734_s4 + $0xa8] sm:$0xff] %v2774_v62   ;;  %2847 = vst [vmem:[%s4734_s4 + $0xb0] sm:$0xff] %v2779_v10  }
 0x35c   :  { %2848 = vst [vmem:[%s4734_s4 + $0xb8] sm:$0xff] %v2784_v57   ;;  %2849 = vst [vmem:[%s4734_s4 + $0xc0] sm:$0xff] %v2789_v5  }
 0x35d   :  { %2850 = vst [vmem:[%s4734_s4 + $0xc8] sm:$0xff] %v2794_v33   ;;  %2851 = vst [vmem:[%s4734_s4 + $0xd0] sm:$0xff] %v2799_v49  }
 0x35e   :  { %2852 = vst [vmem:[%s4734_s4 + $0xd8] sm:$0xff] %v2804_v55   ;;  %2853 = vst [vmem:[%s4734_s4 + $0xe0] sm:$0xff] %v2809_v38  }
 0x35f   :  { %2854 = vst [vmem:[%s4734_s4 + $0xe8] sm:$0xff] %v2814_v63   ;;  %2855 = vst [vmem:[%s4734_s4 + $0xf0] sm:$0xff] %v2819_v41  }
 0x360   :  { %2856 = vst [vmem:[%s4734_s4 + $0xf8] sm:$0xff] %v2824_v7  }

// kernel: generator_forward.9
= control target key start
LH: loop header
LB: loop body
LE: loop exit
PB: predicated region body
PF: predicated region fallthrough
CT: control target
= control target key end

     0   :  { %s2976_s12 = smov 0   ;;  %s3436_s0 = inlined_call_operand.vmem [shape: bf16[2048,288], index: 0, kind: input, shape index: {}]   ;;  %s3437_s1 = inlined_call_operand.vmem [shape: bf16[288,128], index: 1, kind: input, shape index: {}]   ;;  %s3438_s2 = inlined_call_operand.vmem [shape: f32[1,128], index: 2, kind: input, shape index: {}]   ;;  %s3439_s3 = inlined_call_operand.vmem [shape: bf16[2048,128], index: 3, kind: output, shape index: {}]  }
   0x1 LB: > { %s2052_s13 = sadd.s32 4294967295, %s2953_s12   ;;  %p2056_p0 = scmp.ge.s32.totalorder %s2953_s12, 1  ;;  %s2953_s12 = sphi %s2976_s12, %s13_s12  }
   0x2   : > { %p139_p1 = scmp.lt.s32.totalorder %s2953_s12, 5 }
   0x4   : > { %p140_p2 = pnand %p2056_p0, %p139_p1 }
   0x5   : > { %v2673_v0 = vld [vmem:[%s3437_s1] sm:$0xff] (!%p140_p2)   ;;  %v2955_v1 = vmov (!%p140_p2), 0   ;;  %s2057_s16 = sshll.u32 (!%p140_p2), %s2052_s13, 6  ;;  %v2674_v2 = vld [vmem:[%s3437_s1 + $0x8] sm:$0xff] (!%p140_p2)   ;;  %v2675_v3 = vld [vmem:[%s3437_s1 + $0x10] sm:$0xff] (!%p140_p2)   ;;  %vm937_vm0 = vcmask (!%p140_p2), 261120  }
   0x6   : > { %143 = sbr.rel (%p140_p2) target bundleno = 489 (0x1e9), region = 32  ;;  %1034 = vmatprep.subr.bf16.mxu0 (!%p140_p2), %v2955_v1  ;;  %2631 = vmatprep.subr.bf16.mxu1 (!%p140_p2), %v2955_v1  ;;  %p165_p3 = scmp.lt.s32.totalorder (!%p140_p2), %s2057_s16, 255  ;;  %v2676_v4 = vld [vmem:[%s3437_s1 + $0x18] sm:$0xff] (!%p140_p2)   ;;  %v2677_v5 = vld [vmem:[%s3437_s1 + $0x20] sm:$0xff] (!%p140_p2)   ;;  %v2678_v7 = vld [vmem:[%s3437_s1 + $0x28] sm:$0xff] (!%p140_p2)  }
   0x7   : > { %1035 = vmatpush1.bf16.msra.mxu0 (!%p140_p2), %v2673_v0  ;;  %2647 = vmatpush1.bf16.msra.mxu1 (!%p140_p2), %v2673_v0  ;;  %v2679_v9 = vld [vmem:[%s3437_s1 + $0x30] sm:$0xff] (!%p140_p2)   ;;  %v2680_v10 = vld [vmem:[%s3437_s1 + $0x38] sm:$0xff] (!%p140_p2)   ;;  %v2681_v11 = vld [vmem:[%s3437_s1 + $0x40] sm:$0xff] (!%p140_p2)  }
   0x8   : > { %1036 = vmatprep.subr.bf16.mxu0 (!%p140_p2), %v2955_v1  ;;  %2632 = vmatprep.subr.bf16.mxu1 (!%p140_p2), %v2955_v1  ;;  %v2682_v12 = vld [vmem:[%s3437_s1 + $0x48] sm:$0xff] (!%p140_p2)   ;;  %v2683_v13 = vld [vmem:[%s3437_s1 + $0x50] sm:$0xff] (!%p140_p2)   ;;  %v2684_v14 = vld [vmem:[%s3437_s1 + $0x58] sm:$0xff] (!%p140_p2)  }
   0x9   : > { %v2685_v15 = vld [vmem:[%s3437_s1 + $0x60] sm:$0xff] (!%p140_p2)   ;;  %v2686_v16 = vld [vmem:[%s3437_s1 + $0x68] sm:$0xff] (!%p140_p2)   ;;  %v2687_v17 = vld [vmem:[%s3437_s1 + $0x70] sm:$0xff] (!%p140_p2)  }
   0xa   : > { %v2688_v18 = vld [vmem:[%s3437_s1 + $0x78] sm:$0xff] (!%p140_p2)   ;;  %v2695_v19 = vld [vmem:[%s3437_s1 + $0x80] sm:$0xff] (!%p140_p2)   ;;  %v2720_v24 = vld [vmem:[%s3437_s1 + $0x88] sm:$0xff] (!%p140_p2)  }
   0xb   : > { %1037 = vmatpush1.bf16.msra.mxu0 (!%p140_p2), %v2674_v2  ;;  %2648 = vmatpush1.bf16.msra.mxu1 (!%p140_p2), %v2674_v2 }
   0xc   : > { %1038 = vmatprep.subr.bf16.mxu0 (!%p140_p2), %v2955_v1  ;;  %2633 = vmatprep.subr.bf16.mxu1 (!%p140_p2), %v2955_v1 }
   0xd   : > { %s3441_s16 = smov (!%p165_p3, %s2057_s16), 255 }
   0xe   : > { %s2663_s23 = smul.u32 12, %s3441_s16  ;;  %s2060_s5 = sshll.u32 %s3441_s16, 2 }
   0xf   : > { %1039 = vmatpush1.bf16.msra.mxu0 %v2675_v3  ;;  %2649 = vmatpush1.bf16.msra.mxu1 %v2675_v3  ;;  %s3293_s8 = scalar_lea.vmem %s3439_s3, %s2060_s5 }
  0x10   : > { %1040 = vmatprep.subr.bf16.mxu0 %v2955_v1  ;;  %2634 = vmatprep.subr.bf16.mxu1 %v2955_v1  ;;  %s3013_s28 = scalar_lea.vmem %s3436_s0, %s2663_s23 }
  0x11   : > { %v2691_v6 = vld [vmem:[%s3013_s28 + $0x4] ss:$12 sps:$4 sm:$0xff]   ;;  %v2689_v20 = vld [vmem:[%s3013_s28] ss:$12 sps:$4 sm:$0xff]   ;;  %v2696_v22 = vld [vmem:[%s3013_s28 + $0x1c] ss:$12 sps:$4 sm:$0xff]  }
  0x12   : > { %v2694_v8 = vld [vmem:[%s3013_s28 + $0x244] ss:$12 sps:$4 sm:$0xff]   ;;  %1066 = vmatprep.mubr.bf16.mxu0 %v2691_v6  ;;  %v2692_v21 = vld [vmem:[%s3013_s28 + $0x240] ss:$12 sps:$4 sm:$0xff]   ;;  %v2698_v23 = vld [vmem:[%s3013_s28 + $0x25c] ss:$12 sps:$4 sm:$0xff]  }
  0x13   : > { %1041 = vmatpush1.bf16.msra.mxu0 %v2676_v4  ;;  %2650 = vmatpush1.bf16.msra.mxu1 %v2676_v4  ;;  %v2700_v25 = vld [vmem:[%s3013_s28 + $0x18] ss:$12 sps:$4 sm:$0xff]   ;;  %v2702_v27 = vld [vmem:[%s3013_s28 + $0x34] ss:$12 sps:$4 sm:$0xff]   ;;  %v2706_v29 = vld [vmem:[%s3013_s28 + $0x30] ss:$12 sps:$4 sm:$0xff]  }
  0x14   : > { %1042 = vmatprep.subr.bf16.mxu0 %v2955_v1  ;;  %2635 = vmatprep.subr.bf16.mxu1 %v2955_v1  ;;  %v2701_v26 = vld [vmem:[%s3013_s28 + $0x258] ss:$12 sps:$4 sm:$0xff]   ;;  %v2704_v28 = vld [vmem:[%s3013_s28 + $0x274] ss:$12 sps:$4 sm:$0xff]   ;;  %v2707_v30 = vld [vmem:[%s3013_s28 + $0x270] ss:$12 sps:$4 sm:$0xff]  }
  0x15   : > { %1258 = vmatprep.mubr.bf16.mxu1 %v2694_v8  ;;  %v2708_v31 = vld [vmem:[%s3013_s28 + $0x4c] ss:$12 sps:$4 sm:$0xff]   ;;  %v2712_v33 = vld [vmem:[%s3013_s28 + $0x48] ss:$12 sps:$4 sm:$0xff]   ;;  %v2714_v35 = vld [vmem:[%s3013_s28 + $0x64] ss:$12 sps:$4 sm:$0xff]  }
  0x16   : > { %v2710_v32 = vld [vmem:[%s3013_s28 + $0x28c] ss:$12 sps:$4 sm:$0xff]   ;;  %v2713_v34 = vld [vmem:[%s3013_s28 + $0x288] ss:$12 sps:$4 sm:$0xff]   ;;  %v2716_v36 = vld [vmem:[%s3013_s28 + $0x2a4] ss:$12 sps:$4 sm:$0xff]  }
  0x17   : > { %1043 = vmatpush1.bf16.msra.mxu0 %v2677_v5  ;;  %2651 = vmatpush1.bf16.msra.mxu1 %v2677_v5  ;;  %v2718_v37 = vld [vmem:[%s3013_s28 + $0x60] ss:$12 sps:$4 sm:$0xff]   ;;  %v2721_v39 = vld [vmem:[%s3013_s28 + $0x7c] ss:$12 sps:$4 sm:$0xff]   ;;  %v2725_v41 = vld [vmem:[%s3013_s28 + $0x78] ss:$12 sps:$4 sm:$0xff]  }
  0x18   : > { %1044 = vmatprep.subr.bf16.mxu0 %v2955_v1  ;;  %2636 = vmatprep.subr.bf16.mxu1 %v2955_v1  ;;  %v2719_v38 = vld [vmem:[%s3013_s28 + $0x2a0] ss:$12 sps:$4 sm:$0xff]   ;;  %v2723_v40 = vld [vmem:[%s3013_s28 + $0x2bc] ss:$12 sps:$4 sm:$0xff]   ;;  %v2726_v42 = vld [vmem:[%s3013_s28 + $0x2b8] ss:$12 sps:$4 sm:$0xff]  }
  0x19   : > { %v2727_v43 = vld [vmem:[%s3013_s28 + $0x94] ss:$12 sps:$4 sm:$0xff]   ;;  %v2731_v45 = vld [vmem:[%s3013_s28 + $0x90] ss:$12 sps:$4 sm:$0xff]   ;;  %v2733_v47 = vld [vmem:[%s3013_s28 + $0xac] ss:$12 sps:$4 sm:$0xff]  }
  0x1a   : > { %v2729_v44 = vld [vmem:[%s3013_s28 + $0x2d4] ss:$12 sps:$4 sm:$0xff]   ;;  %v2732_v46 = vld [vmem:[%s3013_s28 + $0x2d0] ss:$12 sps:$4 sm:$0xff]   ;;  %v2735_v48 = vld [vmem:[%s3013_s28 + $0x2ec] ss:$12 sps:$4 sm:$0xff]  }
  0x1b   : > { %1045 = vmatpush1.bf16.msra.mxu0 %v2678_v7  ;;  %2652 = vmatpush1.bf16.msra.mxu1 %v2678_v7  ;;  %v2737_v49 = vld [vmem:[%s3013_s28 + $0xa8] ss:$12 sps:$4 sm:$0xff]   ;;  %v2739_v51 = vld [vmem:[%s3013_s28 + $0xc4] ss:$12 sps:$4 sm:$0xff]   ;;  %v2742_v53 = vld [vmem:[%s3013_s28 + $0xc0] ss:$12 sps:$4 sm:$0xff]  }
  0x1c   : > { %1046 = vmatprep.subr.bf16.mxu0 %v2955_v1  ;;  %2637 = vmatprep.subr.bf16.mxu1 %v2955_v1  ;;  %v2738_v50 = vld [vmem:[%s3013_s28 + $0x2e8] ss:$12 sps:$4 sm:$0xff]   ;;  %v2743_v54 = vld [vmem:[%s3013_s28 + $0x20] ss:$12 sps:$4 sm:$0xff]   ;;  %v2746_v56 = vld [vmem:[%s3013_s28 + $0x38] ss:$12 sps:$4 sm:$0xff]  }
  0x1d   : > { %v2741_v52 = vld [vmem:[%s3013_s28 + $0x8] ss:$12 sps:$4 sm:$0xff]   ;;  %v2747_v57 = vld [vmem:[%s3013_s28 + $0xd8] ss:$12 sps:$4 sm:$0xff]   ;;  %v2748_v58 = vld [vmem:[%s3013_s28 + $0x50] ss:$12 sps:$4 sm:$0xff]  }
  0x1e   : > { %v2744_v55 = vld [vmem:[%s3013_s28 + $0xdc] ss:$12 sps:$4 sm:$0xff]   ;;  %v2749_v59 = vld [vmem:[%s3013_s28 + $0xf4] ss:$12 sps:$4 sm:$0xff]   ;;  %v2754_v63 = vld [vmem:[%s3013_s28 + $0x10c] ss:$12 sps:$4 sm:$0xff]  }
  0x1f   : > { %1047 = vmatpush1.bf16.msra.mxu0 %v2679_v9  ;;  %2653 = vmatpush1.bf16.msra.mxu1 %v2679_v9  ;;  %v2751_v60 = vld [vmem:[%s3013_s28 + $0x68] ss:$12 sps:$4 sm:$0xff]   ;;  %v2752_v61 = vld [vmem:[%s3013_s28 + $0xf0] ss:$12 sps:$4 sm:$0xff]   ;;  %v2753_v62 = vld [vmem:[%s3013_s28 + $0x80] ss:$12 sps:$4 sm:$0xff]  }
  0x20   : > { %1048 = vmatprep.subr.bf16.mxu0 %v2955_v1  ;;  %2638 = vmatprep.subr.bf16.mxu1 %v2955_v1  ;;  %v2756_v0 = vld [vmem:[%s3013_s28 + $0x98] ss:$12 sps:$4 sm:$0xff]   ;;  %v2758_v2 = vld [vmem:[%s3013_s28 + $0xb0] ss:$12 sps:$4 sm:$0xff]   ;;  %v2761_v4 = vld [vmem:[%s3013_s28 + $0xc8] ss:$12 sps:$4 sm:$0xff]  }
  0x21   : > { %v2759_v3 = vld [vmem:[%s3013_s28 + $0x124] ss:$12 sps:$4 sm:$0xff]   ;;  %v2762_v5 = vld [vmem:[%s3013_s28 + $0x120] ss:$12 sps:$4 sm:$0xff]   ;;  %v2764_v7 = vld [vmem:[%s3013_s28 + $0x13c] ss:$12 sps:$4 sm:$0xff]  }
  0x22   : > { %v2763_v6 = vld [vmem:[%s3013_s28 + $0xe0] ss:$12 sps:$4 sm:$0xff]   ;;  %v2766_v8 = vld [vmem:[%s3013_s28 + $0xf8] ss:$12 sps:$4 sm:$0xff]  }
  0x23   : > { %1049 = vmatpush1.bf16.msra.mxu0 %v2680_v10  ;;  %2654 = vmatpush1.bf16.msra.mxu1 %v2680_v10  ;;  %v2767_v9 = vld [vmem:[%s3013_s28 + $0x138] ss:$12 sps:$4 sm:$0xff]   ;;  %v2768_v10 = vld [vmem:[%s3013_s28 + $0x110] ss:$12 sps:$4 sm:$0xff]  }
  0x24   : > { %1050 = vmatprep.subr.bf16.mxu0 %v2955_v1  ;;  %2639 = vmatprep.subr.bf16.mxu1 %v2955_v1 }
  0x27   : > { %1051 = vmatpush1.bf16.msra.mxu0 %v2681_v11  ;;  %2655 = vmatpush1.bf16.msra.mxu1 %v2681_v11  ;;  %v2769_v11 = vld [vmem:[%s3013_s28 + $0x154] ss:$12 sps:$4 sm:$0xff]  }
  0x28   : > { %1052 = vmatprep.subr.bf16.mxu0 %v2955_v1  ;;  %2640 = vmatprep.subr.bf16.mxu1 %v2955_v1 }
  0x2b   : > { %1053 = vmatpush1.bf16.msra.mxu0 %v2682_v12  ;;  %2656 = vmatpush1.bf16.msra.mxu1 %v2682_v12  ;;  %v2771_v12 = vld [vmem:[%s3013_s28 + $0x128] ss:$12 sps:$4 sm:$0xff]  }
  0x2c   : > { %1054 = vmatprep.subr.bf16.mxu0 %v2955_v1  ;;  %2641 = vmatprep.subr.bf16.mxu1 %v2955_v1 }
  0x2f   : > { %1055 = vmatpush1.bf16.msra.mxu0 %v2683_v13  ;;  %2657 = vmatpush1.bf16.msra.mxu1 %v2683_v13  ;;  %v2772_v13 = vld [vmem:[%s3013_s28 + $0x150] ss:$12 sps:$4 sm:$0xff]  }
  0x30   : > { %1056 = vmatprep.subr.bf16.mxu0 %v2955_v1  ;;  %2642 = vmatprep.subr.bf16.mxu1 %v2955_v1 }
  0x33   : > { %1057 = vmatpush1.bf16.msra.mxu0 %v2684_v14  ;;  %2658 = vmatpush1.bf16.msra.mxu1 %v2684_v14  ;;  %v2773_v14 = vld [vmem:[%s3013_s28 + $0x140] ss:$12 sps:$4 sm:$0xff]  }
  0x34   : > { %1058 = vmatprep.subr.bf16.mxu0 %v2955_v1  ;;  %2643 = vmatprep.subr.bf16.mxu1 %v2955_v1 }
  0x37   : > { %1059 = vmatpush1.bf16.msra.mxu0 %v2685_v15  ;;  %2659 = vmatpush1.bf16.msra.mxu1 %v2685_v15  ;;  %v2774_v15 = vld [vmem:[%s3013_s28 + $0x16c] ss:$12 sps:$4 sm:$0xff]  }
  0x38   : > { %1060 = vmatprep.subr.bf16.mxu0 %v2955_v1  ;;  %2644 = vmatprep.subr.bf16.mxu1 %v2955_v1 }
  0x3b   : > { %1061 = vmatpush1.bf16.msra.mxu0 %v2686_v16  ;;  %2660 = vmatpush1.bf16.msra.mxu1 %v2686_v16  ;;  %v2776_v16 = vld [vmem:[%s3013_s28 + $0x158] ss:$12 sps:$4 sm:$0xff]  }
  0x3c   : > { %1062 = vmatprep.subr.bf16.mxu0 %v2955_v1  ;;  %2645 = vmatprep.subr.bf16.mxu1 %v2955_v1 }
  0x3f   : > { %1063 = vmatpush1.bf16.msra.mxu0 %v2687_v17  ;;  %2661 = vmatpush1.bf16.msra.mxu1 %v2687_v17  ;;  %v2777_v17 = vld [vmem:[%s3013_s28 + $0x168] ss:$12 sps:$4 sm:$0xff]  }
  0x40   : > { %1064 = vmatprep.subr.bf16.mxu0 %v2955_v1  ;;  %2646 = vmatprep.subr.bf16.mxu1 %v2955_v1  ;;  %v2757_v1 = vld [vmem:[%s3013_s28 + $0x108] ss:$12 sps:$4 sm:$0xff]  }
  0x43   : > { %1065 = vmatpush1.bf16.msra.mxu0 %v2688_v18  ;;  %2662 = vmatpush1.bf16.msra.mxu1 %v2688_v18  ;;  %v2778_v18 = vld [vmem:[%s3013_s28 + $0x170] ss:$12 sps:$4 sm:$0xff]  }
  0x44   : > { %2563 = vmatprep.subr.bf16.mxu1 %v2695_v19 }
  0x46   : > { %1067 = vmatmul.mubr.bf16.vlgmr.msra.gmra.mrb[0].mxu0 %v2689_v20  ;;  %1259 = vmatmul.mubr.bf16.vlgmr.msra.gmra.mrb[0].mxu1 %v2692_v21  ;;  %v2781_v20 = vld [vmem:[%s3013_s28 + $0x188] ss:$12 sps:$4 sm:$0xff]   ;;  %v2782_v21 = vld [vmem:[%s3013_s28 + $0x180] ss:$12 sps:$4 sm:$0xff]  }
  0x47   : > { %2564 = vmatpush3.bf16.msra.mxu1 %v2695_v19  ;;  %1074 = vmatprep.mubr.bf16.mxu0 %v2696_v22  ;;  %v2779_v19 = vld [vmem:[%s3013_s28 + $0x184] ss:$12 sps:$4 sm:$0xff]   ;;  %v2783_v22 = vld [vmem:[%s3013_s28 + $0x1a0] ss:$12 sps:$4 sm:$0xff]  }
  0x48   : > { %1266 = vmatprep.mubr.bf16.mxu1 %v2698_v23  ;;  %2565 = vmatprep.subr.bf16.mxu1 %v2720_v24  ;;  %v2784_v23 = vld [vmem:[%s3013_s28 + $0x19c] ss:$12 sps:$4 sm:$0xff]  }
  0x4b   : > { %2566 = vmatpush3.bf16.msra.mxu1 %v2720_v24  ;;  %v2786_v24 = vld [vmem:[%s3013_s28 + $0x1b8] ss:$12 sps:$4 sm:$0xff]  }
  0x4e   : > { %1075 = vmatmul.mubr.bf16.gmra.mrb[4].mxu0 %v2700_v25  ;;  %1267 = vmatmul.mubr.bf16.gmra.mrb[4].mxu1 %v2701_v26  ;;  %v2787_v25 = vld [vmem:[%s3013_s28 + $0x198] ss:$12 sps:$4 sm:$0xff]   ;;  %v2788_v26 = vld [vmem:[%s3013_s28 + $0x1d0] ss:$12 sps:$4 sm:$0xff]  }
  0x4f   : > { %1082 = vmatprep.mubr.bf16.mxu0 %v2702_v27  ;;  %1274 = vmatprep.mubr.bf16.mxu1 %v2704_v28  ;;  %v2789_v27 = vld [vmem:[%s3013_s28 + $0x1b4] ss:$12 sps:$4 sm:$0xff]  }
  0x50   : > { %v2791_v28 = vld [vmem:[%s3013_s28 + $0x1e8] ss:$12 sps:$4 sm:$0xff]  }
  0x56   : > { %1083 = vmatmul.mubr.bf16.gmra.mrb[8].mxu0 %v2706_v29  ;;  %1275 = vmatmul.mubr.bf16.gmra.mrb[8].mxu1 %v2707_v30  ;;  %v2792_v29 = vld [vmem:[%s3013_s28 + $0x1b0] ss:$12 sps:$4 sm:$0xff]   ;;  %v2793_v30 = vld [vmem:[%s3013_s28 + $0x200] ss:$12 sps:$4 sm:$0xff]  }
  0x57   : > { %1090 = vmatprep.mubr.bf16.mxu0 %v2708_v31  ;;  %1282 = vmatprep.mubr.bf16.mxu1 %v2710_v32  ;;  %v2794_v31 = vld [vmem:[%s3013_s28 + $0x1cc] ss:$12 sps:$4 sm:$0xff]  }
  0x58   : > { %v2796_v32 = vld [vmem:[%s3013_s28 + $0x218] ss:$12 sps:$4 sm:$0xff]  }
  0x5e   : > { %1091 = vmatmul.mubr.bf16.gmra.mrb[12].mxu0 %v2712_v33  ;;  %1283 = vmatmul.mubr.bf16.gmra.mrb[12].mxu1 %v2713_v34  ;;  %v2797_v33 = vld [vmem:[%s3013_s28 + $0x1c8] ss:$12 sps:$4 sm:$0xff]   ;;  %v2798_v34 = vld [vmem:[%s3013_s28 + $0x230] ss:$12 sps:$4 sm:$0xff]  }
  0x5f   : > { %1098 = vmatprep.mubr.bf16.mxu0 %v2714_v35  ;;  %1290 = vmatprep.mubr.bf16.mxu1 %v2716_v36  ;;  %v2799_v35 = vld [vmem:[%s3013_s28 + $0x1e4] ss:$12 sps:$4 sm:$0xff]   ;;  %v2801_v36 = vld [vmem:[%s3013_s28 + $0x248] ss:$12 sps:$4 sm:$0xff]  }
  0x66   : > { %1099 = vmatmul.mubr.bf16.gmra.mrb[16].mxu0 %v2718_v37  ;;  %1291 = vmatmul.mubr.bf16.gmra.mrb[16].mxu1 %v2719_v38  ;;  %v2802_v37 = vld [vmem:[%s3013_s28 + $0x1e0] ss:$12 sps:$4 sm:$0xff]  }
  0x67   : > { %1106 = vmatprep.mubr.bf16.mxu0 %v2721_v39  ;;  %1298 = vmatprep.mubr.bf16.mxu1 %v2723_v40  ;;  %v2803_v38 = vld [vmem:[%s3013_s28 + $0x260] ss:$12 sps:$4 sm:$0xff]   ;;  %v2804_v39 = vld [vmem:[%s3013_s28 + $0x1fc] ss:$12 sps:$4 sm:$0xff]   ;;  %v2806_v40 = vld [vmem:[%s3013_s28 + $0x278] ss:$12 sps:$4 sm:$0xff]  }
  0x6e   : > { %1107 = vmatmul.mubr.bf16.gmra.mrb[20].mxu0 %v2725_v41  ;;  %1299 = vmatmul.mubr.bf16.gmra.mrb[20].mxu1 %v2726_v42  ;;  %v2807_v41 = vld [vmem:[%s3013_s28 + $0x1f8] ss:$12 sps:$4 sm:$0xff]   ;;  %v2808_v42 = vld [vmem:[%s3013_s28 + $0x290] ss:$12 sps:$4 sm:$0xff]  }
  0x6f   : > { %1114 = vmatprep.mubr.bf16.mxu0 %v2727_v43  ;;  %1306 = vmatprep.mubr.bf16.mxu1 %v2729_v44  ;;  %v2809_v43 = vld [vmem:[%s3013_s28 + $0x214] ss:$12 sps:$4 sm:$0xff]  }
  0x70   : > { %v2811_v44 = vld [vmem:[%s3013_s28 + $0x2a8] ss:$12 sps:$4 sm:$0xff]  }
  0x76   : > { %1115 = vmatmul.mubr.bf16.gmra.mrb[24].mxu0 %v2731_v45  ;;  %1307 = vmatmul.mubr.bf16.gmra.mrb[24].mxu1 %v2732_v46  ;;  %v2812_v45 = vld [vmem:[%s3013_s28 + $0x210] ss:$12 sps:$4 sm:$0xff]   ;;  %v2813_v46 = vld [vmem:[%s3013_s28 + $0x2c0] ss:$12 sps:$4 sm:$0xff]  }
  0x77   : > { %1122 = vmatprep.mubr.bf16.mxu0 %v2733_v47  ;;  %1314 = vmatprep.mubr.bf16.mxu1 %v2735_v48  ;;  %v2814_v47 = vld [vmem:[%s3013_s28 + $0x22c] ss:$12 sps:$4 sm:$0xff]  }
  0x78   : > { %v2816_v48 = vld [vmem:[%s3013_s28 + $0x2d8] ss:$12 sps:$4 sm:$0xff]  }
  0x7e   : > { %1123 = vmatmul.mubr.bf16.gmra.mrb[28].mxu0 %v2737_v49  ;;  %1315 = vmatmul.mubr.bf16.gmra.mrb[28].mxu1 %v2738_v50  ;;  %v2817_v49 = vld [vmem:[%s3013_s28 + $0x228] ss:$12 sps:$4 sm:$0xff]   ;;  %v2818_v50 = vld [vmem:[%s3013_s28 + $0x2f0] ss:$12 sps:$4 sm:$0xff]  }
  0x7f   : > { %1130 = vmatprep.mubr.bf16.mxu0 %v2739_v51  ;;  %2567 = vmatprep.mubr.msk.bf16.mxu1 %vm937_vm0, %v2741_v52 }
  0x86   : > { %1131 = vmatmul.mubr.bf16.gmra.mrb[32].mxu0 %v2742_v53  ;;  %2568 = vmatmul.mubr.msk.bf16.vlgmr.msra.gmra.mrb[32].mxu1 %vm937_vm0, %v2743_v54 }
  0x87   : > { %1138 = vmatprep.mubr.bf16.mxu0 %v2744_v55  ;;  %2571 = vmatprep.mubr.msk.bf16.mxu1 %vm937_vm0, %v2746_v56 }
  0x8e   : > { %1139 = vmatmul.mubr.bf16.gmra.mrb[36].mxu0 %v2747_v57  ;;  %2572 = vmatmul.mubr.msk.bf16.gmra.mrb[36].mxu1 %vm937_vm0, %v2748_v58 }
  0x8f   : > { %1146 = vmatprep.mubr.bf16.mxu0 %v2749_v59  ;;  %2575 = vmatprep.mubr.msk.bf16.mxu1 %vm937_vm0, %v2751_v60 }
  0x96   : > { %1147 = vmatmul.mubr.bf16.gmra.mrb[40].mxu0 %v2752_v61  ;;  %2576 = vmatmul.mubr.msk.bf16.gmra.mrb[40].mxu1 %vm937_vm0, %v2753_v62 }
  0x97   : > { %1154 = vmatprep.mubr.bf16.mxu0 %v2754_v63  ;;  %2579 = vmatprep.mubr.msk.bf16.mxu1 %vm937_vm0, %v2756_v0 }
  0x9e   : > { %1155 = vmatmul.mubr.bf16.gmra.mrb[44].mxu0 %v2757_v1  ;;  %2580 = vmatmul.mubr.msk.bf16.gmra.mrb[44].mxu1 %vm937_vm0, %v2758_v2 }
  0x9f   : > { %1162 = vmatprep.mubr.bf16.mxu0 %v2759_v3  ;;  %2583 = vmatprep.mubr.msk.bf16.mxu1 %vm937_vm0, %v2761_v4 }
  0xa6   : > { %1163 = vmatmul.mubr.bf16.gmra.mrb[48].mxu0 %v2762_v5  ;;  %2584 = vmatmul.mubr.msk.bf16.gmra.mrb[48].mxu1 %vm937_vm0, %v2763_v6 }
  0xa7   : > { %1170 = vmatprep.mubr.bf16.mxu0 %v2764_v7  ;;  %2587 = vmatprep.mubr.msk.bf16.mxu1 %vm937_vm0, %v2766_v8 }
  0xae   : > { %1171 = vmatmul.mubr.bf16.gmra.mrb[52].mxu0 %v2767_v9  ;;  %2588 = vmatmul.mubr.msk.bf16.gmra.mrb[52].mxu1 %vm937_vm0, %v2768_v10 }
  0xaf   : > { %1178 = vmatprep.mubr.bf16.mxu0 %v2769_v11  ;;  %2591 = vmatprep.mubr.msk.bf16.mxu1 %vm937_vm0, %v2771_v12 }
  0xb6   : > { %1179 = vmatmul.mubr.bf16.gmra.mrb[56].mxu0 %v2772_v13  ;;  %2592 = vmatmul.mubr.msk.bf16.gmra.mrb[56].mxu1 %vm937_vm0, %v2773_v14 }
  0xb7   : > { %1186 = vmatprep.mubr.bf16.mxu0 %v2774_v15  ;;  %2595 = vmatprep.mubr.msk.bf16.mxu1 %vm937_vm0, %v2776_v16 }
  0xbe   : > { %1187 = vmatmul.mubr.bf16.gmra.mrb[60].mxu0 %v2777_v17  ;;  %2596 = vmatmul.mubr.msk.bf16.gmra.mrb[60].mxu1 %vm937_vm0, %v2778_v18 }
  0xbf   : > { %1194 = vmatprep.mubr.bf16.mxu0 %v2779_v19  ;;  %2599 = vmatprep.mubr.msk.bf16.mxu1 %vm937_vm0, %v2781_v20 }
  0xc6   : > { %1195 = vmatmul.mubr.bf16.gmra.mrb[64].mxu0 %v2782_v21  ;;  %2600 = vmatmul.mubr.msk.bf16.gmra.mrb[64].mxu1 %vm937_vm0, %v2783_v22 }
  0xc7   : > { %1202 = vmatprep.mubr.bf16.mxu0 %v2784_v23  ;;  %2603 = vmatprep.mubr.msk.bf16.mxu1 %vm937_vm0, %v2786_v24 }
  0xce   : > { %1203 = vmatmul.mubr.bf16.gmra.mrb[68].mxu0 %v2787_v25  ;;  %2604 = vmatmul.mubr.msk.bf16.gmra.mrb[68].mxu1 %vm937_vm0, %v2788_v26 }
  0xcf   : > { %1210 = vmatprep.mubr.bf16.mxu0 %v2789_v27  ;;  %2607 = vmatprep.mubr.msk.bf16.mxu1 %vm937_vm0, %v2791_v28 }
  0xd6   : > { %1211 = vmatmul.mubr.bf16.gmra.mrb[72].mxu0 %v2792_v29  ;;  %2608 = vmatmul.mubr.msk.bf16.gmra.mrb[72].mxu1 %vm937_vm0, %v2793_v30 }
  0xd7   : > { %1218 = vmatprep.mubr.bf16.mxu0 %v2794_v31  ;;  %2611 = vmatprep.mubr.msk.bf16.mxu1 %vm937_vm0, %v2796_v32 }
  0xde   : > { %1219 = vmatmul.mubr.bf16.gmra.mrb[76].mxu0 %v2797_v33  ;;  %2612 = vmatmul.mubr.msk.bf16.gmra.mrb[76].mxu1 %vm937_vm0, %v2798_v34 }
  0xdf   : > { %1226 = vmatprep.mubr.bf16.mxu0 %v2799_v35  ;;  %2615 = vmatprep.mubr.msk.bf16.mxu1 %vm937_vm0, %v2801_v36 }
  0xe6   : > { %1227 = vmatmul.mubr.bf16.gmra.mrb[80].mxu0 %v2802_v37  ;;  %2616 = vmatmul.mubr.msk.bf16.gmra.mrb[80].mxu1 %vm937_vm0, %v2803_v38 }
  0xe7   : > { %1234 = vmatprep.mubr.bf16.mxu0 %v2804_v39  ;;  %2619 = vmatprep.mubr.msk.bf16.mxu1 %vm937_vm0, %v2806_v40 }
  0xee   : > { %1235 = vmatmul.mubr.bf16.gmra.mrb[84].mxu0 %v2807_v41  ;;  %2620 = vmatmul.mubr.msk.bf16.gmra.mrb[84].mxu1 %vm937_vm0, %v2808_v42 }
  0xef   : > { %1242 = vmatprep.mubr.bf16.mxu0 %v2809_v43  ;;  %2623 = vmatprep.mubr.msk.bf16.mxu1 %vm937_vm0, %v2811_v44 }
  0xf6   : > { %1243 = vmatmul.mubr.bf16.gmra.mrb[88].mxu0 %v2812_v45  ;;  %2624 = vmatmul.mubr.msk.bf16.gmra.mrb[88].mxu1 %vm937_vm0, %v2813_v46 }
  0xf7   : > { %1250 = vmatprep.mubr.bf16.mxu0 %v2814_v47  ;;  %2627 = vmatprep.mubr.msk.bf16.mxu1 %vm937_vm0, %v2816_v48 }
  0xfe   : > { %1251 = vmatmul.mubr.bf16.gmra.mrb[92].mxu0 %v2817_v49  ;;  %2628 = vmatmul.mubr.msk.bf16.gmra.mrb[92].mxu1 %vm937_vm0, %v2818_v50 }
 0x119   : > { %v3206_v51 = vpop.f32.mrb[0].mxu0  ;;  %v3208_v52 = vpop.f32.mrb[0].mxu1 }
 0x11a   : > { %v1070_v53 = vpop.f32.mrb[1].mxu0  ;;  %v1262_v54 = vpop.f32.mrb[1].mxu1 }
 0x11b   : > { %v3210_v55 = vpop.f32.mrb[2].mxu0  ;;  %v3212_v56 = vpop.f32.mrb[2].mxu1  ;;  %v3265_v53 = vld [vmem:[%s3438_s2] ss:$0 sm:$0xff] }
 0x11c   : > { %v1073_v57 = vpop.f32.mrb[3].mxu0  ;;  %v1265_v58 = vpop.f32.mrb[3].mxu1 }
 0x11d   : > { %v1069_v57 = vadd.f32 %v3265_v53, %v3206_v51 }
 0x121   : > { %v1076_v59 = vpop.f32.mrb[4].mxu0  ;;  %v3214_v60 = vpop.f32.mrb[4].mxu1 }
 0x122   : > { %v1078_v61 = vpop.f32.mrb[5].mxu0  ;;  %v1270_v62 = vpop.f32.mrb[5].mxu1  ;;  %v1077_v54 = vadd.f32 %v3265_v53, %v1076_v59 }
 0x123   : > { %v1079_v63 = vpop.f32.mrb[6].mxu0  ;;  %v3216_v0 = vpop.f32.mrb[6].mxu1 }
 0x124   : > { %v1081_v1 = vpop.f32.mrb[7].mxu0  ;;  %v1273_v2 = vpop.f32.mrb[7].mxu1  ;;  %v1080_v62 = vadd.f32 %v3265_v53, %v1079_v63 }
 0x129   : > { %v3218_v3 = vpop.f32.mrb[8].mxu0  ;;  %v3220_v4 = vpop.f32.mrb[8].mxu1 }
 0x12a   : > { %v1086_v5 = vpop.f32.mrb[9].mxu0  ;;  %v1278_v6 = vpop.f32.mrb[9].mxu1 }
 0x12b   : > { %v3222_v7 = vpop.f32.mrb[10].mxu0  ;;  %v3224_v8 = vpop.f32.mrb[10].mxu1  ;;  %v1072_v6 = vadd.f32 %v3265_v53, %v3210_v55 }
 0x12c   : > { %v1089_v9 = vpop.f32.mrb[11].mxu0  ;;  %v1281_v10 = vpop.f32.mrb[11].mxu1 }
 0x131   : > { %v1092_v11 = vpop.f32.mrb[12].mxu0  ;;  %v3226_v12 = vpop.f32.mrb[12].mxu1 }
 0x132   : > { %v1094_v13 = vpop.f32.mrb[13].mxu0  ;;  %v1286_v14 = vpop.f32.mrb[13].mxu1  ;;  %v1093_v63 = vadd.f32 %v3265_v53, %v1092_v11 }
 0x133   : > { %v1095_v15 = vpop.f32.mrb[14].mxu0  ;;  %v3228_v16 = vpop.f32.mrb[14].mxu1 }
 0x134   : > { %v1097_v17 = vpop.f32.mrb[15].mxu0  ;;  %v1289_v18 = vpop.f32.mrb[15].mxu1 }
 0x135   : > { %v1085_v18 = vadd.f32 %v3265_v53, %v3218_v3 }
 0x139   : > { %v3230_v19 = vpop.f32.mrb[16].mxu0  ;;  %v3232_v20 = vpop.f32.mrb[16].mxu1 }
 0x13a   : > { %v1102_v21 = vpop.f32.mrb[17].mxu0  ;;  %v1294_v22 = vpop.f32.mrb[17].mxu1 }
 0x13b   : > { %v3234_v23 = vpop.f32.mrb[18].mxu0  ;;  %v3236_v24 = vpop.f32.mrb[18].mxu1  ;;  %v1096_v22 = vadd.f32 %v3265_v53, %v1095_v15 }
 0x13c   : > { %v1105_v25 = vpop.f32.mrb[19].mxu0  ;;  %v1297_v26 = vpop.f32.mrb[19].mxu1 }
 0x141   : > { %v3238_v27 = vpop.f32.mrb[20].mxu0  ;;  %v3240_v28 = vpop.f32.mrb[20].mxu1 }
 0x142   : > { %v1110_v29 = vpop.f32.mrb[21].mxu0  ;;  %v1302_v30 = vpop.f32.mrb[21].mxu1 }
 0x143   : > { %v3242_v31 = vpop.f32.mrb[22].mxu0  ;;  %v3244_v32 = vpop.f32.mrb[22].mxu1  ;;  %v1088_v30 = vadd.f32 %v3265_v53, %v3222_v7 }
 0x144   : > { %v1113_v33 = vpop.f32.mrb[23].mxu0  ;;  %v1305_v34 = vpop.f32.mrb[23].mxu1 }
 0x149   : > { %v3246_v35 = vpop.f32.mrb[24].mxu0  ;;  %v3248_v36 = vpop.f32.mrb[24].mxu1 }
 0x14a   : > { %v1118_v37 = vpop.f32.mrb[25].mxu0  ;;  %v1310_v38 = vpop.f32.mrb[25].mxu1 }
 0x14b   : > { %v3250_v39 = vpop.f32.mrb[26].mxu0  ;;  %v3252_v40 = vpop.f32.mrb[26].mxu1 }
 0x14c   : > { %v1121_v41 = vpop.f32.mrb[27].mxu0  ;;  %v1313_v42 = vpop.f32.mrb[27].mxu1 }
 0x151   : > { %v3254_v43 = vpop.f32.mrb[28].mxu0  ;;  %v3256_v44 = vpop.f32.mrb[28].mxu1 }
 0x152   : > { %v1126_v45 = vpop.f32.mrb[29].mxu0  ;;  %v1318_v46 = vpop.f32.mrb[29].mxu1 }
 0x153   : > { %v3258_v47 = vpop.f32.mrb[30].mxu0  ;;  %v3260_v48 = vpop.f32.mrb[30].mxu1  ;;  %v1109_v46 = vadd.f32 %v3265_v53, %v3238_v27 }
 0x154   : > { %v1129_v49 = vpop.f32.mrb[31].mxu0  ;;  %v1321_v50 = vpop.f32.mrb[31].mxu1 }
 0x155   : > { %v1101_v49 = vadd.f32 %v3265_v53, %v3230_v19 }
 0x159   : > { %v3270_v58 = vpop.f32.mrb[32].mxu0  ;;  %v2569_v61 = vpop.f32.mrb[32].mxu1 }
 0x15a   : > { %v1366_v1 = vadd.f32 %v2569_v61, %v1077_v54  ;;  %v1134_v2 = vpop.f32.mrb[33].mxu0  ;;  %v1357_v5 = vpop.f32.mrb[33].mxu1  ;;  %v1112_v61 = vadd.f32 %v3265_v53, %v3242_v31 }
 0x15b   : > { %v1358_v9 = vadd.f32 %v1357_v5, %v1069_v57  ;;  %v3275_v10 = vpop.f32.mrb[34].mxu0  ;;  %v2570_v13 = vpop.f32.mrb[34].mxu1  ;;  %v1104_v5 = vadd.f32 %v3265_v53, %v3234_v23  ;;  %v1125_v23 = vadd.f32 %v3265_v53, %v3254_v43 }
 0x15c   : > { %2819 = vtanh.f32 %v1366_v1  ;;  %v1369_v59 = vadd.f32 %v2570_v13, %v1080_v62  ;;  %v1137_v14 = vpop.f32.mrb[35].mxu0  ;;  %v1360_v17 = vpop.f32.mrb[35].mxu1 }
 0x15d   : > { %2821 = vtanh.f32 %v1358_v9  ;;  %v1361_v51 = vadd.f32 %v1360_v17, %v1072_v6 }
 0x15e   : > { %2823 = vtanh.f32 %v1369_v59 }
 0x15f   : > { %2825 = vtanh.f32 %v1361_v51 }
 0x161   : > { %v3280_v21 = vpop.f32.mrb[36].mxu0  ;;  %v2573_v55 = vpop.f32.mrb[36].mxu1 }
 0x162   : > { %v1382_v25 = vadd.f32 %v2573_v55, %v1093_v63  ;;  %v1142_v26 = vpop.f32.mrb[37].mxu0  ;;  %v1373_v29 = vpop.f32.mrb[37].mxu1  ;;  %v1117_v55 = vadd.f32 %v3265_v53, %v3246_v35 }
 0x163   : > { %v1374_v33 = vadd.f32 %v1373_v29, %v1085_v18  ;;  %v3285_v34 = vpop.f32.mrb[38].mxu0  ;;  %v2574_v37 = vpop.f32.mrb[38].mxu1  ;;  %v1128_v29 = vadd.f32 %v3265_v53, %v3258_v47 }
 0x164   : > { %2827 = vtanh.f32 %v1382_v25  ;;  %v1385_v11 = vadd.f32 %v2574_v37, %v1096_v22  ;;  %v1145_v38 = vpop.f32.mrb[39].mxu0  ;;  %v1376_v41 = vpop.f32.mrb[39].mxu1 }
 0x165   : > { %2829 = vtanh.f32 %v1374_v33  ;;  %v1377_v3 = vadd.f32 %v1376_v41, %v1088_v30  ;;  %v1120_v38 = vadd.f32 %v3265_v53, %v3250_v39  ;;  %v1141_v39 = vadd.f32 %v3265_v53, %v3280_v21 }
 0x166   : > { %v2820_v42 = vpop.eup %2819  ;;  %2831 = vtanh.f32 %v1385_v11 }
 0x167   : > { %v2822_v15 = vpop.eup %2821  ;;  %2833 = vtanh.f32 %v1377_v3 }
 0x168   : > { %v2824_v45 = vpop.eup %2823 }
 0x169   : > { %v2826_v7 = vpop.eup %2825  ;;  %v2346_v50 = vpack.c.bf16 %v2824_v45, %v2820_v42  ;;  %v3297_v54 = vpop.f32.mrb[40].mxu0 }
 0x16a   : > { %v2577_v57 = vpop.f32.mrb[40].mxu1  ;;  %v2341_v62 = vpack.c.bf16 %v2826_v7, %v2822_v15  ;;  %v1150_v1 = vpop.f32.mrb[41].mxu0 }
 0x16b   : > { %v1398_v27 = vadd.f32 %v2577_v57, %v1109_v46  ;;  %v1389_v2 = vpop.f32.mrb[41].mxu1  ;;  %2498 = vst [vmem:[%s3293_s8 + $0x8] sm:$0xff] %v2346_v50   ;;  %v3304_v9 = vpop.f32.mrb[42].mxu0  ;;  %v1133_v50 = vadd.f32 %v3265_v53, %v3270_v58 }
 0x16c   : > { %v1390_v6 = vadd.f32 %v1389_v2, %v1101_v49  ;;  %v2578_v13 = vpop.f32.mrb[42].mxu1  ;;  %2342 = vst [vmem:[%s3293_s8] sm:$0xff] %v2341_v62   ;;  %v1153_v59 = vpop.f32.mrb[43].mxu0 }
 0x16d   : > { %2835 = vtanh.f32 %v1398_v27  ;;  %v1401_v19 = vadd.f32 %v2578_v13, %v1112_v61  ;;  %v1392_v14 = vpop.f32.mrb[43].mxu1  ;;  %v1144_v27 = vadd.f32 %v3265_v53, %v3285_v34  ;;  %v1136_v13 = vadd.f32 %v3265_v53, %v3275_v10 }
 0x16e   : > { %2837 = vtanh.f32 %v1390_v6  ;;  %v1393_v17 = vadd.f32 %v1392_v14, %v1104_v5  ;;  %v2828_v31 = vpop.eup %2827 }
 0x16f   : > { %2839 = vtanh.f32 %v1401_v19  ;;  %v2830_v51 = vpop.eup %2829 }
 0x170   : > { %2841 = vtanh.f32 %v1393_v17  ;;  %v2832_v63 = vpop.eup %2831 }
 0x171   : > { %v2834_v18 = vpop.eup %2833  ;;  %v2356_v22 = vpack.c.bf16 %v2832_v63, %v2828_v31  ;;  %v1156_v25 = vpop.f32.mrb[44].mxu0 }
 0x172   : > { %v2581_v26 = vpop.f32.mrb[44].mxu1  ;;  %v2351_v30 = vpack.c.bf16 %v2834_v18, %v2830_v51  ;;  %v1158_v37 = vpop.f32.mrb[45].mxu0  ;;  %v1149_v18 = vadd.f32 %v3265_v53, %v3297_v54 }
 0x173   : > { %v1414_v33 = vadd.f32 %v2581_v26, %v1125_v23  ;;  %v1405_v11 = vpop.f32.mrb[45].mxu1  ;;  %2500 = vst [vmem:[%s3293_s8 + $0x18] sm:$0xff] %v2356_v22   ;;  %v1159_v41 = vpop.f32.mrb[46].mxu0  ;;  %v1157_v23 = vadd.f32 %v3265_v53, %v1156_v25 }
 0x174   : > { %v1406_v43 = vadd.f32 %v1405_v11, %v1117_v55  ;;  %v2582_v3 = vpop.f32.mrb[46].mxu1  ;;  %2499 = vst [vmem:[%s3293_s8 + $0x10] sm:$0xff] %v2351_v30   ;;  %v1161_v42 = vpop.f32.mrb[47].mxu0 }
 0x175   : > { %2843 = vtanh.f32 %v1414_v33  ;;  %v1417_v35 = vadd.f32 %v2582_v3, %v1128_v29  ;;  %v1408_v15 = vpop.f32.mrb[47].mxu1  ;;  %v1160_v29 = vadd.f32 %v3265_v53, %v1159_v41 }
 0x176   : > { %2845 = vtanh.f32 %v1406_v43  ;;  %v1409_v45 = vadd.f32 %v1408_v15, %v1120_v38  ;;  %v1152_v38 = vadd.f32 %v3265_v53, %v3304_v9 }
 0x177   : > { %v2836_v46 = vpop.eup %2835  ;;  %2847 = vtanh.f32 %v1417_v35 }
 0x178   : > { %v2838_v47 = vpop.eup %2837  ;;  %2849 = vtanh.f32 %v1409_v45 }
 0x179   : > { %v2840_v7 = vpop.eup %2839  ;;  %v1164_v61 = vpop.f32.mrb[48].mxu0 }
 0x17a   : > { %v2842_v49 = vpop.eup %2841  ;;  %v2366_v57 = vpack.c.bf16 %v2840_v7, %v2836_v46  ;;  %v2585_v62 = vpop.f32.mrb[48].mxu1  ;;  %v1165_v7 = vadd.f32 %v3265_v53, %v1164_v61 }
 0x17b   : > { %v2361_v1 = vpack.c.bf16 %v2842_v49, %v2838_v47  ;;  %v1430_v2 = vadd.f32 %v2585_v62, %v1141_v39  ;;  %v1166_v5 = vpop.f32.mrb[49].mxu0  ;;  %v1421_v6 = vpop.f32.mrb[49].mxu1 }
 0x17c   : > { %2502 = vst [vmem:[%s3293_s8 + $0x28] sm:$0xff] %v2366_v57   ;;  %v1422_v21 = vadd.f32 %v1421_v6, %v1133_v50  ;;  %v1167_v19 = vpop.f32.mrb[50].mxu0  ;;  %v2586_v59 = vpop.f32.mrb[50].mxu1 }
 0x17d   : > { %2501 = vst [vmem:[%s3293_s8 + $0x20] sm:$0xff] %v2361_v1   ;;  %2851 = vtanh.f32 %v1430_v2  ;;  %v1433_v58 = vadd.f32 %v2586_v59, %v1144_v27  ;;  %v1169_v14 = vpop.f32.mrb[51].mxu0  ;;  %v1424_v17 = vpop.f32.mrb[51].mxu1  ;;  %v1168_v5 = vadd.f32 %v3265_v53, %v1167_v19 }
 0x17e   : > { %2853 = vtanh.f32 %v1422_v21  ;;  %v1425_v31 = vadd.f32 %v1424_v17, %v1136_v13 }
 0x17f   : > { %v2844_v51 = vpop.eup %2843  ;;  %2855 = vtanh.f32 %v1433_v58 }
 0x180   : > { %v2846_v34 = vpop.eup %2845  ;;  %2857 = vtanh.f32 %v1425_v31 }
 0x181   : > { %v2848_v63 = vpop.eup %2847  ;;  %v1172_v22 = vpop.f32.mrb[52].mxu0 }
 0x182   : > { %v2850_v10 = vpop.eup %2849  ;;  %v2376_v55 = vpack.c.bf16 %v2848_v63, %v2844_v51  ;;  %v2589_v26 = vpop.f32.mrb[52].mxu1  ;;  %v1173_v47 = vadd.f32 %v3265_v53, %v1172_v22 }
 0x183   : > { %v2371_v30 = vpack.c.bf16 %v2850_v10, %v2846_v34  ;;  %v1446_v33 = vadd.f32 %v2589_v26, %v1157_v23  ;;  %v1174_v37 = vpop.f32.mrb[53].mxu0  ;;  %v1437_v11 = vpop.f32.mrb[53].mxu1 }
 0x184   : > { %2504 = vst [vmem:[%s3293_s8 + $0x38] sm:$0xff] %v2376_v55   ;;  %v1438_v43 = vadd.f32 %v1437_v11, %v1149_v18  ;;  %v1175_v25 = vpop.f32.mrb[54].mxu0  ;;  %v2590_v3 = vpop.f32.mrb[54].mxu1 }
 0x185   : > { %2503 = vst [vmem:[%s3293_s8 + $0x30] sm:$0xff] %v2371_v30   ;;  %2859 = vtanh.f32 %v1446_v33  ;;  %v1449_v35 = vadd.f32 %v2590_v3, %v1160_v29  ;;  %v1177_v54 = vpop.f32.mrb[55].mxu0  ;;  %v1440_v42 = vpop.f32.mrb[55].mxu1  ;;  %v1176_v62 = vadd.f32 %v3265_v53, %v1175_v25 }
 0x186   : > { %2861 = vtanh.f32 %v1438_v43  ;;  %v1441_v15 = vadd.f32 %v1440_v42, %v1152_v38 }
 0x187   : > { %v2852_v45 = vpop.eup %2851  ;;  %2863 = vtanh.f32 %v1449_v35 }
 0x188   : > { %v2854_v41 = vpop.eup %2853  ;;  %2865 = vtanh.f32 %v1441_v15 }
 0x189   : > { %v2856_v46 = vpop.eup %2855  ;;  %v1180_v49 = vpop.f32.mrb[56].mxu0 }
 0x18a   : > { %v2858_v9 = vpop.eup %2857  ;;  %v2386_v39 = vpack.c.bf16 %v2856_v46, %v2852_v45  ;;  %v2593_v50 = vpop.f32.mrb[56].mxu1  ;;  %v1181_v63 = vadd.f32 %v3265_v53, %v1180_v49 }
 0x18b   : > { %v2381_v57 = vpack.c.bf16 %v2858_v9, %v2854_v41  ;;  %v1462_v27 = vadd.f32 %v2593_v50, %v1173_v47  ;;  %v1182_v1 = vpop.f32.mrb[57].mxu0  ;;  %v1453_v2 = vpop.f32.mrb[57].mxu1 }
 0x18c   : > { %2506 = vst [vmem:[%s3293_s8 + $0x48] sm:$0xff] %v2386_v39   ;;  %v1454_v6 = vadd.f32 %v1453_v2, %v1165_v7  ;;  %v1183_v13 = vpop.f32.mrb[58].mxu0  ;;  %v2594_v21 = vpop.f32.mrb[58].mxu1 }
 0x18d   : > { %2505 = vst [vmem:[%s3293_s8 + $0x40] sm:$0xff] %v2381_v57   ;;  %2867 = vtanh.f32 %v1462_v27  ;;  %v1465_v59 = vadd.f32 %v2594_v21, %v1176_v62  ;;  %v1185_v58 = vpop.f32.mrb[59].mxu0  ;;  %v1456_v61 = vpop.f32.mrb[59].mxu1  ;;  %v1184_v29 = vadd.f32 %v3265_v53, %v1183_v13 }
 0x18e   : > { %2869 = vtanh.f32 %v1454_v6  ;;  %v1457_v14 = vadd.f32 %v1456_v61, %v1168_v5 }
 0x18f   : > { %v2860_v17 = vpop.eup %2859  ;;  %2871 = vtanh.f32 %v1465_v59 }
 0x190   : > { %v2862_v31 = vpop.eup %2861  ;;  %2873 = vtanh.f32 %v1457_v14 }
 0x191   : > { %v2864_v51 = vpop.eup %2863  ;;  %v1188_v23 = vpop.f32.mrb[60].mxu0 }
 0x192   : > { %v2866_v34 = vpop.eup %2865  ;;  %v2396_v19 = vpack.c.bf16 %v2864_v51, %v2860_v17  ;;  %v2597_v10 = vpop.f32.mrb[60].mxu1  ;;  %v1189_v55 = vadd.f32 %v3265_v53, %v1188_v23 }
 0x193   : > { %v2391_v18 = vpack.c.bf16 %v2866_v34, %v2862_v31  ;;  %v1190_v22 = vpop.f32.mrb[61].mxu0  ;;  %v1469_v26 = vpop.f32.mrb[61].mxu1 }
 0x194   : > { %2508 = vst [vmem:[%s3293_s8 + $0x58] sm:$0xff] %v2396_v19   ;;  %v1470_v30 = vadd.f32 %v1469_v26, %v1181_v63  ;;  %v1191_v33 = vpop.f32.mrb[62].mxu0  ;;  %v2598_v37 = vpop.f32.mrb[62].mxu1  ;;  %v1478_v11 = vadd.f32 %v2597_v10, %v1189_v55 }
 0x195   : > { %2507 = vst [vmem:[%s3293_s8 + $0x50] sm:$0xff] %v2391_v18   ;;  %v1192_v38 = vadd.f32 %v3265_v53, %v1191_v33  ;;  %v1193_v43 = vpop.f32.mrb[63].mxu0  ;;  %v1472_v25 = vpop.f32.mrb[63].mxu1 }
 0x196   : > { %2875 = vtanh.f32 %v1470_v30  ;;  %v1473_v3 = vadd.f32 %v1472_v25, %v1184_v29 }
 0x197   : > { %v2868_v35 = vpop.eup %2867  ;;  %2877 = vtanh.f32 %v1478_v11  ;;  %v1481_v54 = vadd.f32 %v2598_v37, %v1192_v38 }
 0x198   : > { %v2870_v42 = vpop.eup %2869  ;;  %2879 = vtanh.f32 %v1473_v3 }
 0x199   : > { %v2872_v15 = vpop.eup %2871  ;;  %2881 = vtanh.f32 %v1481_v54  ;;  %v1196_v46 = vpop.f32.mrb[64].mxu0 }
 0x19a   : > { %v2874_v45 = vpop.eup %2873  ;;  %v2406_v41 = vpack.c.bf16 %v2872_v15, %v2868_v35  ;;  %v2601_v47 = vpop.f32.mrb[64].mxu1  ;;  %v1197_v7 = vadd.f32 %v3265_v53, %v1196_v46 }
 0x19b   : > { %v2401_v9 = vpack.c.bf16 %v2874_v45, %v2870_v42  ;;  %v1198_v39 = vpop.f32.mrb[65].mxu0  ;;  %v1485_v49 = vpop.f32.mrb[65].mxu1 }
 0x19c   : > { %2510 = vst [vmem:[%s3293_s8 + $0x68] sm:$0xff] %v2406_v41   ;;  %v1199_v50 = vpop.f32.mrb[66].mxu0  ;;  %v2602_v57 = vpop.f32.mrb[66].mxu1  ;;  %v1486_v62 = vadd.f32 %v1485_v49, %v1197_v7 }
 0x19d   : > { %2509 = vst [vmem:[%s3293_s8 + $0x60] sm:$0xff] %v2401_v9   ;;  %v1200_v27 = vadd.f32 %v3265_v53, %v1199_v50  ;;  %v1201_v1 = vpop.f32.mrb[67].mxu0  ;;  %v1488_v2 = vpop.f32.mrb[67].mxu1 }
 0x19e   : > { %2883 = vtanh.f32 %v1486_v62 }
 0x19f   : > { %v1489_v5 = vadd.f32 %v1488_v2, %v1200_v27 }
 0x1a0   : > { %v2876_v6 = vpop.eup %2875 }
 0x1a1   : > { %v2878_v13 = vpop.eup %2877  ;;  %2885 = vtanh.f32 %v1489_v5  ;;  %v1204_v59 = vpop.f32.mrb[68].mxu0 }
 0x1a2   : > { %v2880_v21 = vpop.eup %2879  ;;  %v2605_v58 = vpop.f32.mrb[68].mxu1  ;;  %v1205_v17 = vadd.f32 %v3265_v53, %v1204_v59  ;;  %v1261_v59 = vadd.f32 %v3265_v53, %v3208_v52 }
 0x1a3   : > { %v2882_v61 = vpop.eup %2881  ;;  %v2411_v14 = vpack.c.bf16 %v2880_v21, %v2876_v6  ;;  %v1206_v31 = vpop.f32.mrb[69].mxu0 }
 0x1a4   : > { %v1501_v51 = vpop.f32.mrb[69].mxu1  ;;  %v2416_v34 = vpack.c.bf16 %v2882_v61, %v2878_v13  ;;  %v1207_v19 = vpop.f32.mrb[70].mxu0  ;;  %v1494_v23 = vadd.f32 %v2601_v47, %v1205_v17  ;;  %v1269_v13 = vadd.f32 %v3265_v53, %v3214_v60  ;;  %v1264_v60 = vadd.f32 %v3265_v53, %v3212_v56 }
 0x1a5   : > { %v2606_v63 = vpop.f32.mrb[70].mxu1  ;;  %2511 = vst [vmem:[%s3293_s8 + $0x70] sm:$0xff] %v2411_v14   ;;  %v1208_v10 = vadd.f32 %v3265_v53, %v1207_v19  ;;  %v1209_v18 = vpop.f32.mrb[71].mxu0  ;;  %v1285_v56 = vadd.f32 %v3265_v53, %v3226_v12  ;;  %v1280_v12 = vadd.f32 %v3265_v53, %v3224_v8 }
 0x1a6   : > { %v1504_v55 = vpop.f32.mrb[71].mxu1  ;;  %2512 = vst [vmem:[%s3293_s8 + $0x78] sm:$0xff] %v2416_v34   ;;  %2887 = vtanh.f32 %v1494_v23 }
 0x1a7   : > { %v1497_v22 = vadd.f32 %v2602_v57, %v1208_v10 }
 0x1a8   : > { %v2884_v26 = vpop.eup %2883 }
 0x1a9   : > { %2889 = vtanh.f32 %v1497_v22  ;;  %v1212_v29 = vpop.f32.mrb[72].mxu0  ;;  %v3355_v30 = vpop.f32.mrb[72].mxu1 }
 0x1aa   : > { %v1213_v37 = vadd.f32 %v3265_v53, %v1212_v29  ;;  %v1214_v11 = vpop.f32.mrb[73].mxu0  ;;  %v1517_v38 = vpop.f32.mrb[73].mxu1 }
 0x1ab   : > { %v2886_v33 = vpop.eup %2885  ;;  %v1215_v25 = vpop.f32.mrb[74].mxu0  ;;  %v1277_v11 = vadd.f32 %v3265_v53, %v3220_v4 }
 0x1ac   : > { %v2421_v43 = vpack.c.bf16 %v2886_v33, %v2884_v26  ;;  %v3358_v3 = vpop.f32.mrb[74].mxu1  ;;  %v1502_v35 = vadd.f32 %v1501_v51, %v1213_v37  ;;  %v1216_v54 = vadd.f32 %v3265_v53, %v1215_v25  ;;  %v1217_v42 = vpop.f32.mrb[75].mxu0 }
 0x1ad   : > { %v1520_v15 = vpop.f32.mrb[75].mxu1 }
 0x1ae   : > { %2513 = vst [vmem:[%s3293_s8 + $0x80] sm:$0xff] %v2421_v43   ;;  %v1505_v45 = vadd.f32 %v1504_v55, %v1216_v54  ;;  %2891 = vtanh.f32 %v1502_v35  ;;  %v1288_v35 = vadd.f32 %v3265_v53, %v3228_v16 }
 0x1b0   : > { %2893 = vtanh.f32 %v1505_v45  ;;  %v2888_v41 = vpop.eup %2887 }
 0x1b1   : > { %v1220_v46 = vpop.f32.mrb[76].mxu0  ;;  %v3362_v47 = vpop.f32.mrb[76].mxu1 }
 0x1b2   : > { %v1221_v7 = vadd.f32 %v3265_v53, %v1220_v46  ;;  %v1222_v39 = vpop.f32.mrb[77].mxu0  ;;  %v3365_v49 = vpop.f32.mrb[77].mxu1 }
 0x1b3   : > { %v2890_v9 = vpop.eup %2889  ;;  %v1223_v57 = vpop.f32.mrb[78].mxu0 }
 0x1b4   : > { %v2426_v50 = vpack.c.bf16 %v2890_v9, %v2888_v41  ;;  %v3367_v62 = vpop.f32.mrb[78].mxu1  ;;  %v1510_v27 = vadd.f32 %v2605_v58, %v1221_v7  ;;  %v1224_v1 = vadd.f32 %v3265_v53, %v1223_v57  ;;  %v1225_v2 = vpop.f32.mrb[79].mxu0  ;;  %v1272_v58 = vadd.f32 %v3265_v53, %v3216_v0 }
 0x1b5   : > { %v3370_v5 = vpop.f32.mrb[79].mxu1 }
 0x1b6   : > { %2514 = vst [vmem:[%s3293_s8 + $0x88] sm:$0xff] %v2426_v50   ;;  %v1513_v6 = vadd.f32 %v2606_v63, %v1224_v1  ;;  %2895 = vtanh.f32 %v1510_v27 }
 0x1b8   : > { %2897 = vtanh.f32 %v1513_v6  ;;  %v2892_v21 = vpop.eup %2891 }
 0x1b9   : > { %v1228_v61 = vpop.f32.mrb[80].mxu0  ;;  %v2617_v14 = vpop.f32.mrb[80].mxu1 }
 0x1ba   : > { %v2894_v17 = vpop.eup %2893  ;;  %v1229_v31 = vadd.f32 %v3265_v53, %v1228_v61  ;;  %v1558_v51 = vadd.f32 %v2617_v14, %v1269_v13  ;;  %v1230_v34 = vpop.f32.mrb[81].mxu0  ;;  %v1301_v13 = vadd.f32 %v3265_v53, %v3240_v28  ;;  %v1296_v28 = vadd.f32 %v3265_v53, %v3236_v24 }
 0x1bb   : > { %v1549_v19 = vpop.f32.mrb[81].mxu1  ;;  %v2431_v63 = vpack.c.bf16 %v2894_v17, %v2892_v21  ;;  %v1231_v10 = vpop.f32.mrb[82].mxu0  ;;  %v1293_v21 = vadd.f32 %v3265_v53, %v3232_v20 }
 0x1bc   : > { %v1550_v23 = vadd.f32 %v1549_v19, %v1261_v59  ;;  %v2618_v18 = vpop.f32.mrb[82].mxu1  ;;  %v1518_v52 = vadd.f32 %v1517_v38, %v1229_v31  ;;  %2899 = vtanh.f32 %v1558_v51  ;;  %v1232_v55 = vadd.f32 %v3265_v53, %v1231_v10  ;;  %v1233_v26 = vpop.f32.mrb[83].mxu0 }
 0x1bd   : > { %v1561_v22 = vadd.f32 %v2618_v18, %v1272_v58  ;;  %v1552_v0 = vpop.f32.mrb[83].mxu1  ;;  %2515 = vst [vmem:[%s3293_s8 + $0x90] sm:$0xff] %v2431_v63   ;;  %v1304_v19 = vadd.f32 %v3265_v53, %v3244_v32 }
 0x1be   : > { %2901 = vtanh.f32 %v1550_v23  ;;  %v1553_v29 = vadd.f32 %v1552_v0, %v1264_v60  ;;  %v1521_v33 = vadd.f32 %v1520_v15, %v1232_v55 }
 0x1bf   : > { %2903 = vtanh.f32 %v1518_v52 }
 0x1c0   : > { %2905 = vtanh.f32 %v1561_v22  ;;  %v2896_v37 = vpop.eup %2895 }
 0x1c1   : > { %2907 = vtanh.f32 %v1521_v33  ;;  %v1236_v38 = vpop.f32.mrb[84].mxu0  ;;  %v2621_v43 = vpop.f32.mrb[84].mxu1 }
 0x1c2   : > { %2909 = vtanh.f32 %v1553_v29  ;;  %v2898_v25 = vpop.eup %2897  ;;  %v1237_v54 = vadd.f32 %v3265_v53, %v1236_v38  ;;  %v1574_v42 = vadd.f32 %v2621_v43, %v1285_v56  ;;  %v1238_v15 = vpop.f32.mrb[85].mxu0 }
 0x1c3   : > { %v1565_v45 = vpop.f32.mrb[85].mxu1  ;;  %v2436_v41 = vpack.c.bf16 %v2898_v25, %v2896_v37  ;;  %v1239_v9 = vpop.f32.mrb[86].mxu0  ;;  %v1309_v37 = vadd.f32 %v3265_v53, %v3248_v36 }
 0x1c4   : > { %v1566_v46 = vadd.f32 %v1565_v45, %v1277_v11  ;;  %v2622_v4 = vpop.f32.mrb[86].mxu1  ;;  %v1526_v7 = vadd.f32 %v3355_v30, %v1237_v54  ;;  %2911 = vtanh.f32 %v1574_v42  ;;  %v1240_v39 = vadd.f32 %v3265_v53, %v1239_v9  ;;  %v1241_v16 = vpop.f32.mrb[87].mxu0 }
 0x1c5   : > { %v1577_v50 = vadd.f32 %v2622_v4, %v1288_v35  ;;  %v1568_v57 = vpop.f32.mrb[87].mxu1  ;;  %2516 = vst [vmem:[%s3293_s8 + $0x98] sm:$0xff] %v2436_v41   ;;  %v1320_v45 = vadd.f32 %v3265_v53, %v3260_v48 }
 0x1c6   : > { %2913 = vtanh.f32 %v1566_v46  ;;  %v1569_v27 = vadd.f32 %v1568_v57, %v1280_v12  ;;  %v2900_v1 = vpop.eup %2899  ;;  %v1529_v2 = vadd.f32 %v3358_v3, %v1240_v39 }
 0x1c7   : > { %2915 = vtanh.f32 %v1526_v7 }
 0x1c8   : > { %v2902_v8 = vpop.eup %2901  ;;  %2917 = vtanh.f32 %v1577_v50 }
 0x1c9   : > { %v2904_v6 = vpop.eup %2903  ;;  %2919 = vtanh.f32 %v1529_v2  ;;  %v1244_v59 = vpop.f32.mrb[88].mxu0 }
 0x1ca   : > { %v2906_v30 = vpop.eup %2905  ;;  %2921 = vtanh.f32 %v1569_v27  ;;  %v2625_v61 = vpop.f32.mrb[88].mxu1  ;;  %v1245_v58 = vadd.f32 %v3265_v53, %v1244_v59 }
 0x1cb   : > { %v2908_v14 = vpop.eup %2907  ;;  %v2466_v17 = vpack.c.bf16 %v2906_v30, %v2900_v1  ;;  %v1590_v3 = vadd.f32 %v2625_v61, %v1301_v13  ;;  %v1246_v31 = vpop.f32.mrb[89].mxu0 }
 0x1cc   : > { %v1581_v51 = vpop.f32.mrb[89].mxu1  ;;  %v2910_v34 = vpop.eup %2909  ;;  %v2441_v20 = vpack.c.bf16 %v2908_v14, %v2904_v6  ;;  %v1534_v18 = vadd.f32 %v3365_v49, %v1245_v58  ;;  %v1317_v49 = vadd.f32 %v3265_v53, %v3256_v44  ;;  %v1312_v44 = vadd.f32 %v3265_v53, %v3252_v40 }
 0x1cd   : > { %v1582_v60 = vadd.f32 %v1581_v51, %v1293_v21  ;;  %v1247_v63 = vpop.f32.mrb[90].mxu0  ;;  %v2626_v23 = vpop.f32.mrb[90].mxu1  ;;  %2522 = vst [vmem:[%s3293_s8 + $0xc8] sm:$0xff] %v2466_v17   ;;  %v2461_v10 = vpack.c.bf16 %v2910_v34, %v2902_v8  ;;  %2923 = vtanh.f32 %v1590_v3 }
 0x1ce   : > { %v1248_v52 = vadd.f32 %v3265_v53, %v1247_v63  ;;  %v1249_v55 = vpop.f32.mrb[91].mxu0  ;;  %v1584_v22 = vpop.f32.mrb[91].mxu1  ;;  %2517 = vst [vmem:[%s3293_s8 + $0xa0] sm:$0xff] %v2441_v20   ;;  %v1593_v24 = vadd.f32 %v2626_v23, %v1304_v19 }
 0x1cf   : > { %2925 = vtanh.f32 %v1582_v60  ;;  %v1585_v26 = vadd.f32 %v1584_v22, %v1296_v28  ;;  %v2912_v0 = vpop.eup %2911  ;;  %2521 = vst [vmem:[%s3293_s8 + $0xc0] sm:$0xff] %v2461_v10  }
 0x1d0   : > { %2927 = vtanh.f32 %v1534_v18  ;;  %v1537_v32 = vadd.f32 %v3370_v5, %v1248_v52  ;;  %v2914_v29 = vpop.eup %2913 }
 0x1d1   : > { %2929 = vtanh.f32 %v1593_v24  ;;  %v2916_v33 = vpop.eup %2915  ;;  %v1252_v11 = vpop.f32.mrb[92].mxu0 }
 0x1d2   : > { %2931 = vtanh.f32 %v1537_v32  ;;  %v2918_v56 = vpop.eup %2917  ;;  %v2629_v38 = vpop.f32.mrb[92].mxu1  ;;  %v1253_v35 = vadd.f32 %v3265_v53, %v1252_v11 }
 0x1d3   : > { %2933 = vtanh.f32 %v1585_v26  ;;  %v2920_v43 = vpop.eup %2919  ;;  %v2476_v25 = vpack.c.bf16 %v2918_v56, %v2912_v0  ;;  %v1606_v5 = vadd.f32 %v2629_v38, %v1317_v49  ;;  %v1254_v54 = vpop.f32.mrb[93].mxu0 }
 0x1d4   : > { %v1597_v42 = vpop.f32.mrb[93].mxu1  ;;  %v2922_v15 = vpop.eup %2921  ;;  %v2446_v36 = vpack.c.bf16 %v2920_v43, %v2916_v33  ;;  %v1542_v4 = vadd.f32 %v3362_v47, %v1253_v35 }
 0x1d5   : > { %v1598_v12 = vadd.f32 %v1597_v42, %v1309_v37  ;;  %v1255_v41 = vpop.f32.mrb[94].mxu0  ;;  %v2630_v46 = vpop.f32.mrb[94].mxu1  ;;  %2524 = vst [vmem:[%s3293_s8 + $0xd8] sm:$0xff] %v2476_v25   ;;  %v2471_v9 = vpack.c.bf16 %v2922_v15, %v2914_v29  ;;  %2935 = vtanh.f32 %v1606_v5 }
 0x1d6   : > { %v1256_v7 = vadd.f32 %v3265_v53, %v1255_v41  ;;  %v1257_v39 = vpop.f32.mrb[95].mxu0  ;;  %v1600_v50 = vpop.f32.mrb[95].mxu1  ;;  %2518 = vst [vmem:[%s3293_s8 + $0xa8] sm:$0xff] %v2446_v36   ;;  %v1609_v40 = vadd.f32 %v2630_v46, %v1320_v45 }
 0x1d7   : > { %2937 = vtanh.f32 %v1598_v12  ;;  %v1601_v16 = vadd.f32 %v1600_v50, %v1312_v44  ;;  %v2924_v48 = vpop.eup %2923  ;;  %2523 = vst [vmem:[%s3293_s8 + $0xd0] sm:$0xff] %v2471_v9  }
 0x1d8   : > { %2939 = vtanh.f32 %v1542_v4  ;;  %v1545_v57 = vadd.f32 %v3367_v62, %v1256_v7 }
 0x1d9   : > { %v2926_v27 = vpop.eup %2925  ;;  %2941 = vtanh.f32 %v1609_v40 }
 0x1da   : > { %v2928_v47 = vpop.eup %2927  ;;  %2943 = vtanh.f32 %v1545_v57 }
 0x1db   : > { %v2930_v1 = vpop.eup %2929  ;;  %2945 = vtanh.f32 %v1601_v16 }
 0x1dc   : > { %v2932_v53 = vpop.eup %2931  ;;  %v2486_v2 = vpack.c.bf16 %v2930_v1, %v2924_v48 }
 0x1dd   : > { %v2934_v8 = vpop.eup %2933  ;;  %v2451_v6 = vpack.c.bf16 %v2932_v53, %v2928_v47 }
 0x1de   : > { %2526 = vst [vmem:[%s3293_s8 + $0xe8] sm:$0xff] %v2486_v2   ;;  %v2481_v13 = vpack.c.bf16 %v2934_v8, %v2926_v27 }
 0x1df   : > { %2519 = vst [vmem:[%s3293_s8 + $0xb0] sm:$0xff] %v2451_v6   ;;  %v2936_v30 = vpop.eup %2935 }
 0x1e0   : > { %2525 = vst [vmem:[%s3293_s8 + $0xe0] sm:$0xff] %v2481_v13  }
 0x1e1   : > { %v2938_v21 = vpop.eup %2937 }
 0x1e2   : > { %v2940_v62 = vpop.eup %2939 }
 0x1e3   : > { %v2942_v59 = vpop.eup %2941 }
 0x1e4   : > { %v2944_v61 = vpop.eup %2943  ;;  %v2496_v14 = vpack.c.bf16 %v2942_v59, %v2936_v30 }
 0x1e5   : > { %v2946_v17 = vpop.eup %2945  ;;  %v2456_v58 = vpack.c.bf16 %v2944_v61, %v2940_v62 }
 0x1e6   : > { %2528 = vst [vmem:[%s3293_s8 + $0xf8] sm:$0xff] %v2496_v14   ;;  %v2491_v3 = vpack.c.bf16 %v2946_v17, %v2938_v21 }
 0x1e7   : > { %2520 = vst [vmem:[%s3293_s8 + $0xb8] sm:$0xff] %v2456_v58  }
 0x1e8   : > { %2527 = vst [vmem:[%s3293_s8 + $0xf0] sm:$0xff] %v2491_v3  }
 0x1e9 PF: > { %s13_s12 = sadd.s32 1, %s2953_s12  }
 0x1ea   : > { %p10_p4 = scmp.ge.s32.totalorder %s13_s12, 6  }
 0x1ec   :  { %12 = sbr.rel (!%p10_p4) target bundleno = 1 (0x1), region = 62 }

</bundles_post_ra>
